<compile_context>
chip_gen: v7x
topology: tpu7x:2x2x1
jax: 0.10.0
libtpu: 0.0.40
codegen_flags: <defaults>
</compile_context>

<pallas_src>
import jax
import jax.numpy as jnp
from jax import lax
from jax.experimental import pallas as pl
from jax.experimental.pallas import tpu as pltpu


# --------------------------------------------------------------------------- #
# kernel
# --------------------------------------------------------------------------- #
def _make_bidir_attn_kernel(tile_f, scale, mxu_dtype=jnp.float32):
    """tile_f: feat-token tile size (lane axis). scale: 1/sqrt(dim_head)."""
    cd = mxu_dtype

    def kernel(xf_ref,    # (Cf, tile_f)      feat tokens, channels-first (lane-dense tokens)
               xm_ref,    # (N_m, Cm)         semantic-map tokens, tokens-first (tiny)
               wfq_ref,   # (dh, Cf)          per-head feat  Q weights
               wfv_ref,   # (dh, Cf)          per-head feat  V weights
               wmq_ref,   # (Cm, dh)          per-head map   Q weights (pre-transposed)
               wmv_ref,   # (dh, Cm)          per-head map   V weights
               wfo_ref,   # (out_dim, dh)     per-head feat-out projection
               wmo_ref,   # (map_dim, dh)     per-head map-out  projection
               feat_o_ref,  # (out_dim, N_f)
               map_o_ref,   # (map_dim, N_m)
               facc,      # VMEM (out_dim, N_f)  f32   accumulates over heads
               macc,      # VMEM (map_dim, N_m)  f32   accumulates over heads
               run_max,   # VMEM (N_m, 1)        f32   online-softmax state over feat tiles
               run_sum,   # VMEM (N_m, 1)        f32
               run_acc):  # VMEM (N_m, dh)       f32
        h = pl.program_id(1)
        t = pl.program_id(2)
        last_h = pl.num_programs(1) - 1
        last_t = pl.num_programs(2) - 1

        # per-batch output accumulators (shared across heads & feat tiles)
        @pl.when(jnp.logical_and(h == 0, t == 0))
        def _():
            facc[...] = jnp.zeros_like(facc)
            macc[...] = jnp.zeros_like(macc)

        # per-(batch, head) online-softmax state over the feat-token axis
        @pl.when(t == 0)
        def _():
            run_max[...] = jnp.full_like(run_max, -jnp.inf)
            run_sum[...] = jnp.zeros_like(run_sum)
            run_acc[...] = jnp.zeros_like(run_acc)

        xf = xf_ref[...].astype(cd)                      # (Cf, Tf)
        xm = xm_ref[...].astype(cd)                      # (Nm, Cm)

        # --- per-head 1x1x1-conv projections (plain matmuls over channels) ---
        qf = jnp.dot(wfq_ref[...].astype(cd), xf,
                     preferred_element_type=jnp.float32)            # (dh, Tf)
        vf = jnp.dot(wfv_ref[...].astype(cd), xf,
                     preferred_element_type=jnp.float32)            # (dh, Tf)
        qm = jnp.dot(xm, wmq_ref[...].astype(cd),
                     preferred_element_type=jnp.float32)            # (Nm, dh)
        vm = lax.dot_general(wmv_ref[...].astype(cd), xm,
                             (((1,), (1,)), ((), ())),
                             preferred_element_type=jnp.float32)    # (dh, Nm)

        # attention logits, stored transposed: sT[m, i] = scale * <feat_q_i, map_q_m>
        sT = jnp.dot(qm.astype(cd), qf.astype(cd),
                     preferred_element_type=jnp.float32) * scale    # (Nm, Tf)

        # --------- feat branch: softmax over map tokens (axis 0 of sT) -------
        f_max = jnp.max(sT, axis=0, keepdims=True)                  # (1, Tf)
        f_exp = jnp.exp(sT - f_max)                                 # (Nm, Tf)
        a_fm_T = f_exp / jnp.sum(f_exp, axis=0, keepdims=True)      # (Nm, Tf)
        f_h = jnp.dot(vm.astype(cd), a_fm_T.astype(cd),
                      preferred_element_type=jnp.float32)           # (dh, Tf)
        off = pl.multiple_of(t * tile_f, tile_f)
        facc[:, pl.ds(off, tile_f)] += jnp.dot(
            wfo_ref[...].astype(cd), f_h.astype(cd),
            preferred_element_type=jnp.float32)                     # (out_dim, Tf)

        # ------ map branch: online softmax over feat tokens (axis 1 of sT) ---
        t_max = jnp.max(sT, axis=1, keepdims=True)                  # (Nm, 1)
        new_max = jnp.maximum(run_max[...], t_max)
        alpha = jnp.exp(run_max[...] - new_max)                     # (Nm, 1)
        p_T = jnp.exp(sT - new_max)                                 # (Nm, Tf)
        run_sum[...] = alpha * run_sum[...] + jnp.sum(p_T, axis=1, keepdims=True)
        run_acc[...] = alpha * run_acc[...] + lax.dot_general(
            p_T.astype(cd), vf.astype(cd), (((1,), (1,)), ((), ())),
            preferred_element_type=jnp.float32)                     # (Nm, dh)
        run_max[...] = new_max

        @pl.when(t == last_t)
        def _():
            m_h = run_acc[...] / run_sum[...]                       # (Nm, dh)
            macc[...] += lax.dot_general(
                wmo_ref[...].astype(cd), m_h.astype(cd),
                (((1,), (1,)), ((), ())),
                preferred_element_type=jnp.float32)                 # (map_dim, Nm)

        # single lane-dense store of both outputs at the very last (head, tile) step
        @pl.when(jnp.logical_and(h == last_h, t == last_t))
        def _():
            feat_o_ref[...] = facc[...].astype(feat_o_ref.dtype)
            map_o_ref[...] = macc[...].astype(map_o_ref.dtype)

    return kernel


# --------------------------------------------------------------------------- #
# weight layout plumbing (host side): undo PyTorch's interleaved head split
#   rearrange1/rearrange2 use channel index c = k*heads + h  (head is the INNER factor)
# --------------------------------------------------------------------------- #
def _split_qv_per_head(w_qv, heads, dim_head):
    # w_qv: (2*inner, Cin); first half = Q channels, second half = V channels
    inner = heads * dim_head
    q, v = w_qv[:inner], w_qv[inner:]
    q = q.reshape(dim_head, heads, -1).transpose(1, 0, 2)   # (heads, dh, Cin)
    v = v.reshape(dim_head, heads, -1).transpose(1, 0, 2)   # (heads, dh, Cin)
    return q, v


def _split_out_per_head(w_out, heads, dim_head):
    # w_out: (Cout, inner); input-channel index c = k*heads + h  (rearrange2 layout)
    return w_out.reshape(w_out.shape[0], dim_head, heads).transpose(2, 0, 1)  # (heads, Cout, dh)


# --------------------------------------------------------------------------- #
# public wrapper (NCDHW in / NCDHW out, like the PyTorch module)
# --------------------------------------------------------------------------- #
def bidirection_attention_forward(feat, semantic_map, params, *, heads, dim_head,
                                  map_size, feat_tile=256, mxu_dtype=jnp.float32):
    B, Cf, D, H, W = feat.shape
    Bm, Cm, Dm, Hm, Wm = semantic_map.shape
    assert Bm == B and (Dm, Hm, Wm) == tuple(map_size)
    N_f = D * H * W
    N_m = Dm * Hm * Wm
    scale = float(dim_head) ** -0.5

    if feat_tile is None or N_f < feat_tile or N_f % feat_tile != 0:
        feat_tile = N_f
    n_tiles = N_f // feat_tile

    # layout plumbing (outside the kernel)
    xf = feat.reshape(B, Cf, N_f)                                         # channels-first tokens
    xm = jnp.transpose(semantic_map.reshape(B, Cm, N_m), (0, 2, 1))       # tokens-first (tiny)

    wq_f, wv_f = _split_qv_per_head(params["feat_qv_w"], heads, dim_head)  # (h, dh, Cf)
    wq_m, wv_m = _split_qv_per_head(params["map_qv_w"], heads, dim_head)   # (h, dh, Cm)
    wq_m = jnp.transpose(wq_m, (0, 2, 1))                                  # (h, Cm, dh)
    wo_f = _split_out_per_head(params["feat_out_w"], heads, dim_head)      # (h, out_dim, dh)
    wo_m = _split_out_per_head(params["map_out_w"], heads, dim_head)       # (h, map_dim, dh)

    out_dim = wo_f.shape[1]
    map_dim = wo_m.shape[1]

    kernel = _make_bidir_attn_kernel(feat_tile, scale, mxu_dtype=mxu_dtype)

    feat_out, map_out = pl.pallas_call(
        kernel,
        out_shape=(jax.ShapeDtypeStruct((B, out_dim, N_f), feat.dtype),
                   jax.ShapeDtypeStruct((B, map_dim, N_m), feat.dtype)),
        grid_spec=pltpu.PrefetchScalarGridSpec(
            num_scalar_prefetch=0,
            grid=(B, heads, n_tiles),
            in_specs=[
                pl.BlockSpec((None, Cf, feat_tile), lambda b, h, t: (b, 0, t)),
                pl.BlockSpec((None, N_m, Cm), lambda b, h, t: (b, 0, 0)),
                pl.BlockSpec((None, dim_head, Cf), lambda b, h, t: (h, 0, 0)),
                pl.BlockSpec((None, dim_head, Cf), lambda b, h, t: (h, 0, 0)),
                pl.BlockSpec((None, Cm, dim_head), lambda b, h, t: (h, 0, 0)),
                pl.BlockSpec((None, dim_head, Cm), lambda b, h, t: (h, 0, 0)),
                pl.BlockSpec((None, out_dim, dim_head), lambda b, h, t: (h, 0, 0)),
                pl.BlockSpec((None, map_dim, dim_head), lambda b, h, t: (h, 0, 0)),
            ],
            out_specs=[
                pl.BlockSpec((None, out_dim, N_f), lambda b, h, t: (b, 0, 0)),
                pl.BlockSpec((None, map_dim, N_m), lambda b, h, t: (b, 0, 0)),
            ],
            scratch_shapes=[
                pltpu.VMEM((out_dim, N_f), jnp.float32),
                pltpu.VMEM((map_dim, N_m), jnp.float32),
                pltpu.VMEM((N_m, 1), jnp.float32),
                pltpu.VMEM((N_m, 1), jnp.float32),
                pltpu.VMEM((N_m, dim_head), jnp.float32),
            ],
        ),
        compiler_params=pltpu.CompilerParams(
            dimension_semantics=("parallel", "arbitrary", "arbitrary"),
            vmem_limit_bytes=64 * 1024 * 1024),
    )(xf, xm, wq_f, wv_f, wq_m, wv_m, wo_f, wo_m)

    feat_out = feat_out.reshape(B, out_dim, D, H, W)
    map_out = map_out.reshape((B, map_dim) + tuple(map_size))
    return feat_out, map_out


# --------------------------------------------------------------------------- #
# parameter init (1x1x1 conv weights as (Cout, Cin) matrices, no bias)
# --------------------------------------------------------------------------- #
def init_bidirection_attention_params(key, feat_dim, map_dim, out_dim, heads, dim_head):
    inner = heads * dim_head
    ks = jax.random.split(key, 4)

    def w(k, cout, cin):
        return (float(cin) ** -0.5) * jax.random.normal(k, (cout, cin), jnp.float32)

    return {
        "feat_qv_w": w(ks[0], 2 * inner, feat_dim),   # self.feat_qv (linear 1x1x1 conv)
        "map_qv_w":  w(ks[1], 2 * inner, map_dim),    # self.map_qv
        "feat_out_w": w(ks[2], out_dim, inner),       # self.feat_out
        "map_out_w":  w(ks[3], map_dim, inner),       # self.map_out
    }


# --------------------------------------------------------------------------- #
# pure-JAX reference (mirrors the PyTorch forward exactly) for validation
# --------------------------------------------------------------------------- #
def bidirection_attention_reference(feat, semantic_map, params, heads, dim_head, map_size):
    P = lax.Precision.HIGHEST
    B, Cf, D, H, W = feat.shape
    inner = heads * dim_head
    scale = float(dim_head) ** -0.5

    def conv1x1(x, w):
        return jnp.einsum("oc,bc...->bo...", w, x, precision=P)

    qv_f = conv1x1(feat, params["feat_qv_w"])
    qv_m = conv1x1(semantic_map, params["map_qv_w"])
    fq, fv = qv_f[:, :inner], qv_f[:, inner:]
    mq, mv = qv_m[:, :inner], qv_m[:, inner:]

    def r1(x):  # PyTorch rearrange1: view(b, dim_head, heads, -1).permute(0, 2, 3, 1)
        b = x.shape[0]
        x = x.reshape(b, dim_head, heads, -1)
        return jnp.transpose(x, (0, 2, 3, 1))

    fq, fv, mq, mv = r1(fq), r1(fv), r1(mq), r1(mv)

    attn = jnp.einsum("bhid,bhjd->bhij", fq, mq, precision=P) * scale
    a_fm = jax.nn.softmax(attn, axis=-1)
    a_mf = jax.nn.softmax(attn, axis=-2)
    f_out = jnp.einsum("bhij,bhjd->bhid", a_fm, mv, precision=P)
    m_out = jnp.einsum("bhji,bhjd->bhid", a_mf, fv, precision=P)

    def r2(x, spatial):  # PyTorch rearrange2: permute(0, 3, 1, 2).view(b, heads*dim_head, d, h, w)
        b, hh, n, dh = x.shape
        x = jnp.transpose(x, (0, 3, 1, 2))
        return x.reshape((b, hh * dh) + tuple(spatial))

    f_out = r2(f_out, (D, H, W))
    m_out = r2(m_out, tuple(map_size))
    f_out = conv1x1(f_out, params["feat_out_w"])
    m_out = conv1x1(m_out, params["map_out_w"])
    return f_out, m_out


# --------------------------------------------------------------------------- #
if __name__ == "__main__":
    key = jax.random.PRNGKey(0)
    kf, km, kp = jax.random.split(key, 3)

    B, feat_dim = 2, 4
    D = H = W = 8                     # 512 feat tokens
    map_dim, out_dim = 4, 8
    heads, dim_head = 4, 64           # module defaults -> inner_dim = 256
    map_size = (8, 8, 8)              # 512 map tokens

    feat = jax.random.normal(kf, (B, feat_dim, D, H, W), jnp.float32)
    smap = jax.random.normal(km, (B, map_dim) + map_size, jnp.float32)
    params = init_bidirection_attention_params(kp, feat_dim, map_dim, out_dim, heads, dim_head)

    f_out, m_out = jax.block_until_ready(
        bidirection_attention_forward(feat, smap, params, heads=heads, dim_head=dim_head,
                                      map_size=map_size, feat_tile=256))
    f_ref, m_ref = jax.block_until_ready(
        bidirection_attention_reference(feat, smap, params, heads, dim_head, map_size))

    assert f_out.shape == (B, out_dim, D, H, W), f_out.shape
    assert m_out.shape == (B, map_dim) + map_size, m_out.shape
    err_f = float(jnp.max(jnp.abs(f_out - f_ref)))
    err_m = float(jnp.max(jnp.abs(m_out - m_ref)))
    assert err_f < 1e-2 and err_m < 1e-2, (err_f, err_m)
    print("KERNEL_OK")
</pallas_src>

<mosaic_0001>
module attributes {stable_mosaic.version = 11 : i64} {
  func.func @kernel(%arg0: i32, %arg1: i32, %arg2: i32, %arg3: memref<1x4x256xf32, #tpu.memory_space<vmem>>, %arg4: memref<1x512x4xf32, #tpu.memory_space<vmem>>, %arg5: memref<1x64x4xf32, #tpu.memory_space<vmem>>, %arg6: memref<1x64x4xf32, #tpu.memory_space<vmem>>, %arg7: memref<1x4x64xf32, #tpu.memory_space<vmem>>, %arg8: memref<1x64x4xf32, #tpu.memory_space<vmem>>, %arg9: memref<1x8x64xf32, #tpu.memory_space<vmem>>, %arg10: memref<1x4x64xf32, #tpu.memory_space<vmem>>, %arg11: memref<1x8x512xf32, #tpu.memory_space<vmem>>, %arg12: memref<1x4x512xf32, #tpu.memory_space<vmem>>, %arg13: memref<8x512xf32, #tpu.memory_space<vmem>>, %arg14: memref<4x512xf32, #tpu.memory_space<vmem>>, %arg15: memref<512x1xf32, #tpu.memory_space<vmem>>, %arg16: memref<512x1xf32, #tpu.memory_space<vmem>>, %arg17: memref<512x64xf32, #tpu.memory_space<vmem>>) attributes {dimension_semantics = [#tpu.dimension_semantics<parallel>, #tpu.dimension_semantics<arbitrary>, #tpu.dimension_semantics<arbitrary>], iteration_bounds = array<i64: 2, 4, 2>, scalar_prefetch = 0 : i64, scratch_operands = 5 : i64, tpu.core_type = #tpu.core_type<tc>, window_params = [{transform_indices = @transform_0, window_bounds = array<i64: 1, 4, 256>}, {transform_indices = @transform_1, window_bounds = array<i64: 1, 512, 4>}, {transform_indices = @transform_2, window_bounds = array<i64: 1, 64, 4>}, {transform_indices = @transform_3, window_bounds = array<i64: 1, 64, 4>}, {transform_indices = @transform_4, window_bounds = array<i64: 1, 4, 64>}, {transform_indices = @transform_5, window_bounds = array<i64: 1, 64, 4>}, {transform_indices = @transform_6, window_bounds = array<i64: 1, 8, 64>}, {transform_indices = @transform_7, window_bounds = array<i64: 1, 4, 64>}, {transform_indices = @transform_8, window_bounds = array<i64: 1, 8, 512>}, {transform_indices = @transform_9, window_bounds = array<i64: 1, 4, 512>}]} {
    %c0_i32 = arith.constant 0 : i32
    %0 = arith.cmpi eq, %arg1, %c0_i32 : i32
    %c0_i32_0 = arith.constant 0 : i32
    %1 = arith.cmpi eq, %arg2, %c0_i32_0 : i32
    %2 = arith.andi %0, %1 : i1
    %3 = arith.extui %2 : i1 to i32
    %c0_i32_1 = arith.constant 0 : i32
    %4 = arith.cmpi ne, %3, %c0_i32_1 : i32
    scf.if %4 {
      %cst_55 = arith.constant 0.000000e+00 : f32
      %78 = vector.broadcast %cst_55 : f32 to vector<8x512xf32>
      %c0_56 = arith.constant 0 : index
      %c0_57 = arith.constant 0 : index
      %79 = vector.load %arg13[%c0_56, %c0_57] : memref<8x512xf32, #tpu.memory_space<vmem>>, vector<8x512xf32>
      tpu.vector_store %arg13[%c0_56, %c0_57], %78 {strides = array<i32>} : memref<8x512xf32, #tpu.memory_space<vmem>>, vector<8x512xf32>,
      %cst_58 = arith.constant 0.000000e+00 : f32
      %80 = vector.broadcast %cst_58 : f32 to vector<4x512xf32>
      %c0_59 = arith.constant 0 : index
      %c0_60 = arith.constant 0 : index
      %81 = vector.load %arg14[%c0_59, %c0_60] : memref<4x512xf32, #tpu.memory_space<vmem>>, vector<4x512xf32>
      tpu.vector_store %arg14[%c0_59, %c0_60], %80 {strides = array<i32>} : memref<4x512xf32, #tpu.memory_space<vmem>>, vector<4x512xf32>,
    } else {
    }
    %c0_i32_2 = arith.constant 0 : i32
    %5 = arith.cmpi eq, %arg2, %c0_i32_2 : i32
    %6 = arith.extui %5 : i1 to i32
    %c0_i32_3 = arith.constant 0 : i32
    %7 = arith.cmpi ne, %6, %c0_i32_3 : i32
    scf.if %7 {
      %cst_55 = arith.constant 0xFF800000 : f32
      %78 = vector.broadcast %cst_55 : f32 to vector<512x1xf32>
      %c0_56 = arith.constant 0 : index
      %c0_57 = arith.constant 0 : index
      %79 = vector.load %arg15[%c0_56, %c0_57] : memref<512x1xf32, #tpu.memory_space<vmem>>, vector<512x1xf32>
      tpu.vector_store %arg15[%c0_56, %c0_57], %78 {strides = array<i32>} : memref<512x1xf32, #tpu.memory_space<vmem>>, vector<512x1xf32>,
      %cst_58 = arith.constant 0.000000e+00 : f32
      %80 = vector.broadcast %cst_58 : f32 to vector<512x1xf32>
      %c0_59 = arith.constant 0 : index
      %c0_60 = arith.constant 0 : index
      %81 = vector.load %arg16[%c0_59, %c0_60] : memref<512x1xf32, #tpu.memory_space<vmem>>, vector<512x1xf32>
      tpu.vector_store %arg16[%c0_59, %c0_60], %80 {strides = array<i32>} : memref<512x1xf32, #tpu.memory_space<vmem>>, vector<512x1xf32>,
      %cst_61 = arith.constant 0.000000e+00 : f32
      %82 = vector.broadcast %cst_61 : f32 to vector<512x64xf32>
      %c0_62 = arith.constant 0 : index
      %c0_63 = arith.constant 0 : index
      %83 = vector.load %arg17[%c0_62, %c0_63] : memref<512x64xf32, #tpu.memory_space<vmem>>, vector<512x64xf32>
      tpu.vector_store %arg17[%c0_62, %c0_63], %82 {strides = array<i32>} : memref<512x64xf32, #tpu.memory_space<vmem>>, vector<512x64xf32>,
    } else {
    }
    %c0 = arith.constant 0 : index
    %c0_4 = arith.constant 0 : index
    %c0_5 = arith.constant 0 : index
    %8 = vector.load %arg3[%c0, %c0_4, %c0_5] : memref<1x4x256xf32, #tpu.memory_space<vmem>>, vector<1x4x256xf32>
    %9 = vector.shape_cast %8 : vector<1x4x256xf32> to vector<4x256xf32>
    %c0_6 = arith.constant 0 : index
    %c0_7 = arith.constant 0 : index
    %c0_8 = arith.constant 0 : index
    %10 = vector.load %arg4[%c0_6, %c0_7, %c0_8] : memref<1x512x4xf32, #tpu.memory_space<vmem>>, vector<1x512x4xf32>
    %11 = vector.shape_cast %10 : vector<1x512x4xf32> to vector<512x4xf32>
    %c0_9 = arith.constant 0 : index
    %c0_10 = arith.constant 0 : index
    %c0_11 = arith.constant 0 : index
    %12 = vector.load %arg5[%c0_9, %c0_10, %c0_11] : memref<1x64x4xf32, #tpu.memory_space<vmem>>, vector<1x64x4xf32>
    %13 = vector.shape_cast %12 : vector<1x64x4xf32> to vector<64x4xf32>
    %cst = arith.constant dense<0.000000e+00> : vector<64x256xf32>
    %14 = tpu.matmul %13, %9, %cst {dimension_numbers = #tpu.dot_dimension_numbers<[1], [0], [0], [1], [0, 0, 1, 1], [], []>} : vector<64x4xf32>, vector<4x256xf32>, vector<64x256xf32> -> vector<64x256xf32>
    %c0_12 = arith.constant 0 : index
    %c0_13 = arith.constant 0 : index
    %c0_14 = arith.constant 0 : index
    %15 = vector.load %arg6[%c0_12, %c0_13, %c0_14] : memref<1x64x4xf32, #tpu.memory_space<vmem>>, vector<1x64x4xf32>
    %16 = vector.shape_cast %15 : vector<1x64x4xf32> to vector<64x4xf32>
    %cst_15 = arith.constant dense<0.000000e+00> : vector<64x256xf32>
    %17 = tpu.matmul %16, %9, %cst_15 {dimension_numbers = #tpu.dot_dimension_numbers<[1], [0], [0], [1], [0, 0, 1, 1], [], []>} : vector<64x4xf32>, vector<4x256xf32>, vector<64x256xf32> -> vector<64x256xf32>
    %c0_16 = arith.constant 0 : index
    %c0_17 = arith.constant 0 : index
    %c0_18 = arith.constant 0 : index
    %18 = vector.load %arg7[%c0_16, %c0_17, %c0_18] : memref<1x4x64xf32, #tpu.memory_space<vmem>>, vector<1x4x64xf32>
    %19 = vector.shape_cast %18 : vector<1x4x64xf32> to vector<4x64xf32>
    %cst_19 = arith.constant dense<0.000000e+00> : vector<512x64xf32>
    %20 = tpu.matmul %11, %19, %cst_19 {dimension_numbers = #tpu.dot_dimension_numbers<[1], [0], [0], [1], [0, 0, 1, 1], [], []>} : vector<512x4xf32>, vector<4x64xf32>, vector<512x64xf32> -> vector<512x64xf32>
    %c0_20 = arith.constant 0 : index
    %c0_21 = arith.constant 0 : index
    %c0_22 = arith.constant 0 : index
    %21 = vector.load %arg8[%c0_20, %c0_21, %c0_22] : memref<1x64x4xf32, #tpu.memory_space<vmem>>, vector<1x64x4xf32>
    %22 = vector.shape_cast %21 : vector<1x64x4xf32> to vector<64x4xf32>
    %cst_23 = arith.constant dense<0.000000e+00> : vector<64x512xf32>
    %23 = tpu.matmul %22, %11, %cst_23 {dimension_numbers = #tpu.dot_dimension_numbers<[1], [1], [0], [0], [0, 0, 1, 0], [], []>} : vector<64x4xf32>, vector<512x4xf32>, vector<64x512xf32> -> vector<64x512xf32>
    %cst_24 = arith.constant dense<0.000000e+00> : vector<512x256xf32>
    %24 = tpu.matmul %20, %14, %cst_24 {dimension_numbers = #tpu.dot_dimension_numbers<[1], [0], [0], [1], [0, 0, 1, 1], [], []>} : vector<512x64xf32>, vector<64x256xf32>, vector<512x256xf32> -> vector<512x256xf32>
    %cst_25 = arith.constant 1.250000e-01 : f32
    %25 = vector.broadcast %cst_25 : f32 to vector<512x256xf32>
    %26 = arith.mulf %24, %25 : vector<512x256xf32>
    %cst_26 = arith.constant dense<0xFF800000> : vector<256xf32>
    %27 = vector.multi_reduction <maximumf>, %26, %cst_26 [0] : vector<512x256xf32> to vector<256xf32>
    %28 = vector.shape_cast %27 : vector<256xf32> to vector<1x256xf32>
    %29 = vector.broadcast %28 : vector<1x256xf32> to vector<512x256xf32>
    %30 = arith.subf %26, %29 : vector<512x256xf32>
    %31 = math.exp %30 : vector<512x256xf32>
    %cst_27 = arith.constant dense<0.000000e+00> : vector<256xf32>
    %32 = vector.multi_reduction <add>, %31, %cst_27 [0] : vector<512x256xf32> to vector<256xf32>
    %33 = vector.shape_cast %32 : vector<256xf32> to vector<1x256xf32>
    %34 = vector.broadcast %33 : vector<1x256xf32> to vector<512x256xf32>
    %35 = arith.divf %31, %34 : vector<512x256xf32>
    %cst_28 = arith.constant dense<0.000000e+00> : vector<64x256xf32>
    %36 = tpu.matmul %23, %35, %cst_28 {dimension_numbers = #tpu.dot_dimension_numbers<[1], [0], [0], [1], [0, 0, 1, 1], [], []>} : vector<64x512xf32>, vector<512x256xf32>, vector<64x256xf32> -> vector<64x256xf32>
    %c256_i32 = arith.constant 256 : i32
    %37 = arith.muli %arg2, %c256_i32 : i32
    %38 = tpu.assume_multiple %37, 256 : i32
    %c0_29 = arith.constant 0 : index
    %39 = arith.index_cast %38 : i32 to index
    %40 = vector.load %arg13[%c0_29, %39] : memref<8x512xf32, #tpu.memory_space<vmem>>, vector<8x256xf32>
    %c0_30 = arith.constant 0 : index
    %c0_31 = arith.constant 0 : index
    %c0_32 = arith.constant 0 : index
    %41 = vector.load %arg9[%c0_30, %c0_31, %c0_32] : memref<1x8x64xf32, #tpu.memory_space<vmem>>, vector<1x8x64xf32>
    %42 = vector.shape_cast %41 : vector<1x8x64xf32> to vector<8x64xf32>
    %cst_33 = arith.constant dense<0.000000e+00> : vector<8x256xf32>
    %43 = tpu.matmul %42, %36, %cst_33 {dimension_numbers = #tpu.dot_dimension_numbers<[1], [0], [0], [1], [0, 0, 1, 1], [], []>} : vector<8x64xf32>, vector<64x256xf32>, vector<8x256xf32> -> vector<8x256xf32>
    %44 = arith.addf %40, %43 : vector<8x256xf32>
    %c0_34 = arith.constant 0 : index
    %45 = arith.index_cast %38 : i32 to index
    %46 = vector.load %arg13[%c0_34, %45] : memref<8x512xf32, #tpu.memory_space<vmem>>, vector<8x256xf32>
    tpu.vector_store %arg13[%c0_34, %45], %44 {strides = array<i32>} : memref<8x512xf32, #tpu.memory_space<vmem>>, vector<8x256xf32>,
    %cst_35 = arith.constant dense<0xFF800000> : vector<512xf32>
    %47 = vector.multi_reduction <maximumf>, %26, %cst_35 [1] : vector<512x256xf32> to vector<512xf32>
    %48 = vector.shape_cast %47 : vector<512xf32> to vector<512x1xf32>
    %c0_36 = arith.constant 0 : index
    %c0_37 = arith.constant 0 : index
    %49 = vector.load %arg15[%c0_36, %c0_37] : memref<512x1xf32, #tpu.memory_space<vmem>>, vector<512x1xf32>
    %50 = arith.maximumf %49, %48 : vector<512x1xf32>
    %c0_38 = arith.constant 0 : index
    %c0_39 = arith.constant 0 : index
    %51 = vector.load %arg15[%c0_38, %c0_39] : memref<512x1xf32, #tpu.memory_space<vmem>>, vector<512x1xf32>
    %52 = arith.subf %51, %50 : vector<512x1xf32>
    %53 = math.exp %52 : vector<512x1xf32>
    %54 = vector.broadcast %50 : vector<512x1xf32> to vector<512x256xf32>
    %55 = arith.subf %26, %54 : vector<512x256xf32>
    %56 = math.exp %55 : vector<512x256xf32>
    %c0_40 = arith.constant 0 : index
    %c0_41 = arith.constant 0 : index
    %57 = vector.load %arg16[%c0_40, %c0_41] : memref<512x1xf32, #tpu.memory_space<vmem>>, vector<512x1xf32>
    %58 = arith.mulf %53, %57 : vector<512x1xf32>
    %cst_42 = arith.constant dense<0.000000e+00> : vector<512xf32>
    %59 = vector.multi_reduction <add>, %56, %cst_42 [1] : vector<512x256xf32> to vector<512xf32>
    %60 = vector.shape_cast %59 : vector<512xf32> to vector<512x1xf32>
    %61 = arith.addf %58, %60 : vector<512x1xf32>
    %c0_43 = arith.constant 0 : index
    %c0_44 = arith.constant 0 : index
    %62 = vector.load %arg16[%c0_43, %c0_44] : memref<512x1xf32, #tpu.memory_space<vmem>>, vector<512x1xf32>
    tpu.vector_store %arg16[%c0_43, %c0_44], %61 {strides = array<i32>} : memref<512x1xf32, #tpu.memory_space<vmem>>, vector<512x1xf32>,
    %c0_45 = arith.constant 0 : index
    %c0_46 = arith.constant 0 : index
    %63 = vector.load %arg17[%c0_45, %c0_46] : memref<512x64xf32, #tpu.memory_space<vmem>>, vector<512x64xf32>
    %64 = vector.broadcast %53 : vector<512x1xf32> to vector<512x64xf32>
    %65 = arith.mulf %64, %63 : vector<512x64xf32>
    %cst_47 = arith.constant dense<0.000000e+00> : vector<512x64xf32>
    %66 = tpu.matmul %56, %17, %cst_47 {dimension_numbers = #tpu.dot_dimension_numbers<[1], [1], [0], [0], [0, 0, 1, 0], [], []>} : vector<512x256xf32>, vector<64x256xf32>, vector<512x64xf32> -> vector<512x64xf32>
    %67 = arith.addf %65, %66 : vector<512x64xf32>
    %c0_48 = arith.constant 0 : index
    %c0_49 = arith.constant 0 : index
    %68 = vector.load %arg17[%c0_48, %c0_49] : memref<512x64xf32, #tpu.memory_space<vmem>>, vector<512x64xf32>
    tpu.vector_store %arg17[%c0_48, %c0_49], %67 {strides = array<i32>} : memref<512x64xf32, #tpu.memory_space<vmem>>, vector<512x64xf32>,
    %c0_50 = arith.constant 0 : index
    %c0_51 = arith.constant 0 : index
    %69 = vector.load %arg15[%c0_50, %c0_51] : memref<512x1xf32, #tpu.memory_space<vmem>>, vector<512x1xf32>
    tpu.vector_store %arg15[%c0_50, %c0_51], %50 {strides = array<i32>} : memref<512x1xf32, #tpu.memory_space<vmem>>, vector<512x1xf32>,
    %c1_i32 = arith.constant 1 : i32
    %70 = arith.cmpi eq, %arg2, %c1_i32 : i32
    %71 = arith.extui %70 : i1 to i32
    %c0_i32_52 = arith.constant 0 : i32
    %72 = arith.cmpi ne, %71, %c0_i32_52 : i32
    scf.if %72 {
      %c0_55 = arith.constant 0 : index
      %c0_56 = arith.constant 0 : index
      %78 = vector.load %arg17[%c0_55, %c0_56] : memref<512x64xf32, #tpu.memory_space<vmem>>, vector<512x64xf32>
      %c0_57 = arith.constant 0 : index
      %c0_58 = arith.constant 0 : index
      %79 = vector.load %arg16[%c0_57, %c0_58] : memref<512x1xf32, #tpu.memory_space<vmem>>, vector<512x1xf32>
      %80 = vector.broadcast %79 : vector<512x1xf32> to vector<512x64xf32>
      %81 = arith.divf %78, %80 : vector<512x64xf32>
      %c0_59 = arith.constant 0 : index
      %c0_60 = arith.constant 0 : index
      %82 = vector.load %arg14[%c0_59, %c0_60] : memref<4x512xf32, #tpu.memory_space<vmem>>, vector<4x512xf32>
      %c0_61 = arith.constant 0 : index
      %c0_62 = arith.constant 0 : index
      %c0_63 = arith.constant 0 : index
      %83 = vector.load %arg10[%c0_61, %c0_62, %c0_63] : memref<1x4x64xf32, #tpu.memory_space<vmem>>, vector<1x4x64xf32>
      %84 = vector.shape_cast %83 : vector<1x4x64xf32> to vector<4x64xf32>
      %cst_64 = arith.constant dense<0.000000e+00> : vector<4x512xf32>
      %85 = tpu.matmul %84, %81, %cst_64 {dimension_numbers = #tpu.dot_dimension_numbers<[1], [1], [0], [0], [0, 0, 1, 0], [], []>} : vector<4x64xf32>, vector<512x64xf32>, vector<4x512xf32> -> vector<4x512xf32>
      %86 = arith.addf %82, %85 : vector<4x512xf32>
      %c0_65 = arith.constant 0 : index
      %c0_66 = arith.constant 0 : index
      %87 = vector.load %arg14[%c0_65, %c0_66] : memref<4x512xf32, #tpu.memory_space<vmem>>, vector<4x512xf32>
      tpu.vector_store %arg14[%c0_65, %c0_66], %86 {strides = array<i32>} : memref<4x512xf32, #tpu.memory_space<vmem>>, vector<4x512xf32>,
    } else {
    }
    %c3_i32 = arith.constant 3 : i32
    %73 = arith.cmpi eq, %arg1, %c3_i32 : i32
    %c1_i32_53 = arith.constant 1 : i32
    %74 = arith.cmpi eq, %arg2, %c1_i32_53 : i32
    %75 = arith.andi %73, %74 : i1
    %76 = arith.extui %75 : i1 to i32
    %c0_i32_54 = arith.constant 0 : i32
    %77 = arith.cmpi ne, %76, %c0_i32_54 : i32
    scf.if %77 {
      %c0_55 = arith.constant 0 : index
      %c0_56 = arith.constant 0 : index
      %78 = vector.load %arg13[%c0_55, %c0_56] : memref<8x512xf32, #tpu.memory_space<vmem>>, vector<8x512xf32>
      %c0_57 = arith.constant 0 : index
      %c0_58 = arith.constant 0 : index
      %c0_59 = arith.constant 0 : index
      %79 = vector.load %arg11[%c0_57, %c0_58, %c0_59] : memref<1x8x512xf32, #tpu.memory_space<vmem>>, vector<1x8x512xf32>
      %80 = vector.shape_cast %79 : vector<1x8x512xf32> to vector<8x512xf32>
      %81 = vector.shape_cast %78 : vector<8x512xf32> to vector<1x8x512xf32>
      tpu.vector_store %arg11[%c0_57, %c0_58, %c0_59], %81 {strides = array<i32>} : memref<1x8x512xf32, #tpu.memory_space<vmem>>, vector<1x8x512xf32>,
      %c0_60 = arith.constant 0 : index
      %c0_61 = arith.constant 0 : index
      %82 = vector.load %arg14[%c0_60, %c0_61] : memref<4x512xf32, #tpu.memory_space<vmem>>, vector<4x512xf32>
      %c0_62 = arith.constant 0 : index
      %c0_63 = arith.constant 0 : index
      %c0_64 = arith.constant 0 : index
      %83 = vector.load %arg12[%c0_62, %c0_63, %c0_64] : memref<1x4x512xf32, #tpu.memory_space<vmem>>, vector<1x4x512xf32>
      %84 = vector.shape_cast %83 : vector<1x4x512xf32> to vector<4x512xf32>
      %85 = vector.shape_cast %82 : vector<4x512xf32> to vector<1x4x512xf32>
      tpu.vector_store %arg12[%c0_62, %c0_63, %c0_64], %85 {strides = array<i32>} : memref<1x4x512xf32, #tpu.memory_space<vmem>>, vector<1x4x512xf32>,
    } else {
    }
    return
  }
  func.func @transform_0(%arg0: i32, %arg1: i32, %arg2: i32) -> (i32, i32, i32) {
    %c0_i32 = arith.constant 0 : i32
    %c0_i32_0 = arith.constant 0 : i32
    return %arg0, %c0_i32, %arg2 : i32, i32, i32
  }
  func.func @transform_1(%arg0: i32, %arg1: i32, %arg2: i32) -> (i32, i32, i32) {
    %c0_i32 = arith.constant 0 : i32
    %c0_i32_0 = arith.constant 0 : i32
    %c0_i32_1 = arith.constant 0 : i32
    return %arg0, %c0_i32, %c0_i32_0 : i32, i32, i32
  }
  func.func @transform_2(%arg0: i32, %arg1: i32, %arg2: i32) -> (i32, i32, i32) {
    %c0_i32 = arith.constant 0 : i32
    %c0_i32_0 = arith.constant 0 : i32
    %c0_i32_1 = arith.constant 0 : i32
    return %arg1, %c0_i32, %c0_i32_0 : i32, i32, i32
  }
  func.func @transform_3(%arg0: i32, %arg1: i32, %arg2: i32) -> (i32, i32, i32) {
    %c0_i32 = arith.constant 0 : i32
    %c0_i32_0 = arith.constant 0 : i32
    %c0_i32_1 = arith.constant 0 : i32
    return %arg1, %c0_i32, %c0_i32_0 : i32, i32, i32
  }
  func.func @transform_4(%arg0: i32, %arg1: i32, %arg2: i32) -> (i32, i32, i32) {
    %c0_i32 = arith.constant 0 : i32
    %c0_i32_0 = arith.constant 0 : i32
    %c0_i32_1 = arith.constant 0 : i32
    return %arg1, %c0_i32, %c0_i32_0 : i32, i32, i32
  }
  func.func @transform_5(%arg0: i32, %arg1: i32, %arg2: i32) -> (i32, i32, i32) {
    %c0_i32 = arith.constant 0 : i32
    %c0_i32_0 = arith.constant 0 : i32
    %c0_i32_1 = arith.constant 0 : i32
    return %arg1, %c0_i32, %c0_i32_0 : i32, i32, i32
  }
  func.func @transform_6(%arg0: i32, %arg1: i32, %arg2: i32) -> (i32, i32, i32) {
    %c0_i32 = arith.constant 0 : i32
    %c0_i32_0 = arith.constant 0 : i32
    %c0_i32_1 = arith.constant 0 : i32
    return %arg1, %c0_i32, %c0_i32_0 : i32, i32, i32
  }
  func.func @transform_7(%arg0: i32, %arg1: i32, %arg2: i32) -> (i32, i32, i32) {
    %c0_i32 = arith.constant 0 : i32
    %c0_i32_0 = arith.constant 0 : i32
    %c0_i32_1 = arith.constant 0 : i32
    return %arg1, %c0_i32, %c0_i32_0 : i32, i32, i32
  }
  func.func @transform_8(%arg0: i32, %arg1: i32, %arg2: i32) -> (i32, i32, i32) {
    %c0_i32 = arith.constant 0 : i32
    %c0_i32_0 = arith.constant 0 : i32
    %c0_i32_1 = arith.constant 0 : i32
    return %arg0, %c0_i32, %c0_i32_0 : i32, i32, i32
  }
  func.func @transform_9(%arg0: i32, %arg1: i32, %arg2: i32) -> (i32, i32, i32) {
    %c0_i32 = arith.constant 0 : i32
    %c0_i32_0 = arith.constant 0 : i32
    %c0_i32_1 = arith.constant 0 : i32
    return %arg0, %c0_i32, %c0_i32_0 : i32, i32, i32
  }
}

</mosaic_0001>

<bundles_post_ra>
// kernel: tpu_custom_call.1
= control target key start
LH: loop header
LB: loop body
LE: loop exit
PB: predicated region body
PF: predicated region fallthrough
CT: control target
= control target key end

     0   :  { %s16008_s0 = inlined_call_operand.hbm [shape: f32[2,4,512], index: 0, kind: input, shape index: {}]   ;;  %s16009_s1 = inlined_call_operand.hbm [shape: f32[2,512,4], index: 1, kind: input, shape index: {}]   ;;  %s16010_s2 = inlined_call_operand.hbm [shape: f32[4,64,4], index: 2, kind: input, shape index: {}]   ;;  %s16011_s3 = inlined_call_operand.hbm [shape: f32[4,64,4], index: 3, kind: input, shape index: {}]   ;;  %s16012_s4 = inlined_call_operand.hbm [shape: f32[4,4,64], index: 4, kind: input, shape index: {}]   ;;  %s16013_s5 = inlined_call_operand.hbm [shape: f32[4,64,4], index: 5, kind: input, shape index: {}]   ;;  %s16014_s6 = inlined_call_operand.hbm [shape: f32[4,8,64], index: 6, kind: input, shape index: {}]   ;;  %s16015_s7 = inlined_call_operand.hbm [shape: f32[4,4,64], index: 7, kind: input, shape index: {}]   ;;  %s16016_s8 = inlined_call_operand.hbm [shape: f32[2,8,512], index: 8, kind: output, shape index: {0}]   ;;  %s16017_s9 = inlined_call_operand.hbm [shape: f32[2,4,512], index: 9, kind: output, shape index: {1}]  }
   0x1   :  { %16671 = sst [smem:[#allocation353_spill]] %s16008_s0 }
   0x2   :  { %16672 = sst [smem:[#allocation354_spill]] %s16009_s1 }
   0x3   :  { %16673 = sst [smem:[#allocation355_spill]] %s16010_s2 }
   0x4   :  { %16674 = sst [smem:[#allocation356_spill]] %s16011_s3 }
   0x5   :  { %16675 = sst [smem:[#allocation357_spill]] %s16012_s4 }
   0x6   :  { %16676 = sst [smem:[#allocation358_spill]] %s16013_s5 }
   0x7   :  { %16677 = sst [smem:[#allocation359_spill]] %s16014_s6 }
   0x8   :  { %16678 = sst [smem:[#allocation360_spill]] %s16015_s7 }
   0x9   :  { %16679 = sst [smem:[#allocation361_spill]] %s16016_s8 }
   0xa   :  { %16680 = sst [smem:[#allocation362_spill]] %s16017_s9 }
   0xb   :  { %15 = vsyncpa [#allocation8], 0 }
   0xc   :  { %17 = vsyncpa [#allocation8 + $0x1], 0 }
   0xd   :  { %18 = vsyncpa [#allocation11], 0 }
   0xe   :  { %20 = vsyncpa [#allocation11 + $0x1], 0 }
   0xf   :  { %21 = vsyncpa [#allocation14], 0 }
  0x10   :  { %23 = vsyncpa [#allocation14 + $0x1], 0 }
  0x11   :  { %24 = vsyncpa [#allocation17], 0 }
  0x12   :  { %26 = vsyncpa [#allocation17 + $0x1], 0 }
  0x13   :  { %27 = vsyncpa [#allocation20], 0 }
  0x14   :  { %29 = vsyncpa [#allocation20 + $0x1], 0 }
  0x15   :  { %30 = vsyncpa [#allocation9], 0 }
  0x16   :  { %32 = vsyncpa [#allocation9 + $0x1], 0 }
  0x17   :  { %33 = vsyncpa [#allocation23], 0 }
  0x18   :  { %35 = vsyncpa [#allocation23 + $0x1], 0  ;;  %s10463_s30 = smov 0   ;;  %s10465_s10 = smov 0  }
  0x19   :  { %s10467_s11 = smov 0   ;;  %s10469_s12 = smov 0  }
  0x1a   :  { %s10471_s13 = smov 0   ;;  %s10473_s14 = smov 0  }
  0x1b   :  { %s10475_s15 = smov 0   ;;  %s10477_s16 = smov 0  }
  0x1c   :  { %s10479_s17 = smov 0   ;;  %s10481_s18 = smov 0  }
  0x1d   :  { %s10483_s19 = smov 0   ;;  %s10485_s20 = smov 0  }
  0x1e   :  { %s10487_s21 = smov 0   ;;  %s10489_s22 = smov 0  }
  0x1f   :  { %s10491_s23 = smov 0   ;;  %s10493_s24 = smov 0  }
  0x20 LB: > { %16681 = sst [smem:[#allocation32_spill]] %s10337_s10  ;;  %s10544_s25 = sadd.s32 4294967295, %s10393_s24   ;;  %s10393_s24 = sphi %s10493_s24, %s41_s24   ;;  %s10389_s23 = sphi %s10491_s23, %s17977_s23   ;;  %s10385_s22 = sphi %s10489_s22, %s17976_s22   ;;  %s10381_s21 = sphi %s10487_s21, %s17975_s21   ;;  %s10377_s20 = sphi %s10485_s20, %s17974_s20   ;;  %s10373_s19 = sphi %s10483_s19, %s17973_s19   ;;  %s10369_s18 = sphi %s10481_s18, %s17972_s18   ;;  %s10365_s17 = sphi %s10479_s17, %s17971_s17   ;;  %s10361_s16 = sphi %s10477_s16, %s17970_s16   ;;  %s10357_s15 = sphi %s10475_s15, %s17960_s15   ;;  %s10353_s14 = sphi %s10473_s14, %s17969_s14   ;;  %s10349_s13 = sphi %s10471_s13, %s17959_s13   ;;  %s10345_s12 = sphi %s10469_s12, %s17968_s12   ;;  %s10341_s11 = sphi %s10467_s11, %s17967_s11   ;;  %s10337_s10 = sphi %s10465_s10, %s17966_s10   ;;  %s10333_s30 = sphi %s10463_s30, %s17965_s30  }
  0x21   : > { %16682 = sst [smem:[#allocation33_spill]] %s10345_s12  ;;  %s7879_s26 = sadd.s32 4294967294, %s10393_s24  }
  0x22   : > { %16683 = sst [smem:[#allocation34_spill]] %s10349_s13  ;;  %p16029_p0 = scmp.eq.s32.totalorder %s10393_s24, 0 }
  0x23   : > { %16684 = sst [smem:[#allocation35_spill]] %s10353_s14  ;;  %p102_p1 = scmp.ne.s32.totalorder %s10353_s14, %s10349_s13 }
  0x24   : > { %16685 = sst [smem:[#allocation36_spill]] %s10361_s16  ;;  %p16027_p2 = scmp.ne.s32.totalorder %s10349_s13, %s10345_s12 }
  0x25   : > { %16686 = sst [smem:[#allocation37_spill]] %s10369_s18  ;;  %p288_p3 = scmp.eq.s32.totalorder %s10544_s25, 15 }
  0x26   : > { %16687 = sst [smem:[#allocation38_spill]] %s10373_s19  ;;  %p294_p4 = scmp.eq.s32.totalorder %s7879_s26, 15 }
  0x27   : > { %16688 = sst [smem:[#allocation39_spill]] %s10377_s20  ;;  %p104_p5 = por %p102_p1, %p16029_p0 }
  0x28   : > { %16689 = sst [smem:[#allocation40_spill]] %s10544_s25  ;;  %p10556_p6 = por %p288_p3, %p102_p1 }
  0x29   : > { %p10563_p7 = por %p294_p4, %p16027_p2  ;;  %p16028_p8 = scmp.lt.s32.totalorder %s10393_s24, 16 }
  0x2a   : > { %s16690_s28 = scalar_select %p10556_p6, 1, 0 }
  0x2b   : > { %s16692_s29 = scalar_select %p10563_p7, 1, 0 }
  0x2c   : > { %16691 = sst [smem:[#allocation41_spill]] %s16690_s28  ;;  %s10569_s9 = sand.u32 1, %s10393_s24  }
  0x2d   : > { %16693 = sst [smem:[#allocation42_spill]] %s16692_s29  ;;  %s363_s27 = sand.u32 1, %s10353_s14  }
  0x2e   : > { %16694 = sst [smem:[#allocation43_spill]] %s10569_s9  ;;  %s7886_s8 = sshll.u32 %s363_s27, 9 }
  0x2f   : > { %s8223_s20 = sshll.u32 %s10389_s23, 13  ;;  %s16695_s1 = sld [smem:[#allocation354_spill]] }
  0x30   : > { %s365_s28 = scalar_lea.vmem [#allocation10], %s7886_s8  ;;  %p10580_p9 = pnand %p16028_p8, %p104_p5 }
  0x31   : > { %s372_s7 = sshll.u32 %s365_s28, 4  ;;  %s10584_s7 = int_to_ptr.vmem [resolvable:$true] %s372_s7 }
  0x32   : > { %p9941_p11 = pneg %p10580_p9 }
  0x35   : > { %s10576_s19 = scalar_lea.hbm %s16695_s1, %s8223_s20  ;;  %s9944_s20 = scalar_lea.hbm %s16695_s1, 16384 }
  0x36   : > { %s9939_s6 = scalar_lea.hbm %s10576_s19, 8192  ;;  %p9945_p1 = scmp.lt.u32.totalorder %s10576_s19, %s16695_s1 }
  0x37   : > { %p9940_p10 = scmp.ne.s32.totalorder %s10576_s19, %s9939_s6  ;;  %p9946_p3 = scmp.lt.u32.totalorder %s9944_s20, %s9939_s6 }
  0x38   : > { %p9948_p5 = scmp.lt.u32.totalorder %s9939_s6, %s10576_s19 }
  0x39   : > { %p9942_p12 = pnand %p9941_p11, %p9940_p10  ;;  %p9947_p4 = por %p9946_p3, %p9945_p1 }
  0x3b   : > { %p9943_p13 = pneg %p9942_p12  ;;  %p9949_p2 = por %p9948_p5, %p9947_p4 }
  0x3d   : > { %p9950_p8 = pnand %p9949_p2, %p9943_p13 }
  0x3f   : > { %9953 = shalt.err (!%p9950_p8)
}
  0x40   : > { %s9954_s27 = scalar_lea.vmem %s10584_s7, 8192  ;;  %s10395_s8 = smov [#allocation10]  }
  0x41   : > { %p9955_p10 = scmp.ne.s32.totalorder %s10584_s7, %s9954_s27  ;;  %s9959_s18 = sshll.u32 %s10395_s8, 4  ;;  %s9960_s18 = int_to_ptr.vmem [resolvable:$false] %s9959_s18 }
  0x42   : > { %s9961_s28 = scalar_lea.vmem %s9960_s18, 16384  ;;  %p9962_p7 = scmp.lt.s32.totalorder %s10584_s7, %s9960_s18 }
  0x43   : > { %p9957_p12 = pnand %p9955_p10, %p9941_p11  ;;  %p9963_p1 = scmp.lt.s32.totalorder %s9961_s28, %s9954_s27 }
  0x45   : > { %p9958_p0 = pneg %p9957_p12  ;;  %p9964_p3 = por %p9963_p1, %p9962_p7 }
  0x47   : > { %p9965_p4 = pnand %p9964_p3, %p9958_p0 }
  0x49   : > { %9968 = shalt.err (!%p9965_p4)
}
  0x4a   : > { %s16030_s6 = smov 128   ;;  %s16032_s27 = smov 8  }
  0x4b   : > { %s16697_s20 = scalar_lea.sflag [#allocation11], %s10569_s9  ;;  %p7904_p0 = scmp.ge.s32.totalorder %s10393_s24, 1 }
  0x4c   : > { %8974 = dma.hbm_to_vmem [thread:$0]  (!%p10580_p9), %s10576_s19, 8192, %s10584_s7, %s16697_s20, %s16030_s6, %s16030_s6, %s16032_s27  }
  0x4d   : > { %p497_p2 = scmp.lt.s32.totalorder %s10393_s24, 17  ;;  %p128_p8 = scmp.ne.s32.totalorder %s10341_s11, %s10337_s10 }
  0x4e   : > { %s10629_s18 = sand.u32 1, %s10341_s11   ;;  %s10632_s28 = sshll.u32 %s10385_s22, 10 }
  0x4f   : > { %p10619_p7 = pnand %p7904_p0, %p497_p2  ;;  %16700 = sst [smem:[#allocation45_spill]] %s10629_s18 }
  0x50   : > { %p16701_p13 = scmp.eq.s32.totalorder %s10393_s24, 0  ;;  %s10637_s29 = sshll.u32 %s10629_s18, 6 }
  0x51   : > { %s16698_s26 = scalar_select %p10619_p7, 1, 0 }
  0x52   : > { %p130_p5 = por %p128_p8, %p16701_p13  ;;  %p16702_p9 = scmp.lt.s32.totalorder %s10393_s24, 16 }
  0x53   : > { %16699 = sst [smem:[#allocation44_spill]] %s16698_s26  ;;  %s16704_s3 = sld [smem:[#allocation356_spill]] }
  0x54   : > { %p10641_p10 = pnand %p16702_p9, %p130_p5  ;;  %s407_s6 = scalar_lea.vmem [#allocation13], %s10637_s29 }
  0x55   : > { %s414_s27 = sshll.u32 %s407_s6, 4  ;;  %s10652_s27 = int_to_ptr.vmem [resolvable:$true] %s414_s27 }
  0x56   : > { %s16703_s7 = scalar_select %p10641_p10, 1, 0 }
  0x57   : > { %p10659_p1 = pneg %p10641_p10 }
  0x59   : > { %s10649_s8 = scalar_lea.hbm %s16704_s3, %s10632_s28  ;;  %s9974_s18 = scalar_lea.hbm %s16704_s3, 4096 }
  0x5a   : > { %s9969_s26 = scalar_lea.hbm %s10649_s8, 1024  ;;  %p9975_p0 = scmp.lt.u32.totalorder %s10649_s8, %s16704_s3 }
  0x5b   : > { %p9970_p12 = scmp.ne.s32.totalorder %s10649_s8, %s9969_s26  ;;  %p9976_p2 = scmp.lt.u32.totalorder %s9974_s18, %s9969_s26 }
  0x5c   : > { %p9978_p13 = scmp.lt.u32.totalorder %s9969_s26, %s10649_s8 }
  0x5d   : > { %p9972_p3 = pnand %p10659_p1, %p9970_p12  ;;  %p9977_p8 = por %p9976_p2, %p9975_p0 }
  0x5f   : > { %p9973_p4 = pneg %p9972_p3  ;;  %p9979_p5 = por %p9978_p13, %p9977_p8 }
  0x61   : > { %p9980_p9 = pnand %p9979_p5, %p9973_p4 }
  0x63   : > { %9983 = shalt.err (!%p9980_p9)
}
  0x64   : > { %s9984_s1 = scalar_lea.vmem %s10652_s27, 1024  ;;  %s10398_s19 = smov [#allocation13]  }
  0x65   : > { %p9985_p12 = scmp.ne.s32.totalorder %s10652_s27, %s9984_s1  ;;  %s9989_s20 = sshll.u32 %s10398_s19, 4  ;;  %s9990_s20 = int_to_ptr.vmem [resolvable:$false] %s9989_s20 }
  0x66   : > { %s9991_s2 = scalar_lea.vmem %s9990_s20, 2048  ;;  %p9992_p6 = scmp.lt.s32.totalorder %s10652_s27, %s9990_s20 }
  0x67   : > { %p9987_p3 = pnand %p9985_p12, %p10659_p1  ;;  %p9993_p7 = scmp.lt.s32.totalorder %s9991_s2, %s9984_s1 }
  0x69   : > { %p9988_p11 = pneg %p9987_p3  ;;  %p9994_p0 = por %p9993_p7, %p9992_p6 }
  0x6b   : > { %p9995_p2 = pnand %p9994_p0, %p9988_p11 }
  0x6d   : > { %9998 = shalt.err (!%p9995_p2)
}
  0x6e   : > { %s16706_s26 = smov 8   ;;  %s16707_s18 = smov 128  }
  0x6f   : > { %s16708_s6 = scalar_lea.sflag [#allocation14], %s10569_s9  ;;  %s16709_s5 = sld [smem:[#allocation358_spill]] }
  0x70   : > { %8980 = dma.hbm_to_vmem [thread:$0]  (!%p10641_p10), %s10649_s8, 1024, %s10652_s27, %s16708_s6, %s16707_s18, %s16707_s18, %s16706_s26  }
  0x71   : > { %s446_s2 = scalar_lea.vmem [#allocation16], %s10637_s29  ;;  %s16043_s0 = scalar_lea.sflag [#allocation17], %s10569_s9 }
  0x72   : > { %s453_s3 = sshll.u32 %s446_s2, 4  ;;  %s10694_s3 = int_to_ptr.vmem [resolvable:$true] %s453_s3 }
  0x75   : > { %s10691_s1 = scalar_lea.hbm %s16709_s5, %s10632_s28  ;;  %s10004_s6 = scalar_lea.hbm %s16709_s5, 4096 }
  0x76   : > { %s9999_s14 = scalar_lea.hbm %s10691_s1, 1024  ;;  %p10005_p4 = scmp.lt.u32.totalorder %s10691_s1, %s16709_s5 }
  0x77   : > { %p10000_p6 = scmp.ne.s32.totalorder %s10691_s1, %s9999_s14  ;;  %p10006_p8 = scmp.lt.u32.totalorder %s10004_s6, %s9999_s14 }
  0x78   : > { %p10008_p5 = scmp.lt.u32.totalorder %s9999_s14, %s10691_s1 }
  0x79   : > { %p10002_p7 = pnand %p10000_p6, %p10659_p1  ;;  %p10007_p13 = por %p10006_p8, %p10005_p4 }
  0x7b   : > { %p10003_p11 = pneg %p10002_p7  ;;  %p10009_p9 = por %p10008_p5, %p10007_p13 }
  0x7d   : > { %p10010_p12 = pnand %p10009_p9, %p10003_p11 }
  0x7f   : > { %10013 = shalt.err (!%p10010_p12)
}
  0x80   : > { %s10014_s2 = scalar_lea.vmem %s10694_s3, 1024  ;;  %s10399_s27 = smov [#allocation16]  }
  0x81   : > { %p10015_p3 = scmp.ne.s32.totalorder %s10694_s3, %s10014_s2  ;;  %s10019_s8 = sshll.u32 %s10399_s27, 4  ;;  %s10020_s8 = int_to_ptr.vmem [resolvable:$false] %s10019_s8 }
  0x82   : > { %s10021_s19 = scalar_lea.vmem %s10020_s8, 2048  ;;  %p10022_p6 = scmp.lt.s32.totalorder %s10694_s3, %s10020_s8 }
  0x83   : > { %p10017_p0 = pnand %p10015_p3, %p10659_p1  ;;  %p10023_p7 = scmp.lt.s32.totalorder %s10021_s19, %s10014_s2 }
  0x85   : > { %p10018_p2 = pneg %p10017_p0  ;;  %p10024_p4 = por %p10023_p7, %p10022_p6 }
  0x87   : > { %p10025_p8 = pnand %p10024_p4, %p10018_p2 }
  0x89   : > { %10028 = shalt.err (!%p10025_p8)
}
  0x8a   : > { %8986 = dma.hbm_to_vmem [thread:$0]  (!%p10641_p10), %s10691_s1, 1024, %s10694_s3, %s16043_s0, %s16707_s18, %s16707_s18, %s16706_s26  }
  0x8b   : > { %s53_s14 = sadd.s32 1, %s10381_s21  ;;  %s56_s6 = sadd.s32 1, %s10385_s22 }
  0x8c   : > { %p54_p11 = scmp.ge.s32.totalorder %s53_s14, 2  ;;  %s60_s20 = sadd.s32 1, %s10389_s23 }
  0x8d   : > { %s69_s2 = sadd.s32 1, %s10365_s17  ;;  %p76_p13 = scmp.ne.s32.totalorder %s10365_s17, %s10361_s16 }
  0x8e   : > { %s17979_s14 = smov (%p54_p11, %s53_s14), 0  ;;  %s17981_s6 = smov (!%p54_p11, %s56_s6), %s10385_s22 }
  0x8f   : > { %16710 = sst [smem:[#allocation46_spill]] %s17979_s14  ;;  %s65_s27 = ssub.s32 %s10381_s21, %s17979_s14 }
  0x90   : > { %p16711_p5 = scmp.eq.s32.totalorder %s10393_s24, 0  ;;  %p58_p12 = scmp.ge.s32.totalorder %s17981_s6, 4 }
  0x91   : > { %p82_p3 = scmp.ne.s32.totalorder %s10361_s16, %s10357_s15  ;;  %p83_p0 = scmp.eq.s32.totalorder %s10544_s25, 0 }
  0x92   : > { %p10736_p9 = por %p16711_p5, %p76_p13  ;;  %s340_s1 = sand.u32 1, %s10365_s17  }
  0x93   : > { %s16713_s8 = sld [smem:[#allocation35_spill]]  ;;  %s17983_s6 = smov (%p58_p12, %s17981_s6), 0 }
  0x94   : > { %16714 = sst [smem:[#allocation47_spill]] %s17983_s6  ;;  %s17985_s20 = smov (!%p58_p12, %s60_s20), %s10389_s23 }
  0x95   : > { %p10747_p2 = por %p83_p0, %p82_p3  ;;  %p16717_p6 = scmp.ne.s32.totalorder %s10349_s13, %s10345_s12 }
  0x96   : > { %p62_p4 = scmp.ge.s32.totalorder %s17985_s20, 2  ;;  %s118_s15 = ssub.s32 %s10385_s22, %s17983_s6 }
  0x97   : > { %s16715_s19 = scalar_select %p10747_p2, 1, 0 }
  0x98   : > { %p10754_p7 = por %p16717_p6, %p83_p0  ;;  %p119_p8 = scmp.eq.s32.totalorder %s118_s15, 0 }
  0x99   : > { %16716 = sst [smem:[#allocation48_spill]] %s16715_s19  ;;  %p16720_p11 = scmp.ne.s32.totalorder %s10337_s10, %s10333_s30 }
  0x9a   : > { %s16718_s0 = scalar_select %p10754_p7, 1, 0 }
  0x9b   : > { %p10763_p13 = por %p16720_p11, %p83_p0  ;;  %s17987_s20 = smov (%p62_p4, %s17985_s20), 0 }
  0x9c   : > { %16719 = sst [smem:[#allocation49_spill]] %s16718_s0  ;;  %s16724_s14 = sadd.s32 1, %s10341_s11 }
  0x9d   : > { %s16721_s5 = scalar_select %p10763_p13, 1, 0 }
  0x9e   : > { %16723 = sst [smem:[#allocation51_spill]] %s17987_s20  ;;  %s64_s13 = ssub.s32 %s10389_s23, %s17987_s20 }
  0x9f   : > { %16722 = sst [smem:[#allocation50_spill]] %s16721_s5  ;;  %s66_s25 = sor.u32 %s65_s27, %s64_s13 }
  0xa0   : > { %s10772_s12 = scalar_select %p119_p8, %s10341_s11, %s16724_s14  }
  0xa1   : > { %p93_p5 = scmp.eq.s32.totalorder %s64_s13, 0  ;;  %p67_p12 = scmp.eq.s32.totalorder %s66_s25, 0 }
  0xa2   : > { %s7882_s6 = sshll.u32 %s340_s1, 3  ;;  %s16725_s15 = sadd.s32 1, %s16713_s8 }
  0xa3   : > { %s17989_s8 = smov (!%p93_p5, %s16713_s8), %s16725_s15  ;;  %s7883_s5 = sshll.u32 %s10381_s21, 1 }
  0xa4   : > { %s10782_s30 = scalar_select %p67_p12, %s10365_s17, %s69_s2  }
  0xa5   : > { %s7884_s10 = sshll.u32 %s10389_s23, 2  ;;  %s344_s0 = scalar_lea.vmem [#allocation7], %s7882_s6 }
  0xa6   : > { %s354_s19 = sshll.u32 %s344_s0, 4  ;;  %s350_s16 = sadd.s32 %s7884_s10, %s7883_s5  ;;  %s10786_s19 = int_to_ptr.vmem [resolvable:$true] %s354_s19 }
  0xa7   : > { %s7885_s14 = sshll.u32 %s350_s16, 6  ;;  %p16726_p3 = scmp.lt.s32.totalorder %s10393_s24, 16 }
  0xa8   : > { %s16728_s15 = sld [smem:[#allocation353_spill]]  ;;  %s16730_s0 = sld [smem:[#allocation355_spill]] }
  0xa9   : > { %p10792_p0 = pnand %p16726_p3, %p10736_p9  ;;  %s341_s10 = scalar_lea.sflag [#allocation8], %s340_s1 }
  0xab   : > { %p10031_p6 = pneg %p10792_p0 }
  0xae   : > { %s16729_s9 = smov %s16728_s15  ;;  %s10799_s2 = scalar_lea.hbm %s16728_s15, %s7885_s14 }
  0xaf   : > { %s10805_s5 = scalar_lea.hbm %s16730_s0, %s10632_s28  ;;  %s10029_s16 = scalar_lea.hbm %s10799_s2, 128 }
  0xb0   : > { %p10030_p9 = scmp.ne.s32.totalorder %s10799_s2, %s10029_s16  ;;  %s10034_s13 = scalar_lea.hbm %s16729_s9, 512 }
  0xb1   : > { %p10035_p11 = scmp.lt.u32.totalorder %s10799_s2, %s16729_s9  ;;  %p10036_p5 = scmp.lt.u32.totalorder %s10034_s13, %s10029_s16 }
  0xb2   : > { %p10032_p4 = pnand %p10031_p6, %p10030_p9  ;;  %p10038_p3 = scmp.lt.u32.totalorder %s10029_s16, %s10799_s2 }
  0xb3   : > { %p10037_p12 = por %p10036_p5, %p10035_p11 }
  0xb4   : > { %p10033_p8 = pneg %p10032_p4 }
  0xb5   : > { %p10039_p13 = por %p10038_p3, %p10037_p12 }
  0xb7   : > { %p10040_p7 = pnand %p10039_p13, %p10033_p8 }
  0xb9   : > { %10043 = shalt.err (!%p10040_p7)
}
  0xba   : > { %s10044_s28 = scalar_lea.vmem %s10786_s19, 128  ;;  %s10400_s1 = smov [#allocation7]  }
  0xbb   : > { %p10045_p9 = scmp.ne.s32.totalorder %s10786_s19, %s10044_s28  ;;  %s10049_s15 = sshll.u32 %s10400_s1, 4  ;;  %s10050_s15 = int_to_ptr.vmem [resolvable:$false] %s10049_s15 }
  0xbc   : > { %s10051_s6 = scalar_lea.vmem %s10050_s15, 256  ;;  %p10052_p10 = scmp.lt.s32.totalorder %s10786_s19, %s10050_s15 }
  0xbd   : > { %p10047_p4 = pnand %p10045_p9, %p10031_p6  ;;  %p10053_p11 = scmp.lt.s32.totalorder %s10051_s6, %s10044_s28 }
  0xbf   : > { %p10048_p2 = pneg %p10047_p4  ;;  %p10054_p5 = por %p10053_p11, %p10052_p10 }
  0xc1   : > { %p10055_p12 = pnand %p10054_p5, %p10048_p2 }
  0xc3   : > { %10058 = shalt.err (!%p10055_p12)
}
  0xc4   : > { %s16731_s16 = sld [smem:[#allocation45_spill]]  ;;  %s386_s3 = scalar_lea.vmem [#allocation12], %s10637_s29 }
  0xc5   : > { %8971 = dma.hbm_to_vmem [thread:$0]  (!%p10792_p0), %s10799_s2, 128, %s10786_s19, %s341_s10  }
  0xc6   : > { %s393_s14 = sshll.u32 %s386_s3, 4  ;;  %s10059_s20 = scalar_lea.hbm %s10805_s5, 1024  ;;  %s10834_s14 = int_to_ptr.vmem [resolvable:$true] %s393_s14 }
  0xc7   : > { %p10060_p10 = scmp.ne.s32.totalorder %s10805_s5, %s10059_s20  ;;  %s10064_s28 = scalar_lea.hbm %s16730_s0, 4096 }
  0xc8   : > { %p10065_p13 = scmp.lt.u32.totalorder %s10805_s5, %s16730_s0  ;;  %p10066_p6 = scmp.lt.u32.totalorder %s10064_s28, %s10059_s20 }
  0xc9   : > { %p10062_p2 = pnand %p10060_p10, %p10659_p1  ;;  %p10068_p8 = scmp.lt.u32.totalorder %s10059_s20, %s10805_s5 }
  0xca   : > { %s7895_s13 = sshll.u32 %s16731_s16, 2  ;;  %p10067_p0 = por %p10066_p6, %p10065_p13 }
  0xcb   : > { %p10063_p7 = pneg %p10062_p2 }
  0xcc   : > { %p10069_p3 = por %p10068_p8, %p10067_p0 }
  0xce   : > { %p10070_p9 = pnand %p10069_p3, %p10063_p7 }
  0xd0   : > { %10073 = shalt.err (!%p10070_p9)
}
  0xd1   : > { %s10074_s29 = scalar_lea.vmem %s10834_s14, 1024  ;;  %s10401_s19 = smov [#allocation12]  }
  0xd2   : > { %p10075_p4 = scmp.ne.s32.totalorder %s10834_s14, %s10074_s29  ;;  %s10079_s2 = sshll.u32 %s10401_s19, 4  ;;  %s10080_s2 = int_to_ptr.vmem [resolvable:$false] %s10079_s2 }
  0xd3   : > { %s10081_s10 = scalar_lea.vmem %s10080_s2, 2048  ;;  %p10082_p12 = scmp.lt.s32.totalorder %s10834_s14, %s10080_s2 }
  0xd4   : > { %p10077_p11 = pnand %p10075_p4, %p10659_p1  ;;  %p10083_p10 = scmp.lt.s32.totalorder %s10081_s10, %s10074_s29 }
  0xd6   : > { %p10078_p5 = pneg %p10077_p11  ;;  %p10084_p2 = por %p10083_p10, %p10082_p12 }
  0xd8   : > { %p10085_p13 = pnand %p10084_p2, %p10078_p5 }
  0xda   : > { %10088 = shalt.err (!%p10085_p13)
}
  0xdb   : > { %p16732_p7 = scmp.ne.s32.totalorder %s16703_s7, 0  ;;  %s16733_s6 = sld [smem:[#allocation43_spill]] }
  0xdc   : > { %s7896_s20 = sshll.u32 %s10385_s22, 6  ;;  %s428_s27 = scalar_lea.vmem [#allocation15], %s7895_s13 }
  0xdd   : > { %s435_s25 = sshll.u32 %s428_s27, 4  ;;  %s16735_s15 = sld [smem:[#allocation357_spill]]  ;;  %s436_s25 = int_to_ptr.vmem [resolvable:$true] %s435_s25 }
  0xe1   : > { %s16734_s3 = scalar_lea.sflag [#allocation11], %s16733_s6 }
  0xe2   : > { %8977 = dma.hbm_to_vmem [thread:$0]  (!%p16732_p7), %s10805_s5, 1024, %s10834_s14, %s16734_s3, %s16707_s18, %s16707_s18, %s16706_s26  }
  0xe3   : > { %s16736_s29 = smov %s16735_s15  ;;  %s433_s19 = scalar_lea.hbm %s16735_s15, %s7896_s20 }
  0xe4   : > { %s10089_s2 = scalar_lea.hbm %s433_s19, 64  ;;  %s10094_s9 = scalar_lea.hbm %s16736_s29, 256 }
  0xe5   : > { %p10090_p6 = scmp.ne.s32.totalorder %s433_s19, %s10089_s2  ;;  %p10095_p3 = scmp.lt.u32.totalorder %s433_s19, %s16736_s29 }
  0xe6   : > { %p10096_p9 = scmp.lt.u32.totalorder %s10094_s9, %s10089_s2  ;;  %p10098_p11 = scmp.lt.u32.totalorder %s10089_s2, %s433_s19 }
  0xe7   : > { %p10092_p0 = pnand %p10090_p6, %p10659_p1 }
  0xe8   : > { %p10097_p4 = por %p10096_p9, %p10095_p3 }
  0xe9   : > { %p10093_p8 = pneg %p10092_p0 }
  0xea   : > { %p10099_p5 = por %p10098_p11, %p10097_p4 }
  0xec   : > { %p10100_p12 = pnand %p10099_p5, %p10093_p8 }
  0xee   : > { %10103 = shalt.err (!%p10100_p12)
}
  0xef   : > { %s10104_s5 = scalar_lea.vmem %s436_s25, 64  ;;  %s10402_s14 = smov [#allocation15]  }
  0xf0   : > { %p10105_p10 = scmp.ne.s32.totalorder %s436_s25, %s10104_s5  ;;  %s10109_s3 = sshll.u32 %s10402_s14, 4  ;;  %s10110_s3 = int_to_ptr.vmem [resolvable:$false] %s10109_s3 }
  0xf1   : > { %s10111_s0 = scalar_lea.vmem %s10110_s3, 128  ;;  %p10112_p6 = scmp.lt.s32.totalorder %s436_s25, %s10110_s3 }
  0xf2   : > { %p10107_p2 = pnand %p10105_p10, %p10659_p1  ;;  %p10113_p0 = scmp.lt.s32.totalorder %s10111_s0, %s10104_s5 }
  0xf4   : > { %p10108_p13 = pneg %p10107_p2  ;;  %p10114_p7 = por %p10113_p0, %p10112_p6 }
  0xf6   : > { %p10115_p3 = pnand %p10114_p7, %p10108_p13 }
  0xf8   : > { %10118 = shalt.err (!%p10115_p3)
}
  0xf9   : > { %p16737_p9 = scmp.ne.s32.totalorder %s16703_s7, 0  ;;  %s16738_s9 = scalar_lea.sflag [#allocation14], %s16733_s6 }
  0xfa   : > { %s7900_s27 = sshll.u32 %s16731_s16, 3  ;;  %s7901_s28 = sshll.u32 %s10385_s22, 7 }
  0xfb   : > { %8983 = dma.hbm_to_vmem [thread:$0]  (!%p16737_p9), %s433_s19, 64, %s436_s25, %s16738_s9  }
  0xfc   : > { %s16739_s2 = sld [smem:[#allocation359_spill]]  ;;  %s467_s26 = scalar_lea.vmem [#allocation18], %s7900_s27 }
  0xfd   : > { %s474_s18 = sshll.u32 %s467_s26, 4  ;;  %s475_s18 = int_to_ptr.vmem [resolvable:$true] %s474_s18 }
 0x102   : > { %s10889_s10 = scalar_lea.hbm %s16739_s2, %s7901_s28  ;;  %s10124_s14 = scalar_lea.hbm %s16739_s2, 512 }
 0x103   : > { %s10119_s5 = scalar_lea.hbm %s10889_s10, 128  ;;  %p10125_p11 = scmp.lt.u32.totalorder %s10889_s10, %s16739_s2 }
 0x104   : > { %p10120_p7 = scmp.ne.s32.totalorder %s10889_s10, %s10119_s5  ;;  %p10126_p5 = scmp.lt.u32.totalorder %s10124_s14, %s10119_s5 }
 0x105   : > { %p10128_p10 = scmp.lt.u32.totalorder %s10119_s5, %s10889_s10 }
 0x106   : > { %p10122_p8 = pnand %p10120_p7, %p10659_p1  ;;  %p10127_p12 = por %p10126_p5, %p10125_p11 }
 0x108   : > { %p10123_p4 = pneg %p10122_p8  ;;  %p10129_p2 = por %p10128_p10, %p10127_p12 }
 0x10a   : > { %p10130_p13 = pnand %p10129_p2, %p10123_p4 }
 0x10c   : > { %10133 = shalt.err (!%p10130_p13)
}
 0x10d   : > { %s10134_s9 = scalar_lea.vmem %s475_s18, 128  ;;  %s10403_s27 = smov [#allocation18]  }
 0x10e   : > { %p10135_p6 = scmp.ne.s32.totalorder %s475_s18, %s10134_s9  ;;  %s10139_s28 = sshll.u32 %s10403_s27, 4  ;;  %s10140_s28 = int_to_ptr.vmem [resolvable:$false] %s10139_s28 }
 0x10f   : > { %s10141_s1 = scalar_lea.vmem %s10140_s28, 256  ;;  %p10142_p7 = scmp.lt.s32.totalorder %s475_s18, %s10140_s28 }
 0x110   : > { %p10137_p0 = pnand %p10135_p6, %p10659_p1  ;;  %p10143_p8 = scmp.lt.s32.totalorder %s10141_s1, %s10134_s9 }
 0x112   : > { %p10138_p3 = pneg %p10137_p0  ;;  %p10144_p9 = por %p10143_p8, %p10142_p7 }
 0x114   : > { %p10145_p5 = pnand %p10144_p9, %p10138_p3 }
 0x116   : > { %10148 = shalt.err (!%p10145_p5)
}
 0x117   : > { %p16740_p11 = scmp.ne.s32.totalorder %s16703_s7, 0  ;;  %s16741_s15 = scalar_lea.sflag [#allocation17], %s16733_s6 }
 0x118   : > { %s16742_s25 = sld [smem:[#allocation360_spill]]  ;;  %s485_s14 = scalar_lea.vmem [#allocation19], %s7895_s13 }
 0x119   : > { %8989 = dma.hbm_to_vmem [thread:$0]  (!%p16740_p11), %s10889_s10, 128, %s475_s18, %s16741_s15  }
 0x11a   : > { %s492_s3 = sshll.u32 %s485_s14, 4  ;;  %s482_s6 = scalar_lea.sflag [#allocation20], %s16731_s16  ;;  %s493_s3 = int_to_ptr.vmem [resolvable:$true] %s492_s3 }
 0x11e   : > { %s10915_s19 = scalar_lea.hbm %s16742_s25, %s7896_s20  ;;  %s10154_s9 = scalar_lea.hbm %s16742_s25, 256 }
 0x11f   : > { %s10149_s0 = scalar_lea.hbm %s10915_s19, 64  ;;  %p10155_p10 = scmp.lt.u32.totalorder %s10915_s19, %s16742_s25 }
 0x120   : > { %p10150_p9 = scmp.ne.s32.totalorder %s10915_s19, %s10149_s0  ;;  %p10156_p2 = scmp.lt.u32.totalorder %s10154_s9, %s10149_s0 }
 0x121   : > { %p10158_p6 = scmp.lt.u32.totalorder %s10149_s0, %s10915_s19 }
 0x122   : > { %p10152_p4 = pnand %p10150_p9, %p10659_p1  ;;  %p10157_p13 = por %p10156_p2, %p10155_p10 }
 0x124   : > { %p10153_p12 = pneg %p10152_p4  ;;  %p10159_p0 = por %p10158_p6, %p10157_p13 }
 0x126   : > { %p10160_p3 = pnand %p10159_p0, %p10153_p12 }
 0x128   : > { %10163 = shalt.err (!%p10160_p3)
}
 0x129   : > { %s10164_s16 = scalar_lea.vmem %s493_s3, 64  ;;  %s10404_s13 = smov [#allocation19]  }
 0x12a   : > { %p10165_p7 = scmp.ne.s32.totalorder %s493_s3, %s10164_s16  ;;  %s10169_s28 = sshll.u32 %s10404_s13, 4  ;;  %s10170_s28 = int_to_ptr.vmem [resolvable:$false] %s10169_s28 }
 0x12b   : > { %s10171_s1 = scalar_lea.vmem %s10170_s28, 128  ;;  %p10172_p9 = scmp.lt.s32.totalorder %s493_s3, %s10170_s28 }
 0x12c   : > { %p10167_p8 = pnand %p10165_p7, %p10659_p1  ;;  %p10173_p4 = scmp.lt.s32.totalorder %s10171_s1, %s10164_s16 }
 0x12e   : > { %p10168_p5 = pneg %p10167_p8  ;;  %p10174_p11 = por %p10173_p4, %p10172_p9 }
 0x130   : > { %p10175_p2 = pnand %p10174_p11, %p10168_p5 }
 0x132   : > { %10178 = shalt.err (!%p10175_p2)
}
 0x133   : > { %p16743_p10 = scmp.ne.s32.totalorder %s16703_s7, 0  ;;  %s16744_s15 = sld [smem:[#allocation44_spill]] }
 0x135   : > { %8992 = dma.hbm_to_vmem [thread:$0]  (!%p16743_p10), %s10915_s19, 64, %s493_s3, %s482_s6  }
 0x139   : > { %p16745_p12 = scmp.ne.s32.totalorder %s16744_s15, 0 }
 0x13b   : > { %501 = sbr.rel (%p16745_p12) target bundleno = 3492 (0xda4), region = 52 }
 0x142   : > { %s16746_s26 = sld [smem:[#allocation36_spill]]  ;;  %s16747_s4 = sld [smem:[#allocation48_spill]] }
 0x148   : > { %s503_s5 = sand.u32 1, %s16746_s26   ;;  %p16748_p1 = scmp.ne.s32.totalorder %s16747_s4, 0 }
 0x149   : > { %s10940_s14 = sshll.u32 %s503_s5, 3  ;;  %s504_s0 = scalar_lea.sflag [#allocation8], %s503_s5 }
 0x14a   : > { %10300 = dma.done.wait (%p16748_p1), %s504_s0, 128  }
 0x14b   : > { %10302 = vsyncadd (%p16748_p1), %s504_s0, 4294967168  ;;  %s16749_s18 = sld [smem:[#allocation40_spill]]  ;;  %s16750_s7 = sld [smem:[#allocation34_spill]] }
 0x14c   : > { %s16751_s9 = sld [smem:[#allocation49_spill]] }
 0x151   : > { %s512_s19 = sand.u32 1, %s16749_s18   ;;  %s10949_s3 = sand.u32 1, %s16750_s7  }
 0x152   : > { %s7906_s6 = sshll.u32 %s10949_s3, 9  ;;  %s513_s20 = scalar_lea.sflag [#allocation11], %s512_s19 }
 0x153   : > { %s10952_s27 = scalar_lea.vmem [#allocation10], %s7906_s6  ;;  %p16752_p11 = scmp.ne.s32.totalorder %s16751_s9, 0 }
 0x155   : > { %10304 = dma.done.wait (%p16752_p11), %s513_s20, 8192  }
 0x156   : > { %10306 = vsyncadd (%p16752_p11), %s513_s20, 4294959104  ;;  %s16753_s16 = sld [smem:[#allocation32_spill]]  ;;  %s16754_s13 = sld [smem:[#allocation50_spill]] }
 0x15c   : > { %s523_s28 = sand.u32 1, %s16753_s16   ;;  %p16755_p13 = scmp.ne.s32.totalorder %s16754_s13, 0 }
 0x15d   : > { %s7907_s1 = sshll.u32 %s523_s28, 6 }
 0x15e   : > { %s10959_s15 = scalar_lea.vmem [#allocation12], %s7907_s1 }
 0x15f   : > { %10308 = dma.done.wait (%p16755_p13), %s513_s20, 1024  }
 0x160   : > { %10310 = vsyncadd (%p16755_p13), %s513_s20, 4294966272  ;;  %s531_s26 = scalar_lea.sflag [#allocation14], %s512_s19  ;;  %s10965_s4 = scalar_lea.vmem [#allocation13], %s7907_s1 }
 0x161   : > { %10312 = dma.done.wait (%p16755_p13), %s531_s26, 1088  }
 0x162   : > { %10314 = vsyncadd (%p16755_p13), %s531_s26, 4294966208  ;;  %s7909_s5 = sshll.u32 %s523_s28, 2  ;;  %s549_s18 = scalar_lea.sflag [#allocation17], %s512_s19 }
 0x163   : > { %s10971_s0 = scalar_lea.vmem [#allocation15], %s7909_s5  ;;  %s10973_s7 = scalar_lea.vmem [#allocation16], %s7907_s1 }
 0x164   : > { %10316 = dma.done.wait (%p16755_p13), %s549_s18, 1152  }
 0x165   : > { %10318 = vsyncadd (%p16755_p13), %s549_s18, 4294966144  ;;  %s7911_s9 = sshll.u32 %s523_s28, 3  ;;  %s567_s20 = scalar_lea.sflag [#allocation20], %s523_s28 }
 0x166   : > { %s10979_s6 = scalar_lea.vmem [#allocation18], %s7911_s9  ;;  %s10981_s16 = scalar_lea.vmem [#allocation19], %s7909_s5 }
 0x167   : > { %10320 = dma.done.wait (%p16755_p13), %s567_s20, 64  }
 0x168   : > { %10322 = vsyncadd (%p16755_p13), %s567_s20, 4294967232  ;;  %s16756_s19 = sld [smem:[#allocation38_spill]]  ;;  %s16757_s1 = sld [smem:[#allocation37_spill]] }
 0x169   : > { %s7913_s26 = sshll.u32 %s10949_s3, 5  ;;  %s7914_s10 = sshll.u32 %s10949_s3, 4 }
 0x16a   : > { %s10991_s18 = scalar_lea.vmem [#allocation21], %s7913_s26  ;;  %s10993_s9 = scalar_lea.vmem [#allocation22], %s7914_s10 }
 0x16e   : > { %p646_p6 = scmp.eq.s32.totalorder %s16756_s19, 0  ;;  %p647_p0 = scmp.eq.s32.totalorder %s16757_s1, 0 }
 0x170   : > { %p648_p3 = pnand %p647_p0, %p646_p6 }
 0x171   : > { %v10405_v0 = vmov (!%p648_p3), 0.0  }
 0x172   : > { %651 = sbr.rel (%p648_p3) target bundleno = 377 (0x179), region = 88  ;;  %652 = vst [vmem:[#allocation2] sm:$0xff] (!%p648_p3), %v10405_v0  ;;  %653 = vst [vmem:[#allocation2 + $0x8] sm:$0xff] (!%p648_p3), %v10405_v0 }
 0x173   : > { %654 = vst [vmem:[#allocation2 + $0x10] sm:$0xff] (!%p648_p3), %v10405_v0  ;;  %655 = vst [vmem:[#allocation2 + $0x18] sm:$0xff] (!%p648_p3), %v10405_v0 }
 0x174   : > { %656 = vst [vmem:[#allocation3] sm:$0xff] (!%p648_p3), %v10405_v0  ;;  %657 = vst [vmem:[#allocation3 + $0x8] sm:$0xff] (!%p648_p3), %v10405_v0 }
 0x179 PF: > { %s16758_s13 = sld [smem:[#allocation37_spill]] }
 0x17f   : > { %p7915_p7 = scmp.ne.s32.totalorder %s16758_s13, 0 }
 0x180   : > { %vm661_vm0 = vcmask (!%p7915_p7), 7168   ;;  %vm790_vm1 = vcmask (!%p7915_p7), 523264   ;;  %v10406_v1 = vmov (!%p7915_p7), -inf   ;;  %v10407_v2 = vmov (!%p7915_p7), 0.0  }
 0x181   : > { %660 = sbr.rel (%p7915_p7) target bundleno = 481 (0x1e1), region = 92  ;;  %662 = vst.msk [vmem:[#allocation4] sm:$0xff] (!%p7915_p7), %vm661_vm0, %v10406_v1  ;;  %663 = vst.msk [vmem:[#allocation4 + $0x8] sm:$0xff] (!%p7915_p7), %vm661_vm0, %v10406_v1 }
 0x182   : > { %664 = vst.msk [vmem:[#allocation4 + $0x10] sm:$0xff] (!%p7915_p7), %vm661_vm0, %v10406_v1  ;;  %665 = vst.msk [vmem:[#allocation4 + $0x18] sm:$0xff] (!%p7915_p7), %vm661_vm0, %v10406_v1 }
 0x183   : > { %666 = vst.msk [vmem:[#allocation4 + $0x20] sm:$0xff] (!%p7915_p7), %vm661_vm0, %v10406_v1  ;;  %667 = vst.msk [vmem:[#allocation4 + $0x28] sm:$0xff] (!%p7915_p7), %vm661_vm0, %v10406_v1 }
 0x184   : > { %668 = vst.msk [vmem:[#allocation4 + $0x30] sm:$0xff] (!%p7915_p7), %vm661_vm0, %v10406_v1  ;;  %669 = vst.msk [vmem:[#allocation4 + $0x38] sm:$0xff] (!%p7915_p7), %vm661_vm0, %v10406_v1 }
 0x185   : > { %670 = vst.msk [vmem:[#allocation4 + $0x40] sm:$0xff] (!%p7915_p7), %vm661_vm0, %v10406_v1  ;;  %671 = vst.msk [vmem:[#allocation4 + $0x48] sm:$0xff] (!%p7915_p7), %vm661_vm0, %v10406_v1 }
 0x186   : > { %672 = vst.msk [vmem:[#allocation4 + $0x50] sm:$0xff] (!%p7915_p7), %vm661_vm0, %v10406_v1  ;;  %673 = vst.msk [vmem:[#allocation4 + $0x58] sm:$0xff] (!%p7915_p7), %vm661_vm0, %v10406_v1 }
 0x187   : > { %674 = vst.msk [vmem:[#allocation4 + $0x60] sm:$0xff] (!%p7915_p7), %vm661_vm0, %v10406_v1  ;;  %675 = vst.msk [vmem:[#allocation4 + $0x68] sm:$0xff] (!%p7915_p7), %vm661_vm0, %v10406_v1 }
 0x188   : > { %676 = vst.msk [vmem:[#allocation4 + $0x70] sm:$0xff] %vm661_vm0, %v10406_v1  ;;  %677 = vst.msk [vmem:[#allocation4 + $0x78] sm:$0xff] %vm661_vm0, %v10406_v1 }
 0x189   : > { %678 = vst.msk [vmem:[#allocation4 + $0x80] sm:$0xff] %vm661_vm0, %v10406_v1  ;;  %679 = vst.msk [vmem:[#allocation4 + $0x88] sm:$0xff] %vm661_vm0, %v10406_v1 }
 0x18a   : > { %680 = vst.msk [vmem:[#allocation4 + $0x90] sm:$0xff] %vm661_vm0, %v10406_v1  ;;  %681 = vst.msk [vmem:[#allocation4 + $0x98] sm:$0xff] %vm661_vm0, %v10406_v1 }
 0x18b   : > { %682 = vst.msk [vmem:[#allocation4 + $0xa0] sm:$0xff] %vm661_vm0, %v10406_v1  ;;  %683 = vst.msk [vmem:[#allocation4 + $0xa8] sm:$0xff] %vm661_vm0, %v10406_v1 }
 0x18c   : > { %684 = vst.msk [vmem:[#allocation4 + $0xb0] sm:$0xff] %vm661_vm0, %v10406_v1  ;;  %685 = vst.msk [vmem:[#allocation4 + $0xb8] sm:$0xff] %vm661_vm0, %v10406_v1 }
 0x18d   : > { %686 = vst.msk [vmem:[#allocation4 + $0xc0] sm:$0xff] %vm661_vm0, %v10406_v1  ;;  %687 = vst.msk [vmem:[#allocation4 + $0xc8] sm:$0xff] %vm661_vm0, %v10406_v1 }
 0x18e   : > { %688 = vst.msk [vmem:[#allocation4 + $0xd0] sm:$0xff] %vm661_vm0, %v10406_v1  ;;  %689 = vst.msk [vmem:[#allocation4 + $0xd8] sm:$0xff] %vm661_vm0, %v10406_v1 }
 0x18f   : > { %690 = vst.msk [vmem:[#allocation4 + $0xe0] sm:$0xff] %vm661_vm0, %v10406_v1  ;;  %691 = vst.msk [vmem:[#allocation4 + $0xe8] sm:$0xff] %vm661_vm0, %v10406_v1 }
 0x190   : > { %692 = vst.msk [vmem:[#allocation4 + $0xf0] sm:$0xff] %vm661_vm0, %v10406_v1  ;;  %693 = vst.msk [vmem:[#allocation4 + $0xf8] sm:$0xff] %vm661_vm0, %v10406_v1 }
 0x191   : > { %694 = vst.msk [vmem:[#allocation4 + $0x100] sm:$0xff] %vm661_vm0, %v10406_v1  ;;  %695 = vst.msk [vmem:[#allocation4 + $0x108] sm:$0xff] %vm661_vm0, %v10406_v1 }
 0x192   : > { %696 = vst.msk [vmem:[#allocation4 + $0x110] sm:$0xff] %vm661_vm0, %v10406_v1  ;;  %697 = vst.msk [vmem:[#allocation4 + $0x118] sm:$0xff] %vm661_vm0, %v10406_v1 }
 0x193   : > { %698 = vst.msk [vmem:[#allocation4 + $0x120] sm:$0xff] %vm661_vm0, %v10406_v1  ;;  %699 = vst.msk [vmem:[#allocation4 + $0x128] sm:$0xff] %vm661_vm0, %v10406_v1 }
 0x194   : > { %700 = vst.msk [vmem:[#allocation4 + $0x130] sm:$0xff] %vm661_vm0, %v10406_v1  ;;  %701 = vst.msk [vmem:[#allocation4 + $0x138] sm:$0xff] %vm661_vm0, %v10406_v1 }
 0x195   : > { %702 = vst.msk [vmem:[#allocation4 + $0x140] sm:$0xff] %vm661_vm0, %v10406_v1  ;;  %703 = vst.msk [vmem:[#allocation4 + $0x148] sm:$0xff] %vm661_vm0, %v10406_v1 }
 0x196   : > { %704 = vst.msk [vmem:[#allocation4 + $0x150] sm:$0xff] %vm661_vm0, %v10406_v1  ;;  %705 = vst.msk [vmem:[#allocation4 + $0x158] sm:$0xff] %vm661_vm0, %v10406_v1 }
 0x197   : > { %706 = vst.msk [vmem:[#allocation4 + $0x160] sm:$0xff] %vm661_vm0, %v10406_v1  ;;  %707 = vst.msk [vmem:[#allocation4 + $0x168] sm:$0xff] %vm661_vm0, %v10406_v1 }
 0x198   : > { %708 = vst.msk [vmem:[#allocation4 + $0x170] sm:$0xff] %vm661_vm0, %v10406_v1  ;;  %709 = vst.msk [vmem:[#allocation4 + $0x178] sm:$0xff] %vm661_vm0, %v10406_v1 }
 0x199   : > { %710 = vst.msk [vmem:[#allocation4 + $0x180] sm:$0xff] %vm661_vm0, %v10406_v1  ;;  %711 = vst.msk [vmem:[#allocation4 + $0x188] sm:$0xff] %vm661_vm0, %v10406_v1 }
 0x19a   : > { %712 = vst.msk [vmem:[#allocation4 + $0x190] sm:$0xff] %vm661_vm0, %v10406_v1  ;;  %713 = vst.msk [vmem:[#allocation4 + $0x198] sm:$0xff] %vm661_vm0, %v10406_v1 }
 0x19b   : > { %714 = vst.msk [vmem:[#allocation4 + $0x1a0] sm:$0xff] %vm661_vm0, %v10406_v1  ;;  %715 = vst.msk [vmem:[#allocation4 + $0x1a8] sm:$0xff] %vm661_vm0, %v10406_v1 }
 0x19c   : > { %716 = vst.msk [vmem:[#allocation4 + $0x1b0] sm:$0xff] %vm661_vm0, %v10406_v1  ;;  %717 = vst.msk [vmem:[#allocation4 + $0x1b8] sm:$0xff] %vm661_vm0, %v10406_v1 }
 0x19d   : > { %718 = vst.msk [vmem:[#allocation4 + $0x1c0] sm:$0xff] %vm661_vm0, %v10406_v1  ;;  %719 = vst.msk [vmem:[#allocation4 + $0x1c8] sm:$0xff] %vm661_vm0, %v10406_v1 }
 0x19e   : > { %720 = vst.msk [vmem:[#allocation4 + $0x1d0] sm:$0xff] %vm661_vm0, %v10406_v1  ;;  %721 = vst.msk [vmem:[#allocation4 + $0x1d8] sm:$0xff] %vm661_vm0, %v10406_v1 }
 0x19f   : > { %722 = vst.msk [vmem:[#allocation4 + $0x1e0] sm:$0xff] %vm661_vm0, %v10406_v1  ;;  %723 = vst.msk [vmem:[#allocation4 + $0x1e8] sm:$0xff] %vm661_vm0, %v10406_v1 }
 0x1a0   : > { %724 = vst.msk [vmem:[#allocation4 + $0x1f0] sm:$0xff] %vm661_vm0, %v10406_v1  ;;  %725 = vst.msk [vmem:[#allocation4 + $0x1f8] sm:$0xff] %vm661_vm0, %v10406_v1 }
 0x1a1   : > { %726 = vst.msk [vmem:[#allocation5] sm:$0xff] %vm661_vm0, %v10407_v2  ;;  %727 = vst.msk [vmem:[#allocation5 + $0x8] sm:$0xff] %vm661_vm0, %v10407_v2 }
 0x1a2   : > { %728 = vst.msk [vmem:[#allocation5 + $0x10] sm:$0xff] %vm661_vm0, %v10407_v2  ;;  %729 = vst.msk [vmem:[#allocation5 + $0x18] sm:$0xff] %vm661_vm0, %v10407_v2 }
 0x1a3   : > { %730 = vst.msk [vmem:[#allocation5 + $0x20] sm:$0xff] %vm661_vm0, %v10407_v2  ;;  %731 = vst.msk [vmem:[#allocation5 + $0x28] sm:$0xff] %vm661_vm0, %v10407_v2 }
 0x1a4   : > { %732 = vst.msk [vmem:[#allocation5 + $0x30] sm:$0xff] %vm661_vm0, %v10407_v2  ;;  %733 = vst.msk [vmem:[#allocation5 + $0x38] sm:$0xff] %vm661_vm0, %v10407_v2 }
 0x1a5   : > { %734 = vst.msk [vmem:[#allocation5 + $0x40] sm:$0xff] %vm661_vm0, %v10407_v2  ;;  %735 = vst.msk [vmem:[#allocation5 + $0x48] sm:$0xff] %vm661_vm0, %v10407_v2 }
 0x1a6   : > { %736 = vst.msk [vmem:[#allocation5 + $0x50] sm:$0xff] %vm661_vm0, %v10407_v2  ;;  %737 = vst.msk [vmem:[#allocation5 + $0x58] sm:$0xff] %vm661_vm0, %v10407_v2 }
 0x1a7   : > { %738 = vst.msk [vmem:[#allocation5 + $0x60] sm:$0xff] %vm661_vm0, %v10407_v2  ;;  %739 = vst.msk [vmem:[#allocation5 + $0x68] sm:$0xff] %vm661_vm0, %v10407_v2 }
 0x1a8   : > { %740 = vst.msk [vmem:[#allocation5 + $0x70] sm:$0xff] %vm661_vm0, %v10407_v2  ;;  %741 = vst.msk [vmem:[#allocation5 + $0x78] sm:$0xff] %vm661_vm0, %v10407_v2 }
 0x1a9   : > { %742 = vst.msk [vmem:[#allocation5 + $0x80] sm:$0xff] %vm661_vm0, %v10407_v2  ;;  %743 = vst.msk [vmem:[#allocation5 + $0x88] sm:$0xff] %vm661_vm0, %v10407_v2 }
 0x1aa   : > { %744 = vst.msk [vmem:[#allocation5 + $0x90] sm:$0xff] %vm661_vm0, %v10407_v2  ;;  %745 = vst.msk [vmem:[#allocation5 + $0x98] sm:$0xff] %vm661_vm0, %v10407_v2 }
 0x1ab   : > { %746 = vst.msk [vmem:[#allocation5 + $0xa0] sm:$0xff] %vm661_vm0, %v10407_v2  ;;  %747 = vst.msk [vmem:[#allocation5 + $0xa8] sm:$0xff] %vm661_vm0, %v10407_v2 }
 0x1ac   : > { %748 = vst.msk [vmem:[#allocation5 + $0xb0] sm:$0xff] %vm661_vm0, %v10407_v2  ;;  %749 = vst.msk [vmem:[#allocation5 + $0xb8] sm:$0xff] %vm661_vm0, %v10407_v2 }
 0x1ad   : > { %750 = vst.msk [vmem:[#allocation5 + $0xc0] sm:$0xff] %vm661_vm0, %v10407_v2  ;;  %751 = vst.msk [vmem:[#allocation5 + $0xc8] sm:$0xff] %vm661_vm0, %v10407_v2 }
 0x1ae   : > { %752 = vst.msk [vmem:[#allocation5 + $0xd0] sm:$0xff] %vm661_vm0, %v10407_v2  ;;  %753 = vst.msk [vmem:[#allocation5 + $0xd8] sm:$0xff] %vm661_vm0, %v10407_v2 }
 0x1af   : > { %754 = vst.msk [vmem:[#allocation5 + $0xe0] sm:$0xff] %vm661_vm0, %v10407_v2  ;;  %755 = vst.msk [vmem:[#allocation5 + $0xe8] sm:$0xff] %vm661_vm0, %v10407_v2 }
 0x1b0   : > { %756 = vst.msk [vmem:[#allocation5 + $0xf0] sm:$0xff] %vm661_vm0, %v10407_v2  ;;  %757 = vst.msk [vmem:[#allocation5 + $0xf8] sm:$0xff] %vm661_vm0, %v10407_v2 }
 0x1b1   : > { %758 = vst.msk [vmem:[#allocation5 + $0x100] sm:$0xff] %vm661_vm0, %v10407_v2  ;;  %759 = vst.msk [vmem:[#allocation5 + $0x108] sm:$0xff] %vm661_vm0, %v10407_v2 }
 0x1b2   : > { %760 = vst.msk [vmem:[#allocation5 + $0x110] sm:$0xff] %vm661_vm0, %v10407_v2  ;;  %761 = vst.msk [vmem:[#allocation5 + $0x118] sm:$0xff] %vm661_vm0, %v10407_v2 }
 0x1b3   : > { %762 = vst.msk [vmem:[#allocation5 + $0x120] sm:$0xff] %vm661_vm0, %v10407_v2  ;;  %763 = vst.msk [vmem:[#allocation5 + $0x128] sm:$0xff] %vm661_vm0, %v10407_v2 }
 0x1b4   : > { %764 = vst.msk [vmem:[#allocation5 + $0x130] sm:$0xff] %vm661_vm0, %v10407_v2  ;;  %765 = vst.msk [vmem:[#allocation5 + $0x138] sm:$0xff] %vm661_vm0, %v10407_v2 }
 0x1b5   : > { %766 = vst.msk [vmem:[#allocation5 + $0x140] sm:$0xff] %vm661_vm0, %v10407_v2  ;;  %767 = vst.msk [vmem:[#allocation5 + $0x148] sm:$0xff] %vm661_vm0, %v10407_v2 }
 0x1b6   : > { %768 = vst.msk [vmem:[#allocation5 + $0x150] sm:$0xff] %vm661_vm0, %v10407_v2  ;;  %769 = vst.msk [vmem:[#allocation5 + $0x158] sm:$0xff] %vm661_vm0, %v10407_v2 }
 0x1b7   : > { %770 = vst.msk [vmem:[#allocation5 + $0x160] sm:$0xff] %vm661_vm0, %v10407_v2  ;;  %771 = vst.msk [vmem:[#allocation5 + $0x168] sm:$0xff] %vm661_vm0, %v10407_v2 }
 0x1b8   : > { %772 = vst.msk [vmem:[#allocation5 + $0x170] sm:$0xff] %vm661_vm0, %v10407_v2  ;;  %773 = vst.msk [vmem:[#allocation5 + $0x178] sm:$0xff] %vm661_vm0, %v10407_v2 }
 0x1b9   : > { %774 = vst.msk [vmem:[#allocation5 + $0x180] sm:$0xff] %vm661_vm0, %v10407_v2  ;;  %775 = vst.msk [vmem:[#allocation5 + $0x188] sm:$0xff] %vm661_vm0, %v10407_v2 }
 0x1ba   : > { %776 = vst.msk [vmem:[#allocation5 + $0x190] sm:$0xff] %vm661_vm0, %v10407_v2  ;;  %777 = vst.msk [vmem:[#allocation5 + $0x198] sm:$0xff] %vm661_vm0, %v10407_v2 }
 0x1bb   : > { %778 = vst.msk [vmem:[#allocation5 + $0x1a0] sm:$0xff] %vm661_vm0, %v10407_v2  ;;  %779 = vst.msk [vmem:[#allocation5 + $0x1a8] sm:$0xff] %vm661_vm0, %v10407_v2 }
 0x1bc   : > { %780 = vst.msk [vmem:[#allocation5 + $0x1b0] sm:$0xff] %vm661_vm0, %v10407_v2  ;;  %781 = vst.msk [vmem:[#allocation5 + $0x1b8] sm:$0xff] %vm661_vm0, %v10407_v2 }
 0x1bd   : > { %782 = vst.msk [vmem:[#allocation5 + $0x1c0] sm:$0xff] %vm661_vm0, %v10407_v2  ;;  %783 = vst.msk [vmem:[#allocation5 + $0x1c8] sm:$0xff] %vm661_vm0, %v10407_v2 }
 0x1be   : > { %784 = vst.msk [vmem:[#allocation5 + $0x1d0] sm:$0xff] %vm661_vm0, %v10407_v2  ;;  %785 = vst.msk [vmem:[#allocation5 + $0x1d8] sm:$0xff] %vm661_vm0, %v10407_v2 }
 0x1bf   : > { %786 = vst.msk [vmem:[#allocation5 + $0x1e0] sm:$0xff] %vm661_vm0, %v10407_v2  ;;  %787 = vst.msk [vmem:[#allocation5 + $0x1e8] sm:$0xff] %vm661_vm0, %v10407_v2 }
 0x1c0   : > { %788 = vst.msk [vmem:[#allocation5 + $0x1f0] sm:$0xff] %vm661_vm0, %v10407_v2  ;;  %789 = vst.msk [vmem:[#allocation5 + $0x1f8] sm:$0xff] %vm661_vm0, %v10407_v2 }
 0x1c1   : > { %791 = vst.msk [vmem:[#allocation6] sm:$0xff] %vm790_vm1, %v10407_v2  ;;  %792 = vst.msk [vmem:[#allocation6 + $0x8] sm:$0xff] %vm790_vm1, %v10407_v2 }
 0x1c2   : > { %793 = vst.msk [vmem:[#allocation6 + $0x10] sm:$0xff] %vm790_vm1, %v10407_v2  ;;  %794 = vst.msk [vmem:[#allocation6 + $0x18] sm:$0xff] %vm790_vm1, %v10407_v2 }
 0x1c3   : > { %795 = vst.msk [vmem:[#allocation6 + $0x20] sm:$0xff] %vm790_vm1, %v10407_v2  ;;  %796 = vst.msk [vmem:[#allocation6 + $0x28] sm:$0xff] %vm790_vm1, %v10407_v2 }
 0x1c4   : > { %797 = vst.msk [vmem:[#allocation6 + $0x30] sm:$0xff] %vm790_vm1, %v10407_v2  ;;  %798 = vst.msk [vmem:[#allocation6 + $0x38] sm:$0xff] %vm790_vm1, %v10407_v2 }
 0x1c5   : > { %799 = vst.msk [vmem:[#allocation6 + $0x40] sm:$0xff] %vm790_vm1, %v10407_v2  ;;  %800 = vst.msk [vmem:[#allocation6 + $0x48] sm:$0xff] %vm790_vm1, %v10407_v2 }
 0x1c6   : > { %801 = vst.msk [vmem:[#allocation6 + $0x50] sm:$0xff] %vm790_vm1, %v10407_v2  ;;  %802 = vst.msk [vmem:[#allocation6 + $0x58] sm:$0xff] %vm790_vm1, %v10407_v2 }
 0x1c7   : > { %803 = vst.msk [vmem:[#allocation6 + $0x60] sm:$0xff] %vm790_vm1, %v10407_v2  ;;  %804 = vst.msk [vmem:[#allocation6 + $0x68] sm:$0xff] %vm790_vm1, %v10407_v2 }
 0x1c8   : > { %805 = vst.msk [vmem:[#allocation6 + $0x70] sm:$0xff] %vm790_vm1, %v10407_v2  ;;  %806 = vst.msk [vmem:[#allocation6 + $0x78] sm:$0xff] %vm790_vm1, %v10407_v2 }
 0x1c9   : > { %807 = vst.msk [vmem:[#allocation6 + $0x80] sm:$0xff] %vm790_vm1, %v10407_v2  ;;  %808 = vst.msk [vmem:[#allocation6 + $0x88] sm:$0xff] %vm790_vm1, %v10407_v2 }
 0x1ca   : > { %809 = vst.msk [vmem:[#allocation6 + $0x90] sm:$0xff] %vm790_vm1, %v10407_v2  ;;  %810 = vst.msk [vmem:[#allocation6 + $0x98] sm:$0xff] %vm790_vm1, %v10407_v2 }
 0x1cb   : > { %811 = vst.msk [vmem:[#allocation6 + $0xa0] sm:$0xff] %vm790_vm1, %v10407_v2  ;;  %812 = vst.msk [vmem:[#allocation6 + $0xa8] sm:$0xff] %vm790_vm1, %v10407_v2 }
 0x1cc   : > { %813 = vst.msk [vmem:[#allocation6 + $0xb0] sm:$0xff] %vm790_vm1, %v10407_v2  ;;  %814 = vst.msk [vmem:[#allocation6 + $0xb8] sm:$0xff] %vm790_vm1, %v10407_v2 }
 0x1cd   : > { %815 = vst.msk [vmem:[#allocation6 + $0xc0] sm:$0xff] %vm790_vm1, %v10407_v2  ;;  %816 = vst.msk [vmem:[#allocation6 + $0xc8] sm:$0xff] %vm790_vm1, %v10407_v2 }
 0x1ce   : > { %817 = vst.msk [vmem:[#allocation6 + $0xd0] sm:$0xff] %vm790_vm1, %v10407_v2  ;;  %818 = vst.msk [vmem:[#allocation6 + $0xd8] sm:$0xff] %vm790_vm1, %v10407_v2 }
 0x1cf   : > { %819 = vst.msk [vmem:[#allocation6 + $0xe0] sm:$0xff] %vm790_vm1, %v10407_v2  ;;  %820 = vst.msk [vmem:[#allocation6 + $0xe8] sm:$0xff] %vm790_vm1, %v10407_v2 }
 0x1d0   : > { %821 = vst.msk [vmem:[#allocation6 + $0xf0] sm:$0xff] %vm790_vm1, %v10407_v2  ;;  %822 = vst.msk [vmem:[#allocation6 + $0xf8] sm:$0xff] %vm790_vm1, %v10407_v2 }
 0x1d1   : > { %823 = vst.msk [vmem:[#allocation6 + $0x100] sm:$0xff] %vm790_vm1, %v10407_v2  ;;  %824 = vst.msk [vmem:[#allocation6 + $0x108] sm:$0xff] %vm790_vm1, %v10407_v2 }
 0x1d2   : > { %825 = vst.msk [vmem:[#allocation6 + $0x110] sm:$0xff] %vm790_vm1, %v10407_v2  ;;  %826 = vst.msk [vmem:[#allocation6 + $0x118] sm:$0xff] %vm790_vm1, %v10407_v2 }
 0x1d3   : > { %827 = vst.msk [vmem:[#allocation6 + $0x120] sm:$0xff] %vm790_vm1, %v10407_v2  ;;  %828 = vst.msk [vmem:[#allocation6 + $0x128] sm:$0xff] %vm790_vm1, %v10407_v2 }
 0x1d4   : > { %829 = vst.msk [vmem:[#allocation6 + $0x130] sm:$0xff] %vm790_vm1, %v10407_v2  ;;  %830 = vst.msk [vmem:[#allocation6 + $0x138] sm:$0xff] %vm790_vm1, %v10407_v2 }
 0x1d5   : > { %831 = vst.msk [vmem:[#allocation6 + $0x140] sm:$0xff] %vm790_vm1, %v10407_v2  ;;  %832 = vst.msk [vmem:[#allocation6 + $0x148] sm:$0xff] %vm790_vm1, %v10407_v2 }
 0x1d6   : > { %833 = vst.msk [vmem:[#allocation6 + $0x150] sm:$0xff] %vm790_vm1, %v10407_v2  ;;  %834 = vst.msk [vmem:[#allocation6 + $0x158] sm:$0xff] %vm790_vm1, %v10407_v2 }
 0x1d7   : > { %835 = vst.msk [vmem:[#allocation6 + $0x160] sm:$0xff] %vm790_vm1, %v10407_v2  ;;  %836 = vst.msk [vmem:[#allocation6 + $0x168] sm:$0xff] %vm790_vm1, %v10407_v2 }
 0x1d8   : > { %837 = vst.msk [vmem:[#allocation6 + $0x170] sm:$0xff] %vm790_vm1, %v10407_v2  ;;  %838 = vst.msk [vmem:[#allocation6 + $0x178] sm:$0xff] %vm790_vm1, %v10407_v2 }
 0x1d9   : > { %839 = vst.msk [vmem:[#allocation6 + $0x180] sm:$0xff] %vm790_vm1, %v10407_v2  ;;  %840 = vst.msk [vmem:[#allocation6 + $0x188] sm:$0xff] %vm790_vm1, %v10407_v2 }
 0x1da   : > { %841 = vst.msk [vmem:[#allocation6 + $0x190] sm:$0xff] %vm790_vm1, %v10407_v2  ;;  %842 = vst.msk [vmem:[#allocation6 + $0x198] sm:$0xff] %vm790_vm1, %v10407_v2 }
 0x1db   : > { %843 = vst.msk [vmem:[#allocation6 + $0x1a0] sm:$0xff] %vm790_vm1, %v10407_v2  ;;  %844 = vst.msk [vmem:[#allocation6 + $0x1a8] sm:$0xff] %vm790_vm1, %v10407_v2 }
 0x1dc   : > { %845 = vst.msk [vmem:[#allocation6 + $0x1b0] sm:$0xff] %vm790_vm1, %v10407_v2  ;;  %846 = vst.msk [vmem:[#allocation6 + $0x1b8] sm:$0xff] %vm790_vm1, %v10407_v2 }
 0x1dd   : > { %847 = vst.msk [vmem:[#allocation6 + $0x1c0] sm:$0xff] %vm790_vm1, %v10407_v2  ;;  %848 = vst.msk [vmem:[#allocation6 + $0x1c8] sm:$0xff] %vm790_vm1, %v10407_v2 }
 0x1de   : > { %849 = vst.msk [vmem:[#allocation6 + $0x1d0] sm:$0xff] %vm790_vm1, %v10407_v2  ;;  %850 = vst.msk [vmem:[#allocation6 + $0x1d8] sm:$0xff] %vm790_vm1, %v10407_v2 }
 0x1df   : > { %851 = vst.msk [vmem:[#allocation6 + $0x1e0] sm:$0xff] %vm790_vm1, %v10407_v2  ;;  %852 = vst.msk [vmem:[#allocation6 + $0x1e8] sm:$0xff] %vm790_vm1, %v10407_v2 }
 0x1e0   : > { %853 = vst.msk [vmem:[#allocation6 + $0x1f0] sm:$0xff] %vm790_vm1, %v10407_v2  ;;  %854 = vst.msk [vmem:[#allocation6 + $0x1f8] sm:$0xff] %vm790_vm1, %v10407_v2 }
 0x1e1 PF: > { %s16759_s10 = scalar_lea.vmem [#allocation7], %s10940_s14  ;;  %vm955_vm2 = vcmask 1043456   ;;  %v16080_v5 = vmov 0.0   ;;  %v920_v6 = vld [vmem:[%s10959_s15] sm:$0xff]  ;;  %vm930_vm3 = vcmask 31744   ;;  %v11391_v9 = vld [vmem:[%s10952_s27 + $0x8] sm:$0xff] }
 0x1e2   : > { %v855_v3 = vld [vmem:[%s16759_s10] sm:$0xff]  ;;  %1024 = vmatprep.mubr.f32.mxu0 %v16080_v5  ;;  %1169 = vmatprep.mubr.f32.mxu1 %v16080_v5  ;;  %v1218_v7 = vld [vmem:[%s10971_s0] sm:$0xf]  ;;  %v921_v10 = vld [vmem:[%s10959_s15 + $0x8] sm:$0xff]  ;;  %vm2057_vm4 = vcmask 523264   ;;  %vm5529_vm6 = vcmask 7168  }
 0x1e3   : > { %v929_v4 = vcombine.high %v855_v3, %v855_v3  ;;  %v11388_v8 = vld [vmem:[%s10952_s27] sm:$0xff]  ;;  %v11399_v12 = vld [vmem:[%s10952_s27 + $0x10] sm:$0xff]  ;;  %v11402_v13 = vld [vmem:[%s10952_s27 + $0x18] sm:$0xff]  ;;  %s17720_s14 = sld [smem:[#allocation37_spill]] }
 0x1e4   : > { %v11405_v14 = vld [vmem:[%s10952_s27 + $0x20] sm:$0xff]  ;;  %v11413_v16 = vld [vmem:[%s10952_s27 + $0x28] sm:$0xff]  ;;  %v11416_v17 = vld [vmem:[%s10952_s27 + $0x30] sm:$0xff] }
 0x1e5   : > { %7916 = vmatprep.subr.msk.mxu0 %vm955_vm2, %v929_v4  ;;  %7926 = vmatprep.subr.msk.mxu1 %vm955_vm2, %v929_v4  ;;  %v11419_v18 = vld [vmem:[%s10952_s27 + $0x38] sm:$0xff]  ;;  %v11428_v21 = vld [vmem:[%s10952_s27 + $0x40] sm:$0xff]  ;;  %v11431_v22 = vld [vmem:[%s10952_s27 + $0x48] sm:$0xff] }
 0x1e6   : > { %7917 = vmatpush1.msk.msra.mxu0 %vm955_vm2, %v855_v3  ;;  %7927 = vmatpush1.msk.msra.mxu1 %vm955_vm2, %v855_v3  ;;  %v11434_v23 = vld [vmem:[%s10952_s27 + $0x50] sm:$0xff]  ;;  %v11439_v25 = vld [vmem:[%s10952_s27 + $0x58] sm:$0xff]  ;;  %v11442_v26 = vld [vmem:[%s10952_s27 + $0x60] sm:$0xff] }
 0x1e7   : > { %7918 = vmatmul.mubr.msk.f32.vlgmr.msra.gmra.mrb[0].mxu0 %vm930_vm3, %v920_v6  ;;  %8458 = vmatprep.subr.msk.mxu0 %vm955_vm2, %v1218_v7  ;;  %v11445_v27 = vld [vmem:[%s10952_s27 + $0x68] sm:$0xff]  ;;  %v11452_v30 = vld [vmem:[%s10952_s27 + $0x70] sm:$0xff]  ;;  %v11455_v31 = vld [vmem:[%s10952_s27 + $0x78] sm:$0xff] }
 0x1e8   : > { %1030 = vmatprep.mubr.f32.mxu0 %v16080_v5  ;;  %8459 = vmatpush3.msk.msra.mxu0 %vm955_vm2, %v1218_v7  ;;  %v11458_v32 = vld [vmem:[%s10952_s27 + $0x80] sm:$0xff]  ;;  %v11464_v34 = vld [vmem:[%s10952_s27 + $0x88] sm:$0xff]  ;;  %v11467_v35 = vld [vmem:[%s10952_s27 + $0x90] sm:$0xff] }
 0x1e9   : > { %v11470_v36 = vld [vmem:[%s10952_s27 + $0x98] sm:$0xff]  ;;  %v922_v37 = vld [vmem:[%s10959_s15 + $0x10] sm:$0xff]  ;;  %v924_v41 = vld [vmem:[%s10959_s15 + $0x20] sm:$0xff]  ;;  %p6619_p8 = scmp.eq.s32.totalorder %s17720_s14, 1  ;;  %p8148_p5 = scmp.ne.s32.totalorder %s17720_s14, 1 }
 0x1ea   : > { %v923_v40 = vld [vmem:[%s10959_s15 + $0x18] sm:$0xff]  ;;  %v925_v42 = vld [vmem:[%s10959_s15 + $0x28] sm:$0xff]  ;;  %v926_v43 = vld [vmem:[%s10959_s15 + $0x30] sm:$0xff] }
 0x1eb   : > { %7919 = vmatmul.mubr.msk.f32.gmra.mrb[2].mxu0 %vm930_vm3, %v921_v10  ;;  %v927_v44 = vld [vmem:[%s10959_s15 + $0x38] sm:$0xff]  ;;  %v11533_v45 = vld [vmem:[%s10952_s27 + $0xa0] sm:$0xff]  ;;  %v11540_v46 = vld [vmem:[%s10952_s27 + $0xa8] sm:$0xff] }
 0x1ec   : > { %1036 = vmatprep.mubr.f32.mxu0 %v16080_v5  ;;  %v878_v47 = vld [vmem:[%s10952_s27 + $0xb0] sm:$0xff]  ;;  %v879_v48 = vld [vmem:[%s10952_s27 + $0xb8] sm:$0xff]  ;;  %v880_v49 = vld [vmem:[%s10952_s27 + $0xc0] sm:$0xff] }
 0x1ed   : > { %v881_v50 = vld [vmem:[%s10952_s27 + $0xc8] sm:$0xff]  ;;  %v882_v51 = vld [vmem:[%s10952_s27 + $0xd0] sm:$0xff]  ;;  %v883_v52 = vld [vmem:[%s10952_s27 + $0xd8] sm:$0xff] }
 0x1ee   : > { %v884_v53 = vld [vmem:[%s10952_s27 + $0xe0] sm:$0xff]  ;;  %v11557_v54 = vld [vmem:[%s10952_s27 + $0x170] sm:$0xff]  ;;  %v11560_v55 = vld [vmem:[%s10952_s27 + $0x178] sm:$0xff] }
 0x1ef   : > { %7920 = vmatmul.mubr.msk.f32.gmra.mrb[4].mxu0 %vm930_vm3, %v922_v37  ;;  %16760 = vst [vmem:[#allocation52_spill] sm:$0xff] %v11557_v54  ;;  %16761 = vst [vmem:[#allocation53_spill] sm:$0xff] %v11560_v55  ;;  %v885_v57 = vld [vmem:[%s10952_s27 + $0xe8] sm:$0xff]  ;;  %v886_v58 = vld [vmem:[%s10952_s27 + $0xf0] sm:$0xff] }
 0x1f0   : > { %1042 = vmatprep.mubr.f32.mxu0 %v16080_v5  ;;  %v11569_v59 = vld [vmem:[%s10952_s27 + $0x180] sm:$0xff]  ;;  %v11572_v60 = vld [vmem:[%s10952_s27 + $0x188] sm:$0xff]  ;;  %v887_v62 = vld [vmem:[%s10952_s27 + $0xf8] sm:$0xff] }
 0x1f1   : > { %v11580_v63 = vld [vmem:[%s10952_s27 + $0x190] sm:$0xff]  ;;  %v11583_v0 = vld [vmem:[%s10952_s27 + $0x198] sm:$0xff]  ;;  %v888_v1 = vld [vmem:[%s10952_s27 + $0x100] sm:$0xff] }
 0x1f2   : > { %16762 = vst [vmem:[#allocation54_spill] sm:$0xff] %v11580_v63  ;;  %16763 = vst [vmem:[#allocation55_spill] sm:$0xff] %v11583_v0  ;;  %v11590_v3 = vld [vmem:[%s10952_s27 + $0x1a0] sm:$0xff]  ;;  %v11593_v4 = vld [vmem:[%s10952_s27 + $0x1a8] sm:$0xff] }
 0x1f3   : > { %7921 = vmatmul.mubr.msk.f32.gmra.mrb[6].mxu0 %vm930_vm3, %v923_v40  ;;  %16764 = vst [vmem:[#allocation56_spill] sm:$0xff] %v11590_v3  ;;  %16765 = vst [vmem:[#allocation57_spill] sm:$0xff] %v11593_v4  ;;  %v889_v6 = vld [vmem:[%s10952_s27 + $0x108] sm:$0xff]  ;;  %v11600_v10 = vld [vmem:[%s10952_s27 + $0x1b0] sm:$0xff] }
 0x1f4   : > { %1048 = vmatprep.mubr.f32.mxu0 %v16080_v5  ;;  %16766 = vst [vmem:[#allocation58_spill] sm:$0xff] %v11600_v10  ;;  %v11603_v37 = vld [vmem:[%s10952_s27 + $0x1b8] sm:$0xff]  ;;  %v890_v40 = vld [vmem:[%s10952_s27 + $0x110] sm:$0xff]  ;;  %v901_v56 = vld [vmem:[%s10952_s27 + $0x168] sm:$0xff] }
 0x1f5   : > { %16767 = vst [vmem:[#allocation59_spill] sm:$0xff] %v11603_v37  ;;  %vm12101_vm5 = vmpackc.low %vm930_vm3, %vm930_vm3 }
 0x1f6   : > { %vm15819_vm7 = vmpackc.low (!%p8148_p5), %vm2057_vm4, %vm2057_vm4 }
 0x1f7   : > { %7922 = vmatmul.mubr.msk.f32.gmra.mrb[8].mxu0 %vm930_vm3, %v924_v41 }
 0x1f8   : > { %1054 = vmatprep.mubr.f32.mxu0 %v16080_v5 }
 0x1fb   : > { %7923 = vmatmul.mubr.msk.f32.gmra.mrb[10].mxu0 %vm930_vm3, %v925_v42  ;;  %v11610_v42 = vld [vmem:[%s10952_s27 + $0x1c0] sm:$0xff] }
 0x1fc   : > { %1060 = vmatprep.mubr.f32.mxu0 %v16080_v5  ;;  %16768 = vst [vmem:[#allocation60_spill] sm:$0xff] %v11610_v42 }
 0x1ff   : > { %7924 = vmatmul.mubr.msk.f32.gmra.mrb[12].mxu0 %vm930_vm3, %v926_v43  ;;  %v11613_v43 = vld [vmem:[%s10952_s27 + $0x1c8] sm:$0xff] }
 0x200   : > { %1066 = vmatprep.mubr.f32.mxu0 %v16080_v5  ;;  %16769 = vst [vmem:[#allocation61_spill] sm:$0xff] %v11613_v43 }
 0x203   : > { %7925 = vmatmul.mubr.msk.f32.gmra.mrb[14].mxu0 %vm930_vm3, %v927_v44  ;;  %v891_v44 = vld [vmem:[%s10952_s27 + $0x118] sm:$0xff] }
 0x204   : > { %8460 = vmatprep.mubr.msk.f32.mxu0 %vm930_vm3, %v11388_v8 }
 0x207   : > { %8461 = vmatmul.mubr.msk.f32.vlgmr.msra.gmra.mrb[16].mxu0 %vm930_vm3, %v11391_v9 }
 0x208   : > { %8463 = vmatprep.mubr.msk.f32.mxu0 %vm930_vm3, %v11399_v12 }
 0x20b   : > { %8464 = vmatmul.mubr.msk.f32.gmra.mrb[18].mxu0 %vm930_vm3, %v11402_v13 }
 0x20c   : > { %8466 = vmatprep.mubr.msk.f32.mxu0 %vm930_vm3, %v11405_v14 }
 0x20f   : > { %8467 = vmatmul.mubr.msk.f32.gmra.mrb[20].mxu0 %vm930_vm3, %v11413_v16 }
 0x210   : > { %8469 = vmatprep.mubr.msk.f32.mxu0 %vm930_vm3, %v11416_v17 }
 0x213   : > { %8470 = vmatmul.mubr.msk.f32.gmra.mrb[22].mxu0 %vm930_vm3, %v11419_v18 }
 0x214   : > { %8472 = vmatprep.mubr.msk.f32.mxu0 %vm930_vm3, %v11428_v21 }
 0x217   : > { %8473 = vmatmul.mubr.msk.f32.gmra.mrb[24].mxu0 %vm930_vm3, %v11431_v22 }
 0x218   : > { %8475 = vmatprep.mubr.msk.f32.mxu0 %vm930_vm3, %v11434_v23 }
 0x21b   : > { %8476 = vmatmul.mubr.msk.f32.gmra.mrb[26].mxu0 %vm930_vm3, %v11439_v25 }
 0x21c   : > { %8478 = vmatprep.mubr.msk.f32.mxu0 %vm930_vm3, %v11442_v26 }
 0x21f   : > { %8479 = vmatmul.mubr.msk.f32.gmra.mrb[28].mxu0 %vm930_vm3, %v11445_v27 }
 0x220   : > { %8481 = vmatprep.mubr.msk.f32.mxu0 %vm930_vm3, %v11452_v30 }
 0x223   : > { %8482 = vmatmul.mubr.msk.f32.gmra.mrb[30].mxu0 %vm930_vm3, %v11455_v31 }
 0x224   : > { %8484 = vmatprep.mubr.msk.f32.mxu0 %vm930_vm3, %v11458_v32 }
 0x227   : > { %8485 = vmatmul.mubr.msk.f32.gmra.mrb[32].mxu0 %vm930_vm3, %v11464_v34 }
 0x228   : > { %8487 = vmatprep.mubr.msk.f32.mxu0 %vm930_vm3, %v11467_v35 }
 0x22b   : > { %8488 = vmatmul.mubr.msk.f32.gmra.mrb[34].mxu0 %vm930_vm3, %v11470_v36 }
 0x22c   : > { %8490 = vmatprep.mubr.msk.f32.mxu0 %vm930_vm3, %v11533_v45 }
 0x22f   : > { %8491 = vmatmul.mubr.msk.f32.gmra.mrb[36].mxu0 %vm930_vm3, %v11540_v46 }
 0x230   : > { %8493 = vmatprep.mubr.msk.f32.mxu0 %vm930_vm3, %v878_v47 }
 0x233   : > { %8494 = vmatmul.mubr.msk.f32.gmra.mrb[38].mxu0 %vm930_vm3, %v879_v48  ;;  %v892_v48 = vld [vmem:[%s10952_s27 + $0x120] sm:$0xff] }
 0x234   : > { %8496 = vmatprep.mubr.msk.f32.mxu0 %vm930_vm3, %v880_v49  ;;  %v893_v49 = vld [vmem:[%s10952_s27 + $0x128] sm:$0xff] }
 0x237   : > { %8497 = vmatmul.mubr.msk.f32.gmra.mrb[40].mxu0 %vm930_vm3, %v881_v50  ;;  %v894_v50 = vld [vmem:[%s10952_s27 + $0x130] sm:$0xff] }
 0x238   : > { %8499 = vmatprep.mubr.msk.f32.mxu0 %vm930_vm3, %v882_v51  ;;  %v11626_v51 = vld [vmem:[%s10952_s27 + $0x1d0] sm:$0xff] }
 0x239   : > { %16770 = vst [vmem:[#allocation62_spill] sm:$0xff] %v11626_v51 }
 0x23b   : > { %8500 = vmatmul.mubr.msk.f32.gmra.mrb[42].mxu0 %vm930_vm3, %v883_v52  ;;  %v11629_v52 = vld [vmem:[%s10952_s27 + $0x1d8] sm:$0xff] }
 0x23c   : > { %8502 = vmatprep.mubr.msk.f32.mxu0 %vm930_vm3, %v884_v53  ;;  %16771 = vst [vmem:[#allocation63_spill] sm:$0xff] %v11629_v52  ;;  %v895_v53 = vld [vmem:[%s10952_s27 + $0x138] sm:$0xff] }
 0x23f   : > { %8503 = vmatmul.mubr.msk.f32.gmra.mrb[44].mxu0 %vm930_vm3, %v885_v57 }
 0x240   : > { %8505 = vmatprep.mubr.msk.f32.mxu0 %vm930_vm3, %v886_v58  ;;  %v896_v58 = vld [vmem:[%s10952_s27 + $0x140] sm:$0xff] }
 0x243   : > { %8506 = vmatmul.mubr.msk.f32.gmra.mrb[46].mxu0 %vm930_vm3, %v887_v62  ;;  %v897_v62 = vld [vmem:[%s10952_s27 + $0x148] sm:$0xff] }
 0x244   : > { %8508 = vmatprep.mubr.msk.f32.mxu0 %vm930_vm3, %v888_v1  ;;  %v898_v1 = vld [vmem:[%s10952_s27 + $0x150] sm:$0xff] }
 0x247   : > { %8509 = vmatmul.mubr.msk.f32.gmra.mrb[48].mxu0 %vm930_vm3, %v889_v6  ;;  %v11641_v6 = vld [vmem:[%s10952_s27 + $0x1e0] sm:$0xff] }
 0x248   : > { %8511 = vmatprep.mubr.msk.f32.mxu0 %vm930_vm3, %v890_v40  ;;  %16772 = vst [vmem:[#allocation64_spill] sm:$0xff] %v11641_v6  ;;  %v11644_v40 = vld [vmem:[%s10952_s27 + $0x1e8] sm:$0xff] }
 0x249   : > { %16773 = vst [vmem:[#allocation65_spill] sm:$0xff] %v11644_v40 }
 0x24b   : > { %8512 = vmatmul.mubr.msk.f32.gmra.mrb[50].mxu0 %vm930_vm3, %v891_v44 }
 0x24c   : > { %8514 = vmatprep.mubr.msk.f32.mxu0 %vm930_vm3, %v892_v48  ;;  %v899_v48 = vld [vmem:[%s10952_s27 + $0x158] sm:$0xff] }
 0x24f   : > { %8515 = vmatmul.mubr.msk.f32.gmra.mrb[52].mxu0 %vm930_vm3, %v893_v49  ;;  %v11652_v49 = vld [vmem:[%s10952_s27 + $0x1f0] sm:$0xff] }
 0x250   : > { %8517 = vmatprep.mubr.msk.f32.mxu0 %vm930_vm3, %v894_v50  ;;  %16774 = vst [vmem:[#allocation66_spill] sm:$0xff] %v11652_v49  ;;  %v11655_v50 = vld [vmem:[%s10952_s27 + $0x1f8] sm:$0xff] }
 0x251   : > { %16775 = vst [vmem:[#allocation67_spill] sm:$0xff] %v11655_v50 }
 0x253   : > { %8518 = vmatmul.mubr.msk.f32.gmra.mrb[54].mxu0 %vm930_vm3, %v895_v53  ;;  %v900_v53 = vld [vmem:[%s10952_s27 + $0x160] sm:$0xff] }
 0x254   : > { %8520 = vmatprep.mubr.msk.f32.mxu0 %vm930_vm3, %v896_v58 }
 0x257   : > { %8521 = vmatmul.mubr.msk.f32.gmra.mrb[56].mxu0 %vm930_vm3, %v897_v62 }
 0x258   : > { %8523 = vmatprep.mubr.msk.f32.mxu0 %vm930_vm3, %v898_v1 }
 0x25b   : > { %8524 = vmatmul.mubr.msk.f32.gmra.mrb[58].mxu0 %vm930_vm3, %v899_v48 }
 0x25c   : > { %8526 = vmatprep.mubr.msk.f32.mxu0 %vm930_vm3, %v900_v53 }
 0x25f   : > { %8527 = vmatmul.mubr.msk.f32.gmra.mrb[60].mxu0 %vm930_vm3, %v901_v56 }
 0x260   : > { %8529 = vmatprep.mubr.msk.f32.mxu0 %vm930_vm3, %v11557_v54 }
 0x263   : > { %8530 = vmatmul.mubr.msk.f32.gmra.mrb[62].mxu0 %vm930_vm3, %v11560_v55 }
 0x264   : > { %8532 = vmatprep.mubr.msk.f32.mxu0 %vm930_vm3, %v11569_v59 }
 0x267   : > { %8533 = vmatmul.mubr.msk.f32.gmra.mrb[64].mxu0 %vm930_vm3, %v11572_v60 }
 0x268   : > { %8535 = vmatprep.mubr.msk.f32.mxu0 %vm930_vm3, %v11580_v63 }
 0x26b   : > { %8536 = vmatmul.mubr.msk.f32.gmra.mrb[66].mxu0 %vm930_vm3, %v11583_v0 }
 0x26c   : > { %8538 = vmatprep.mubr.msk.f32.mxu0 %vm930_vm3, %v11590_v3  ;;  %v1074_v3 = vld [vmem:[%s10965_s4 + $0x8] sm:$0xff] }
 0x26f   : > { %8539 = vmatmul.mubr.msk.f32.gmra.mrb[68].mxu0 %vm930_vm3, %v11593_v4 }
 0x270   : > { %8541 = vmatprep.mubr.msk.f32.mxu0 %vm930_vm3, %v11600_v10 }
 0x273   : > { %8542 = vmatmul.mubr.msk.f32.gmra.mrb[70].mxu0 %vm930_vm3, %v11603_v37 }
 0x274   : > { %8544 = vmatprep.mubr.msk.f32.mxu0 %vm930_vm3, %v11610_v42 }
 0x277   : > { %8545 = vmatmul.mubr.msk.f32.gmra.mrb[72].mxu0 %vm930_vm3, %v11613_v43 }
 0x278   : > { %8547 = vmatprep.mubr.msk.f32.mxu0 %vm930_vm3, %v11626_v51 }
 0x27b   : > { %8548 = vmatmul.mubr.msk.f32.gmra.mrb[74].mxu0 %vm930_vm3, %v11629_v52 }
 0x27c   : > { %8550 = vmatprep.mubr.msk.f32.mxu0 %vm930_vm3, %v11641_v6 }
 0x27f   : > { %8551 = vmatmul.mubr.msk.f32.gmra.mrb[76].mxu0 %vm930_vm3, %v11644_v40 }
 0x280   : > { %8553 = vmatprep.mubr.msk.f32.mxu0 %vm930_vm3, %v11652_v49 }
 0x283   : > { %8554 = vmatmul.mubr.msk.f32.gmra.mrb[78].mxu0 %vm930_vm3, %v11655_v50 }
 0x284   : > { %2314 = vmatprep.mubr.f32.mxu0 %v16080_v5 }
 0x2ba   : > { %v1026_v56 = vpop.f32.mrb[0].mxu0 }
 0x2bb   : > { %v1028_v62 = vpop.f32.mrb[1].mxu0 }
 0x2be   : > { %v1032_v1 = vpop.f32.mrb[2].mxu0 }
 0x2bf   : > { %v8654_v48 = vpack.c.bf16 %v1032_v1, %v1026_v56  ;;  %v1034_v53 = vpop.f32.mrb[3].mxu0 }
 0x2c0   : > { %v8652_v58 = vpack.c.bf16 %v1034_v53, %v1028_v62 }
 0x2c2   : > { %8653 = vmatprep.subr.bf16.mxu0 %v8652_v58  ;;  %v1038_v44 = vpop.f32.mrb[4].mxu0 }
 0x2c3   : > { %8655 = vmatpush1.bf16.msra.mxu0 %v8654_v48  ;;  %v1040_v57 = vpop.f32.mrb[5].mxu0 }
 0x2c6   : > { %v1044_v47 = vpop.f32.mrb[6].mxu0 }
 0x2c7   : > { %v8658_v41 = vpack.c.bf16 %v1044_v47, %v1038_v44  ;;  %v1046_v7 = vpop.f32.mrb[7].mxu0 }
 0x2c8   : > { %v8656_v2 = vpack.c.bf16 %v1046_v7, %v1040_v57 }
 0x2ca   : > { %v1050_v61 = vpop.f32.mrb[8].mxu0  ;;  %8657 = vmatprep.subr.bf16.mxu0 %v8656_v2 }
 0x2cb   : > { %v1052_v33 = vpop.f32.mrb[9].mxu0  ;;  %8659 = vmatpush1.bf16.msra.mxu0 %v8658_v41 }
 0x2ce   : > { %v1056_v29 = vpop.f32.mrb[10].mxu0 }
 0x2cf   : > { %v8662_v28 = vpack.c.bf16 %v1056_v29, %v1050_v61  ;;  %v1058_v24 = vpop.f32.mrb[11].mxu0 }
 0x2d0   : > { %v8660_v20 = vpack.c.bf16 %v1058_v24, %v1052_v33 }
 0x2d2   : > { %v1062_v19 = vpop.f32.mrb[12].mxu0  ;;  %8661 = vmatprep.subr.bf16.mxu0 %v8660_v20 }
 0x2d3   : > { %v1064_v56 = vpop.f32.mrb[13].mxu0  ;;  %8663 = vmatpush1.bf16.msra.mxu0 %v8662_v28 }
 0x2d6   : > { %v1068_v58 = vpop.f32.mrb[14].mxu0 }
 0x2d7   : > { %v8666_v62 = vpack.c.bf16 %v1068_v58, %v1062_v19  ;;  %v1070_v1 = vpop.f32.mrb[15].mxu0 }
 0x2d8   : > { %v8664_v48 = vpack.c.bf16 %v1070_v1, %v1064_v56 }
 0x2da   : > { %8665 = vmatprep.subr.bf16.mxu0 %v8664_v48  ;;  %v8462_v47 = vpop.f32.mrb[16].mxu0 }
 0x2db   : > { %8667 = vmatpush1.bf16.msra.mxu0 %v8666_v62  ;;  %v1480_v7 = vpop.f32.mrb[17].mxu0 }
 0x2de   : > { %8081 = vmatmul.mubr.msk.f32.vlgmr.msra.gmra.mrb[80].mxu0 %vm2057_vm4, %v1480_v7  ;;  %v8465_v2 = vpop.f32.mrb[18].mxu0 }
 0x2df   : > { %2320 = vmatprep.mubr.f32.mxu0 %v16080_v5  ;;  %v1490_v29 = vpop.f32.mrb[19].mxu0 }
 0x2e2   : > { %8082 = vmatmul.mubr.msk.f32.gmra.mrb[82].mxu0 %vm2057_vm4, %v8462_v47  ;;  %v8468_v20 = vpop.f32.mrb[20].mxu0 }
 0x2e3   : > { %2326 = vmatprep.mubr.f32.mxu0 %v16080_v5  ;;  %v1500_v24 = vpop.f32.mrb[21].mxu0 }
 0x2e6   : > { %8083 = vmatmul.mubr.msk.f32.gmra.mrb[84].mxu0 %vm2057_vm4, %v1490_v29  ;;  %v8471_v19 = vpop.f32.mrb[22].mxu0 }
 0x2e7   : > { %2332 = vmatprep.mubr.f32.mxu0 %v16080_v5  ;;  %v1510_v28 = vpop.f32.mrb[23].mxu0 }
 0x2ea   : > { %8084 = vmatmul.mubr.msk.f32.gmra.mrb[86].mxu0 %vm2057_vm4, %v8465_v2  ;;  %v8474_v33 = vpop.f32.mrb[24].mxu0 }
 0x2eb   : > { %2338 = vmatprep.mubr.f32.mxu0 %v16080_v5  ;;  %v1520_v61 = vpop.f32.mrb[25].mxu0 }
 0x2ee   : > { %8085 = vmatmul.mubr.msk.f32.gmra.mrb[88].mxu0 %vm2057_vm4, %v1500_v24  ;;  %v8477_v41 = vpop.f32.mrb[26].mxu0 }
 0x2ef   : > { %2344 = vmatprep.mubr.f32.mxu0 %v16080_v5  ;;  %v1530_v57 = vpop.f32.mrb[27].mxu0 }
 0x2f2   : > { %8086 = vmatmul.mubr.msk.f32.gmra.mrb[90].mxu0 %vm2057_vm4, %v8468_v20  ;;  %v8480_v44 = vpop.f32.mrb[28].mxu0 }
 0x2f3   : > { %2350 = vmatprep.mubr.f32.mxu0 %v16080_v5  ;;  %v1540_v53 = vpop.f32.mrb[29].mxu0 }
 0x2f6   : > { %8087 = vmatmul.mubr.msk.f32.gmra.mrb[92].mxu0 %vm2057_vm4, %v1510_v28  ;;  %v8483_v56 = vpop.f32.mrb[30].mxu0 }
 0x2f7   : > { %2356 = vmatprep.mubr.f32.mxu0 %v16080_v5  ;;  %v1550_v58 = vpop.f32.mrb[31].mxu0 }
 0x2fa   : > { %8088 = vmatmul.mubr.msk.f32.gmra.mrb[94].mxu0 %vm2057_vm4, %v8471_v19  ;;  %v8486_v62 = vpop.f32.mrb[32].mxu0 }
 0x2fb   : > { %2362 = vmatprep.mubr.f32.mxu0 %v16080_v5  ;;  %v1560_v1 = vpop.f32.mrb[33].mxu0 }
 0x2fe   : > { %8089 = vmatmul.mubr.msk.f32.gmra.mrb[96].mxu0 %vm2057_vm4, %v1520_v61  ;;  %v8489_v48 = vpop.f32.mrb[34].mxu0 }
 0x2ff   : > { %2368 = vmatprep.mubr.f32.mxu0 %v16080_v5  ;;  %v1570_v47 = vpop.f32.mrb[35].mxu0 }
 0x302   : > { %8090 = vmatmul.mubr.msk.f32.gmra.mrb[98].mxu0 %vm2057_vm4, %v8474_v33  ;;  %v8492_v7 = vpop.f32.mrb[36].mxu0 }
 0x303   : > { %2374 = vmatprep.mubr.f32.mxu0 %v16080_v5  ;;  %v1580_v2 = vpop.f32.mrb[37].mxu0 }
 0x306   : > { %8091 = vmatmul.mubr.msk.f32.gmra.mrb[100].mxu0 %vm2057_vm4, %v1530_v57  ;;  %v8495_v29 = vpop.f32.mrb[38].mxu0 }
 0x307   : > { %2380 = vmatprep.mubr.f32.mxu0 %v16080_v5  ;;  %v1590_v20 = vpop.f32.mrb[39].mxu0 }
 0x30a   : > { %8092 = vmatmul.mubr.msk.f32.gmra.mrb[102].mxu0 %vm2057_vm4, %v8477_v41  ;;  %v8498_v24 = vpop.f32.mrb[40].mxu0 }
 0x30b   : > { %2386 = vmatprep.mubr.f32.mxu0 %v16080_v5  ;;  %v1600_v19 = vpop.f32.mrb[41].mxu0 }
 0x30e   : > { %8093 = vmatmul.mubr.msk.f32.gmra.mrb[104].mxu0 %vm2057_vm4, %v1540_v53  ;;  %v8501_v28 = vpop.f32.mrb[42].mxu0 }
 0x30f   : > { %2392 = vmatprep.mubr.f32.mxu0 %v16080_v5  ;;  %v1610_v33 = vpop.f32.mrb[43].mxu0 }
 0x312   : > { %8094 = vmatmul.mubr.msk.f32.gmra.mrb[106].mxu0 %vm2057_vm4, %v8480_v44  ;;  %v11728_v61 = vpop.f32.mrb[44].mxu0 }
 0x313   : > { %2398 = vmatprep.mubr.f32.mxu0 %v16080_v5  ;;  %v1620_v57 = vpop.f32.mrb[45].mxu0 }
 0x316   : > { %8095 = vmatmul.mubr.msk.f32.gmra.mrb[108].mxu0 %vm2057_vm4, %v1550_v58  ;;  %v11732_v41 = vpop.f32.mrb[46].mxu0 }
 0x317   : > { %2404 = vmatprep.mubr.f32.mxu0 %v16080_v5  ;;  %v1630_v15 = vpop.f32.mrb[47].mxu0 }
 0x31a   : > { %8096 = vmatmul.mubr.msk.f32.gmra.mrb[110].mxu0 %vm2057_vm4, %v8483_v56  ;;  %v11736_v53 = vpop.f32.mrb[48].mxu0 }
 0x31b   : > { %2410 = vmatprep.mubr.f32.mxu0 %v16080_v5  ;;  %v11739_v39 = vpop.f32.mrb[49].mxu0 }
 0x31e   : > { %8097 = vmatmul.mubr.msk.f32.gmra.mrb[112].mxu0 %vm2057_vm4, %v1560_v1  ;;  %v11742_v44 = vpop.f32.mrb[50].mxu0 }
 0x31f   : > { %2416 = vmatprep.mubr.f32.mxu0 %v16080_v5  ;;  %v11745_v58 = vpop.f32.mrb[51].mxu0 }
 0x322   : > { %8098 = vmatmul.mubr.msk.f32.gmra.mrb[114].mxu0 %vm2057_vm4, %v8486_v62  ;;  %v11748_v11 = vpop.f32.mrb[52].mxu0 }
 0x323   : > { %2422 = vmatprep.mubr.f32.mxu0 %v16080_v5  ;;  %v11751_v56 = vpop.f32.mrb[53].mxu0 }
 0x326   : > { %8099 = vmatmul.mubr.msk.f32.gmra.mrb[116].mxu0 %vm2057_vm4, %v1570_v47  ;;  %v11754_v38 = vpop.f32.mrb[54].mxu0 }
 0x327   : > { %2428 = vmatprep.mubr.f32.mxu0 %v16080_v5  ;;  %v11757_v1 = vpop.f32.mrb[55].mxu0 }
 0x32a   : > { %8100 = vmatmul.mubr.msk.f32.gmra.mrb[118].mxu0 %vm2057_vm4, %v8489_v48  ;;  %v11760_v54 = vpop.f32.mrb[56].mxu0 }
 0x32b   : > { %2434 = vmatprep.mubr.f32.mxu0 %v16080_v5  ;;  %v11763_v62 = vpop.f32.mrb[57].mxu0 }
 0x32e   : > { %8101 = vmatmul.mubr.msk.f32.gmra.mrb[120].mxu0 %vm2057_vm4, %v1580_v2  ;;  %v11766_v55 = vpop.f32.mrb[58].mxu0 }
 0x32f   : > { %2440 = vmatprep.mubr.f32.mxu0 %v16080_v5  ;;  %v11769_v47 = vpop.f32.mrb[59].mxu0 }
 0x332   : > { %8102 = vmatmul.mubr.msk.f32.gmra.mrb[122].mxu0 %vm2057_vm4, %v8492_v7  ;;  %v11772_v49 = vpop.f32.mrb[60].mxu0 }
 0x333   : > { %2446 = vmatprep.mubr.f32.mxu0 %v16080_v5  ;;  %v11775_v48 = vpop.f32.mrb[61].mxu0 }
 0x336   : > { %8103 = vmatmul.mubr.msk.f32.gmra.mrb[124].mxu0 %vm2057_vm4, %v1590_v20  ;;  %v11778_v50 = vpop.f32.mrb[62].mxu0 }
 0x337   : > { %2452 = vmatprep.mubr.f32.mxu0 %v16080_v5  ;;  %v11781_v2 = vpop.f32.mrb[63].mxu0 }
 0x33a   : > { %8104 = vmatmul.mubr.msk.f32.gmra.mrb[126].mxu0 %vm2057_vm4, %v8495_v29  ;;  %v11784_v6 = vpop.f32.mrb[64].mxu0 }
 0x33b   : > { %2458 = vmatprep.mubr.f32.mxu0 %v16080_v5  ;;  %v11787_v7 = vpop.f32.mrb[65].mxu0 }
 0x33e   : > { %8105 = vmatmul.mubr.msk.f32.gmra.mrb[128].mxu0 %vm2057_vm4, %v1600_v19  ;;  %v11790_v40 = vpop.f32.mrb[66].mxu0 }
 0x33f   : > { %2464 = vmatprep.mubr.f32.mxu0 %v16080_v5  ;;  %v11793_v20 = vpop.f32.mrb[67].mxu0 }
 0x342   : > { %8106 = vmatmul.mubr.msk.f32.gmra.mrb[130].mxu0 %vm2057_vm4, %v8498_v24  ;;  %v11796_v51 = vpop.f32.mrb[68].mxu0 }
 0x343   : > { %2470 = vmatprep.mubr.f32.mxu0 %v16080_v5  ;;  %v11799_v29 = vpop.f32.mrb[69].mxu0 }
 0x346   : > { %8107 = vmatmul.mubr.msk.f32.gmra.mrb[132].mxu0 %vm2057_vm4, %v1610_v33  ;;  %v11802_v52 = vpop.f32.mrb[70].mxu0 }
 0x347   : > { %2476 = vmatprep.mubr.f32.mxu0 %v16080_v5  ;;  %v11805_v19 = vpop.f32.mrb[71].mxu0 }
 0x34a   : > { %8108 = vmatmul.mubr.msk.f32.gmra.mrb[134].mxu0 %vm2057_vm4, %v8501_v28  ;;  %v11808_v42 = vpop.f32.mrb[72].mxu0 }
 0x34b   : > { %2482 = vmatprep.mubr.f32.mxu0 %v16080_v5  ;;  %v11811_v24 = vpop.f32.mrb[73].mxu0 }
 0x34e   : > { %8109 = vmatmul.mubr.msk.f32.gmra.mrb[136].mxu0 %vm2057_vm4, %v1620_v57  ;;  %v11814_v43 = vpop.f32.mrb[74].mxu0 }
 0x34f   : > { %2488 = vmatprep.mubr.f32.mxu0 %v16080_v5  ;;  %v11817_v33 = vpop.f32.mrb[75].mxu0 }
 0x352   : > { %8110 = vmatmul.mubr.msk.f32.gmra.mrb[138].mxu0 %vm2057_vm4, %v11728_v61  ;;  %v11821_v28 = vpop.f32.mrb[76].mxu0  ;;  %v1073_v61 = vld [vmem:[%s10965_s4] sm:$0xff] }
 0x353   : > { %2494 = vmatprep.mubr.f32.mxu0 %v16080_v5  ;;  %v11824_v10 = vpop.f32.mrb[77].mxu0  ;;  %7928 = vmatmul.mubr.msk.f32.vlgmr.msra.gmra.mrb[0].mxu1 %vm930_vm3, %v1073_v61 }
 0x354   : > { %1175 = vmatprep.mubr.f32.mxu1 %v16080_v5 }
 0x356   : > { %8111 = vmatmul.mubr.msk.f32.gmra.mrb[140].mxu0 %vm2057_vm4, %v1630_v15  ;;  %v11827_v57 = vpop.f32.mrb[78].mxu0  ;;  %v1075_v15 = vld [vmem:[%s10965_s4 + $0x10] sm:$0xff] }
 0x357   : > { %2500 = vmatprep.mubr.f32.mxu0 %v16080_v5  ;;  %v11830_v37 = vpop.f32.mrb[79].mxu0  ;;  %7929 = vmatmul.mubr.msk.f32.gmra.mrb[2].mxu1 %vm930_vm3, %v1074_v3  ;;  %v1078_v3 = vld [vmem:[%s10965_s4 + $0x28] sm:$0xff] }
 0x358   : > { %1181 = vmatprep.mubr.f32.mxu1 %v16080_v5 }
 0x35a   : > { %8112 = vmatmul.mubr.msk.f32.gmra.mrb[142].mxu0 %vm2057_vm4, %v11732_v41  ;;  %v1076_v41 = vld [vmem:[%s10965_s4 + $0x18] sm:$0xff] }
 0x35b   : > { %2506 = vmatprep.mubr.f32.mxu0 %v16080_v5  ;;  %7930 = vmatmul.mubr.msk.f32.gmra.mrb[4].mxu1 %vm930_vm3, %v1075_v15 }
 0x35c   : > { %1187 = vmatprep.mubr.f32.mxu1 %v16080_v5 }
 0x35e   : > { %8113 = vmatmul.mubr.msk.f32.gmra.mrb[144].mxu0 %vm2057_vm4, %v11739_v39  ;;  %v1077_v39 = vld [vmem:[%s10965_s4 + $0x20] sm:$0xff] }
 0x35f   : > { %2512 = vmatprep.mubr.f32.mxu0 %v16080_v5  ;;  %7931 = vmatmul.mubr.msk.f32.gmra.mrb[6].mxu1 %vm930_vm3, %v1076_v41 }
 0x360   : > { %1193 = vmatprep.mubr.f32.mxu1 %v16080_v5 }
 0x362   : > { %8114 = vmatmul.mubr.msk.f32.gmra.mrb[146].mxu0 %vm2057_vm4, %v11736_v53  ;;  %v1079_v53 = vld [vmem:[%s10965_s4 + $0x30] sm:$0xff] }
 0x363   : > { %2518 = vmatprep.mubr.f32.mxu0 %v16080_v5  ;;  %7932 = vmatmul.mubr.msk.f32.gmra.mrb[8].mxu1 %vm930_vm3, %v1077_v39 }
 0x364   : > { %1199 = vmatprep.mubr.f32.mxu1 %v16080_v5 }
 0x366   : > { %8115 = vmatmul.mubr.msk.f32.gmra.mrb[148].mxu0 %vm2057_vm4, %v11745_v58 }
 0x367   : > { %2524 = vmatprep.mubr.f32.mxu0 %v16080_v5  ;;  %7933 = vmatmul.mubr.msk.f32.gmra.mrb[10].mxu1 %vm930_vm3, %v1078_v3 }
 0x368   : > { %1205 = vmatprep.mubr.f32.mxu1 %v16080_v5 }
 0x36a   : > { %8116 = vmatmul.mubr.msk.f32.gmra.mrb[150].mxu0 %vm2057_vm4, %v11742_v44  ;;  %v1080_v44 = vld [vmem:[%s10965_s4 + $0x38] sm:$0xff] }
 0x36b   : > { %2530 = vmatprep.mubr.f32.mxu0 %v16080_v5  ;;  %7934 = vmatmul.mubr.msk.f32.gmra.mrb[12].mxu1 %vm930_vm3, %v1079_v53 }
 0x36c   : > { %1211 = vmatprep.mubr.f32.mxu1 %v16080_v5 }
 0x36e   : > { %8117 = vmatmul.mubr.msk.f32.gmra.mrb[152].mxu0 %vm2057_vm4, %v11751_v56 }
 0x36f   : > { %2536 = vmatprep.mubr.f32.mxu0 %v16080_v5  ;;  %7935 = vmatmul.mubr.msk.f32.gmra.mrb[14].mxu1 %vm930_vm3, %v1080_v44 }
 0x372   : > { %8118 = vmatmul.mubr.msk.f32.gmra.mrb[154].mxu0 %vm2057_vm4, %v11748_v11 }
 0x373   : > { %2542 = vmatprep.mubr.f32.mxu0 %v16080_v5 }
 0x376   : > { %8119 = vmatmul.mubr.msk.f32.gmra.mrb[156].mxu0 %vm2057_vm4, %v11757_v1 }
 0x377   : > { %2548 = vmatprep.mubr.f32.mxu0 %v16080_v5 }
 0x37a   : > { %8120 = vmatmul.mubr.msk.f32.gmra.mrb[158].mxu0 %vm2057_vm4, %v11754_v38 }
 0x37b   : > { %2554 = vmatprep.mubr.f32.mxu0 %v16080_v5 }
 0x37e   : > { %8121 = vmatmul.mubr.msk.f32.gmra.mrb[160].mxu0 %vm2057_vm4, %v11763_v62 }
 0x37f   : > { %2560 = vmatprep.mubr.f32.mxu0 %v16080_v5 }
 0x382   : > { %8122 = vmatmul.mubr.msk.f32.gmra.mrb[162].mxu0 %vm2057_vm4, %v11760_v54 }
 0x383   : > { %2566 = vmatprep.mubr.f32.mxu0 %v16080_v5 }
 0x386   : > { %8123 = vmatmul.mubr.msk.f32.gmra.mrb[164].mxu0 %vm2057_vm4, %v11769_v47 }
 0x387   : > { %2572 = vmatprep.mubr.f32.mxu0 %v16080_v5 }
 0x38a   : > { %8124 = vmatmul.mubr.msk.f32.gmra.mrb[166].mxu0 %vm2057_vm4, %v11766_v55 }
 0x38b   : > { %2578 = vmatprep.mubr.f32.mxu0 %v16080_v5 }
 0x38e   : > { %8125 = vmatmul.mubr.msk.f32.gmra.mrb[168].mxu0 %vm2057_vm4, %v11775_v48 }
 0x38f   : > { %2584 = vmatprep.mubr.f32.mxu0 %v16080_v5 }
 0x392   : > { %8126 = vmatmul.mubr.msk.f32.gmra.mrb[170].mxu0 %vm2057_vm4, %v11772_v49 }
 0x393   : > { %2590 = vmatprep.mubr.f32.mxu0 %v16080_v5 }
 0x396   : > { %8127 = vmatmul.mubr.msk.f32.gmra.mrb[172].mxu0 %vm2057_vm4, %v11781_v2 }
 0x397   : > { %2596 = vmatprep.mubr.f32.mxu0 %v16080_v5 }
 0x39a   : > { %8128 = vmatmul.mubr.msk.f32.gmra.mrb[174].mxu0 %vm2057_vm4, %v11778_v50 }
 0x39b   : > { %2602 = vmatprep.mubr.f32.mxu0 %v16080_v5 }
 0x39e   : > { %8129 = vmatmul.mubr.msk.f32.gmra.mrb[176].mxu0 %vm2057_vm4, %v11787_v7 }
 0x39f   : > { %2608 = vmatprep.mubr.f32.mxu0 %v16080_v5 }
 0x3a2   : > { %8130 = vmatmul.mubr.msk.f32.gmra.mrb[178].mxu0 %vm2057_vm4, %v11784_v6 }
 0x3a3   : > { %2614 = vmatprep.mubr.f32.mxu0 %v16080_v5 }
 0x3a6   : > { %8131 = vmatmul.mubr.msk.f32.gmra.mrb[180].mxu0 %vm2057_vm4, %v11793_v20 }
 0x3a7   : > { %2620 = vmatprep.mubr.f32.mxu0 %v16080_v5 }
 0x3aa   : > { %8132 = vmatmul.mubr.msk.f32.gmra.mrb[182].mxu0 %vm2057_vm4, %v11790_v40 }
 0x3ab   : > { %2626 = vmatprep.mubr.f32.mxu0 %v16080_v5 }
 0x3ae   : > { %8133 = vmatmul.mubr.msk.f32.gmra.mrb[184].mxu0 %vm2057_vm4, %v11799_v29 }
 0x3af   : > { %2632 = vmatprep.mubr.f32.mxu0 %v16080_v5 }
 0x3b1   : > { %v2316_v11 = vpop.f32.mrb[80].mxu0 }
 0x3b2   : > { %8134 = vmatmul.mubr.msk.f32.gmra.mrb[186].mxu0 %vm2057_vm4, %v11796_v51  ;;  %v11923_v38 = vmul.f32 0.125, %v2316_v11  ;;  %v2318_v54 = vpop.f32.mrb[81].mxu0 }
 0x3b3   : > { %2638 = vmatprep.mubr.f32.mxu0 %v16080_v5  ;;  %v11926_v55 = vmul.f32 0.125, %v2318_v54 }
 0x3b4   : > { %16776 = vst [vmem:[#allocation68_spill] sm:$0xff] %v11923_v38 }
 0x3b5   : > { %16777 = vst [vmem:[#allocation69_spill] sm:$0xff] %v11926_v55  ;;  %v2322_v6 = vpop.f32.mrb[82].mxu0  ;;  %v3929_v40 = vmax.f32 %v11923_v38, %v11926_v55 }
 0x3b6   : > { %8135 = vmatmul.mubr.msk.f32.gmra.mrb[188].mxu0 %vm2057_vm4, %v11805_v19  ;;  %v11932_v49 = vmul.f32 0.125, %v2322_v6  ;;  %v2324_v50 = vpop.f32.mrb[83].mxu0 }
 0x3b7   : > { %2644 = vmatprep.mubr.f32.mxu0 %v16080_v5  ;;  %v11935_v51 = vmul.f32 0.125, %v2324_v50  ;;  %3930 = vmax.xlane.f32.xlu0 %v3929_v40 }
 0x3b8   : > { %16778 = vst [vmem:[#allocation70_spill] sm:$0xff] %v11932_v49 }
 0x3b9   : > { %16779 = vst [vmem:[#allocation71_spill] sm:$0xff] %v11935_v51  ;;  %v2328_v58 = vpop.f32.mrb[84].mxu0  ;;  %v3932_v56 = vmax.f32 %v11932_v49, %v11935_v51  ;;  %v12355_v51 = vld [vmem:[#allocation4 + $0x40] sm:$0xff] }
 0x3ba   : > { %8136 = vmatmul.mubr.msk.f32.gmra.mrb[190].mxu0 %vm2057_vm4, %v11802_v52  ;;  %v11941_v1 = vmul.f32 0.125, %v2328_v58  ;;  %v2330_v62 = vpop.f32.mrb[85].mxu0  ;;  %16882 = vst [vmem:[#allocation161_spill] sm:$0xff] %v12355_v51 }
 0x3bb   : > { %2650 = vmatprep.mubr.f32.mxu0 %v16080_v5  ;;  %v11944_v47 = vmul.f32 0.125, %v2330_v62  ;;  %3933 = vmax.xlane.f32.xlu0 %v3932_v56 }
 0x3bc   : > { %16780 = vst [vmem:[#allocation72_spill] sm:$0xff] %v11941_v1 }
 0x3bd   : > { %16781 = vst [vmem:[#allocation73_spill] sm:$0xff] %v11944_v47  ;;  %v3935_v48 = vmax.f32 %v11941_v1, %v11944_v47  ;;  %v2334_v2 = vpop.f32.mrb[86].mxu0 }
 0x3be   : > { %8137 = vmatmul.mubr.msk.f32.gmra.mrb[192].mxu0 %vm2057_vm4, %v11811_v24  ;;  %v11950_v7 = vmul.f32 0.125, %v2334_v2  ;;  %v2336_v20 = vpop.f32.mrb[87].mxu0 }
 0x3bf   : > { %2656 = vmatprep.mubr.f32.mxu0 %v16080_v5  ;;  %3936 = vmax.xlane.f32.xlu1 %v3935_v48  ;;  %v11953_v52 = vmul.f32 0.125, %v2336_v20 }
 0x3c0   : > { %16782 = vst [vmem:[#allocation74_spill] sm:$0xff] %v11950_v7 }
 0x3c1   : > { %16783 = vst [vmem:[#allocation75_spill] sm:$0xff] %v11953_v52  ;;  %v2340_v29 = vpop.f32.mrb[88].mxu0  ;;  %v3938_v19 = vmax.f32 %v11950_v7, %v11953_v52  ;;  %v12377_v52 = vld [vmem:[#allocation4 + $0x50] sm:$0xff] }
 0x3c2   : > { %8138 = vmatmul.mubr.msk.f32.gmra.mrb[194].mxu0 %vm2057_vm4, %v11808_v42  ;;  %v11959_v61 = vmul.f32 0.125, %v2340_v29  ;;  %v2342_v15 = vpop.f32.mrb[89].mxu0  ;;  %16889 = vst [vmem:[#allocation168_spill] sm:$0xff] %v12377_v52 }
 0x3c3   : > { %2662 = vmatprep.mubr.f32.mxu0 %v16080_v5  ;;  %v11962_v24 = vmul.f32 0.125, %v2342_v15  ;;  %3939 = vmax.xlane.f32.xlu1 %v3938_v19 }
 0x3c4   : > { %16784 = vst [vmem:[#allocation76_spill] sm:$0xff] %v11959_v61 }
 0x3c5   : > { %16785 = vst [vmem:[#allocation77_spill] sm:$0xff] %v11962_v24  ;;  %v2346_v41 = vpop.f32.mrb[90].mxu0  ;;  %v3941_v39 = vmax.f32 %v11959_v61, %v11962_v24 }
 0x3c6   : > { %8139 = vmatmul.mubr.msk.f32.gmra.mrb[196].mxu0 %vm2057_vm4, %v11817_v33  ;;  %v11968_v3 = vmul.f32 0.125, %v2346_v41  ;;  %v2348_v53 = vpop.f32.mrb[91].mxu0 }
 0x3c7   : > { %2668 = vmatprep.mubr.f32.mxu0 %v16080_v5  ;;  %v11971_v42 = vmul.f32 0.125, %v2348_v53  ;;  %3942 = vmax.xlane.f32.xlu0 %v3941_v39 }
 0x3c8   : > { %16786 = vst [vmem:[#allocation78_spill] sm:$0xff] %v11968_v3 }
 0x3c9   : > { %16787 = vst [vmem:[#allocation79_spill] sm:$0xff] %v11971_v42  ;;  %v2352_v44 = vpop.f32.mrb[92].mxu0  ;;  %v3944_v11 = vmax.f32 %v11968_v3, %v11971_v42  ;;  %v12330_v42 = vld [vmem:[#allocation4 + $0x30] sm:$0xff] }
 0x3ca   : > { %8140 = vmatmul.mubr.msk.f32.gmra.mrb[198].mxu0 %vm2057_vm4, %v11814_v43  ;;  %v11977_v54 = vmul.f32 0.125, %v2352_v44  ;;  %v2354_v6 = vpop.f32.mrb[93].mxu0  ;;  %16875 = vst [vmem:[#allocation154_spill] sm:$0xff] %v12330_v42 }
 0x3cb   : > { %2674 = vmatprep.mubr.f32.mxu0 %v16080_v5  ;;  %v11980_v33 = vmul.f32 0.125, %v2354_v6  ;;  %3945 = vmax.xlane.f32.xlu1 %v3944_v11 }
 0x3cc   : > { %16788 = vst [vmem:[#allocation80_spill] sm:$0xff] %v11977_v54 }
 0x3cd   : > { %16789 = vst [vmem:[#allocation81_spill] sm:$0xff] %v11980_v33  ;;  %v2358_v40 = vpop.f32.mrb[94].mxu0  ;;  %v3947_v50 = vmax.f32 %v11977_v54, %v11980_v33 }
 0x3ce   : > { %8141 = vmatmul.mubr.msk.f32.gmra.mrb[200].mxu0 %vm2057_vm4, %v11824_v10  ;;  %v11986_v58 = vmul.f32 0.125, %v2358_v40  ;;  %v2360_v56 = vpop.f32.mrb[95].mxu0 }
 0x3cf   : > { %2680 = vmatprep.mubr.f32.mxu0 %v16080_v5  ;;  %v11989_v43 = vmul.f32 0.125, %v2360_v56  ;;  %3948 = vmax.xlane.f32.xlu0 %v3947_v50 }
 0x3d0   : > { %16790 = vst [vmem:[#allocation82_spill] sm:$0xff] %v11986_v58 }
 0x3d1   : > { %16791 = vst [vmem:[#allocation83_spill] sm:$0xff] %v11989_v43  ;;  %v2364_v62 = vpop.f32.mrb[96].mxu0  ;;  %v3950_v48 = vmax.f32 %v11986_v58, %v11989_v43 }
 0x3d2   : > { %8142 = vmatmul.mubr.msk.f32.gmra.mrb[202].mxu0 %vm2057_vm4, %v11821_v28  ;;  %v11995_v2 = vmul.f32 0.125, %v2364_v62  ;;  %v2366_v20 = vpop.f32.mrb[97].mxu0 }
 0x3d3   : > { %2686 = vmatprep.mubr.f32.mxu0 %v16080_v5  ;;  %v11998_v10 = vmul.f32 0.125, %v2366_v20  ;;  %3951 = vmax.xlane.f32.xlu1 %v3950_v48 }
 0x3d4   : > { %16792 = vst [vmem:[#allocation84_spill] sm:$0xff] %v11995_v2 }
 0x3d5   : > { %16793 = vst [vmem:[#allocation85_spill] sm:$0xff] %v11998_v10  ;;  %v2370_v29 = vpop.f32.mrb[98].mxu0  ;;  %v3953_v19 = vmax.f32 %v11995_v2, %v11998_v10 }
 0x3d6   : > { %8143 = vmatmul.mubr.msk.f32.gmra.mrb[204].mxu0 %vm2057_vm4, %v11830_v37  ;;  %v12004_v15 = vmul.f32 0.125, %v2370_v29  ;;  %v2372_v41 = vpop.f32.mrb[99].mxu0  ;;  %v10409_v37 = vmov 0  }
 0x3d7   : > { %2692 = vmatprep.mubr.f32.mxu0 %v16080_v5  ;;  %v12007_v28 = vmul.f32 0.125, %v2372_v41  ;;  %3954 = vmax.xlane.f32.xlu0 %v3953_v19 }
 0x3d8   : > { %16794 = vst [vmem:[#allocation86_spill] sm:$0xff] %v12004_v15  ;;  %9138 = vset.pattern.permute.xlu0 %v10409_v37  ;;  %9139 = vset.pattern.permute.xlu1 %v10409_v37 }
 0x3d9   : > { %16795 = vst [vmem:[#allocation87_spill] sm:$0xff] %v12007_v28  ;;  %v2376_v39 = vpop.f32.mrb[100].mxu0  ;;  %v3956_v53 = vmax.f32 %v12004_v15, %v12007_v28 }
 0x3da   : > { %8144 = vmatmul.mubr.msk.f32.gmra.mrb[206].mxu0 %vm2057_vm4, %v11827_v57  ;;  %v12013_v44 = vmul.f32 0.125, %v2376_v39  ;;  %v2378_v11 = vpop.f32.mrb[101].mxu0 }
 0x3db   : > { %v12015_v6 = vmul.f32 0.125, %v2378_v11  ;;  %3957 = vmax.xlane.f32.xlu1 %v3956_v53 }
 0x3dc   : > { %16796 = vst [vmem:[#allocation88_spill] sm:$0xff] %v12013_v44 }
 0x3dd   : > { %16797 = vst [vmem:[#allocation89_spill] sm:$0xff] %v12015_v6  ;;  %v2382_v40 = vpop.f32.mrb[102].mxu0  ;;  %v3959_v50 = vmax.f32 %v12013_v44, %v12015_v6 }
 0x3de   : > { %v12019_v56 = vmul.f32 0.125, %v2382_v40  ;;  %v2384_v62 = vpop.f32.mrb[103].mxu0 }
 0x3df   : > { %v12021_v48 = vmul.f32 0.125, %v2384_v62  ;;  %3960 = vmax.xlane.f32.xlu0 %v3959_v50 }
 0x3e0   : > { %16798 = vst [vmem:[#allocation90_spill] sm:$0xff] %v12019_v56 }
 0x3e1   : > { %16799 = vst [vmem:[#allocation91_spill] sm:$0xff] %v12021_v48  ;;  %v2388_v57 = vpop.f32.mrb[104].mxu0  ;;  %v3962_v20 = vmax.f32 %v12019_v56, %v12021_v48 }
 0x3e2   : > { %v12025_v29 = vmul.f32 0.125, %v2388_v57  ;;  %v2390_v19 = vpop.f32.mrb[105].mxu0 }
 0x3e3   : > { %v12027_v41 = vmul.f32 0.125, %v2390_v19  ;;  %3963 = vmax.xlane.f32.xlu1 %v3962_v20 }
 0x3e4   : > { %16800 = vst [vmem:[#allocation92_spill] sm:$0xff] %v12025_v29 }
 0x3e5   : > { %16801 = vst [vmem:[#allocation93_spill] sm:$0xff] %v12027_v41  ;;  %v2394_v39 = vpop.f32.mrb[106].mxu0  ;;  %v3965_v53 = vmax.f32 %v12025_v29, %v12027_v41 }
 0x3e6   : > { %v12031_v11 = vmul.f32 0.125, %v2394_v39  ;;  %v2396_v37 = vpop.f32.mrb[107].mxu0 }
 0x3e7   : > { %v12033_v40 = vmul.f32 0.125, %v2396_v37  ;;  %3966 = vmax.xlane.f32.xlu0 %v3965_v53 }
 0x3e8   : > { %16802 = vst [vmem:[#allocation94_spill] sm:$0xff] %v12031_v11 }
 0x3e9   : > { %16803 = vst [vmem:[#allocation95_spill] sm:$0xff] %v12033_v40  ;;  %v2400_v50 = vpop.f32.mrb[108].mxu0  ;;  %v3968_v62 = vmax.f32 %v12031_v11, %v12033_v40 }
 0x3ea   : > { %v12037_v57 = vmul.f32 0.125, %v2400_v50  ;;  %v2402_v5 = vpop.f32.mrb[109].mxu0 }
 0x3eb   : > { %v12039_v19 = vmul.f32 0.125, %v2402_v5  ;;  %3969 = vmax.xlane.f32.xlu1 %v3968_v62 }
 0x3ec   : > { %16804 = vst [vmem:[#allocation96_spill] sm:$0xff] %v12037_v57 }
 0x3ed   : > { %16805 = vst [vmem:[#allocation97_spill] sm:$0xff] %v12039_v19  ;;  %v2406_v20 = vpop.f32.mrb[110].mxu0  ;;  %v3971_v4 = vmax.f32 %v12037_v57, %v12039_v19 }
 0x3ee   : > { %v12043_v39 = vmul.f32 0.125, %v2406_v20  ;;  %v2408_v63 = vpop.f32.mrb[111].mxu0 }
 0x3ef   : > { %v12045_v37 = vmul.f32 0.125, %v2408_v63  ;;  %3972 = vmax.xlane.f32.xlu0 %v3971_v4 }
 0x3f0   : > { %16806 = vst [vmem:[#allocation98_spill] sm:$0xff] %v12043_v39 }
 0x3f1   : > { %16807 = vst [vmem:[#allocation99_spill] sm:$0xff] %v12045_v37  ;;  %v2412_v53 = vpop.f32.mrb[112].mxu0  ;;  %v3974_v0 = vmax.f32 %v12043_v39, %v12045_v37 }
 0x3f2   : > { %v12049_v50 = vmul.f32 0.125, %v2412_v53  ;;  %v2414_v41 = vpop.f32.mrb[113].mxu0 }
 0x3f3   : > { %v12051_v5 = vmul.f32 0.125, %v2414_v41  ;;  %3975 = vmax.xlane.f32.xlu1 %v3974_v0 }
 0x3f4   : > { %16808 = vst [vmem:[#allocation100_spill] sm:$0xff] %v12049_v50 }
 0x3f5   : > { %16809 = vst [vmem:[#allocation101_spill] sm:$0xff] %v12051_v5  ;;  %v2418_v62 = vpop.f32.mrb[114].mxu0  ;;  %v3977_v19 = vmax.f32 %v12049_v50, %v12051_v5 }
 0x3f6   : > { %v12055_v20 = vmul.f32 0.125, %v2418_v62  ;;  %v2420_v40 = vpop.f32.mrb[115].mxu0 }
 0x3f7   : > { %v12057_v63 = vmul.f32 0.125, %v2420_v40  ;;  %3978 = vmax.xlane.f32.xlu0 %v3977_v19 }
 0x3f8   : > { %16810 = vst [vmem:[#allocation102_spill] sm:$0xff] %v12055_v20 }
 0x3f9   : > { %16811 = vst [vmem:[#allocation103_spill] sm:$0xff] %v12057_v63  ;;  %v2424_v4 = vpop.f32.mrb[116].mxu0  ;;  %v3980_v37 = vmax.f32 %v12055_v20, %v12057_v63 }
 0x3fa   : > { %v12061_v53 = vmul.f32 0.125, %v2424_v4  ;;  %v2426_v6 = vpop.f32.mrb[117].mxu0 }
 0x3fb   : > { %v12063_v41 = vmul.f32 0.125, %v2426_v6  ;;  %3981 = vmax.xlane.f32.xlu1 %v3980_v37 }
 0x3fc   : > { %16812 = vst [vmem:[#allocation104_spill] sm:$0xff] %v12061_v53 }
 0x3fd   : > { %16813 = vst [vmem:[#allocation105_spill] sm:$0xff] %v12063_v41  ;;  %v2430_v0 = vpop.f32.mrb[118].mxu0  ;;  %v3983_v5 = vmax.f32 %v12061_v53, %v12063_v41 }
 0x3fe   : > { %v12067_v62 = vmul.f32 0.125, %v2430_v0  ;;  %v2432_v48 = vpop.f32.mrb[119].mxu0 }
 0x3ff   : > { %v12069_v40 = vmul.f32 0.125, %v2432_v48  ;;  %3984 = vmax.xlane.f32.xlu0 %v3983_v5 }
 0x400   : > { %16814 = vst [vmem:[#allocation106_spill] sm:$0xff] %v12067_v62 }
 0x401   : > { %16815 = vst [vmem:[#allocation107_spill] sm:$0xff] %v12069_v40  ;;  %v2436_v19 = vpop.f32.mrb[120].mxu0  ;;  %v3986_v63 = vmax.f32 %v12067_v62, %v12069_v40 }
 0x402   : > { %v12073_v4 = vmul.f32 0.125, %v2436_v19  ;;  %v2438_v10 = vpop.f32.mrb[121].mxu0 }
 0x403   : > { %v12075_v6 = vmul.f32 0.125, %v2438_v10  ;;  %3987 = vmax.xlane.f32.xlu1 %v3986_v63 }
 0x404   : > { %16816 = vst [vmem:[#allocation108_spill] sm:$0xff] %v12073_v4 }
 0x405   : > { %16817 = vst [vmem:[#allocation109_spill] sm:$0xff] %v12075_v6  ;;  %v2442_v37 = vpop.f32.mrb[122].mxu0  ;;  %v3989_v41 = vmax.f32 %v12073_v4, %v12075_v6 }
 0x406   : > { %v12079_v0 = vmul.f32 0.125, %v2442_v37  ;;  %v2444_v28 = vpop.f32.mrb[123].mxu0 }
 0x407   : > { %v12081_v48 = vmul.f32 0.125, %v2444_v28  ;;  %3990 = vmax.xlane.f32.xlu0 %v3989_v41 }
 0x408   : > { %16818 = vst [vmem:[#allocation110_spill] sm:$0xff] %v12079_v0 }
 0x409   : > { %16819 = vst [vmem:[#allocation111_spill] sm:$0xff] %v12081_v48  ;;  %v2448_v5 = vpop.f32.mrb[124].mxu0  ;;  %v3992_v40 = vmax.f32 %v12079_v0, %v12081_v48 }
 0x40a   : > { %v12085_v19 = vmul.f32 0.125, %v2448_v5  ;;  %v2450_v33 = vpop.f32.mrb[125].mxu0 }
 0x40b   : > { %v12087_v10 = vmul.f32 0.125, %v2450_v33  ;;  %3993 = vmax.xlane.f32.xlu1 %v3992_v40  ;;  %v16825_v33 = vmov 0 }
 0x40c   : > { %16820 = vst [vmem:[#allocation112_spill] sm:$0xff] %v12085_v19  ;;  %v16826_v33 = vsel %vm12101_vm5, 4294967295, %v16825_v33 }
 0x40d   : > { %16821 = vst [vmem:[#allocation113_spill] sm:$0xff] %v12087_v10  ;;  %v2454_v63 = vpop.f32.mrb[126].mxu0  ;;  %v3995_v6 = vmax.f32 %v12085_v19, %v12087_v10  ;;  %16827 = vst [vmem:[#allocation117_spill] sm:$0xff] %v16826_v33  ;;  %v12319_v10 = vld [vmem:[#allocation4 + $0x28] sm:$0xff] }
 0x40e   : > { %v12091_v37 = vmul.f32 0.125, %v2454_v63  ;;  %v2456_v43 = vpop.f32.mrb[127].mxu0  ;;  %16872 = vst [vmem:[#allocation151_spill] sm:$0xff] %v12319_v10 }
 0x40f   : > { %v12093_v28 = vmul.f32 0.125, %v2456_v43  ;;  %3996 = vmax.xlane.f32.xlu0 %v3995_v6  ;;  %v16829_v43 = vpack.c.bf16 %v11464_v34, %v11458_v32  ;;  %v16830_v6 = vpack.c.bf16 %v11391_v9, %v11388_v8  ;;  %v8568_v8 = vpack.c.bf16 %v11540_v46, %v11533_v45 }
 0x410   : > { %16822 = vst [vmem:[#allocation114_spill] sm:$0xff] %v12091_v37 }
 0x411   : > { %16823 = vst [vmem:[#allocation115_spill] sm:$0xff] %v12093_v28  ;;  %v2460_v41 = vpop.f32.mrb[128].mxu0  ;;  %v3998_v48 = vmax.f32 %v12091_v37, %v12093_v28  ;;  %8558 = vmatprep.subr.msk.bf16.mxu1 %vm12101_vm5, %v16829_v43 }
 0x412   : > { %v12097_v5 = vmul.f32 0.125, %v2460_v41  ;;  %v2462_v24 = vpop.f32.mrb[129].mxu0  ;;  %8561 = vmatpush3.bf16.xpose.msk.msra.mxu1 %vm12101_vm5, %v16830_v6 }
 0x413   : > { %v12105_v40 = vmul.f32 0.125, %v2462_v24  ;;  %3999 = vmax.xlane.f32.xlu1 %v3998_v48  ;;  %v16831_v24 = vpack.c.bf16 %v11470_v36, %v11467_v35 }
 0x414   : > { %16824 = vst [vmem:[#allocation116_spill] sm:$0xff] %v12097_v5 }
 0x415   : > { %16828 = vst [vmem:[#allocation118_spill] sm:$0xff] %v12105_v40  ;;  %v2466_v63 = vpop.f32.mrb[130].mxu0  ;;  %v4001_v41 = vmax.f32 %v12097_v5, %v12105_v40  ;;  %8564 = vmatprep.subr.msk.bf16.mxu1 %vm12101_vm5, %v16831_v24 }
 0x416   : > { %v12124_v32 = vmul.f32 0.125, %v2466_v63  ;;  %v2468_v34 = vpop.f32.mrb[131].mxu0  ;;  %v16836_v63 = vpack.c.bf16 %v11402_v13, %v11399_v12 }
 0x417   : > { %v12126_v48 = vmul.f32 0.125, %v2468_v34  ;;  %4002 = vmax.xlane.f32.xlu0 %v4001_v41 }
 0x418   : > { %16832 = vst [vmem:[#allocation119_spill] sm:$0xff] %v12124_v32 }
 0x419   : > { %16833 = vst [vmem:[#allocation120_spill] sm:$0xff] %v12126_v48  ;;  %v2472_v9 = vpop.f32.mrb[132].mxu0  ;;  %v4004_v43 = vmax.f32 %v12124_v32, %v12126_v48 }
 0x41a   : > { %v12132_v6 = vmul.f32 0.125, %v2472_v9  ;;  %v2474_v35 = vpop.f32.mrb[133].mxu0  ;;  %8567 = vmatpush3.bf16.xpose.msk.msra.mxu1 %vm12101_vm5, %v16836_v63  ;;  %v9785_v9 = vld [vmem:[%s10952_s27 + $0xb0] sm:$0xff] }
 0x41b   : > { %v12134_v36 = vmul.f32 0.125, %v2474_v35  ;;  %4005 = vmax.xlane.f32.xlu1 %v4004_v43  ;;  %8570 = vmatprep.subr.msk.bf16.mxu1 %vm12101_vm5, %v8568_v8  ;;  %v9786_v43 = vld [vmem:[%s10952_s27 + $0xb8] sm:$0xff]  ;;  %v16841_v8 = vpack.c.bf16 %v11413_v16, %v11405_v14 }
 0x41c   : > { %16834 = vst [vmem:[#allocation121_spill] sm:$0xff] %v12132_v6  ;;  %v8574_v12 = vpack.c.bf16 %v9786_v43, %v9785_v9 }
 0x41d   : > { %16835 = vst [vmem:[#allocation122_spill] sm:$0xff] %v12134_v36  ;;  %v2478_v41 = vpop.f32.mrb[134].mxu0  ;;  %v4007_v45 = vmax.f32 %v12132_v6, %v12134_v36 }
 0x41e   : > { %v12145_v46 = vmul.f32 0.125, %v2478_v41  ;;  %v2480_v24 = vpop.f32.mrb[135].mxu0 }
 0x41f   : > { %v12147_v34 = vmul.f32 0.125, %v2480_v24  ;;  %4008 = vmax.xlane.f32.xlu0 %v4007_v45 }
 0x420   : > { %16837 = vst [vmem:[#allocation123_spill] sm:$0xff] %v12145_v46 }
 0x421   : > { %16838 = vst [vmem:[#allocation124_spill] sm:$0xff] %v12147_v34  ;;  %v2484_v13 = vpop.f32.mrb[136].mxu0  ;;  %v4010_v35 = vmax.f32 %v12145_v46, %v12147_v34 }
 0x422   : > { %v12153_v63 = vmul.f32 0.125, %v2484_v13  ;;  %v2486_v36 = vpop.f32.mrb[137].mxu0  ;;  %8573 = vmatpush3.bf16.xpose.msk.msra.mxu1 %vm12101_vm5, %v16841_v8  ;;  %v9788_v13 = vld [vmem:[%s10952_s27 + $0xc8] sm:$0xff] }
 0x423   : > { %v12155_v40 = vmul.f32 0.125, %v2486_v36  ;;  %4011 = vmax.xlane.f32.xlu1 %v4010_v35  ;;  %8576 = vmatprep.subr.msk.bf16.mxu1 %vm12101_vm5, %v8574_v12  ;;  %v9787_v36 = vld [vmem:[%s10952_s27 + $0xc0] sm:$0xff]  ;;  %v16846_v12 = vpack.c.bf16 %v11419_v18, %v11416_v17 }
 0x424   : > { %16839 = vst [vmem:[#allocation125_spill] sm:$0xff] %v12153_v63  ;;  %v8580_v14 = vpack.c.bf16 %v9788_v13, %v9787_v36 }
 0x425   : > { %16840 = vst [vmem:[#allocation126_spill] sm:$0xff] %v12155_v40  ;;  %v2490_v41 = vpop.f32.mrb[138].mxu0  ;;  %v4013_v45 = vmax.f32 %v12153_v63, %v12155_v40 }
 0x426   : > { %v12166_v24 = vmul.f32 0.125, %v2490_v41  ;;  %v2492_v9 = vpop.f32.mrb[139].mxu0 }
 0x427   : > { %v12168_v43 = vmul.f32 0.125, %v2492_v9  ;;  %4014 = vmax.xlane.f32.xlu0 %v4013_v45 }
 0x428   : > { %16842 = vst [vmem:[#allocation127_spill] sm:$0xff] %v12166_v24 }
 0x429   : > { %16843 = vst [vmem:[#allocation128_spill] sm:$0xff] %v12168_v43  ;;  %v2496_v16 = vpop.f32.mrb[140].mxu0  ;;  %v4016_v35 = vmax.f32 %v12166_v24, %v12168_v43 }
 0x42a   : > { %v12174_v8 = vmul.f32 0.125, %v2496_v16  ;;  %v2498_v40 = vpop.f32.mrb[141].mxu0  ;;  %8579 = vmatpush3.bf16.xpose.msk.msra.mxu1 %vm12101_vm5, %v16846_v12  ;;  %v9790_v16 = vld [vmem:[%s10952_s27 + $0xd8] sm:$0xff] }
 0x42b   : > { %v12176_v34 = vmul.f32 0.125, %v2498_v40  ;;  %4017 = vmax.xlane.f32.xlu1 %v4016_v35  ;;  %8582 = vmatprep.subr.msk.bf16.mxu1 %vm12101_vm5, %v8580_v14  ;;  %v9789_v40 = vld [vmem:[%s10952_s27 + $0xd0] sm:$0xff]  ;;  %v16851_v14 = vpack.c.bf16 %v11431_v22, %v11428_v21 }
 0x42c   : > { %16844 = vst [vmem:[#allocation129_spill] sm:$0xff] %v12174_v8  ;;  %v8586_v17 = vpack.c.bf16 %v9790_v16, %v9789_v40 }
 0x42d   : > { %16845 = vst [vmem:[#allocation130_spill] sm:$0xff] %v12176_v34  ;;  %v2502_v41 = vpop.f32.mrb[142].mxu0  ;;  %v4019_v45 = vmax.f32 %v12174_v8, %v12176_v34 }
 0x42e   : > { %v12187_v9 = vmul.f32 0.125, %v2502_v41  ;;  %v2504_v36 = vpop.f32.mrb[143].mxu0 }
 0x42f   : > { %v12189_v13 = vmul.f32 0.125, %v2504_v36  ;;  %4020 = vmax.xlane.f32.xlu0 %v4019_v45 }
 0x430   : > { %16847 = vst [vmem:[#allocation131_spill] sm:$0xff] %v12187_v9 }
 0x431   : > { %16848 = vst [vmem:[#allocation132_spill] sm:$0xff] %v12189_v13  ;;  %v2508_v18 = vpop.f32.mrb[144].mxu0  ;;  %v4022_v35 = vmax.f32 %v12187_v9, %v12189_v13 }
 0x432   : > { %v12195_v12 = vmul.f32 0.125, %v2508_v18  ;;  %v2510_v34 = vpop.f32.mrb[145].mxu0  ;;  %8585 = vmatpush3.bf16.xpose.msk.msra.mxu1 %vm12101_vm5, %v16851_v14  ;;  %v9792_v18 = vld [vmem:[%s10952_s27 + $0xe8] sm:$0xff] }
 0x433   : > { %v12197_v43 = vmul.f32 0.125, %v2510_v34  ;;  %4023 = vmax.xlane.f32.xlu1 %v4022_v35  ;;  %8588 = vmatprep.subr.msk.bf16.mxu1 %vm12101_vm5, %v8586_v17  ;;  %v9791_v34 = vld [vmem:[%s10952_s27 + $0xe0] sm:$0xff]  ;;  %v16856_v17 = vpack.c.bf16 %v11439_v25, %v11434_v23 }
 0x434   : > { %16849 = vst [vmem:[#allocation133_spill] sm:$0xff] %v12195_v12  ;;  %v8592_v21 = vpack.c.bf16 %v9792_v18, %v9791_v34 }
 0x435   : > { %16850 = vst [vmem:[#allocation134_spill] sm:$0xff] %v12197_v43  ;;  %v2514_v41 = vpop.f32.mrb[146].mxu0  ;;  %v4025_v45 = vmax.f32 %v12195_v12, %v12197_v43 }
 0x436   : > { %v12208_v36 = vmul.f32 0.125, %v2514_v41  ;;  %v2516_v40 = vpop.f32.mrb[147].mxu0 }
 0x437   : > { %v12210_v16 = vmul.f32 0.125, %v2516_v40  ;;  %4026 = vmax.xlane.f32.xlu0 %v4025_v45 }
 0x438   : > { %16852 = vst [vmem:[#allocation135_spill] sm:$0xff] %v12208_v36 }
 0x439   : > { %16853 = vst [vmem:[#allocation136_spill] sm:$0xff] %v12210_v16  ;;  %v2520_v22 = vpop.f32.mrb[148].mxu0  ;;  %v4028_v35 = vmax.f32 %v12208_v36, %v12210_v16 }
 0x43a   : > { %v12216_v14 = vmul.f32 0.125, %v2520_v22  ;;  %v2522_v43 = vpop.f32.mrb[149].mxu0  ;;  %8591 = vmatpush3.bf16.xpose.msk.msra.mxu1 %vm12101_vm5, %v16856_v17  ;;  %v9794_v22 = vld [vmem:[%s10952_s27 + $0xf8] sm:$0xff] }
 0x43b   : > { %v12218_v13 = vmul.f32 0.125, %v2522_v43  ;;  %4029 = vmax.xlane.f32.xlu1 %v4028_v35  ;;  %8594 = vmatprep.subr.msk.bf16.mxu1 %vm12101_vm5, %v8592_v21  ;;  %v9793_v43 = vld [vmem:[%s10952_s27 + $0xf0] sm:$0xff] }
 0x43c   : > { %16854 = vst [vmem:[#allocation137_spill] sm:$0xff] %v12216_v14  ;;  %v8598_v35 = vpack.c.bf16 %v9794_v22, %v9793_v43 }
 0x43d   : > { %16855 = vst [vmem:[#allocation138_spill] sm:$0xff] %v12218_v13  ;;  %v2526_v41 = vpop.f32.mrb[150].mxu0  ;;  %v4031_v45 = vmax.f32 %v12216_v14, %v12218_v13  ;;  %v12239_v13 = vld [vmem:[#allocation4] sm:$0xff] }
 0x43e   : > { %v12229_v40 = vmul.f32 0.125, %v2526_v41  ;;  %v2528_v34 = vpop.f32.mrb[151].mxu0  ;;  %v16861_v41 = vpack.c.bf16 %v11445_v27, %v11442_v26 }
 0x43f   : > { %v12231_v18 = vmul.f32 0.125, %v2528_v34  ;;  %4032 = vmax.xlane.f32.xlu0 %v4031_v45 }
 0x440   : > { %16857 = vst [vmem:[#allocation139_spill] sm:$0xff] %v12229_v40 }
 0x441   : > { %16858 = vst [vmem:[#allocation140_spill] sm:$0xff] %v12231_v18  ;;  %v2532_v23 = vpop.f32.mrb[152].mxu0  ;;  %v4034_v25 = vmax.f32 %v12229_v40, %v12231_v18  ;;  %v12295_v18 = vld [vmem:[#allocation4 + $0x18] sm:$0xff] }
 0x442   : > { %v12237_v17 = vmul.f32 0.125, %v2532_v23  ;;  %v2534_v16 = vpop.f32.mrb[153].mxu0  ;;  %8597 = vmatpush3.bf16.xpose.msk.msra.mxu1 %vm12101_vm5, %v16861_v41  ;;  %v12257_v23 = vld [vmem:[#allocation4 + $0x8] sm:$0xff]  ;;  %16868 = vst [vmem:[#allocation147_spill] sm:$0xff] %v12295_v18 }
 0x443   : > { %v12241_v48 = vmul.f32 0.125, %v2534_v16  ;;  %4035 = vmax.xlane.f32.xlu1 %v4034_v25  ;;  %8600 = vmatprep.subr.msk.bf16.mxu1 %vm12101_vm5, %v8598_v35 }
 0x444   : > { %16859 = vst [vmem:[#allocation141_spill] sm:$0xff] %v12237_v17  ;;  %v3931_v21 = vpop.xlane.xlu0 %3930 }
 0x445   : > { %16860 = vst [vmem:[#allocation142_spill] sm:$0xff] %v12241_v48  ;;  %v2538_v45 = vpop.f32.mrb[154].mxu0  ;;  %v4037_v34 = vmax.f32 %v12237_v17, %v12241_v48  ;;  %v12251_v43 = vmax.f32 %v12239_v13, %v3931_v21  ;;  %v16865_v48 = vpack.c.bf16 %v11455_v31, %v11452_v30 }
 0x446   : > { %v12255_v16 = vmul.f32 0.125, %v2538_v45  ;;  %v2540_v22 = vpop.f32.mrb[155].mxu0  ;;  %v12272_v45 = vld [vmem:[#allocation4 + $0x10] sm:$0xff] }
 0x447   : > { %v12259_v25 = vmul.f32 0.125, %v2540_v22  ;;  %4038 = vmax.xlane.f32.xlu0 %v4037_v34  ;;  %6555 = vst.msk [vmem:[#allocation4] sm:$0xff] %vm5529_vm6, %v12251_v43  ;;  %16864 = vst [vmem:[#allocation145_spill] sm:$0xff] %v12272_v45 }
 0x448   : > { %16862 = vst [vmem:[#allocation143_spill] sm:$0xff] %v12255_v16  ;;  %v3934_v26 = vpop.xlane.xlu0 %3933 }
 0x449   : > { %16863 = vst [vmem:[#allocation144_spill] sm:$0xff] %v12259_v25  ;;  %v12263_v27 = vpop.f32.mrb[156].mxu0  ;;  %v4040_v21 = vmax.f32 %v12255_v16, %v12259_v25  ;;  %v12268_v41 = vmax.f32 %v12257_v23, %v3934_v26 }
 0x44a   : > { %v12270_v35 = vpop.f32.mrb[157].mxu0  ;;  %8603 = vmatpush3.bf16.xpose.msk.msra.mxu1 %vm12101_vm5, %v16865_v48 }
 0x44b   : > { %4041 = vmax.xlane.f32.xlu1 %v4040_v21  ;;  %6556 = vst.msk [vmem:[#allocation4 + $0x8] sm:$0xff] %vm5529_vm6, %v12268_v41  ;;  %v16867_v21 = vpack.c.bf16 %v11572_v60, %v11569_v59  ;;  %v12308_v60 = vld [vmem:[#allocation4 + $0x20] sm:$0xff] }
 0x44c   : > { %v3937_v22 = vpop.xlane.xlu1 %3936  ;;  %16870 = vst [vmem:[#allocation149_spill] sm:$0xff] %v12308_v60 }
 0x44d   : > { %v12283_v26 = vpop.f32.mrb[158].mxu0  ;;  %v12286_v25 = vmax.f32 %v12272_v45, %v3937_v22  ;;  %8606 = vmatprep.subr.msk.bf16.mxu1 %vm12101_vm5, %v16867_v21 }
 0x44e   : > { %v12293_v34 = vpop.f32.mrb[159].mxu0 }
 0x44f   : > { %16866 = vst [vmem:[#allocation146_spill] sm:$0xff] %v12286_v25  ;;  %6557 = vst.msk [vmem:[#allocation4 + $0x10] sm:$0xff] %vm5529_vm6, %v12286_v25 }
 0x450   : > { %v3940_v31 = vpop.xlane.xlu1 %3939 }
 0x451   : > { %v12301_v48 = vpop.f32.mrb[160].mxu0  ;;  %v12304_v22 = vmax.f32 %v12295_v18, %v3940_v31 }
 0x452   : > { %v12306_v59 = vpop.f32.mrb[161].mxu0 }
 0x453   : > { %16869 = vst [vmem:[#allocation148_spill] sm:$0xff] %v12306_v59  ;;  %6558 = vst.msk [vmem:[#allocation4 + $0x18] sm:$0xff] %vm5529_vm6, %v12304_v22 }
 0x454   : > { %v3943_v21 = vpop.xlane.xlu0 %3942 }
 0x455   : > { %v12312_v33 = vpop.f32.mrb[162].mxu0  ;;  %v12315_v30 = vmax.f32 %v12308_v60, %v3943_v21 }
 0x456   : > { %v12317_v45 = vpop.f32.mrb[163].mxu0 }
 0x457   : > { %16871 = vst [vmem:[#allocation150_spill] sm:$0xff] %v12317_v45  ;;  %6559 = vst.msk [vmem:[#allocation4 + $0x20] sm:$0xff] %vm5529_vm6, %v12315_v30 }
 0x458   : > { %v3946_v31 = vpop.xlane.xlu1 %3945 }
 0x459   : > { %v12323_v28 = vpop.f32.mrb[164].mxu0  ;;  %v12326_v18 = vmax.f32 %v12319_v10, %v3946_v31  ;;  %v12343_v31 = vld [vmem:[#allocation4 + $0x38] sm:$0xff] }
 0x45a   : > { %v12328_v59 = vpop.f32.mrb[165].mxu0  ;;  %16878 = vst [vmem:[#allocation157_spill] sm:$0xff] %v12343_v31 }
 0x45b   : > { %16873 = vst [vmem:[#allocation152_spill] sm:$0xff] %v12326_v18  ;;  %16874 = vst [vmem:[#allocation153_spill] sm:$0xff] %v12328_v59 }
 0x45c   : > { %6560 = vst.msk [vmem:[#allocation4 + $0x28] sm:$0xff] %vm5529_vm6, %v12326_v18  ;;  %4448 = vperm.xlu1 %9139, %v12268_v41   ;;  %v3949_v21 = vpop.xlane.xlu0 %3948 }
 0x45d   : > { %4443 = vperm.xlu0 %9138, %v12251_v43   ;;  %v12336_v60 = vpop.f32.mrb[166].mxu0  ;;  %v12339_v45 = vmax.f32 %v12330_v42, %v3949_v21 }
 0x45e   : > { %v12341_v55 = vpop.f32.mrb[167].mxu0 }
 0x45f   : > { %16876 = vst [vmem:[#allocation155_spill] sm:$0xff] %v12339_v45  ;;  %16877 = vst [vmem:[#allocation156_spill] sm:$0xff] %v12341_v55 }
 0x460   : > { %6561 = vst.msk [vmem:[#allocation4 + $0x30] sm:$0xff] %vm5529_vm6, %v12339_v45  ;;  %4453 = vperm.xlu1 %9139, %v12286_v25   ;;  %v3952_v10 = vpop.xlane.xlu1 %3951  ;;  %v12366_v25 = vld [vmem:[#allocation4 + $0x48] sm:$0xff] }
 0x461   : > { %v12348_v18 = vpop.f32.mrb[168].mxu0  ;;  %v12351_v59 = vmax.f32 %v12343_v31, %v3952_v10  ;;  %16885 = vst [vmem:[#allocation164_spill] sm:$0xff] %v12366_v25 }
 0x462   : > { %16879 = vst [vmem:[#allocation158_spill] sm:$0xff] %v12348_v18  ;;  %v12353_v47 = vpop.f32.mrb[169].mxu0  ;;  %v12388_v18 = vld [vmem:[#allocation4 + $0x58] sm:$0xff] }
 0x463   : > { %16880 = vst [vmem:[#allocation159_spill] sm:$0xff] %v12351_v59  ;;  %16881 = vst [vmem:[#allocation160_spill] sm:$0xff] %v12353_v47 }
 0x464   : > { %6562 = vst.msk [vmem:[#allocation4 + $0x38] sm:$0xff] %vm5529_vm6, %v12351_v59  ;;  %v3955_v21 = vpop.xlane.xlu0 %3954  ;;  %16892 = vst [vmem:[#allocation171_spill] sm:$0xff] %v12388_v18 }
 0x465   : > { %v12359_v42 = vpop.f32.mrb[170].mxu0  ;;  %v12362_v45 = vmax.f32 %v12355_v51, %v3955_v21 }
 0x466   : > { %v12364_v55 = vpop.f32.mrb[171].mxu0 }
 0x467   : > { %16883 = vst [vmem:[#allocation162_spill] sm:$0xff] %v12362_v45  ;;  %16884 = vst [vmem:[#allocation163_spill] sm:$0xff] %v12364_v55 }
 0x468   : > { %6563 = vst.msk [vmem:[#allocation4 + $0x40] sm:$0xff] %vm5529_vm6, %v12362_v45  ;;  %v3958_v10 = vpop.xlane.xlu1 %3957 }
 0x469   : > { %v12370_v31 = vpop.f32.mrb[172].mxu0  ;;  %v12373_v47 = vmax.f32 %v12366_v25, %v3958_v10 }
 0x46a   : > { %16886 = vst [vmem:[#allocation165_spill] sm:$0xff] %v12370_v31  ;;  %v12375_v59 = vpop.f32.mrb[173].mxu0  ;;  %v12399_v31 = vld [vmem:[#allocation4 + $0x60] sm:$0xff] }
 0x46b   : > { %16887 = vst [vmem:[#allocation166_spill] sm:$0xff] %v12373_v47  ;;  %16888 = vst [vmem:[#allocation167_spill] sm:$0xff] %v12375_v59 }
 0x46c   : > { %6564 = vst.msk [vmem:[#allocation4 + $0x48] sm:$0xff] %vm5529_vm6, %v12373_v47  ;;  %v3961_v21 = vpop.xlane.xlu0 %3960  ;;  %16896 = vst [vmem:[#allocation175_spill] sm:$0xff] %v12399_v31 }
 0x46d   : > { %v12381_v51 = vpop.f32.mrb[174].mxu0  ;;  %v12384_v55 = vmax.f32 %v12377_v52, %v3961_v21  ;;  %v2828_v21 = vmax.f32 %v11932_v49, %v11950_v7  ;;  %v12425_v49 = vmul.f32 0.125, %v12270_v35 }
 0x46e   : > { %v12386_v45 = vpop.f32.mrb[175].mxu0 }
 0x46f   : > { %16890 = vst [vmem:[#allocation169_spill] sm:$0xff] %v12384_v55  ;;  %16891 = vst [vmem:[#allocation170_spill] sm:$0xff] %v12386_v45 }
 0x470   : > { %6565 = vst.msk [vmem:[#allocation4 + $0x50] sm:$0xff] %vm5529_vm6, %v12384_v55  ;;  %v3964_v10 = vpop.xlane.xlu1 %3963  ;;  %v2827_v55 = vmax.f32 %v11923_v38, %v11941_v1  ;;  %v12422_v1 = vmul.f32 0.125, %v12263_v27  ;;  %16900 = vst [vmem:[#allocation179_spill] sm:$0xff] %v12425_v49  ;;  %v12438_v27 = vld [vmem:[#allocation4 + $0x70] sm:$0xff] }
 0x471   : > { %v12392_v25 = vpop.f32.mrb[176].mxu0  ;;  %v12395_v59 = vmax.f32 %v12388_v18, %v3964_v10  ;;  %v2830_v10 = vmax.f32 %v2828_v21, %v11968_v3  ;;  %16902 = vst [vmem:[#allocation181_spill] sm:$0xff] %v12438_v27 }
 0x472   : > { %16893 = vst [vmem:[#allocation172_spill] sm:$0xff] %v12392_v25  ;;  %v12397_v47 = vpop.f32.mrb[177].mxu0  ;;  %16899 = vst [vmem:[#allocation178_spill] sm:$0xff] %v12422_v1 }
 0x473   : > { %16894 = vst [vmem:[#allocation173_spill] sm:$0xff] %v12395_v59  ;;  %16895 = vst [vmem:[#allocation174_spill] sm:$0xff] %v12397_v47  ;;  %v12415_v47 = vld [vmem:[#allocation4 + $0x68] sm:$0xff]  ;;  %v2832_v7 = vmax.f32 %v2830_v10, %v11986_v58  ;;  %v4043_v10 = vmax.f32 %v12422_v1, %v12425_v49 }
 0x474   : > { %6566 = vst.msk [vmem:[#allocation4 + $0x58] sm:$0xff] %vm5529_vm6, %v12395_v59  ;;  %v3967_v52 = vpop.xlane.xlu0 %3966  ;;  %16898 = vst [vmem:[#allocation177_spill] sm:$0xff] %v12415_v47  ;;  %v2829_v59 = vmax.f32 %v2827_v55, %v11959_v61 }
 0x475   : > { %v12407_v45 = vpop.f32.mrb[178].mxu0  ;;  %v12410_v25 = vmax.f32 %v12399_v31, %v3967_v52  ;;  %v2834_v55 = vmax.f32 %v2832_v7, %v12004_v15 }
 0x476   : > { %v12413_v18 = vpop.f32.mrb[179].mxu0  ;;  %v2831_v21 = vmax.f32 %v2829_v59, %v11977_v54  ;;  %v12453_v54 = vld [vmem:[#allocation4 + $0x78] sm:$0xff] }
 0x477   : > { %16897 = vst [vmem:[#allocation176_spill] sm:$0xff] %v12410_v25  ;;  %6567 = vst.msk [vmem:[#allocation4 + $0x60] sm:$0xff] %vm5529_vm6, %v12410_v25  ;;  %v2836_v59 = vmax.f32 %v2834_v55, %v12019_v56  ;;  %v4249_v55 = vsub.f32 %v12239_v13, %v12251_v43 }
 0x478   : > { %v3970_v52 = vpop.xlane.xlu1 %3969  ;;  %v2833_v35 = vmax.f32 %v2831_v21, %v11995_v2  ;;  %16904 = vst [vmem:[#allocation183_spill] sm:$0xff] %v12453_v54 }
 0x479   : > { %v12428_v31 = vpop.f32.mrb[180].mxu0  ;;  %v12431_v3 = vmax.f32 %v12415_v47, %v3970_v52  ;;  %v2838_v15 = vmax.f32 %v2836_v59, %v12031_v11 }
 0x47a   : > { %v12434_v61 = vpop.f32.mrb[181].mxu0  ;;  %v2835_v52 = vmax.f32 %v2833_v35, %v12013_v44  ;;  %v12462_v35 = vmul.f32 0.125, %v12283_v26 }
 0x47b   : > { %16901 = vst [vmem:[#allocation180_spill] sm:$0xff] %v12431_v3  ;;  %6568 = vst.msk [vmem:[#allocation4 + $0x68] sm:$0xff] %vm5529_vm6, %v12431_v3 }
 0x47c   : > { %4044 = vmax.xlane.f32.xlu0 %v4043_v10  ;;  %v3973_v25 = vpop.xlane.xlu0 %3972  ;;  %v2837_v21 = vmax.f32 %v2835_v52, %v12025_v29  ;;  %v2840_v10 = vmax.f32 %v2838_v15, %v12043_v39  ;;  %16905 = vst [vmem:[#allocation184_spill] sm:$0xff] %v12462_v35 }
 0x47d   : > { %v12445_v47 = vpop.f32.mrb[182].mxu0  ;;  %v12448_v7 = vmax.f32 %v12438_v27, %v3973_v25  ;;  %v12465_v25 = vmul.f32 0.125, %v12293_v34 }
 0x47e   : > { %v12451_v58 = vpop.f32.mrb[183].mxu0  ;;  %v2839_v27 = vmax.f32 %v2837_v21, %v12037_v57  ;;  %v2842_v13 = vmax.f32 %v2840_v10, %v12055_v20 }
 0x47f   : > { %16903 = vst [vmem:[#allocation182_spill] sm:$0xff] %v12448_v7  ;;  %6569 = vst.msk [vmem:[#allocation4 + $0x70] sm:$0xff] %vm5529_vm6, %v12448_v7  ;;  %v4046_v15 = vmax.f32 %v12462_v35, %v12465_v25  ;;  %v4313_v7 = vmul.f32 1.442695, %v4249_v55 }
 0x480   : > { %16906 = vst [vmem:[#allocation185_spill] sm:$0xff] %v12465_v25  ;;  %v3976_v59 = vpop.xlane.xlu1 %3975  ;;  %v2841_v26 = vmax.f32 %v2839_v27, %v12049_v50  ;;  %v2844_v34 = vmax.f32 %v2842_v13, %v12067_v62 }
 0x481   : > { %v12468_v3 = vpop.f32.mrb[184].mxu0  ;;  %v12471_v52 = vmax.f32 %v12453_v54, %v3976_v59  ;;  %9141 = vpow2.f32 %v4313_v7 }
 0x482   : > { %v12474_v43 = vpop.f32.mrb[185].mxu0  ;;  %v2843_v21 = vmax.f32 %v2841_v26, %v12061_v53  ;;  %v2846_v10 = vmax.f32 %v2844_v34, %v12079_v0 }
 0x483   : > { %16907 = vst [vmem:[#allocation186_spill] sm:$0xff] %v12471_v52  ;;  %6570 = vst.msk [vmem:[#allocation4 + $0x78] sm:$0xff] %vm5529_vm6, %v12471_v52 }
 0x484   : > { %4047 = vmax.xlane.f32.xlu1 %v4046_v15  ;;  %v2845_v20 = vmax.f32 %v2843_v21, %v12073_v4  ;;  %v2848_v27 = vmax.f32 %v2846_v10, %v12091_v37  ;;  %v16908_v21 = vsub.f32 %v12257_v23, %v12268_v41  ;;  %v12509_v37 = vld [vmem:[#allocation4 + $0x80] sm:$0xff] }
 0x485   : > { %v12483_v59 = vpop.f32.mrb[186].mxu0  ;;  %16909 = vst [vmem:[#allocation187_spill] sm:$0xff] %v12509_v37 }
 0x486   : > { %v12486_v54 = vpop.f32.mrb[187].mxu0  ;;  %v2847_v55 = vmax.f32 %v2845_v20, %v12085_v19  ;;  %v2850_v13 = vmax.f32 %v2848_v27, %v12124_v32  ;;  %v4315_v20 = vmul.f32 1.442695, %v16908_v21  ;;  %v12527_v21 = vld [vmem:[#allocation4 + $0x88] sm:$0xff] }
 0x487   : > { %16912 = vst [vmem:[#allocation190_spill] sm:$0xff] %v12527_v21 }
 0x488   : > { %v2849_v26 = vmax.f32 %v2847_v55, %v12097_v5  ;;  %v2852_v52 = vmax.f32 %v2850_v13, %v12145_v46  ;;  %v3979_v55 = vpop.xlane.xlu0 %3978  ;;  %9143 = vpow2.f32 %v4315_v20 }
 0x489   : > { %v12491_v50 = vpop.f32.mrb[188].mxu0 }
 0x48a   : > { %v12494_v15 = vpop.f32.mrb[189].mxu0  ;;  %v2851_v34 = vmax.f32 %v2849_v26, %v12132_v6  ;;  %v2854_v7 = vmax.f32 %v2852_v52, %v12166_v24  ;;  %v12517_v52 = vmax.f32 %v12509_v37, %v3979_v55  ;;  %v16952_v24 = vld [vmem:[#allocation79_spill] sm:$0xff] }
 0x48b   : > { %v12511_v13 = vpop.eup %9141 }
 0x48c   : > { %v2853_v27 = vmax.f32 %v2851_v34, %v12153_v63  ;;  %v2856_v32 = vmax.f32 %v2854_v7, %v12187_v9  ;;  %16910 = vst [vmem:[#allocation188_spill] sm:$0xff] %v12511_v13  ;;  %16911 = vst [vmem:[#allocation189_spill] sm:$0xff] %v12517_v52  ;;  %v17003_v63 = vld [vmem:[#allocation146_spill] sm:$0xff] }
 0x48d   : > { %v12499_v0 = vpop.f32.mrb[190].mxu0  ;;  %6571 = vst.msk [vmem:[#allocation4 + $0x80] sm:$0xff] %vm5529_vm6, %v12517_v52  ;;  %v12542_v52 = vmul.f32 0.125, %v12301_v48 }
 0x48e   : > { %v12505_v10 = vpop.f32.mrb[191].mxu0  ;;  %v2855_v26 = vmax.f32 %v2853_v27, %v12174_v8  ;;  %v2858_v23 = vmax.f32 %v2856_v32, %v12208_v36  ;;  %v3982_v27 = vpop.xlane.xlu1 %3981 }
 0x48f   : > { %v12532_v20 = vmax.f32 %v12527_v21, %v3982_v27  ;;  %16915 = vst [vmem:[#allocation193_spill] sm:$0xff] %v12542_v52  ;;  %v12548_v27 = vmul.f32 0.125, %v12336_v60  ;;  %v12550_v21 = vld [vmem:[#allocation4 + $0x90] sm:$0xff] }
 0x490   : > { %v2857_v34 = vmax.f32 %v2855_v26, %v12195_v12  ;;  %v2860_v7 = vmax.f32 %v2858_v23, %v12229_v40  ;;  %v12536_v26 = vmul.f32 0.125, %v12312_v33  ;;  %16917 = vst [vmem:[#allocation195_spill] sm:$0xff] %v12550_v21  ;;  %v16926_v40 = vld [vmem:[#allocation165_spill] sm:$0xff]  ;;  %v16930_v12 = vld [vmem:[#allocation172_spill] sm:$0xff] }
 0x491   : > { %v12514_v46 = vpop.f32.mrb[192].mxu0  ;;  %16913 = vst [vmem:[#allocation191_spill] sm:$0xff] %v12532_v20  ;;  %6572 = vst.msk [vmem:[#allocation4 + $0x88] sm:$0xff] %vm5529_vm6, %v12532_v20 }
 0x492   : > { %5660 = vperm.xlu0 %9138, %v12511_v13   ;;  %v12521_v41 = vpop.f32.mrb[193].mxu0  ;;  %v2859_v55 = vmax.f32 %v2857_v34, %v12216_v14  ;;  %v2862_v13 = vmax.f32 %v2860_v7, %v12255_v16  ;;  %16914 = vst [vmem:[#allocation192_spill] sm:$0xff] %v12536_v26  ;;  %16916 = vst [vmem:[#allocation194_spill] sm:$0xff] %v12548_v27  ;;  %v3985_v7 = vpop.xlane.xlu0 %3984  ;;  %v12554_v16 = vmul.f32 0.125, %v12323_v28 }
 0x493   : > { %v12572_v28 = vpop.eup %9143 }
 0x494   : > { %v2861_v23 = vmax.f32 %v2859_v55, %v12237_v17  ;;  %v2864_v34 = vmax.f32 %v2862_v13, %v12462_v35  ;;  %16918 = vst [vmem:[#allocation196_spill] sm:$0xff] %v12554_v16  ;;  %v12558_v55 = vmax.f32 %v12550_v21, %v3985_v7  ;;  %v12562_v13 = vmul.f32 0.125, %v12359_v42  ;;  %v16921_v17 = vld [vmem:[#allocation158_spill] sm:$0xff]  ;;  %16923 = vst [vmem:[#allocation199_spill] sm:$0xff] %v12572_v28  ;;  %v3988_v42 = vpop.xlane.xlu1 %3987 }
 0x495   : > { %4458 = vperm.xlu1 %9139, %v12304_v22   ;;  %v2658_v32 = vpop.f32.mrb[194].mxu0  ;;  %v12576_v21 = vmul.f32 0.125, %v12381_v51 }
 0x496   : > { %v12538_v37 = vpop.f32.mrb[195].mxu0  ;;  %v2863_v33 = vmax.f32 %v2861_v23, %v12422_v1  ;;  %16919 = vst [vmem:[#allocation197_spill] sm:$0xff] %v12558_v55  ;;  %v2866_v20 = vmax.f32 %v2864_v34, %v12536_v26  ;;  %16920 = vst [vmem:[#allocation198_spill] sm:$0xff] %v12562_v13  ;;  %v12568_v23 = vmul.f32 0.125, %v16921_v17  ;;  %v12578_v34 = vld [vmem:[#allocation4 + $0x98] sm:$0xff] }
 0x497   : > { %6573 = vst.msk [vmem:[#allocation4 + $0x90] sm:$0xff] %vm5529_vm6, %v12558_v55  ;;  %16924 = vst [vmem:[#allocation200_spill] sm:$0xff] %v12576_v21  ;;  %v12586_v55 = vmax.f32 %v12578_v34, %v3988_v42  ;;  %v12602_v42 = vmul.f32 0.125, %v12445_v47 }
 0x498   : > { %v2865_v35 = vmax.f32 %v2863_v33, %v12542_v52  ;;  %16922 = vst [vmem:[#allocation158_spill] sm:$0xff] %v12568_v23  ;;  %v2868_v7 = vmax.f32 %v2866_v20, %v12548_v27  ;;  %16925 = vst [vmem:[#allocation201_spill] sm:$0xff] %v12578_v34  ;;  %v12582_v33 = vmul.f32 0.125, %v16926_v40  ;;  %v12590_v20 = vmul.f32 0.125, %v12407_v45 }
 0x499   : > { %4463 = vperm.xlu1 %9139, %v12315_v30   ;;  %v2664_v48 = vpop.f32.mrb[196].mxu0  ;;  %16928 = vst [vmem:[#allocation202_spill] sm:$0xff] %v12586_v55  ;;  %6574 = vst.msk [vmem:[#allocation4 + $0x98] sm:$0xff] %vm5529_vm6, %v12586_v55  ;;  %v12608_v34 = vmul.f32 0.125, %v12428_v31  ;;  %v12615_v55 = vmul.f32 0.125, %v12483_v59  ;;  %v12627_v31 = vmul.f32 0.125, %v12499_v0 }
 0x49a   : > { %v12564_v60 = vpop.f32.mrb[197].mxu0  ;;  %v2867_v1 = vmax.f32 %v2865_v35, %v12554_v16  ;;  %16927 = vst [vmem:[#allocation165_spill] sm:$0xff] %v12582_v33  ;;  %v2870_v14 = vmax.f32 %v2868_v7, %v12562_v13  ;;  %16929 = vst [vmem:[#allocation203_spill] sm:$0xff] %v12590_v20  ;;  %v12596_v35 = vmul.f32 0.125, %v16930_v12  ;;  %v3991_v7 = vpop.xlane.xlu0 %3990 }
 0x49b   : > { %16932 = vst [vmem:[#allocation204_spill] sm:$0xff] %v12602_v42  ;;  %16934 = vst [vmem:[#allocation206_spill] sm:$0xff] %v12608_v34 }
 0x49c   : > { %v2869_v36 = vmax.f32 %v2867_v1, %v12568_v23  ;;  %16931 = vst [vmem:[#allocation172_spill] sm:$0xff] %v12596_v35  ;;  %v2872_v40 = vmax.f32 %v2870_v14, %v12576_v21  ;;  %16936 = vst [vmem:[#allocation208_spill] sm:$0xff] %v12615_v55  ;;  %v12621_v21 = vmul.f32 0.125, %v12468_v3 }
 0x49d   : > { %5665 = vperm.xlu1 %9139, %v12572_v28   ;;  %v2670_v17 = vpop.f32.mrb[198].mxu0  ;;  %v12604_v28 = vld [vmem:[#allocation4 + $0xa0] sm:$0xff]  ;;  %16938 = vst [vmem:[#allocation210_spill] sm:$0xff] %v12627_v31 }
 0x49e   : > { %v12592_v51 = vpop.f32.mrb[199].mxu0  ;;  %16933 = vst [vmem:[#allocation205_spill] sm:$0xff] %v12604_v28  ;;  %v2871_v45 = vmax.f32 %v2869_v36, %v12582_v33  ;;  %v12611_v12 = vmax.f32 %v12604_v28, %v3991_v7  ;;  %v2874_v9 = vmax.f32 %v2872_v40, %v12590_v20  ;;  %16937 = vst [vmem:[#allocation209_spill] sm:$0xff] %v12621_v21  ;;  %v12629_v7 = vld [vmem:[#allocation4 + $0xa8] sm:$0xff]  ;;  %v3994_v40 = vpop.xlane.xlu1 %3993  ;;  %v12633_v28 = vmul.f32 0.125, %v12491_v50 }
 0x49f   : > { %16939 = vst [vmem:[#allocation211_spill] sm:$0xff] %v12629_v7  ;;  %v12636_v3 = vmax.f32 %v12629_v7, %v3994_v40  ;;  %v16944_v50 = vld [vmem:[#allocation75_spill] sm:$0xff]  ;;  %v12652_v7 = vmul.f32 0.125, %v2670_v17 }
 0x4a0   : > { %16935 = vst [vmem:[#allocation207_spill] sm:$0xff] %v12611_v12  ;;  %v2873_v47 = vmax.f32 %v2871_v45, %v12596_v35  ;;  %6575 = vst.msk [vmem:[#allocation4 + $0xa0] sm:$0xff] %vm5529_vm6, %v12611_v12  ;;  %v2876_v36 = vmax.f32 %v2874_v9, %v12602_v42  ;;  %v12639_v12 = vmul.f32 0.125, %v2658_v32  ;;  %v12645_v42 = vmul.f32 0.125, %v12514_v46  ;;  %v3997_v32 = vpop.xlane.xlu0 %3996 }
 0x4a1   : > { %v2676_v1 = vpop.f32.mrb[200].mxu0  ;;  %16940 = vst [vmem:[#allocation212_spill] sm:$0xff] %v12633_v28  ;;  %16941 = vst [vmem:[#allocation213_spill] sm:$0xff] %v12636_v3  ;;  %v12657_v35 = vmul.f32 0.125, %v2664_v48  ;;  %v16955_v48 = vld [vmem:[#allocation77_spill] sm:$0xff] }
 0x4a2   : > { %v12617_v14 = vpop.f32.mrb[201].mxu0  ;;  %v2875_v59 = vmax.f32 %v2873_v47, %v12608_v34  ;;  %v2878_v20 = vmax.f32 %v2876_v36, %v12615_v55  ;;  %16942 = vst [vmem:[#allocation214_spill] sm:$0xff] %v12639_v12  ;;  %16943 = vst [vmem:[#allocation215_spill] sm:$0xff] %v12645_v42  ;;  %v16945_v47 = vld [vmem:[#allocation71_spill] sm:$0xff]  ;;  %v12654_v36 = vld [vmem:[#allocation4 + $0xb0] sm:$0xff] }
 0x4a3   : > { %6576 = vst.msk [vmem:[#allocation4 + $0xa8] sm:$0xff] %vm5529_vm6, %v12636_v3  ;;  %v2897_v34 = vmax.f32 %v16945_v47, %v16944_v50  ;;  %16946 = vst [vmem:[#allocation216_spill] sm:$0xff] %v12652_v7  ;;  %v12660_v46 = vmax.f32 %v12654_v36, %v3997_v32  ;;  %v16951_v3 = vld [vmem:[#allocation69_spill] sm:$0xff] }
 0x4a4   : > { %v2877_v0 = vmax.f32 %v2875_v59, %v12621_v21  ;;  %v2880_v40 = vmax.f32 %v2878_v20, %v12627_v31  ;;  %16947 = vst [vmem:[#allocation217_spill] sm:$0xff] %v12654_v36  ;;  %16948 = vst [vmem:[#allocation218_spill] sm:$0xff] %v12657_v35  ;;  %v16950_v21 = vld [vmem:[#allocation73_spill] sm:$0xff]  ;;  %v16956_v36 = vld [vmem:[#allocation83_spill] sm:$0xff] }
 0x4a5   : > { %v2682_v45 = vpop.f32.mrb[202].mxu0  ;;  %16949 = vst [vmem:[#allocation219_spill] sm:$0xff] %v12660_v46  ;;  %v2896_v8 = vmax.f32 %v16951_v3, %v16950_v21  ;;  %v2899_v50 = vmax.f32 %v2897_v34, %v16952_v24  ;;  %6577 = vst.msk [vmem:[#allocation4 + $0xb0] sm:$0xff] %vm5529_vm6, %v12660_v46  ;;  %v12678_v34 = vld [vmem:[#allocation4 + $0xb8] sm:$0xff] }
 0x4a6   : > { %v12641_v9 = vpop.f32.mrb[203].mxu0  ;;  %v2879_v55 = vmax.f32 %v2877_v0, %v12633_v28  ;;  %v2882_v20 = vmax.f32 %v2880_v40, %v12639_v12  ;;  %v12666_v17 = vmul.f32 0.125, %v2682_v45  ;;  %v12671_v0 = vmul.f32 0.125, %v2676_v1  ;;  %16957 = vst [vmem:[#allocation222_spill] sm:$0xff] %v12678_v34  ;;  %v4000_v40 = vpop.xlane.xlu1 %3999  ;;  %v16958_v45 = vld [vmem:[#allocation148_spill] sm:$0xff]  ;;  %v16962_v46 = vld [vmem:[#allocation81_spill] sm:$0xff] }
 0x4a7   : > { %v2898_v32 = vmax.f32 %v2896_v8, %v16955_v48  ;;  %v2901_v28 = vmax.f32 %v2899_v50, %v16956_v36  ;;  %v12681_v12 = vmul.f32 0.125, %v16958_v45  ;;  %v16965_v45 = vld [vmem:[#allocation153_spill] sm:$0xff] }
 0x4a8   : > { %16953 = vst [vmem:[#allocation220_spill] sm:$0xff] %v12666_v17  ;;  %v2881_v47 = vmax.f32 %v2879_v55, %v12645_v42  ;;  %16954 = vst [vmem:[#allocation221_spill] sm:$0xff] %v12671_v0  ;;  %v2884_v21 = vmax.f32 %v2882_v20, %v12652_v7  ;;  %v12687_v42 = vmax.f32 %v12678_v34, %v4000_v40  ;;  %v16964_v7 = vld [vmem:[#allocation87_spill] sm:$0xff]  ;;  %v12697_v3 = vmul.f32 0.125, %v16965_v45  ;;  %v4003_v34 = vpop.xlane.xlu0 %4002 }
 0x4a9   : > { %v2688_v59 = vpop.f32.mrb[204].mxu0  ;;  %16959 = vst [vmem:[#allocation148_spill] sm:$0xff] %v12681_v12  ;;  %v2900_v8 = vmax.f32 %v2898_v32, %v16962_v46  ;;  %v2903_v48 = vmax.f32 %v2901_v28, %v16964_v7  ;;  %v16967_v32 = vld [vmem:[#allocation85_spill] sm:$0xff]  ;;  %v16972_v7 = vld [vmem:[#allocation95_spill] sm:$0xff] }
 0x4aa   : > { %v12668_v31 = vpop.f32.mrb[205].mxu0  ;;  %v2883_v24 = vmax.f32 %v2881_v47, %v12657_v35  ;;  %v12684_v55 = vmul.f32 0.125, %v2688_v59  ;;  %16961 = vst [vmem:[#allocation224_spill] sm:$0xff] %v12687_v42  ;;  %v2886_v50 = vmax.f32 %v2884_v21, %v12666_v17  ;;  %16966 = vst [vmem:[#allocation153_spill] sm:$0xff] %v12697_v3  ;;  %v4049_v59 = vmax.f32 %v12542_v52, %v12681_v12  ;;  %v16969_v17 = vld [vmem:[#allocation91_spill] sm:$0xff] }
 0x4ab   : > { %6578 = vst.msk [vmem:[#allocation4 + $0xb8] sm:$0xff] %vm5529_vm6, %v12687_v42  ;;  %v2902_v40 = vmax.f32 %v2900_v8, %v16967_v32  ;;  %v2905_v28 = vmax.f32 %v2903_v48, %v16969_v17  ;;  %v4055_v8 = vmax.f32 %v12554_v16, %v12697_v3  ;;  %v12720_v48 = vld [vmem:[#allocation4 + $0xc8] sm:$0xff]  ;;  %v12733_v17 = vld [vmem:[#allocation4 + $0xd0] sm:$0xff]  ;;  %v17000_v32 = vld [vmem:[#allocation130_spill] sm:$0xff] }
 0x4ac   : > { %16960 = vst [vmem:[#allocation223_spill] sm:$0xff] %v12684_v55  ;;  %v2885_v47 = vmax.f32 %v2883_v24, %v12671_v0  ;;  %v16971_v0 = vld [vmem:[#allocation89_spill] sm:$0xff]  ;;  %16974 = vst [vmem:[#allocation228_spill] sm:$0xff] %v12720_v48 }
 0x4ad   : > { %v2694_v1 = vpop.f32.mrb[206].mxu0  ;;  %v2904_v35 = vmax.f32 %v2902_v40, %v16971_v0  ;;  %v2907_v46 = vmax.f32 %v2905_v28, %v16972_v7  ;;  %v16977_v40 = vld [vmem:[#allocation97_spill] sm:$0xff] }
 0x4ae   : > { %v12691_v36 = vmul.f32 0.125, %v2694_v1  ;;  %v12693_v20 = vpop.f32.mrb[207].mxu0  ;;  %v12706_v1 = vld [vmem:[#allocation4 + $0xc0] sm:$0xff]  ;;  %v2887_v45 = vmax.f32 %v2885_v47, %v12684_v55  ;;  %v4006_v47 = vpop.xlane.xlu1 %4005 }
 0x4af   : > { %16968 = vst [vmem:[#allocation226_spill] sm:$0xff] %v12706_v1  ;;  %v12711_v24 = vmax.f32 %v12706_v1, %v4003_v34  ;;  %v12724_v34 = vmax.f32 %v12720_v48, %v4006_v47 }
 0x4b0   : > { %16963 = vst [vmem:[#allocation225_spill] sm:$0xff] %v12691_v36  ;;  %v2888_v21 = vmax.f32 %v2886_v50, %v12691_v36  ;;  %v16973_v50 = vld [vmem:[#allocation93_spill] sm:$0xff] }
 0x4b1   : > { %4050 = vmax.xlane.f32.xlu0 %v4049_v59  ;;  %16970 = vst [vmem:[#allocation227_spill] sm:$0xff] %v12711_v24  ;;  %6579 = vst.msk [vmem:[#allocation4 + $0xc0] sm:$0xff] %vm5529_vm6, %v12711_v24  ;;  %v2906_v36 = vmax.f32 %v2904_v35, %v16973_v50  ;;  %v16975_v59 = vld [vmem:[#allocation99_spill] sm:$0xff]  ;;  %v16979_v24 = vld [vmem:[#allocation101_spill] sm:$0xff] }
 0x4b2   : > { %v2889_v42 = vmax.f32 %v2887_v45, %v2888_v21  ;;  %v2909_v55 = vmax.f32 %v2907_v46, %v16975_v59  ;;  %16976 = vst [vmem:[#allocation229_spill] sm:$0xff] %v12724_v34  ;;  %v16978_v21 = vld [vmem:[#allocation103_spill] sm:$0xff]  ;;  %6580 = vst.msk [vmem:[#allocation4 + $0xc8] sm:$0xff] %vm5529_vm6, %v12724_v34  ;;  %v4009_v46 = vpop.xlane.xlu0 %4008 }
 0x4b3   : > { %v2908_v28 = vmax.f32 %v2906_v36, %v16977_v40  ;;  %v16980_v35 = vld [vmem:[#allocation147_spill] sm:$0xff]  ;;  %v12737_v47 = vmax.f32 %v12733_v17, %v4009_v46  ;;  %v16984_v36 = vld [vmem:[#allocation105_spill] sm:$0xff]  ;;  %v16986_v40 = vld [vmem:[#allocation150_spill] sm:$0xff] }
 0x4b4   : > { %v2911_v45 = vmax.f32 %v2909_v55, %v16978_v21  ;;  %v2890_v1 = vrot.slane %v2889_v42, 4  ;;  %v4252_v50 = vsub.f32 %v16980_v35, %v12304_v22  ;;  %16981 = vst [vmem:[#allocation147_spill] sm:$0xff] %v12733_v17  ;;  %v16985_v55 = vld [vmem:[#allocation111_spill] sm:$0xff]  ;;  %v12742_v0 = vmul.f32 0.125, %v16986_v40  ;;  %v16988_v22 = vld [vmem:[#allocation109_spill] sm:$0xff] }
 0x4b5   : > { %4056 = vmax.xlane.f32.xlu0 %v4055_v8  ;;  %v2910_v7 = vmax.f32 %v2908_v28, %v16979_v24  ;;  %v16982_v8 = vld [vmem:[#allocation107_spill] sm:$0xff]  ;;  %16983 = vst [vmem:[#allocation230_spill] sm:$0xff] %v12737_v47  ;;  %6581 = vst.msk [vmem:[#allocation4 + $0xd0] sm:$0xff] %vm5529_vm6, %v12737_v47  ;;  %v12747_v24 = vld [vmem:[#allocation4 + $0xd8] sm:$0xff] }
 0x4b6   : > { %v2913_v59 = vmax.f32 %v2911_v45, %v16982_v8  ;;  %16987 = vst [vmem:[#allocation150_spill] sm:$0xff] %v12742_v0  ;;  %v2891_v34 = vmax.f32 %v2889_v42, %v2890_v1  ;;  %v4319_v35 = vmul.f32 1.442695, %v4252_v50  ;;  %16989 = vst [vmem:[#allocation231_spill] sm:$0xff] %v12747_v24  ;;  %v4012_v45 = vpop.xlane.xlu1 %4011  ;;  %v16990_v8 = vld [vmem:[#allocation115_spill] sm:$0xff]  ;;  %v4052_v42 = vmax.f32 %v12536_v26, %v12742_v0  ;;  %v16994_v1 = vld [vmem:[#allocation118_spill] sm:$0xff] }
 0x4b7   : > { %v2912_v48 = vmax.f32 %v2910_v7, %v16984_v36  ;;  %v12751_v17 = vmax.f32 %v12747_v24, %v4012_v45  ;;  %v16992_v7 = vld [vmem:[#allocation113_spill] sm:$0xff]  ;;  %v16997_v24 = vld [vmem:[#allocation128_spill] sm:$0xff] }
 0x4b8   : > { %v2915_v21 = vmax.f32 %v2913_v59, %v16985_v55  ;;  %v16993_v55 = vld [vmem:[#allocation120_spill] sm:$0xff]  ;;  %v2892_v36 = vrot.slane %v2891_v34, 2  ;;  %9145 = vpow2.f32 %v4319_v35 }
 0x4b9   : > { %v2914_v28 = vmax.f32 %v2912_v48, %v16988_v22  ;;  %16991 = vst [vmem:[#allocation232_spill] sm:$0xff] %v12751_v17  ;;  %6582 = vst.msk [vmem:[#allocation4 + $0xd8] sm:$0xff] %vm5529_vm6, %v12751_v17  ;;  %v16995_v48 = vld [vmem:[#allocation124_spill] sm:$0xff]  ;;  %v17002_v17 = vld [vmem:[#allocation145_spill] sm:$0xff] }
 0x4ba   : > { %v2917_v46 = vmax.f32 %v2915_v21, %v16990_v8  ;;  %v16996_v21 = vld [vmem:[#allocation122_spill] sm:$0xff]  ;;  %v17001_v26 = vld [vmem:[#allocation136_spill] sm:$0xff] }
 0x4bb   : > { %v2916_v59 = vmax.f32 %v2914_v28, %v16992_v7  ;;  %v2893_v28 = vmax.f32 %v2891_v34, %v2892_v36  ;;  %v16998_v7 = vld [vmem:[#allocation126_spill] sm:$0xff]  ;;  %v17009_v36 = vld [vmem:[#allocation144_spill] sm:$0xff] }
 0x4bc   : > { %v2919_v40 = vmax.f32 %v2917_v46, %v16993_v55  ;;  %v16999_v55 = vld [vmem:[#allocation132_spill] sm:$0xff]  ;;  %v17008_v34 = vld [vmem:[#allocation138_spill] sm:$0xff] }
 0x4bd   : > { %v2918_v50 = vmax.f32 %v2916_v59, %v16994_v1  ;;  %v17004_v59 = vsub.f32 %v17002_v17, %v17003_v63  ;;  %v2894_v1 = vrot.slane %v2893_v28, 1  ;;  %v17011_v17 = vld [vmem:[#allocation156_spill] sm:$0xff] }
 0x4be   : > { %v2921_v47 = vmax.f32 %v2919_v40, %v16995_v48  ;;  %v17005_v40 = vld [vmem:[#allocation134_spill] sm:$0xff]  ;;  %v17006_v48 = vld [vmem:[#allocation140_spill] sm:$0xff] }
 0x4bf   : > { %v2920_v45 = vmax.f32 %v2918_v50, %v16996_v21  ;;  %v4317_v35 = vmul.f32 1.442695, %v17004_v59  ;;  %v12782_v59 = vmul.f32 0.125, %v17011_v17 }
 0x4c0   : > { %v2923_v8 = vmax.f32 %v2921_v47, %v16997_v24 }
 0x4c1   : > { %4053 = vmax.xlane.f32.xlu1 %v4052_v42  ;;  %v2922_v46 = vmax.f32 %v2920_v45, %v16998_v7  ;;  %9147 = vpow2.f32 %v4317_v35  ;;  %17012 = vst [vmem:[#allocation146_spill] sm:$0xff] %v12782_v59  ;;  %v17015_v35 = vld [vmem:[#allocation160_spill] sm:$0xff] }
 0x4c2   : > { %v2925_v22 = vmax.f32 %v2923_v8, %v16999_v55  ;;  %v12772_v21 = vpop.eup %9145  ;;  %v12776_v8 = vmax.f32 %v2893_v28, %v2894_v1 }
 0x4c3   : > { %v2924_v16 = vmax.f32 %v2922_v46, %v17000_v32  ;;  %17007 = vst [vmem:[#allocation145_spill] sm:$0xff] %v12772_v21  ;;  %v17106_v32 = vld [vmem:[#allocation178_spill] sm:$0xff] }
 0x4c4   : > { %v2927_v52 = vmax.f32 %v2925_v22, %v17001_v26  ;;  %v17010_v22 = vld [vmem:[#allocation142_spill] sm:$0xff]  ;;  %v2965_v1 = vsub.f32 %v11923_v38, %v12776_v8 }
 0x4c5   : > { %v2926_v42 = vmax.f32 %v2924_v16, %v17005_v40 }
 0x4c6   : > { %v2929_v50 = vmax.f32 %v2927_v52, %v17006_v48  ;;  %v17013_v48 = vld [vmem:[#allocation163_spill] sm:$0xff]  ;;  %v3093_v38 = vmul.f32 1.442695, %v2965_v1  ;;  %v17029_v1 = vld [vmem:[#allocation74_spill] sm:$0xff] }
 0x4c7   : > { %v2928_v47 = vmax.f32 %v2926_v42, %v17008_v34  ;;  %v12787_v42 = vmul.f32 0.125, %v17013_v48  ;;  %v17020_v48 = vld [vmem:[#allocation167_spill] sm:$0xff] }
 0x4c8   : > { %v2931_v45 = vmax.f32 %v2929_v50, %v17009_v36  ;;  %v12793_v50 = vmul.f32 0.125, %v17015_v35  ;;  %v12808_v35 = vmul.f32 0.125, %v12413_v18  ;;  %v12820_v36 = vmul.f32 0.125, %v12451_v58 }
 0x4c9   : > { %v2930_v46 = vmax.f32 %v2928_v47, %v17010_v22  ;;  %17014 = vst [vmem:[#allocation156_spill] sm:$0xff] %v12787_v42  ;;  %v17017_v47 = vld [vmem:[#allocation70_spill] sm:$0xff]  ;;  %9149 = vpow2.f32 %v3093_v38  ;;  %v17036_v38 = vld [vmem:[#allocation155_spill] sm:$0xff] }
 0x4ca   : > { %v2933_v63 = vmax.f32 %v2931_v45, %v12465_v25  ;;  %17016 = vst [vmem:[#allocation163_spill] sm:$0xff] %v12793_v50  ;;  %v2967_v45 = vsub.f32 %v17017_v47, %v12776_v8  ;;  %v17022_v25 = vld [vmem:[#allocation152_spill] sm:$0xff]  ;;  %17023 = vst [vmem:[#allocation167_spill] sm:$0xff] %v12808_v35 }
 0x4cb   : > { %5675 = vperm.xlu0 %9138, %v12772_v21   ;;  %v2932_v16 = vmax.f32 %v2930_v46, %v12425_v49  ;;  %v17018_v21 = vld [vmem:[#allocation170_spill] sm:$0xff]  ;;  %v12813_v49 = vpop.eup %9147  ;;  %17028 = vst [vmem:[#allocation233_spill] sm:$0xff] %v12820_v36 }
 0x4cc   : > { %v2935_v52 = vmax.f32 %v2933_v63, %v12742_v0  ;;  %v12799_v46 = vmul.f32 0.125, %v17018_v21  ;;  %v12803_v0 = vmul.f32 0.125, %v17020_v48  ;;  %v3097_v21 = vmul.f32 1.442695, %v2967_v45  ;;  %17025 = vst [vmem:[#allocation152_spill] sm:$0xff] %v12813_v49  ;;  %v17026_v48 = vld [vmem:[#allocation174_spill] sm:$0xff] }
 0x4cd   : > { %v2934_v28 = vmax.f32 %v2932_v16, %v12681_v12  ;;  %v12828_v45 = vmul.f32 0.125, %v12434_v61  ;;  %v17035_v61 = vld [vmem:[#allocation78_spill] sm:$0xff] }
 0x4ce   : > { %v2937_v17 = vmax.f32 %v2935_v52, %v12782_v59  ;;  %17019 = vst [vmem:[#allocation160_spill] sm:$0xff] %v12799_v46  ;;  %17021 = vst [vmem:[#allocation170_spill] sm:$0xff] %v12803_v0  ;;  %v17024_v52 = vld [vmem:[#allocation72_spill] sm:$0xff]  ;;  %9151 = vpow2.f32 %v3097_v21  ;;  %v12849_v21 = vmul.f32 0.125, %v12494_v15  ;;  %v17042_v15 = vld [vmem:[#allocation82_spill] sm:$0xff] }
 0x4cf   : > { %v2936_v63 = vmax.f32 %v2934_v28, %v12697_v3  ;;  %v2969_v12 = vsub.f32 %v17024_v52, %v12776_v8  ;;  %v12817_v3 = vmul.f32 0.125, %v17026_v48  ;;  %17030 = vst [vmem:[#allocation234_spill] sm:$0xff] %v12828_v45  ;;  %v17032_v48 = vld [vmem:[#allocation76_spill] sm:$0xff]  ;;  %v17096_v52 = vld [vmem:[#allocation166_spill] sm:$0xff] }
 0x4d0   : > { %v2939_v16 = vmax.f32 %v2937_v17, %v12787_v42  ;;  %v2971_v17 = vsub.f32 %v17029_v1, %v12776_v8  ;;  %v2973_v58 = vsub.f32 %v17032_v48, %v12776_v8  ;;  %17037 = vst [vmem:[#allocation155_spill] sm:$0xff] %v12849_v21 }
 0x4d1   : > { %v2938_v47 = vmax.f32 %v2936_v63, %v12793_v50  ;;  %17027 = vst [vmem:[#allocation174_spill] sm:$0xff] %v12817_v3 }
 0x4d2   : > { %4468 = vperm.xlu1 %9139, %v17022_v25   ;;  %v2941_v28 = vmax.f32 %v2939_v16, %v12799_v46  ;;  %v12831_v16 = vmul.f32 0.125, %v12486_v54  ;;  %v3101_v46 = vmul.f32 1.442695, %v2969_v12  ;;  %v2975_v54 = vsub.f32 %v17035_v61, %v12776_v8 }
 0x4d3   : > { %v2940_v18 = vmax.f32 %v2938_v47, %v12803_v0  ;;  %v12859_v61 = vmul.f32 0.125, %v12521_v41  ;;  %v2981_v41 = vsub.f32 %v11995_v2, %v12776_v8 }
 0x4d4   : > { %v2943_v63 = vmax.f32 %v2941_v28, %v12808_v35  ;;  %17031 = vst [vmem:[#allocation235_spill] sm:$0xff] %v12831_v16  ;;  %v12841_v28 = vmul.f32 0.125, %v12505_v10  ;;  %v3105_v35 = vmul.f32 1.442695, %v2971_v17  ;;  %9153 = vpow2.f32 %v3101_v46 }
 0x4d5   : > { %v2942_v47 = vmax.f32 %v2940_v18, %v12817_v3  ;;  %v12852_v18 = vmul.f32 0.125, %v12538_v37  ;;  %17040 = vst [vmem:[#allocation239_spill] sm:$0xff] %v12859_v61  ;;  %v3113_v37 = vmul.f32 1.442695, %v2975_v54 }
 0x4d6   : > { %5670 = vperm.xlu1 %9139, %v12813_v49   ;;  %v2945_v1 = vmax.f32 %v2943_v63, %v12820_v36  ;;  %v12838_v49 = vmul.f32 0.125, %v12474_v43  ;;  %17034 = vst [vmem:[#allocation237_spill] sm:$0xff] %v12841_v28  ;;  %v17039_v43 = vld [vmem:[#allocation80_spill] sm:$0xff]  ;;  %v3109_v63 = vmul.f32 1.442695, %v2973_v58  ;;  %9155 = vpow2.f32 %v3105_v35 }
 0x4d7   : > { %v2944_v48 = vmax.f32 %v2942_v47, %v12828_v45  ;;  %17038 = vst [vmem:[#allocation238_spill] sm:$0xff] %v12852_v18  ;;  %v2977_v10 = vsub.f32 %v17039_v43, %v12776_v8  ;;  %v2979_v47 = vsub.f32 %v17042_v15, %v12776_v8  ;;  %v12869_v58 = vmul.f32 0.125, %v12564_v60  ;;  %v13059_v43 = vld [vmem:[%s10952_s27 + $0x158] sm:$0xff] }
 0x4d8   : > { %17033 = vst [vmem:[#allocation236_spill] sm:$0xff] %v12838_v49  ;;  %v2947_v12 = vmax.f32 %v2945_v1, %v12831_v16  ;;  %v12862_v1 = vmul.f32 0.125, %v12592_v51  ;;  %9157 = vpow2.f32 %v3109_v63  ;;  %v12884_v60 = vmul.f32 0.125, %v12693_v20  ;;  %v17092_v45 = vld [vmem:[#allocation127_spill] sm:$0xff] }
 0x4d9   : > { %v2946_v36 = vmax.f32 %v2944_v48, %v12838_v49  ;;  %17043 = vst [vmem:[#allocation241_spill] sm:$0xff] %v12869_v58  ;;  %v12872_v48 = vmul.f32 0.125, %v12641_v9  ;;  %v3117_v51 = vmul.f32 1.442695, %v2977_v10  ;;  %v17049_v9 = vld [vmem:[#allocation86_spill] sm:$0xff]  ;;  %9159 = vpow2.f32 %v3113_v37 }
 0x4da   : > { %4473 = vperm.xlu1 %9139, %v17036_v38   ;;  %v2949_v17 = vmax.f32 %v2947_v12, %v12841_v28  ;;  %17041 = vst [vmem:[#allocation240_spill] sm:$0xff] %v12862_v1  ;;  %v12876_v12 = vpop.eup %9149  ;;  %17047 = vst [vmem:[#allocation245_spill] sm:$0xff] %v12884_v60  ;;  %v2983_v15 = vsub.f32 %v17049_v9, %v12776_v8  ;;  %v3121_v63 = vmul.f32 1.442695, %v2979_v47  ;;  %v3125_v20 = vmul.f32 1.442695, %v2981_v41 }
 0x4db   : > { %v2948_v16 = vmax.f32 %v2946_v36, %v12849_v21  ;;  %17044 = vst [vmem:[#allocation242_spill] sm:$0xff] %v12872_v48  ;;  %17045 = vst [vmem:[#allocation243_spill] sm:$0xff] %v12876_v12  ;;  %v12881_v36 = vmul.f32 0.125, %v12617_v14  ;;  %v2985_v14 = vsub.f32 %v12013_v44, %v12776_v8  ;;  %9161 = vpow2.f32 %v3117_v51  ;;  %v12901_v47 = vpop.f32.mrb[0].mxu1  ;;  %v13056_v49 = vld [vmem:[%s10952_s27 + $0x150] sm:$0xff] }
 0x4dc   : > { %v2951_v46 = vmax.f32 %v2949_v17, %v12852_v18  ;;  %v12886_v17 = vpop.eup %9151  ;;  %9163 = vpow2.f32 %v3121_v63  ;;  %v12907_v9 = vpop.f32.mrb[1].mxu1 }
 0x4dd   : > { %v2950_v35 = vmax.f32 %v2948_v16, %v12859_v61  ;;  %17046 = vst [vmem:[#allocation244_spill] sm:$0xff] %v12881_v36  ;;  %17048 = vst [vmem:[#allocation246_spill] sm:$0xff] %v12886_v17  ;;  %v12893_v16 = vmul.f32 0.125, %v12668_v31  ;;  %v2987_v31 = vsub.f32 %v12019_v56, %v12776_v8  ;;  %9165 = vpow2.f32 %v3125_v20 }
 0x4de   : > { %v2953_v54 = vmax.f32 %v2951_v46, %v12862_v1  ;;  %v3349_v1 = vadd.f32 %v12886_v17, %v12876_v12  ;;  %v3133_v17 = vmul.f32 1.442695, %v2985_v14 }
 0x4df   : > { %v2952_v10 = vmax.f32 %v2950_v35, %v12869_v58  ;;  %17050 = vst [vmem:[#allocation247_spill] sm:$0xff] %v12893_v16  ;;  %v12903_v35 = vpop.eup %9153  ;;  %v3137_v12 = vmul.f32 1.442695, %v2987_v31  ;;  %v17055_v31 = vld [vmem:[#allocation151_spill] sm:$0xff] }
 0x4e0   : > { %v2955_v2 = vmax.f32 %v2953_v54, %v12872_v48  ;;  %17051 = vst [vmem:[#allocation248_spill] sm:$0xff] %v12903_v35  ;;  %v3129_v54 = vmul.f32 1.442695, %v2983_v15  ;;  %v3350_v51 = vadd.f32 %v12903_v35, %v3349_v1  ;;  %v12913_v44 = vpop.eup %9155  ;;  %v4061_v15 = vmax.f32 %v12568_v23, %v12793_v50  ;;  %v12945_v48 = vld [vmem:[%s10973_s7] sm:$0xff] }
 0x4e1   : > { %v2954_v46 = vmax.f32 %v2952_v10, %v12881_v36  ;;  %v12911_v10 = vpop.f32.mrb[2].mxu1  ;;  %17052 = vst [vmem:[#allocation249_spill] sm:$0xff] %v12913_v44  ;;  %v2991_v35 = vsub.f32 %v12031_v11, %v12776_v8  ;;  %8326 = vmatprep.mubr.msk.f32.mxu1 %vm930_vm3, %v12945_v48 }
 0x4e2   : > { %v2957_v37 = vmax.f32 %v2955_v2, %v12884_v60  ;;  %v2989_v2 = vsub.f32 %v12025_v29, %v12776_v8  ;;  %v12917_v56 = vpop.f32.mrb[3].mxu1  ;;  %v3351_v63 = vadd.f32 %v12913_v44, %v3350_v51  ;;  %v12922_v1 = vpop.eup %9157  ;;  %9167 = vpow2.f32 %v3129_v54  ;;  %v9796_v51 = vld [vmem:[%s10952_s27 + $0x108] sm:$0xff]  ;;  %8327 = vmatmul.mubr.msk.f32.vlgmr.msra.gmra.mrb[16].mxu1 %vm930_vm3, %v12945_v48 }
 0x4e3   : > { %v2956_v41 = vmax.f32 %v2954_v46, %v12893_v16  ;;  %17053 = vst [vmem:[#allocation250_spill] sm:$0xff] %v12922_v1  ;;  %v12926_v29 = vpop.f32.mrb[4].mxu1  ;;  %v12931_v60 = vpop.eup %9159  ;;  %v9795_v16 = vld [vmem:[%s10952_s27 + $0x100] sm:$0xff]  ;;  %9169 = vpow2.f32 %v3133_v17  ;;  %v4254_v44 = vsub.f32 %v17055_v31, %v17022_v25  ;;  %v3145_v17 = vmul.f32 1.442695, %v2991_v35 }
 0x4e4   : > { %v3352_v14 = vadd.f32 %v12922_v1, %v3351_v63  ;;  %v12929_v20 = vpop.f32.mrb[5].mxu1  ;;  %17054 = vst [vmem:[#allocation251_spill] sm:$0xff] %v12931_v60  ;;  %v3141_v11 = vmul.f32 1.442695, %v2989_v2  ;;  %9171 = vpow2.f32 %v3137_v12 }
 0x4e5   : > { %v2958_v46 = vmax.f32 %v2956_v41, %v2957_v37  ;;  %v8607_v37 = vpack.c.bf16 %v9796_v51, %v9795_v16  ;;  %v2993_v41 = vsub.f32 %v12037_v57, %v12776_v8  ;;  %v12937_v54 = vpop.f32.mrb[6].mxu1  ;;  %v12947_v36 = vpop.eup %9161  ;;  %v2995_v16 = vsub.f32 %v12043_v39, %v12776_v8  ;;  %v17215_v57 = vld [vmem:[#allocation212_spill] sm:$0xff] }
 0x4e6   : > { %v12942_v1 = vpop.f32.mrb[7].mxu1  ;;  %17056 = vst [vmem:[#allocation151_spill] sm:$0xff] %v12947_v36  ;;  %v12956_v25 = vpop.eup %9163  ;;  %9173 = vpow2.f32 %v3141_v11  ;;  %v4323_v12 = vmul.f32 1.442695, %v4254_v44  ;;  %v17064_v11 = vld [vmem:[#allocation102_spill] sm:$0xff]  ;;  %v17065_v44 = vld [vmem:[#allocation149_spill] sm:$0xff] }
 0x4e7   : > { %v2959_v63 = vrot.slane %v2958_v46, 4  ;;  %17057 = vst [vmem:[#allocation252_spill] sm:$0xff] %v12956_v25  ;;  %v3149_v31 = vmul.f32 1.442695, %v2993_v41  ;;  %8609 = vmatpush3.bf16.xpose.msk.msra.mxu1 %vm12101_vm5, %v8607_v37  ;;  %v12968_v58 = vpop.eup %9165  ;;  %9175 = vpow2.f32 %v3145_v17  ;;  %v3153_v41 = vmul.f32 1.442695, %v2995_v16 }
 0x4e8   : > { %17063 = vst [vmem:[#allocation117_spill] sm:$0xff] %v12968_v58  ;;  %v12972_v18 = vpop.f32.mrb[8].mxu1  ;;  %v4253_v37 = vsub.f32 %v17065_v44, %v12315_v30 }
 0x4e9   : > { %v2960_v39 = vmax.f32 %v2958_v46, %v2959_v63  ;;  %v12977_v63 = vpop.f32.mrb[9].mxu1  ;;  %9177 = vpow2.f32 %v3149_v31 }
 0x4ea   : > { %4062 = vmax.xlane.f32.xlu0 %v4061_v15  ;;  %v3353_v15 = vadd.f32 %v12931_v60, %v3352_v14  ;;  %v17058_v14 = vld [vmem:[#allocation100_spill] sm:$0xff]  ;;  %v12985_v16 = vpop.f32.mrb[10].mxu1  ;;  %9179 = vpow2.f32 %v4323_v12  ;;  %v4321_v31 = vmul.f32 1.442695, %v4253_v37 }
 0x4eb   : > { %v2997_v51 = vsub.f32 %v17058_v14, %v12776_v8  ;;  %v2999_v14 = vsub.f32 %v17064_v11, %v12776_v8  ;;  %v17067_v11 = vld [vmem:[#allocation154_spill] sm:$0xff]  ;;  %v2961_v44 = vrot.slane %v2960_v39, 2  ;;  %9181 = vpow2.f32 %v3153_v41 }
 0x4ec   : > { %v3354_v2 = vadd.f32 %v12947_v36, %v3353_v15  ;;  %v17060_v15 = vld [vmem:[#allocation55_spill] sm:$0xff]  ;;  %v17061_v36 = vld [vmem:[#allocation54_spill] sm:$0xff]  ;;  %v4255_v30 = vsub.f32 %v17067_v11, %v17036_v38  ;;  %v3005_v11 = vsub.f32 %v12073_v4, %v12776_v8 }
 0x4ed   : > { %v17062_v60 = vpack.c.bf16 %v17060_v15, %v17061_v36  ;;  %v12979_v36 = vpop.eup %9167  ;;  %v3157_v17 = vmul.f32 1.442695, %v2997_v51  ;;  %v17069_v51 = vld [vmem:[#allocation159_spill] sm:$0xff]  ;;  %v2962_v37 = vmax.f32 %v2960_v39, %v2961_v44 }
 0x4ee   : > { %v3355_v35 = vadd.f32 %v12956_v25, %v3354_v2  ;;  %17066 = vst [vmem:[#allocation55_spill] sm:$0xff] %v12979_v36  ;;  %v9797_v2 = vld [vmem:[%s10952_s27 + $0x110] sm:$0xff]  ;;  %v3001_v25 = vsub.f32 %v12061_v53, %v12776_v8  ;;  %v12992_v61 = vpop.eup %9169  ;;  %v17070_v53 = vld [vmem:[#allocation157_spill] sm:$0xff]  ;;  %v4325_v41 = vmul.f32 1.442695, %v4255_v30 }
 0x4ef   : > { %8612 = vmatprep.subr.msk.bf16.mxu1 %vm12101_vm5, %v17062_v60  ;;  %v9798_v60 = vld [vmem:[%s10952_s27 + $0x118] sm:$0xff]  ;;  %17068 = vst [vmem:[#allocation54_spill] sm:$0xff] %v12992_v61  ;;  %v4256_v28 = vsub.f32 %v17070_v53, %v17069_v51  ;;  %v12999_v38 = vpop.eup %9171  ;;  %9183 = vpow2.f32 %v3157_v17  ;;  %v17073_v53 = vld [vmem:[#allocation56_spill] sm:$0xff]  ;;  %v9800_v30 = vld [vmem:[%s10952_s27 + $0x128] sm:$0xff] }
 0x4f0   : > { %v3356_v46 = vadd.f32 %v12968_v58, %v3355_v35  ;;  %v8613_v15 = vpack.c.bf16 %v9798_v60, %v9797_v2  ;;  %v12990_v58 = vpop.f32.mrb[11].mxu1  ;;  %v3003_v2 = vsub.f32 %v12067_v62, %v12776_v8  ;;  %v3161_v60 = vmul.f32 1.442695, %v2999_v14  ;;  %17071 = vst [vmem:[#allocation149_spill] sm:$0xff] %v12999_v38  ;;  %v17072_v62 = vld [vmem:[#allocation57_spill] sm:$0xff] }
 0x4f1   : > { %v13015_v17 = vpop.f32.mrb[12].mxu1  ;;  %v4327_v39 = vmul.f32 1.442695, %v4256_v28 }
 0x4f2   : > { %v3357_v35 = vadd.f32 %v12979_v36, %v3356_v46  ;;  %v3165_v46 = vmul.f32 1.442695, %v3001_v25  ;;  %8615 = vmatpush3.bf16.xpose.msk.msra.mxu1 %vm12101_vm5, %v8613_v15  ;;  %v17074_v36 = vpack.c.bf16 %v17072_v62, %v17073_v53  ;;  %9185 = vpow2.f32 %v3161_v60  ;;  %v9799_v15 = vld [vmem:[%s10952_s27 + $0x120] sm:$0xff]  ;;  %v13020_v44 = vpop.f32.mrb[13].mxu1 }
 0x4f3   : > { %v3169_v25 = vmul.f32 1.442695, %v3003_v2  ;;  %v8619_v21 = vpack.c.bf16 %v9800_v30, %v9799_v15  ;;  %9187 = vpow2.f32 %v4321_v31  ;;  %17077 = vst [vmem:[#allocation159_spill] sm:$0xff] %v13020_v44  ;;  %v3173_v2 = vmul.f32 1.442695, %v3005_v11  ;;  %v13026_v60 = vpop.f32.mrb[14].mxu1 }
 0x4f4   : > { %v3358_v12 = vadd.f32 %v12992_v61, %v3357_v35  ;;  %8618 = vmatprep.subr.msk.bf16.mxu1 %vm12101_vm5, %v17074_v36  ;;  %v13011_v35 = vpop.eup %9173  ;;  %v17076_v61 = vld [vmem:[#allocation110_spill] sm:$0xff]  ;;  %9189 = vpow2.f32 %v3165_v46  ;;  %17079 = vst [vmem:[#allocation57_spill] sm:$0xff] %v13026_v60  ;;  %v4058_v31 = vmax.f32 %v12548_v27, %v12782_v59  ;;  %v13031_v53 = vpop.f32.mrb[15].mxu1  ;;  %v13039_v11 = vld [vmem:[%s10952_s27 + $0x138] sm:$0xff] }
 0x4f5   : > { %17075 = vst [vmem:[#allocation154_spill] sm:$0xff] %v13011_v35  ;;  %v3007_v4 = vsub.f32 %v17076_v61, %v12776_v8  ;;  %v13022_v36 = vpop.eup %9175  ;;  %9191 = vpow2.f32 %v4325_v41  ;;  %17080 = vst [vmem:[#allocation56_spill] sm:$0xff] %v13031_v53  ;;  %v13036_v30 = vld [vmem:[%s10952_s27 + $0x130] sm:$0xff]  ;;  %v17085_v46 = vld [vmem:[#allocation59_spill] sm:$0xff] }
 0x4f6   : > { %v3359_v14 = vadd.f32 %v12999_v38, %v3358_v12  ;;  %17078 = vst [vmem:[#allocation157_spill] sm:$0xff] %v13022_v36  ;;  %v3009_v12 = vsub.f32 %v12085_v19, %v12776_v8  ;;  %v13033_v15 = vpop.eup %9177  ;;  %v17082_v61 = vld [vmem:[#allocation114_spill] sm:$0xff]  ;;  %9193 = vpow2.f32 %v3169_v25  ;;  %v3013_v38 = vsub.f32 %v12097_v5, %v12776_v8  ;;  %v17124_v53 = vld [vmem:[#allocation172_spill] sm:$0xff] }
 0x4f7   : > { %17081 = vst [vmem:[#allocation253_spill] sm:$0xff] %v13033_v15  ;;  %v3011_v41 = vsub.f32 %v17082_v61, %v12776_v8  ;;  %v13045_v19 = vpop.eup %9179  ;;  %9195 = vpow2.f32 %v4327_v39  ;;  %v13070_v61 = vld [vmem:[%s10952_s27 + $0x168] sm:$0xff]  ;;  %v3023_v5 = vsub.f32 %v17092_v45, %v12776_v8  ;;  %v17099_v45 = vld [vmem:[#allocation135_spill] sm:$0xff] }
 0x4f8   : > { %v3360_v62 = vadd.f32 %v13011_v35, %v3359_v14  ;;  %v2963_v14 = vrot.slane %v2962_v37, 1  ;;  %17083 = vst [vmem:[#allocation254_spill] sm:$0xff] %v13045_v19  ;;  %v13051_v35 = vld [vmem:[%s10952_s27 + $0x148] sm:$0xff]  ;;  %v13064_v25 = vpop.eup %9181  ;;  %9197 = vpow2.f32 %v3173_v2  ;;  %v3181_v50 = vmul.f32 1.442695, %v3009_v12 }
 0x4f9   : > { %17084 = vst [vmem:[#allocation255_spill] sm:$0xff] %v13064_v25  ;;  %v13091_v2 = vpop.eup %9183 }
 0x4fa   : > { %v3361_v28 = vadd.f32 %v13022_v36, %v3360_v62  ;;  %v3177_v62 = vmul.f32 1.442695, %v3007_v4  ;;  %v13048_v36 = vld [vmem:[%s10952_s27 + $0x140] sm:$0xff]  ;;  %8621 = vmatpush3.bf16.xpose.msk.msra.mxu1 %vm12101_vm5, %v8619_v21  ;;  %17088 = vst [vmem:[#allocation59_spill] sm:$0xff] %v13091_v2  ;;  %v17089_v21 = vld [vmem:[#allocation119_spill] sm:$0xff] }
 0x4fc   : > { %v3362_v4 = vadd.f32 %v13033_v15, %v3361_v28  ;;  %v13080_v28 = vmax.f32 %v2962_v37, %v2963_v14  ;;  %v17086_v15 = vld [vmem:[#allocation58_spill] sm:$0xff]  ;;  %v3017_v37 = vsub.f32 %v12132_v6, %v12776_v8  ;;  %9199 = vpow2.f32 %v3177_v62  ;;  %v17095_v6 = vld [vmem:[#allocation131_spill] sm:$0xff] }
 0x4fd   : > { %v17087_v59 = vpack.c.bf16 %v17085_v46, %v17086_v15  ;;  %v3185_v14 = vmul.f32 1.442695, %v3011_v41  ;;  %v17090_v15 = vld [vmem:[#allocation123_spill] sm:$0xff]  ;;  %v3027_v62 = vsub.f32 %v17095_v6, %v12776_v8  ;;  %9201 = vpow2.f32 %v3181_v50  ;;  %v17103_v6 = vld [vmem:[#allocation141_spill] sm:$0xff] }
 0x4fe   : > { %4059 = vmax.xlane.f32.xlu1 %v4058_v31  ;;  %v13067_v31 = vld [vmem:[%s10952_s27 + $0x160] sm:$0xff]  ;;  %v3363_v39 = vadd.f32 %v13064_v25, %v3362_v4  ;;  %v3019_v46 = vsub.f32 %v17090_v15, %v12776_v8  ;;  %v13104_v25 = vpop.eup %9185  ;;  %v3189_v41 = vmul.f32 1.442695, %v3013_v38  ;;  %v17102_v50 = vld [vmem:[#allocation139_spill] sm:$0xff]  ;;  %v17109_v38 = vld [vmem:[#allocation193_spill] sm:$0xff]  ;;  %s8145_s27 = sshll.u32 %s17720_s14, 8 }
 0x4ff   : > { %8624 = vmatprep.subr.msk.bf16.mxu1 %vm12101_vm5, %v17087_v59  ;;  %v17091_v59 = vld [vmem:[#allocation125_spill] sm:$0xff]  ;;  %17093 = vst [vmem:[#allocation58_spill] sm:$0xff] %v13104_v25  ;;  %v13111_v15 = vpop.eup %9187  ;;  %9203 = vpow2.f32 %v3185_v14  ;;  %s3844_s28 = sshra.s32 %s8145_s27, 7 }
 0x500   : > { %5685 = vperm.xlu0 %9138, %v13045_v19   ;;  %v3015_v19 = vsub.f32 %v17089_v21, %v12776_v8  ;;  %v3021_v4 = vsub.f32 %v17091_v59, %v12776_v8  ;;  %v3364_v12 = vadd.f32 %v13091_v2, %v3363_v39  ;;  %v17094_v21 = vld [vmem:[#allocation129_spill] sm:$0xff]  ;;  %17097 = vst [vmem:[#allocation256_spill] sm:$0xff] %v13111_v15  ;;  %v13120_v26 = vpop.eup %9189  ;;  %9205 = vpow2.f32 %v3189_v41  ;;  %v17115_v41 = vld [vmem:[#allocation60_spill] sm:$0xff]  ;;  %s8146_s15 = sshll.u32 %s3844_s28, 3 }
 0x501   : > { %v3025_v3 = vsub.f32 %v17094_v21, %v12776_v8  ;;  %v17098_v59 = vld [vmem:[#allocation133_spill] sm:$0xff]  ;;  %17101 = vst [vmem:[#allocation257_spill] sm:$0xff] %v13120_v26  ;;  %v13126_v55 = vpop.eup %9191  ;;  %v17111_v39 = vpack.c.bf16 %v13039_v11, %v13036_v30  ;;  %s3847_s4 = scalar_lea.vmem [#allocation2], %s8146_s15 }
 0x502   : > { %v3029_v22 = vsub.f32 %v17098_v59, %v12776_v8  ;;  %v17100_v2 = vld [vmem:[#allocation137_spill] sm:$0xff]  ;;  %v3365_v21 = vadd.f32 %v13104_v25, %v3364_v12  ;;  %v3193_v40 = vmul.f32 1.442695, %v3015_v19  ;;  %17104 = vst [vmem:[#allocation258_spill] sm:$0xff] %v13126_v55  ;;  %v17105_v59 = vld [vmem:[#allocation143_spill] sm:$0xff]  ;;  %v17107_v12 = vld [vmem:[#allocation184_spill] sm:$0xff]  ;;  %v13135_v7 = vpop.eup %9193 }
 0x503   : > { %17108 = vst [vmem:[#allocation259_spill] sm:$0xff] %v13135_v7  ;;  %v17110_v19 = vld [vmem:[#allocation192_spill] sm:$0xff]  ;;  %v3197_v55 = vmul.f32 1.442695, %v3017_v37  ;;  %8627 = vmatpush3.bf16.xpose.msk.msra.mxu1 %vm12101_vm5, %v17111_v39  ;;  %v13146_v34 = vpop.eup %9195  ;;  %v17114_v14 = vld [vmem:[#allocation61_spill] sm:$0xff] }
 0x504   : > { %4488 = vperm.xlu0 %9138, %v17096_v52   ;;  %v3366_v24 = vadd.f32 %v13120_v26, %v3365_v21  ;;  %17112 = vst [vmem:[#allocation260_spill] sm:$0xff] %v13146_v34  ;;  %v17113_v21 = vld [vmem:[#allocation196_spill] sm:$0xff]  ;;  %v3201_v52 = vmul.f32 1.442695, %v3019_v46  ;;  %v17116_v37 = vpack.c.bf16 %v17114_v14, %v17115_v41  ;;  %v13158_v30 = vpop.eup %9197  ;;  %9207 = vpow2.f32 %v3193_v40  ;;  %v17118_v25 = vld [vmem:[#allocation69_spill] sm:$0xff]  ;;  %v17119_v14 = vld [vmem:[#allocation71_spill] sm:$0xff] }
 0x505   : > { %17117 = vst [vmem:[#allocation61_spill] sm:$0xff] %v13158_v30  ;;  %v3205_v39 = vmul.f32 1.442695, %v3021_v4  ;;  %v2966_v34 = vsub.f32 %v17118_v25, %v13080_v28  ;;  %v2968_v41 = vsub.f32 %v17119_v14, %v13080_v28  ;;  %v17121_v40 = vld [vmem:[#allocation200_spill] sm:$0xff]  ;;  %9209 = vpow2.f32 %v3197_v55 }
 0x506   : > { %v3367_v42 = vadd.f32 %v13135_v7, %v3366_v24  ;;  %8630 = vmatprep.subr.msk.bf16.mxu1 %vm12101_vm5, %v17116_v37  ;;  %v3209_v24 = vmul.f32 1.442695, %v3023_v5  ;;  %v13169_v37 = vpop.eup %9199  ;;  %v3213_v11 = vmul.f32 1.442695, %v3025_v3  ;;  %9211 = vpow2.f32 %v3201_v52  ;;  %v17122_v5 = vld [vmem:[#allocation73_spill] sm:$0xff]  ;;  %v17125_v7 = vld [vmem:[#allocation203_spill] sm:$0xff] }
 0x507   : > { %17120 = vst [vmem:[#allocation60_spill] sm:$0xff] %v13169_v37  ;;  %v3217_v25 = vmul.f32 1.442695, %v3027_v62  ;;  %v13180_v14 = vpop.eup %9201  ;;  %9213 = vpow2.f32 %v3205_v39  ;;  %v3095_v55 = vmul.f32 1.442695, %v2966_v34  ;;  %v4015_v39 = vpop.xlane.xlu0 %4014 }
 0x508   : > { %v3368_v26 = vadd.f32 %v13158_v30, %v3367_v42  ;;  %v2970_v42 = vsub.f32 %v17122_v5, %v13080_v28  ;;  %v13178_v30 = vpop.xlane.xlu1 %4017  ;;  %17123 = vst [vmem:[#allocation261_spill] sm:$0xff] %v13180_v14  ;;  %9215 = vpow2.f32 %v3209_v24  ;;  %v3099_v62 = vmul.f32 1.442695, %v2968_v41  ;;  %v17131_v24 = vld [vmem:[#allocation77_spill] sm:$0xff]  ;;  %v13275_v5 = vld [vmem:[#allocation4 + $0xf0] sm:$0xff] }
 0x509   : > { %v13190_v4 = vpop.eup %9203  ;;  %9217 = vpow2.f32 %v3213_v11  ;;  %v3221_v34 = vmul.f32 1.442695, %v3029_v22  ;;  %v2974_v41 = vsub.f32 %v17131_v24, %v13080_v28  ;;  %v17132_v11 = vld [vmem:[#allocation63_spill] sm:$0xff]  ;;  %v17133_v22 = vld [vmem:[#allocation62_spill] sm:$0xff]  ;;  %17153 = vst [vmem:[#allocation267_spill] sm:$0xff] %v13275_v5 }
 0x50a   : > { %v3369_v46 = vadd.f32 %v13169_v37, %v3368_v26  ;;  %v17126_v26 = vld [vmem:[#allocation75_spill] sm:$0xff]  ;;  %17127 = vst [vmem:[#allocation262_spill] sm:$0xff] %v13190_v4  ;;  %9219 = vpow2.f32 %v3217_v25  ;;  %v17134_v60 = vpack.c.bf16 %v17132_v11, %v17133_v22 }
 0x50b   : > { %v2972_v52 = vsub.f32 %v17126_v26, %v13080_v28  ;;  %v13207_v26 = vld [vmem:[%s10973_s7 + $0x8] sm:$0xff]  ;;  %9221 = vpow2.f32 %v3095_v55  ;;  %v17141_v55 = vsub.f32 %v17100_v2, %v12776_v8  ;;  %v13247_v2 = vld [vmem:[#allocation4 + $0xe8] sm:$0xff] }
 0x50c   : > { %v3370_v3 = vadd.f32 %v13180_v14, %v3369_v46  ;;  %v17130_v46 = vpack.c.bf16 %v13051_v35, %v13048_v36  ;;  %v3103_v14 = vmul.f32 1.442695, %v2970_v42  ;;  %v13204_v44 = vpop.xlane.xlu1 %4023  ;;  %v13214_v35 = vpop.eup %9205  ;;  %v17138_v42 = vsub.f32 %v17099_v45, %v12776_v8  ;;  %8328 = vmatprep.mubr.msk.f32.mxu1 %vm930_vm3, %v13207_v26  ;;  %v13241_v45 = vld [vmem:[#allocation4 + $0xe0] sm:$0xff]  ;;  %17146 = vst [vmem:[#allocation264_spill] sm:$0xff] %v13247_v2 }
 0x50d   : > { %17135 = vst [vmem:[#allocation63_spill] sm:$0xff] %v13214_v35  ;;  %9223 = vpow2.f32 %v3099_v62  ;;  %v3107_v24 = vmul.f32 1.442695, %v2972_v52  ;;  %8329 = vmatmul.mubr.msk.f32.gmra.mrb[18].mxu1 %vm930_vm3, %v13207_v26  ;;  %v17143_v62 = vld [vmem:[#allocation81_spill] sm:$0xff]  ;;  %17144 = vst [vmem:[#allocation263_spill] sm:$0xff] %v13241_v45  ;;  %v13283_v37 = vmax.f32 %v13241_v45, %v4015_v39  ;;  %v13310_v45 = vpack.c.bf16 %v12917_v56, %v12907_v9 }
 0x50e   : > { %8633 = vmatpush3.bf16.xpose.msk.msra.mxu1 %vm12101_vm5, %v17130_v46  ;;  %v13231_v46 = vpop.eup %9207  ;;  %9225 = vpow2.f32 %v3221_v34  ;;  %v2978_v52 = vsub.f32 %v17143_v62, %v13080_v28  ;;  %v17148_v62 = vsub.f32 %v17105_v59, %v12776_v8 }
 0x50f   : > { %4478 = vperm.xlu1 %9139, %v17069_v51   ;;  %v3371_v51 = vadd.f32 %v13190_v4, %v3370_v3  ;;  %8636 = vmatprep.subr.msk.bf16.mxu1 %vm12101_vm5, %v17134_v60  ;;  %v3225_v4 = vmul.f32 1.442695, %v17138_v42  ;;  %v17139_v60 = vld [vmem:[#allocation79_spill] sm:$0xff]  ;;  %17140 = vst [vmem:[#allocation62_spill] sm:$0xff] %v13231_v46  ;;  %v3229_v42 = vmul.f32 1.442695, %v17141_v55  ;;  %9227 = vpow2.f32 %v3103_v14 }
 0x510   : > { %v2976_v22 = vsub.f32 %v17139_v60, %v13080_v28  ;;  %v3111_v3 = vmul.f32 1.442695, %v2974_v41  ;;  %v13249_v55 = vpop.xlane.xlu1 %4029  ;;  %v13259_v36 = vmul.f32 1.442695, %v17148_v62  ;;  %v17150_v14 = vld [vmem:[#allocation83_spill] sm:$0xff]  ;;  %17156 = vst [vmem:[#allocation268_spill] sm:$0xff] %v13283_v37  ;;  %8813 = vmatprep.subr.bf16.mxu0 %v13310_v45 }
 0x511   : > { %v3372_v11 = vadd.f32 %v13214_v35, %v3371_v51  ;;  %v17142_v51 = vsub.f32 %v17102_v50, %v12776_v8  ;;  %v4021_v35 = vpop.xlane.xlu0 %4020  ;;  %v13252_v50 = vld [vmem:[%s10973_s7 + $0x10] sm:$0xff]  ;;  %9229 = vpow2.f32 %v3225_v4  ;;  %v2980_v41 = vsub.f32 %v17150_v14, %v13080_v28  ;;  %17163 = vst [vmem:[#allocation274_spill] sm:$0xff] %v13310_v45  ;;  %6583 = vst.msk [vmem:[#allocation4 + $0xe0] sm:$0xff] %vm5529_vm6, %v13283_v37  ;;  %v13361_v37 = vld [vmem:[%s10973_s7 + $0x20] sm:$0xff] }
 0x512   : > { %8330 = vmatprep.mubr.msk.f32.mxu1 %vm930_vm3, %v13252_v50  ;;  %9231 = vpow2.f32 %v3107_v24  ;;  %v3115_v59 = vmul.f32 1.442695, %v2976_v22  ;;  %v3119_v14 = vmul.f32 1.442695, %v2978_v52  ;;  %v13289_v24 = vld [vmem:[#allocation4 + $0xf8] sm:$0xff]  ;;  %v13291_v22 = vld [vmem:[#allocation4 + $0x100] sm:$0xff]  ;;  %v13330_v56 = vmax.f32 %v13275_v5, %v4021_v35 }
 0x513   : > { %5680 = vperm.xlu1 %9139, %v13111_v15   ;;  %v3233_v25 = vmul.f32 1.442695, %v17142_v51  ;;  %v17145_v15 = vsub.f32 %v17103_v6, %v12776_v8  ;;  %v3373_v34 = vadd.f32 %v13231_v46, %v3372_v11  ;;  %v13254_v51 = vpop.eup %9209  ;;  %v17152_v46 = vld [vmem:[#allocation85_spill] sm:$0xff]  ;;  %8331 = vmatmul.mubr.msk.f32.gmra.mrb[20].mxu1 %vm930_vm3, %v13252_v50  ;;  %9233 = vpow2.f32 %v3229_v42  ;;  %17158 = vst [vmem:[#allocation270_spill] sm:$0xff] %v13289_v24  ;;  %v13299_v42 = vld [vmem:[%s10973_s7 + $0x18] sm:$0xff] }
 0x514   : > { %17147 = vst [vmem:[#allocation265_spill] sm:$0xff] %v13254_v51  ;;  %v13270_v6 = vpop.eup %9211  ;;  %v2982_v62 = vsub.f32 %v17152_v46, %v13080_v28  ;;  %17159 = vst [vmem:[#allocation271_spill] sm:$0xff] %v13291_v22  ;;  %v17160_v46 = vpack.c.bf16 %v13059_v43, %v13056_v49  ;;  %9235 = vpow2.f32 %v3111_v3  ;;  %8332 = vmatprep.mubr.msk.f32.mxu1 %vm930_vm3, %v13299_v42  ;;  %v17164_v49 = vld [vmem:[#allocation65_spill] sm:$0xff]  ;;  %v17165_v43 = vld [vmem:[#allocation64_spill] sm:$0xff] }
 0x515   : > { %v3237_v60 = vmul.f32 1.442695, %v17145_v15  ;;  %v17149_v15 = vsub.f32 %v17106_v32, %v12776_v8  ;;  %17151 = vst [vmem:[#allocation266_spill] sm:$0xff] %v13270_v6  ;;  %v3374_v4 = vadd.f32 %v13254_v51, %v3373_v34  ;;  %v13280_v32 = vpop.eup %9213  ;;  %v13287_v34 = vmax.f32 %v13247_v2, %v13178_v30  ;;  %v4027_v51 = vpop.xlane.xlu0 %4026  ;;  %17169 = vst [vmem:[#allocation64_spill] sm:$0xff] %v13330_v56  ;;  %v17176_v5 = vld [vmem:[#allocation89_spill] sm:$0xff] }
 0x516   : > { %8639 = vmatpush3.bf16.xpose.msk.msra.mxu1 %vm12101_vm5, %v17160_v46  ;;  %v13301_v52 = vpop.eup %9215  ;;  %v13306_v30 = vpack.c.bf16 %v12911_v10, %v12901_v47  ;;  %v13312_v2 = vpop.xlane.xlu1 %4035  ;;  %v17166_v46 = vpack.c.bf16 %v17164_v49, %v17165_v43  ;;  %9237 = vpow2.f32 %v3233_v25  ;;  %v17168_v47 = vld [vmem:[#allocation87_spill] sm:$0xff]  ;;  %v13337_v25 = vmax.f32 %v13289_v24, %v13204_v44  ;;  %6585 = vst.msk [vmem:[#allocation4 + $0xf0] sm:$0xff] %vm5529_vm6, %v13330_v56  ;;  %v17182_v24 = vld [vmem:[#allocation93_spill] sm:$0xff] }
 0x517   : > { %v13264_v11 = vmul.f32 1.442695, %v17149_v15  ;;  %v17154_v15 = vld [vmem:[#allocation162_spill] sm:$0xff]  ;;  %17157 = vst [vmem:[#allocation269_spill] sm:$0xff] %v13287_v34  ;;  %17161 = vst [vmem:[#allocation272_spill] sm:$0xff] %v13301_v52  ;;  %v3375_v39 = vadd.f32 %v13270_v6, %v3374_v4  ;;  %v13321_v3 = vpop.eup %9217  ;;  %v2984_v10 = vsub.f32 %v17168_v47, %v13080_v28  ;;  %9239 = vpow2.f32 %v3115_v59  ;;  %v13343_v43 = vld [vmem:[#allocation4 + $0x108] sm:$0xff]  ;;  %8333 = vmatmul.mubr.msk.f32.gmra.mrb[22].mxu1 %vm930_vm3, %v13299_v42 }
 0x518   : > { %4483 = vperm.xlu1 %9139, %v17154_v15   ;;  %17155 = vst [vmem:[#allocation162_spill] sm:$0xff] %v13280_v32  ;;  %17162 = vst [vmem:[#allocation273_spill] sm:$0xff] %v13306_v30  ;;  %8642 = vmatprep.subr.msk.bf16.mxu1 %vm12101_vm5, %v17166_v46  ;;  %v3123_v4 = vmul.f32 1.442695, %v2980_v41  ;;  %v13332_v9 = vpop.eup %9219  ;;  %v13341_v41 = vmax.f32 %v13291_v22, %v4027_v51  ;;  %9241 = vpow2.f32 %v3237_v60 }
 0x519   : > { %17167 = vst [vmem:[#allocation65_spill] sm:$0xff] %v13321_v3  ;;  %6584 = vst.msk [vmem:[#allocation4 + $0xe8] sm:$0xff] %vm5529_vm6, %v13287_v34  ;;  %v3376_v49 = vadd.f32 %v13280_v32, %v3375_v39  ;;  %v13347_v35 = vpop.eup %9221  ;;  %v17174_v59 = vsub.f32 %v17107_v12, %v12776_v8  ;;  %v17175_v44 = vsub.f32 %v17109_v38, %v12776_v8  ;;  %8815 = vmatpush1.bf16.xpose.msra.mxu0 %v13306_v30  ;;  %v4033_v22 = vpop.xlane.xlu0 %4032  ;;  %v13395_v34 = vld [vmem:[#allocation4 + $0x118] sm:$0xff] }
 0x51a   : > { %17170 = vst [vmem:[#allocation87_spill] sm:$0xff] %v13332_v9  ;;  %17171 = vst [vmem:[#allocation275_spill] sm:$0xff] %v13337_v25  ;;  %v2986_v51 = vsub.f32 %v17176_v5, %v13080_v28  ;;  %v13363_v60 = vpop.eup %9223  ;;  %9243 = vpow2.f32 %v3119_v14  ;;  %v3127_v38 = vmul.f32 1.442695, %v2982_v62  ;;  %v4042_v56 = vpop.xlane.xlu1 %4041  ;;  %8334 = vmatprep.mubr.msk.f32.mxu1 %vm930_vm3, %v13361_v37  ;;  %v13386_v62 = vmax.f32 %v13343_v43, %v13249_v55 }
 0x51b   : > { %17172 = vst [vmem:[#allocation276_spill] sm:$0xff] %v13341_v41  ;;  %17173 = vst [vmem:[#allocation277_spill] sm:$0xff] %v13343_v43  ;;  %v3249_v39 = vmul.f32 1.442695, %v17174_v59  ;;  %v3253_v46 = vmul.f32 1.442695, %v17175_v44  ;;  %v17177_v59 = vsub.f32 %v17110_v19, %v12776_v8  ;;  %v3377_v44 = vadd.f32 %v13301_v52, %v3376_v49  ;;  %v13377_v30 = vpop.eup %9225  ;;  %8335 = vmatmul.mubr.msk.f32.gmra.mrb[24].mxu1 %vm930_vm3, %v13361_v37 }
 0x51c   : > { %6586 = vst.msk [vmem:[#allocation4 + $0xf8] sm:$0xff] %vm5529_vm6, %v13337_v25  ;;  %6587 = vst.msk [vmem:[#allocation4 + $0x100] sm:$0xff] %vm5529_vm6, %v13341_v41  ;;  %9245 = vpow2.f32 %v13259_v36  ;;  %v3418_v14 = vadd.f32 %v13363_v60, %v13347_v35  ;;  %v13388_v49 = vld [vmem:[#allocation4 + $0x110] sm:$0xff]  ;;  %v13390_v41 = vpop.eup %9227  ;;  %v2990_v36 = vsub.f32 %v17182_v24, %v13080_v28  ;;  %v3131_v25 = vmul.f32 1.442695, %v2984_v10  ;;  %v13409_v10 = vld [vmem:[#allocation4 + $0x120] sm:$0xff] }
 0x51d   : > { %v13368_v12 = vmul.f32 1.442695, %v17177_v59  ;;  %17178 = vst [vmem:[#allocation278_spill] sm:$0xff] %v13377_v30  ;;  %v17179_v59 = vld [vmem:[#allocation91_spill] sm:$0xff]  ;;  %17180 = vst [vmem:[#allocation279_spill] sm:$0xff] %v13386_v62  ;;  %v3378_v45 = vadd.f32 %v13321_v3, %v3377_v44  ;;  %9247 = vpow2.f32 %v3123_v4  ;;  %v13399_v52 = vpop.eup %9229  ;;  %v13407_v44 = vpack.c.bf16 %v12937_v54, %v12926_v29  ;;  %v4039_v4 = vpop.xlane.xlu0 %4038 }
 0x51e   : > { %v2988_v19 = vsub.f32 %v17179_v59, %v13080_v28  ;;  %17181 = vst [vmem:[#allocation280_spill] sm:$0xff] %v13388_v49  ;;  %17183 = vst [vmem:[#allocation281_spill] sm:$0xff] %v13395_v34  ;;  %9249 = vpow2.f32 %v13264_v11  ;;  %v3135_v55 = vmul.f32 1.442695, %v2986_v51  ;;  %v3419_v43 = vadd.f32 %v13390_v41, %v3418_v14  ;;  %v13417_v11 = vld [vmem:[%s10973_s7 + $0x28] sm:$0xff]  ;;  %v13419_v51 = vpop.eup %9231 }
 0x51f   : > { %17184 = vst [vmem:[#allocation282_spill] sm:$0xff] %v13399_v52  ;;  %6588 = vst.msk [vmem:[#allocation4 + $0x108] sm:$0xff] %vm5529_vm6, %v13386_v62  ;;  %v17187_v24 = vpack.c.bf16 %v13070_v61, %v13067_v31  ;;  %v3379_v14 = vadd.f32 %v13332_v9, %v3378_v45  ;;  %9251 = vpow2.f32 %v3127_v38  ;;  %v13424_v29 = vpack.c.bf16 %v12942_v1, %v12929_v20  ;;  %v13429_v62 = vld [vmem:[#allocation4 + $0x128] sm:$0xff]  ;;  %v17192_v31 = vld [vmem:[#allocation66_spill] sm:$0xff]  ;;  %v13438_v45 = vpop.eup %9233 }
 0x520   : > { %17185 = vst [vmem:[#allocation283_spill] sm:$0xff] %v13407_v44  ;;  %17186 = vst [vmem:[#allocation284_spill] sm:$0xff] %v13409_v10  ;;  %v13427_v54 = vmax.f32 %v13388_v49, %v4033_v22  ;;  %8336 = vmatprep.mubr.msk.f32.mxu1 %vm930_vm3, %v13417_v11  ;;  %v17191_v61 = vld [vmem:[#allocation67_spill] sm:$0xff]  ;;  %9253 = vpow2.f32 %v3249_v39  ;;  %v3420_v38 = vadd.f32 %v13419_v51, %v3419_v43  ;;  %v13447_v49 = vpop.eup %9235  ;;  %v13456_v43 = vpop.permute.xlu1 %4448 }
 0x521   : > { %8645 = vmatpush3.bf16.xpose.msk.msra.mxu1 %vm12101_vm5, %v17187_v24  ;;  %17188 = vst [vmem:[#allocation285_spill] sm:$0xff] %v13424_v29  ;;  %17190 = vst [vmem:[#allocation287_spill] sm:$0xff] %v13429_v62  ;;  %v17193_v24 = vpack.c.bf16 %v17191_v61, %v17192_v31  ;;  %v17195_v1 = vld [vmem:[#allocation95_spill] sm:$0xff]  ;;  %v13445_v22 = vmax.f32 %v13395_v34, %v13312_v2  ;;  %v3380_v61 = vadd.f32 %v13377_v30, %v3379_v14  ;;  %v13460_v2 = vpop.eup %9237 }
 0x522   : > { %17189 = vst [vmem:[#allocation286_spill] sm:$0xff] %v13427_v54  ;;  %17194 = vst [vmem:[#allocation67_spill] sm:$0xff] %v13438_v45  ;;  %v2992_v20 = vsub.f32 %v17195_v1, %v13080_v28  ;;  %9255 = vpow2.f32 %v3131_v25  ;;  %v3139_v31 = vmul.f32 1.442695, %v2988_v19  ;;  %8817 = vmatprep.subr.bf16.mxu0 %v13424_v29  ;;  %v13454_v39 = vmax.f32 %v13409_v10, %v4039_v4  ;;  %v17224_v1 = vld [vmem:[#allocation57_spill] sm:$0xff] }
 0x523   : > { %8648 = vmatprep.subr.msk.bf16.mxu1 %vm12101_vm5, %v17193_v24  ;;  %17196 = vst [vmem:[#allocation66_spill] sm:$0xff] %v13445_v22  ;;  %6589 = vst.msk [vmem:[#allocation4 + $0x110] sm:$0xff] %vm5529_vm6, %v13427_v54  ;;  %8337 = vmatmul.mubr.msk.f32.gmra.mrb[26].mxu1 %vm930_vm3, %v13417_v11  ;;  %9257 = vpow2.f32 %v3253_v46  ;;  %v17199_v25 = vsub.f32 %v17113_v21, %v12776_v8  ;;  %v3421_v14 = vadd.f32 %v13447_v49, %v3420_v38  ;;  %v13473_v24 = vld [vmem:[%s10973_s7 + $0x30] sm:$0xff]  ;;  %v13478_v46 = vpop.eup %9239  ;;  %v17202_v38 = vld [vmem:[#allocation97_spill] sm:$0xff] }
 0x524   : > { %17197 = vst [vmem:[#allocation288_spill] sm:$0xff] %v13454_v39  ;;  %17198 = vst [vmem:[#allocation289_spill] sm:$0xff] %v13460_v2  ;;  %8819 = vmatpush1.bf16.xpose.msra.mxu0 %v13407_v44  ;;  %v13470_v4 = vmax.f32 %v13429_v62, %v4042_v56  ;;  %v17201_v10 = vmax.f32 %v12582_v33, %v12803_v0  ;;  %v2994_v34 = vsub.f32 %v17202_v38, %v13080_v28  ;;  %v13487_v56 = vpop.eup %9241 }
 0x525   : > { %v3261_v19 = vmul.f32 1.442695, %v17199_v25  ;;  %6590 = vst.msk [vmem:[#allocation4 + $0x118] sm:$0xff] %vm5529_vm6, %v13445_v22  ;;  %v3381_v25 = vadd.f32 %v13399_v52, %v3380_v61  ;;  %9259 = vpow2.f32 %v3135_v55  ;;  %v3143_v21 = vmul.f32 1.442695, %v2990_v36  ;;  %6591 = vst.msk [vmem:[#allocation4 + $0x120] sm:$0xff] %vm5529_vm6, %v13454_v39  ;;  %8338 = vmatprep.mubr.msk.f32.mxu1 %vm930_vm3, %v13473_v24  ;;  %v13498_v55 = vpop.eup %9243  ;;  %v13530_v22 = vpop.permute.xlu1 %4453 }
 0x526   : > { %17200 = vst [vmem:[#allocation290_spill] sm:$0xff] %v13470_v4  ;;  %4068 = vmax.xlane.f32.xlu0 %v17201_v10  ;;  %17203 = vst [vmem:[#allocation291_spill] sm:$0xff] %v13487_v56  ;;  %9261 = vpow2.f32 %v13368_v12  ;;  %v17204_v10 = vsub.f32 %v12548_v27, %v12776_v8  ;;  %v17205_v61 = vld [vmem:[#allocation99_spill] sm:$0xff]  ;;  %v3422_v36 = vadd.f32 %v13478_v46, %v3421_v14  ;;  %v3147_v44 = vmul.f32 1.442695, %v2992_v20  ;;  %v17210_v20 = vld [vmem:[#allocation53_spill] sm:$0xff] }
 0x527   : > { %v2996_v54 = vsub.f32 %v17205_v61, %v13080_v28  ;;  %6592 = vst.msk [vmem:[#allocation4 + $0x128] sm:$0xff] %vm5529_vm6, %v13470_v4  ;;  %v3382_v39 = vadd.f32 %v13438_v45, %v3381_v25  ;;  %9263 = vpow2.f32 %v3139_v31  ;;  %v13503_v12 = vpack.c.bf16 %v12985_v16, %v12972_v18  ;;  %8339 = vmatmul.mubr.msk.f32.gmra.mrb[28].mxu1 %vm930_vm3, %v13473_v24  ;;  %v17211_v25 = vld [vmem:[#allocation52_spill] sm:$0xff]  ;;  %v17242_v52 = vld [vmem:[#allocation113_spill] sm:$0xff] }
 0x528   : > { %v3265_v62 = vmul.f32 1.442695, %v17204_v10  ;;  %v13507_v10 = vpop.eup %9245  ;;  %9265 = vpow2.f32 %v3261_v19  ;;  %v17208_v14 = vsub.f32 %v12568_v23, %v12776_v8  ;;  %v3423_v29 = vadd.f32 %v13498_v55, %v3422_v36  ;;  %v13523_v16 = vld [vmem:[%s10973_s7 + $0x38] sm:$0xff] }
 0x529   : > { %17206 = vst [vmem:[#allocation292_spill] sm:$0xff] %v13503_v12  ;;  %17207 = vst [vmem:[#allocation293_spill] sm:$0xff] %v13507_v10  ;;  %v13515_v31 = vpack.c.bf16 %v12990_v58, %v12977_v63  ;;  %v17212_v18 = vpack.c.bf16 %v17210_v20, %v17211_v25  ;;  %v13525_v4 = vpop.eup %9247  ;;  %v3383_v19 = vadd.f32 %v13460_v2, %v3382_v39  ;;  %9267 = vpow2.f32 %v3143_v21  ;;  %v4048_v61 = vpop.xlane.xlu1 %4047 }
 0x52a   : > { %v3269_v27 = vmul.f32 1.442695, %v17208_v14  ;;  %v17213_v14 = vld [vmem:[#allocation101_spill] sm:$0xff]  ;;  %v3151_v36 = vmul.f32 1.442695, %v2994_v34  ;;  %8340 = vmatprep.mubr.msk.f32.mxu1 %vm930_vm3, %v13523_v16  ;;  %v13534_v58 = vpop.eup %9249  ;;  %9269 = vpow2.f32 %v3265_v62  ;;  %v17216_v20 = vsub.f32 %v12562_v13, %v12776_v8 }
 0x52b   : > { %17209 = vst [vmem:[#allocation294_spill] sm:$0xff] %v13515_v31  ;;  %8651 = vmatpush3.bf16.xpose.msk.msra.mxu1 %vm12101_vm5, %v17212_v18  ;;  %v2998_v23 = vsub.f32 %v17213_v14, %v13080_v28  ;;  %17214 = vst [vmem:[#allocation53_spill] sm:$0xff] %v13534_v58  ;;  %v3424_v25 = vadd.f32 %v13525_v4, %v3423_v29  ;;  %8821 = vmatprep.subr.bf16.mxu0 %v13515_v31  ;;  %v13543_v21 = vpop.eup %9251  ;;  %v17217_v18 = vld [vmem:[#allocation103_spill] sm:$0xff]  ;;  %9271 = vpow2.f32 %v3147_v44 }
 0x52c   : > { %v3273_v39 = vmul.f32 1.442695, %v17216_v20  ;;  %v3384_v34 = vadd.f32 %v13487_v56, %v3383_v19  ;;  %v3000_v14 = vsub.f32 %v17217_v18, %v13080_v28  ;;  %v3155_v38 = vmul.f32 1.442695, %v2996_v54  ;;  %8341 = vmatmul.mubr.msk.f32.gmra.mrb[30].mxu1 %vm930_vm3, %v13523_v16  ;;  %v13550_v62 = vpop.eup %9253  ;;  %8823 = vmatpush1.bf16.xpose.msra.mxu0 %v13503_v12  ;;  %v13572_v12 = vpop.permute.xlu0 %4443 }
 0x52d   : > { %17218 = vst [vmem:[#allocation52_spill] sm:$0xff] %v13550_v62  ;;  %9273 = vpow2.f32 %v3269_v27  ;;  %v17219_v29 = vsub.f32 %v12582_v33, %v12776_v8  ;;  %v17220_v63 = vsub.f32 %v17121_v40, %v12776_v8  ;;  %v3425_v19 = vadd.f32 %v13543_v21, %v3424_v25  ;;  %8374 = vmatprep.mubr.msk.f32.mxu1 %vm930_vm3, %v12945_v48  ;;  %v13562_v44 = vpop.eup %9255  ;;  %v17221_v27 = vld [vmem:[#allocation105_spill] sm:$0xff]  ;;  %v13720_v59 = vpop.permute.xlu1 %4458 }
 0x52e   : > { %v3385_v54 = vadd.f32 %v13507_v10, %v3384_v34  ;;  %v3002_v18 = vsub.f32 %v17221_v27, %v13080_v28  ;;  %9275 = vpow2.f32 %v3151_v36  ;;  %v13567_v33 = vld [vmem:[#allocation4 + $0x138] sm:$0xff]  ;;  %v13576_v56 = vpack.c.bf16 %v17224_v1, %v13015_v17  ;;  %v17226_v34 = vld [vmem:[#allocation159_spill] sm:$0xff]  ;;  %v17227_v10 = vld [vmem:[#allocation56_spill] sm:$0xff] }
 0x52f   : > { %v3277_v20 = vmul.f32 1.442695, %v17219_v29  ;;  %v3281_v31 = vmul.f32 1.442695, %v17220_v63  ;;  %v3159_v29 = vmul.f32 1.442695, %v2998_v23  ;;  %v13569_v63 = vpop.eup %9257  ;;  %9277 = vpow2.f32 %v3273_v39 }
 0x530   : > { %17222 = vst [vmem:[#allocation295_spill] sm:$0xff] %v13567_v33  ;;  %17223 = vst [vmem:[#allocation296_spill] sm:$0xff] %v13569_v63  ;;  %v3426_v25 = vadd.f32 %v13562_v44, %v3425_v19  ;;  %v13580_v2 = vpack.c.bf16 %v17227_v10, %v17226_v34  ;;  %v13582_v36 = vpop.eup %9259  ;;  %v3386_v23 = vadd.f32 %v13534_v58, %v3385_v54  ;;  %v17229_v27 = vld [vmem:[#allocation107_spill] sm:$0xff]  ;;  %9279 = vpow2.f32 %v3155_v38 }
 0x531   : > { %17225 = vst [vmem:[#allocation57_spill] sm:$0xff] %v13576_v56  ;;  %v3004_v45 = vsub.f32 %v17229_v27, %v13080_v28  ;;  %v3163_v39 = vmul.f32 1.442695, %v3000_v14  ;;  %v13589_v19 = vpop.eup %9261  ;;  %9281 = vpow2.f32 %v3277_v20  ;;  %v17231_v17 = vsub.f32 %v17124_v53, %v12776_v8  ;;  %v17233_v14 = vld [vmem:[#allocation109_spill] sm:$0xff] }
 0x532   : > { %17228 = vst [vmem:[#allocation159_spill] sm:$0xff] %v13580_v2  ;;  %8375 = vmatmul.mubr.msk.f32.vlgmr.msra.gmra.mrb[32].mxu1 %vm930_vm3, %v12945_v48  ;;  %17230 = vst [vmem:[#allocation56_spill] sm:$0xff] %v13589_v19  ;;  %v3427_v10 = vadd.f32 %v13582_v36, %v3426_v25  ;;  %8825 = vmatprep.subr.bf16.mxu0 %v13580_v2  ;;  %v13597_v54 = vmax.f32 %v13567_v33, %v4048_v61  ;;  %v13601_v38 = vpop.eup %9263  ;;  %9283 = vpow2.f32 %v3159_v29  ;;  %v17235_v25 = vld [vmem:[#allocation210_spill] sm:$0xff] }
 0x533   : > { %v3285_v1 = vmul.f32 1.442695, %v17231_v17  ;;  %8376 = vmatprep.mubr.msk.f32.mxu1 %vm930_vm3, %v13207_v26  ;;  %v3387_v48 = vadd.f32 %v13550_v62, %v3386_v23  ;;  %v3006_v20 = vsub.f32 %v17233_v14, %v13080_v28  ;;  %v3167_v34 = vmul.f32 1.442695, %v3002_v18  ;;  %v13606_v17 = vpop.eup %9265  ;;  %v13616_v23 = vld [vmem:[#allocation4 + $0x130] sm:$0xff]  ;;  %v4045_v14 = vpop.xlane.xlu0 %4044  ;;  %v17238_v62 = vld [vmem:[#allocation111_spill] sm:$0xff] }
 0x534   : > { %17232 = vst [vmem:[#allocation297_spill] sm:$0xff] %v13597_v54  ;;  %17234 = vst [vmem:[#allocation298_spill] sm:$0xff] %v13606_v17  ;;  %9285 = vpow2.f32 %v3281_v31  ;;  %v17236_v61 = vsub.f32 %v17125_v7, %v12776_v8  ;;  %v3428_v27 = vadd.f32 %v13601_v38, %v3427_v10  ;;  %v13618_v29 = vpop.eup %9267  ;;  %v3008_v2 = vsub.f32 %v17238_v62, %v13080_v28  ;;  %v17240_v10 = vld [vmem:[#allocation206_spill] sm:$0xff]  ;;  %v17245_v62 = vld [vmem:[#allocation215_spill] sm:$0xff] }
 0x535   : > { %6594 = vst.msk [vmem:[#allocation4 + $0x138] sm:$0xff] %vm5529_vm6, %v13597_v54  ;;  %17237 = vst [vmem:[#allocation299_spill] sm:$0xff] %v13616_v23  ;;  %v3388_v18 = vadd.f32 %v13569_v63, %v3387_v48  ;;  %9287 = vpow2.f32 %v3163_v39  ;;  %v3171_v31 = vmul.f32 1.442695, %v3004_v45  ;;  %v17241_v54 = vsub.f32 %v17240_v10, %v12776_v8  ;;  %8827 = vmatpush1.bf16.xpose.msra.mxu0 %v13576_v56 }
 0x536   : > { %v3289_v33 = vmul.f32 1.442695, %v17236_v61  ;;  %8377 = vmatmul.mubr.msk.f32.gmra.mrb[34].mxu1 %vm930_vm3, %v13207_v26  ;;  %v13625_v61 = vpop.eup %9269  ;;  %9289 = vpow2.f32 %v3285_v1  ;;  %v3010_v30 = vsub.f32 %v17242_v52, %v13080_v28  ;;  %v3429_v48 = vadd.f32 %v13618_v29, %v3428_v27  ;;  %v17246_v27 = vld [vmem:[#allocation204_spill] sm:$0xff]  ;;  %v17251_v52 = vld [vmem:[#allocation209_spill] sm:$0xff] }
 0x537   : > { %17239 = vst [vmem:[#allocation300_spill] sm:$0xff] %v13625_v61  ;;  %v3293_v58 = vmul.f32 1.442695, %v17241_v54  ;;  %8378 = vmatprep.mubr.msk.f32.mxu1 %vm930_vm3, %v13252_v50  ;;  %v13636_v45 = vpop.eup %9271  ;;  %v3389_v26 = vadd.f32 %v13589_v19, %v3388_v18  ;;  %9291 = vpow2.f32 %v3167_v34  ;;  %v3175_v39 = vmul.f32 1.442695, %v3006_v20  ;;  %v17248_v20 = vld [vmem:[#allocation115_spill] sm:$0xff] }
 0x538   : > { %v13640_v1 = vmax.f32 %v13616_v23, %v4045_v14  ;;  %v13642_v54 = vpop.eup %9273  ;;  %9293 = vpow2.f32 %v3289_v33  ;;  %v17247_v56 = vsub.f32 %v17246_v27, %v12776_v8  ;;  %v3430_v9 = vadd.f32 %v13636_v45, %v3429_v48  ;;  %v13682_v27 = vpop.permute.xlu0 %5660 }
 0x539   : > { %17244 = vst [vmem:[#allocation302_spill] sm:$0xff] %v13642_v54  ;;  %v13650_v3 = vpop.eup %9275  ;;  %v3390_v34 = vadd.f32 %v13606_v17, %v3389_v26  ;;  %v3012_v14 = vsub.f32 %v17248_v20, %v13080_v28  ;;  %9295 = vpow2.f32 %v3171_v31  ;;  %v3179_v18 = vmul.f32 1.442695, %v3008_v2  ;;  %v17253_v31 = vld [vmem:[#allocation118_spill] sm:$0xff]  ;;  %17258 = vst [vmem:[#allocation305_spill] sm:$0xff] %v13682_v27 }
 0x53a   : > { %17243 = vst [vmem:[#allocation301_spill] sm:$0xff] %v13640_v1  ;;  %v3297_v63 = vmul.f32 1.442695, %v17247_v56  ;;  %8379 = vmatmul.mubr.msk.f32.gmra.mrb[36].mxu1 %vm930_vm3, %v13252_v50  ;;  %6593 = vst.msk [vmem:[#allocation4 + $0x130] sm:$0xff] %vm5529_vm6, %v13640_v1  ;;  %v13659_v33 = vpop.eup %9277  ;;  %v17250_v56 = vld [vmem:[#allocation214_spill] sm:$0xff]  ;;  %9297 = vpow2.f32 %v3293_v58  ;;  %v17252_v26 = vsub.f32 %v17251_v52, %v12776_v8  ;;  %v3431_v20 = vadd.f32 %v13650_v3, %v3430_v9 }
 0x53b   : > { %17249 = vst [vmem:[#allocation303_spill] sm:$0xff] %v13659_v33  ;;  %8380 = vmatprep.mubr.msk.f32.mxu1 %vm930_vm3, %v13299_v42  ;;  %v13669_v2 = vpop.eup %9279  ;;  %v3391_v50 = vadd.f32 %v13625_v61, %v3390_v34  ;;  %v3014_v1 = vsub.f32 %v17253_v31, %v13080_v28  ;;  %9299 = vpow2.f32 %v3175_v39  ;;  %v3183_v17 = vmul.f32 1.442695, %v3010_v30  ;;  %v17255_v58 = vld [vmem:[#allocation218_spill] sm:$0xff]  ;;  %v17259_v34 = vld [vmem:[#allocation260_spill] sm:$0xff] }
 0x53c   : > { %v3301_v23 = vmul.f32 1.442695, %v17252_v26  ;;  %v13674_v48 = vpop.eup %9281  ;;  %9301 = vpow2.f32 %v3297_v63  ;;  %v17256_v26 = vld [vmem:[#allocation208_spill] sm:$0xff]  ;;  %v3432_v6 = vadd.f32 %v13669_v2, %v3431_v20  ;;  %5695 = vperm.xlu0 %9138, %v17259_v34   ;;  %v3187_v19 = vmul.f32 1.442695, %v3012_v14 }
 0x53d   : > { %17254 = vst [vmem:[#allocation304_spill] sm:$0xff] %v13674_v48  ;;  %v17257_v9 = vsub.f32 %v17256_v26, %v12776_v8  ;;  %v13685_v61 = vpop.eup %9283  ;;  %v3392_v30 = vadd.f32 %v13642_v54, %v3391_v50  ;;  %v17261_v39 = vld [vmem:[#allocation120_spill] sm:$0xff]  ;;  %9303 = vpow2.f32 %v3179_v18  ;;  %v17266_v50 = vsub.f32 %v17215_v57, %v12776_v8 }
 0x53e   : > { %17260 = vst [vmem:[#allocation306_spill] sm:$0xff] %v13685_v61  ;;  %v3016_v31 = vsub.f32 %v17261_v39, %v13080_v28  ;;  %8381 = vmatmul.mubr.msk.f32.gmra.mrb[38].mxu1 %vm930_vm3, %v13299_v42  ;;  %v17262_v63 = vld [vmem:[#allocation156_spill] sm:$0xff]  ;;  %v13695_v20 = vpop.eup %9285  ;;  %9305 = vpow2.f32 %v3301_v23  ;;  %v3433_v18 = vadd.f32 %v13685_v61, %v3432_v6  ;;  %v13705_v42 = vld [vmem:[#allocation4 + $0x140] sm:$0xff]  ;;  %v3191_v23 = vmul.f32 1.442695, %v3014_v1 }
 0x53f   : > { %v3305_v32 = vmul.f32 1.442695, %v17257_v9  ;;  %v17263_v9 = vmax.f32 %v12562_v13, %v17262_v63  ;;  %17264 = vst [vmem:[#allocation307_spill] sm:$0xff] %v13695_v20  ;;  %v17265_v34 = vld [vmem:[#allocation216_spill] sm:$0xff]  ;;  %v3309_v26 = vmul.f32 1.442695, %v17266_v50  ;;  %8382 = vmatprep.mubr.msk.f32.mxu1 %vm930_vm3, %v13361_v37  ;;  %v13707_v14 = vpop.eup %9287  ;;  %9307 = vpow2.f32 %v3183_v17 }
 0x540   : > { %17267 = vst [vmem:[#allocation308_spill] sm:$0xff] %v13705_v42  ;;  %17268 = vst [vmem:[#allocation309_spill] sm:$0xff] %v13707_v14  ;;  %v17269_v13 = vld [vmem:[#allocation122_spill] sm:$0xff]  ;;  %v13712_v27 = vpop.eup %9289  ;;  %v17271_v6 = vsub.f32 %v17235_v25, %v12776_v8  ;;  %v17272_v54 = vld [vmem:[#allocation124_spill] sm:$0xff]  ;;  %v3434_v5 = vadd.f32 %v13707_v14, %v3433_v18  ;;  %v17278_v25 = vsub.f32 %v17245_v62, %v12776_v8 }
 0x541   : > { %4065 = vmax.xlane.f32.xlu1 %v17263_v9  ;;  %v3393_v9 = vadd.f32 %v13659_v33, %v3392_v30  ;;  %v3018_v39 = vsub.f32 %v17269_v13, %v13080_v28  ;;  %17270 = vst [vmem:[#allocation310_spill] sm:$0xff] %v13712_v27  ;;  %9309 = vpow2.f32 %v3305_v32  ;;  %v3020_v57 = vsub.f32 %v17272_v54, %v13080_v28  ;;  %v17273_v30 = vld [vmem:[#allocation173_spill] sm:$0xff]  ;;  %v4051_v33 = vpop.xlane.xlu0 %4050  ;;  %v13723_v13 = vpop.eup %9291  ;;  %v17284_v62 = vld [vmem:[#allocation128_spill] sm:$0xff] }
 0x542   : > { %v3313_v50 = vmul.f32 1.442695, %v17271_v6  ;;  %4498 = vperm.xlu0 %9138, %v17273_v30   ;;  %17274 = vst [vmem:[#allocation173_spill] sm:$0xff] %v13723_v13  ;;  %9311 = vpow2.f32 %v3187_v19  ;;  %v3195_v32 = vmul.f32 1.442695, %v3016_v31  ;;  %8383 = vmatmul.mubr.msk.f32.gmra.mrb[40].mxu1 %vm930_vm3, %v13361_v37  ;;  %v13729_v1 = vmax.f32 %v13705_v42, %v4051_v33  ;;  %v13731_v6 = vpop.eup %9293  ;;  %v17277_v18 = vld [vmem:[#allocation221_spill] sm:$0xff] }
 0x543   : > { %v3394_v17 = vadd.f32 %v13674_v48, %v3393_v9  ;;  %17276 = vst [vmem:[#allocation312_spill] sm:$0xff] %v13731_v6  ;;  %v3085_v54 = vsub.f32 %v17277_v18, %v12776_v8  ;;  %9313 = vpow2.f32 %v3309_v26  ;;  %v3317_v14 = vmul.f32 1.442695, %v17278_v25  ;;  %8384 = vmatprep.mubr.msk.f32.mxu1 %vm930_vm3, %v13417_v11  ;;  %v13741_v19 = vld [vmem:[#allocation4 + $0x150] sm:$0xff]  ;;  %v13743_v37 = vpop.eup %9295  ;;  %v17281_v31 = vld [vmem:[#allocation126_spill] sm:$0xff] }
 0x544   : > { %17275 = vst [vmem:[#allocation311_spill] sm:$0xff] %v13729_v1  ;;  %v3435_v9 = vadd.f32 %v13723_v13, %v3434_v5  ;;  %17279 = vst [vmem:[#allocation313_spill] sm:$0xff] %v13741_v19  ;;  %v3022_v42 = vsub.f32 %v17281_v31, %v13080_v28  ;;  %9315 = vpow2.f32 %v3191_v23  ;;  %v3199_v26 = vmul.f32 1.442695, %v3018_v39  ;;  %v13750_v25 = vpop.eup %9297 }
 0x545   : > { %17280 = vst [vmem:[#allocation314_spill] sm:$0xff] %v13743_v37  ;;  %v3395_v33 = vadd.f32 %v13695_v20, %v3394_v17  ;;  %6595 = vst.msk [vmem:[#allocation4 + $0x140] sm:$0xff] %vm5529_vm6, %v13729_v1  ;;  %9317 = vpow2.f32 %v3313_v50  ;;  %v17283_v5 = vsub.f32 %v17250_v56, %v12776_v8  ;;  %v3024_v48 = vsub.f32 %v17284_v62, %v13080_v28  ;;  %v4057_v20 = vpop.xlane.xlu0 %4056  ;;  %v13758_v13 = vpop.eup %9299 }
 0x546   : > { %17282 = vst [vmem:[#allocation315_spill] sm:$0xff] %v13750_v25  ;;  %v3436_v17 = vadd.f32 %v13743_v37, %v3435_v9  ;;  %17285 = vst [vmem:[#allocation316_spill] sm:$0xff] %v13758_v13  ;;  %9319 = vpow2.f32 %v3195_v32  ;;  %v3203_v23 = vmul.f32 1.442695, %v3020_v57  ;;  %8385 = vmatmul.mubr.msk.f32.gmra.mrb[42].mxu1 %vm930_vm3, %v13417_v11  ;;  %v13764_v50 = vmax.f32 %v13741_v19, %v4057_v20  ;;  %v13766_v1 = vpop.eup %9301  ;;  %v13774_v32 = vpop.permute.xlu1 %4463  ;;  %v17291_v20 = vld [vmem:[#allocation130_spill] sm:$0xff] }
 0x547   : > { %v3321_v18 = vmul.f32 1.442695, %v17283_v5  ;;  %v3396_v39 = vadd.f32 %v13712_v27, %v3395_v33  ;;  %17287 = vst [vmem:[#allocation318_spill] sm:$0xff] %v13766_v1  ;;  %v17288_v5 = vld [vmem:[#allocation220_spill] sm:$0xff]  ;;  %9321 = vpow2.f32 %v3317_v14  ;;  %v17289_v9 = vsub.f32 %v17255_v58, %v12776_v8  ;;  %8386 = vmatprep.mubr.msk.f32.mxu1 %vm930_vm3, %v13473_v24  ;;  %v13778_v11 = vpop.eup %9303 }
 0x548   : > { %17286 = vst [vmem:[#allocation317_spill] sm:$0xff] %v13764_v50  ;;  %v3087_v31 = vsub.f32 %v17288_v5, %v12776_v8  ;;  %v3437_v33 = vadd.f32 %v13758_v13, %v3436_v17  ;;  %17290 = vst [vmem:[#allocation319_spill] sm:$0xff] %v13778_v11  ;;  %v3026_v19 = vsub.f32 %v17291_v20, %v13080_v28  ;;  %9323 = vpow2.f32 %v3199_v26  ;;  %v17293_v17 = vld [vmem:[#allocation223_spill] sm:$0xff] }
 0x549   : > { %v3325_v62 = vmul.f32 1.442695, %v17289_v9  ;;  %v3397_v57 = vadd.f32 %v13731_v6, %v3396_v39  ;;  %v3207_v14 = vmul.f32 1.442695, %v3022_v42  ;;  %6597 = vst.msk [vmem:[#allocation4 + $0x150] sm:$0xff] %vm5529_vm6, %v13764_v50  ;;  %v13785_v9 = vpop.eup %9305  ;;  %v3089_v5 = vsub.f32 %v17293_v17, %v12776_v8  ;;  %v17296_v42 = vld [vmem:[#allocation132_spill] sm:$0xff] }
 0x54a   : > { %17292 = vst [vmem:[#allocation320_spill] sm:$0xff] %v13785_v9  ;;  %9325 = vpow2.f32 %v3321_v18  ;;  %v17294_v56 = vsub.f32 %v17265_v34, %v12776_v8  ;;  %v3438_v39 = vadd.f32 %v13778_v11, %v3437_v33  ;;  %v13793_v6 = vpop.eup %9307  ;;  %v3028_v20 = vsub.f32 %v17296_v42, %v13080_v28  ;;  %8387 = vmatmul.mubr.msk.f32.gmra.mrb[44].mxu1 %vm930_vm3, %v13473_v24  ;;  %v17298_v18 = vld [vmem:[#allocation225_spill] sm:$0xff] }
 0x54b   : > { %17295 = vst [vmem:[#allocation321_spill] sm:$0xff] %v13793_v6  ;;  %v3398_v26 = vadd.f32 %v13750_v25, %v3397_v57  ;;  %9327 = vpow2.f32 %v3203_v23  ;;  %v3211_v50 = vmul.f32 1.442695, %v3024_v48  ;;  %v13800_v17 = vpop.eup %9309  ;;  %v3091_v34 = vsub.f32 %v17298_v18, %v12776_v8  ;;  %8388 = vmatprep.mubr.msk.f32.mxu1 %vm930_vm3, %v13523_v16  ;;  %v17300_v48 = vld [vmem:[#allocation134_spill] sm:$0xff] }
 0x54c   : > { %v3329_v58 = vmul.f32 1.442695, %v17294_v56  ;;  %17297 = vst [vmem:[#allocation322_spill] sm:$0xff] %v13800_v17  ;;  %9329 = vpow2.f32 %v3325_v62  ;;  %v3333_v56 = vmul.f32 1.442695, %v3085_v54  ;;  %v3439_v33 = vadd.f32 %v13793_v6, %v3438_v39  ;;  %v13807_v57 = vpop.eup %9311  ;;  %v13815_v39 = vpop.permute.xlu1 %5665 }
 0x54d   : > { %17299 = vst [vmem:[#allocation323_spill] sm:$0xff] %v13807_v57  ;;  %v3399_v23 = vadd.f32 %v13766_v1, %v3398_v26  ;;  %v3030_v42 = vsub.f32 %v17300_v48, %v13080_v28  ;;  %9331 = vpow2.f32 %v3207_v14  ;;  %v3215_v24 = vmul.f32 1.442695, %v3026_v19  ;;  %v13812_v25 = vpop.eup %9313  ;;  %17302 = vst [vmem:[#allocation325_spill] sm:$0xff] %v13815_v39  ;;  %v17304_v26 = vld [vmem:[#allocation136_spill] sm:$0xff] }
 0x54e   : > { %17301 = vst [vmem:[#allocation324_spill] sm:$0xff] %v13812_v25  ;;  %9333 = vpow2.f32 %v3329_v58  ;;  %v3337_v8 = vmul.f32 1.442695, %v3087_v31  ;;  %v3341_v62 = vmul.f32 1.442695, %v3089_v5  ;;  %v3440_v54 = vadd.f32 %v13807_v57, %v3439_v33  ;;  %v13817_v18 = vpop.eup %9315  ;;  %8389 = vmatmul.mubr.msk.f32.gmra.mrb[46].mxu1 %vm930_vm3, %v13523_v16  ;;  %v17306_v31 = vld [vmem:[#allocation138_spill] sm:$0xff] }
 0x54f   : > { %17303 = vst [vmem:[#allocation326_spill] sm:$0xff] %v13817_v18  ;;  %v3400_v27 = vadd.f32 %v13785_v9, %v3399_v23  ;;  %v3032_v1 = vsub.f32 %v17304_v26, %v13080_v28  ;;  %9335 = vpow2.f32 %v3211_v50  ;;  %v3219_v48 = vmul.f32 1.442695, %v3028_v20  ;;  %v13824_v19 = vpop.eup %9317  ;;  %v17307_v33 = vld [vmem:[#allocation258_spill] sm:$0xff]  ;;  %v13830_v23 = vld [vmem:[#allocation4 + $0x148] sm:$0xff]  ;;  %v17310_v20 = vld [vmem:[#allocation140_spill] sm:$0xff] }
 0x550   : > { %17305 = vst [vmem:[#allocation327_spill] sm:$0xff] %v13824_v19  ;;  %9337 = vpow2.f32 %v3333_v56  ;;  %v3345_v58 = vmul.f32 1.442695, %v3091_v34  ;;  %v3034_v5 = vsub.f32 %v17306_v31, %v13080_v28  ;;  %v3441_v14 = vadd.f32 %v13817_v18, %v3440_v54  ;;  %17308 = vst [vmem:[#allocation328_spill] sm:$0xff] %v13830_v23  ;;  %v13832_v39 = vpop.eup %9319  ;;  %v17312_v34 = vld [vmem:[#allocation142_spill] sm:$0xff]  ;;  %v17313_v54 = vld [vmem:[#allocation144_spill] sm:$0xff]  ;;  %v4054_v18 = vpop.xlane.xlu1 %4053 }
 0x551   : > { %17309 = vst [vmem:[#allocation329_spill] sm:$0xff] %v13832_v39  ;;  %v3401_v50 = vadd.f32 %v13800_v17, %v3400_v27  ;;  %v3036_v16 = vsub.f32 %v17310_v20, %v13080_v28  ;;  %9339 = vpow2.f32 %v3215_v24  ;;  %v3223_v26 = vmul.f32 1.442695, %v3030_v42  ;;  %v13837_v56 = vpop.eup %9321 }
 0x552   : > { %5690 = vperm.xlu1 %9139, %v17307_v33   ;;  %17311 = vst [vmem:[#allocation330_spill] sm:$0xff] %v13837_v56  ;;  %9341 = vpow2.f32 %v3337_v8  ;;  %v3038_v31 = vsub.f32 %v17312_v34, %v13080_v28  ;;  %v3040_v33 = vsub.f32 %v17313_v54, %v13080_v28  ;;  %v3442_v9 = vadd.f32 %v13832_v39, %v3441_v14  ;;  %v13844_v57 = vpop.eup %9323  ;;  %v17317_v8 = vld [vmem:[#allocation179_spill] sm:$0xff]  ;;  %v17318_v14 = vld [vmem:[#allocation169_spill] sm:$0xff] }
 0x553   : > { %17314 = vst [vmem:[#allocation331_spill] sm:$0xff] %v13844_v57  ;;  %v3402_v27 = vadd.f32 %v13812_v25, %v3401_v50  ;;  %9343 = vpow2.f32 %v3219_v48  ;;  %v3227_v20 = vmul.f32 1.442695, %v3032_v1  ;;  %v13848_v42 = vmax.f32 %v13830_v23, %v4054_v18  ;;  %v17320_v1 = vld [vmem:[#allocation185_spill] sm:$0xff] }
 0x554   : > { %v13850_v24 = vpop.eup %9325  ;;  %9345 = vpow2.f32 %v3341_v62  ;;  %v3042_v34 = vsub.f32 %v17317_v8, %v13080_v28  ;;  %v3231_v17 = vmul.f32 1.442695, %v3034_v5  ;;  %v3443_v54 = vadd.f32 %v13844_v57, %v3442_v9  ;;  %v17321_v5 = vld [vmem:[#allocation148_spill] sm:$0xff] }
 0x555   : > { %17315 = vst [vmem:[#allocation332_spill] sm:$0xff] %v13848_v42  ;;  %17316 = vst [vmem:[#allocation333_spill] sm:$0xff] %v13850_v24  ;;  %v13856_v39 = vpop.eup %9327  ;;  %v3403_v50 = vadd.f32 %v13824_v19, %v3402_v27  ;;  %v3044_v48 = vsub.f32 %v17320_v1, %v13080_v28  ;;  %9347 = vpow2.f32 %v3223_v26  ;;  %v3235_v18 = vmul.f32 1.442695, %v3036_v16  ;;  %v17323_v27 = vld [vmem:[#allocation150_spill] sm:$0xff]  ;;  %v17324_v26 = vld [vmem:[#allocation153_spill] sm:$0xff] }
 0x556   : > { %4493 = vperm.xlu1 %9139, %v17318_v14   ;;  %17319 = vst [vmem:[#allocation169_spill] sm:$0xff] %v13856_v39  ;;  %6596 = vst.msk [vmem:[#allocation4 + $0x148] sm:$0xff] %vm5529_vm6, %v13848_v42  ;;  %v13863_v62 = vpop.eup %9329  ;;  %9349 = vpow2.f32 %v3345_v58  ;;  %v3046_v9 = vsub.f32 %v17321_v5, %v13080_v28  ;;  %v3239_v23 = vmul.f32 1.442695, %v3038_v31  ;;  %v3444_v8 = vadd.f32 %v13856_v39, %v3443_v54  ;;  %v17326_v39 = vld [vmem:[#allocation68_spill] sm:$0xff] }
 0x557   : > { %v13868_v25 = vpop.eup %9331  ;;  %v3048_v19 = vsub.f32 %v17323_v27, %v13080_v28  ;;  %v3050_v16 = vsub.f32 %v17324_v26, %v13080_v28  ;;  %9351 = vpow2.f32 %v3227_v20  ;;  %v3243_v1 = vmul.f32 1.442695, %v3040_v33  ;;  %v17327_v26 = vld [vmem:[#allocation69_spill] sm:$0xff] }
 0x558   : > { %17322 = vst [vmem:[#allocation334_spill] sm:$0xff] %v13868_v25  ;;  %v13874_v42 = vpop.eup %9333  ;;  %v3404_v58 = vadd.f32 %v13837_v56, %v3403_v50  ;;  %9353 = vpow2.f32 %v3231_v17  ;;  %v3247_v57 = vmul.f32 1.442695, %v3042_v34  ;;  %v3445_v31 = vadd.f32 %v13868_v25, %v3444_v8  ;;  %v17329_v8 = vld [vmem:[#allocation70_spill] sm:$0xff] }
 0x559   : > { %v13878_v5 = vpop.eup %9335  ;;  %9355 = vpow2.f32 %v3235_v18  ;;  %v3251_v54 = vmul.f32 1.442695, %v3044_v48  ;;  %v4761_v27 = vsub.f32 %v17326_v39, %v13572_v12  ;;  %v3255_v20 = vmul.f32 1.442695, %v3046_v9  ;;  %v17330_v48 = vld [vmem:[#allocation71_spill] sm:$0xff] }
 0x55a   : > { %17325 = vst [vmem:[#allocation335_spill] sm:$0xff] %v13878_v5  ;;  %v13882_v6 = vpop.eup %9337  ;;  %9357 = vpow2.f32 %v3239_v23  ;;  %v3446_v33 = vadd.f32 %v13878_v5, %v3445_v31  ;;  %v4762_v50 = vsub.f32 %v17327_v26, %v13572_v12  ;;  %v3259_v34 = vmul.f32 1.442695, %v3048_v19  ;;  %v17332_v19 = vld [vmem:[#allocation72_spill] sm:$0xff]  ;;  %v17333_v26 = vld [vmem:[#allocation174_spill] sm:$0xff] }
 0x55b   : > { %v13887_v17 = vpop.eup %9339  ;;  %9359 = vpow2.f32 %v3243_v1  ;;  %v4763_v18 = vsub.f32 %v17329_v8, %v13456_v43  ;;  %v4764_v56 = vsub.f32 %v17330_v48, %v13456_v43  ;;  %v3405_v23 = vadd.f32 %v13850_v24, %v3404_v58  ;;  %v13912_v24 = vpop.permute.xlu1 %4468 }
 0x55c   : > { %17328 = vst [vmem:[#allocation68_spill] sm:$0xff] %v13887_v17  ;;  %v13893_v39 = vpop.eup %9341  ;;  %9361 = vpow2.f32 %v3247_v57  ;;  %v3263_v9 = vmul.f32 1.442695, %v3050_v16  ;;  %v3447_v31 = vadd.f32 %v13887_v17, %v3446_v33  ;;  %v4889_v12 = vmul.f32 1.442695, %v4761_v27  ;;  %v17334_v57 = vld [vmem:[#allocation73_spill] sm:$0xff] }
 0x55d   : > { %v13897_v5 = vpop.eup %9343  ;;  %9363 = vpow2.f32 %v3251_v54  ;;  %v4765_v1 = vsub.f32 %v17332_v19, %v13530_v22  ;;  %v4073_v8 = vmax.f32 %v17124_v53, %v17333_v26  ;;  %v4891_v58 = vmul.f32 1.442695, %v4762_v50  ;;  %v17336_v54 = vld [vmem:[#allocation146_spill] sm:$0xff]  ;;  %v17344_v17 = vld [vmem:[#allocation164_spill] sm:$0xff] }
 0x55e   : > { %17331 = vst [vmem:[#allocation69_spill] sm:$0xff] %v13897_v5  ;;  %v13903_v25 = vpop.eup %9345  ;;  %9365 = vpow2.f32 %v3255_v20  ;;  %v3448_v43 = vadd.f32 %v13897_v5, %v3447_v31  ;;  %v4766_v16 = vsub.f32 %v17334_v57, %v13530_v22  ;;  %v3052_v27 = vsub.f32 %v17336_v54, %v13080_v28  ;;  %v17337_v31 = vld [vmem:[#allocation74_spill] sm:$0xff] }
 0x55f   : > { %v13908_v33 = vpop.eup %9347  ;;  %9367 = vpow2.f32 %v3259_v34  ;;  %v4893_v48 = vmul.f32 1.442695, %v4763_v18  ;;  %v4895_v19 = vmul.f32 1.442695, %v4764_v56  ;;  %v3406_v20 = vadd.f32 %v13863_v62, %v3405_v23  ;;  %v17339_v34 = vld [vmem:[#allocation75_spill] sm:$0xff] }
 0x560   : > { %17335 = vst [vmem:[#allocation70_spill] sm:$0xff] %v13908_v33  ;;  %v13914_v53 = vpop.eup %9349  ;;  %9369 = vpow2.f32 %v3263_v9  ;;  %v3449_v50 = vadd.f32 %v13908_v33, %v3448_v43  ;;  %v4767_v22 = vsub.f32 %v17337_v31, %v13720_v59  ;;  %v4897_v5 = vmul.f32 1.442695, %v4765_v1  ;;  %v17341_v9 = vld [vmem:[#allocation76_spill] sm:$0xff]  ;;  %v17343_v31 = vld [vmem:[#allocation166_spill] sm:$0xff]  ;;  %v17345_v1 = vld [vmem:[#allocation77_spill] sm:$0xff] }
 0x561   : > { %v13920_v57 = vpop.eup %9351  ;;  %9371 = vpow2.f32 %v4889_v12  ;;  %v4768_v18 = vsub.f32 %v17339_v34, %v13720_v59  ;;  %4074 = vmax.xlane.f32.xlu0 %v4073_v8  ;;  %v4899_v23 = vmul.f32 1.442695, %v4766_v16  ;;  %v4769_v43 = vsub.f32 %v17341_v9, %v13774_v32  ;;  %v17348_v9 = vld [vmem:[#allocation163_spill] sm:$0xff] }
 0x562   : > { %17338 = vst [vmem:[#allocation71_spill] sm:$0xff] %v13920_v57  ;;  %v13924_v56 = vpop.eup %9353  ;;  %v3450_v54 = vadd.f32 %v13920_v57, %v3449_v50  ;;  %9373 = vpow2.f32 %v4891_v58  ;;  %v4258_v11 = vsub.f32 %v17344_v17, %v17343_v31  ;;  %v3267_v12 = vmul.f32 1.442695, %v3052_v27  ;;  %v13943_v27 = vpop.permute.xlu1 %5670 }
 0x563   : > { %17340 = vst [vmem:[#allocation72_spill] sm:$0xff] %v13924_v56  ;;  %v13929_v33 = vpop.eup %9355  ;;  %9375 = vpow2.f32 %v4893_v48  ;;  %v4770_v59 = vsub.f32 %v17345_v1, %v13774_v32  ;;  %v3407_v34 = vadd.f32 %v13874_v42, %v3406_v20  ;;  %v4901_v16 = vmul.f32 1.442695, %v4767_v22  ;;  %17349 = vst [vmem:[#allocation76_spill] sm:$0xff] %v13943_v27 }
 0x564   : > { %17342 = vst [vmem:[#allocation73_spill] sm:$0xff] %v13929_v33  ;;  %v13935_v8 = vpop.eup %9357  ;;  %v3451_v58 = vadd.f32 %v13924_v56, %v3450_v54  ;;  %9377 = vpow2.f32 %v4895_v19  ;;  %v3054_v57 = vsub.f32 %v17348_v9, %v13080_v28  ;;  %v4903_v17 = vmul.f32 1.442695, %v4768_v18 }
 0x565   : > { %17346 = vst [vmem:[#allocation74_spill] sm:$0xff] %v13935_v8  ;;  %v13939_v50 = vpop.eup %9359  ;;  %9379 = vpow2.f32 %v4897_v5  ;;  %v4905_v31 = vmul.f32 1.442695, %v4769_v43  ;;  %v3056_v54 = vsub.f32 %v17262_v63, %v13080_v28  ;;  %v4907_v19 = vmul.f32 1.442695, %v4770_v59  ;;  %v17353_v59 = vld [vmem:[#allocation79_spill] sm:$0xff] }
 0x566   : > { %17347 = vst [vmem:[#allocation75_spill] sm:$0xff] %v13939_v50  ;;  %v13945_v48 = vpop.eup %9361  ;;  %v3452_v32 = vadd.f32 %v13929_v33, %v3451_v58  ;;  %9381 = vpow2.f32 %v4899_v23  ;;  %v4331_v1 = vmul.f32 1.442695, %v4258_v11  ;;  %v3408_v5 = vadd.f32 %v13882_v6, %v3407_v34  ;;  %v17354_v34 = vld [vmem:[#allocation160_spill] sm:$0xff]  ;;  %v4474_v27 = vpop.permute.xlu1 %4473 }
 0x567   : > { %17350 = vst [vmem:[#allocation166_spill] sm:$0xff] %v13945_v48  ;;  %v13948_v20 = vpop.eup %9363  ;;  %9383 = vpow2.f32 %v3267_v12  ;;  %v3058_v23 = vsub.f32 %v12803_v0, %v13080_v28  ;;  %v3271_v43 = vmul.f32 1.442695, %v3054_v57  ;;  %v4772_v11 = vsub.f32 %v17353_v59, %v13912_v24  ;;  %v17355_v59 = vld [vmem:[#allocation78_spill] sm:$0xff] }
 0x568   : > { %17351 = vst [vmem:[#allocation164_spill] sm:$0xff] %v13948_v20  ;;  %v13952_v22 = vpop.eup %9365  ;;  %v3453_v18 = vadd.f32 %v13935_v8, %v3452_v32  ;;  %9385 = vpow2.f32 %v4901_v16  ;;  %v3060_v32 = vsub.f32 %v17354_v34, %v13080_v28  ;;  %v3275_v16 = vmul.f32 1.442695, %v3056_v54 }
 0x569   : > { %v13956_v9 = vpop.eup %9367  ;;  %9387 = vpow2.f32 %v4903_v17  ;;  %v3409_v57 = vadd.f32 %v13893_v39, %v3408_v5  ;;  %v3062_v17 = vsub.f32 %v17333_v26, %v13080_v28  ;;  %v3279_v0 = vmul.f32 1.442695, %v3058_v23  ;;  %v17358_v26 = vld [vmem:[#allocation81_spill] sm:$0xff] }
 0x56a   : > { %v13960_v58 = vpop.eup %9369  ;;  %v3454_v12 = vadd.f32 %v13939_v50, %v3453_v18  ;;  %9389 = vpow2.f32 %v4905_v31  ;;  %v4771_v50 = vsub.f32 %v17355_v59, %v13912_v24  ;;  %v4911_v56 = vmul.f32 1.442695, %v4772_v11 }
 0x56b   : > { %17352 = vst [vmem:[#allocation77_spill] sm:$0xff] %v13960_v58  ;;  %v9372_v63 = vpop.eup %9371  ;;  %9391 = vpow2.f32 %v4907_v19  ;;  %v17357_v19 = vld [vmem:[#allocation167_spill] sm:$0xff]  ;;  %v4774_v13 = vsub.f32 %v17358_v26, %v4474_v27  ;;  %v3410_v59 = vadd.f32 %v13903_v25, %v3409_v57  ;;  %v17362_v26 = vld [vmem:[#allocation80_spill] sm:$0xff]  ;;  %v17364_v57 = vld [vmem:[#allocation233_spill] sm:$0xff] }
 0x56c   : > { %v9374_v8 = vpop.eup %9373  ;;  %9393 = vpow2.f32 %v4331_v1  ;;  %v3455_v18 = vadd.f32 %v13945_v48, %v3454_v12  ;;  %v3064_v1 = vsub.f32 %v17357_v19, %v13080_v28  ;;  %v3283_v48 = vmul.f32 1.442695, %v3060_v32 }
 0x56d   : > { %v9376_v31 = vpop.eup %9375  ;;  %9395 = vpow2.f32 %v3271_v43  ;;  %6106 = vmatprep.mubr.f32.mxu0 %v9374_v8  ;;  %v13973_v33 = vadd.f32 %v9374_v8, %v9372_v63  ;;  %v17359_v43 = vld [vmem:[#allocation234_spill] sm:$0xff]  ;;  %v4773_v11 = vsub.f32 %v17362_v26, %v4474_v27 }
 0x56e   : > { %v9378_v54 = vpop.eup %9377  ;;  %v3456_v5 = vadd.f32 %v13948_v20, %v3455_v18  ;;  %6107 = vmatmul.mubr.f32.vlgmr.msra.gmra.mrb[208].mxu0 %v9372_v63  ;;  %v3066_v23 = vsub.f32 %v17359_v43, %v13080_v28  ;;  %9397 = vpow2.f32 %v3275_v16  ;;  %v4909_v63 = vmul.f32 1.442695, %v4771_v50 }
 0x56f   : > { %17356 = vst [vmem:[#allocation79_spill] sm:$0xff] %v13973_v33  ;;  %v9380_v12 = vpop.eup %9379  ;;  %6111 = vmatprep.mubr.f32.mxu0 %v9378_v54  ;;  %v13981_v24 = vadd.f32 %v9378_v54, %v9376_v31  ;;  %v3287_v33 = vmul.f32 1.442695, %v3062_v17  ;;  %9399 = vpow2.f32 %v3279_v0  ;;  %v4915_v16 = vmul.f32 1.442695, %v4774_v13 }
 0x570   : > { %v9382_v8 = vpop.eup %9381  ;;  %v3457_v37 = vadd.f32 %v13952_v22, %v3456_v5  ;;  %9401 = vpow2.f32 %v4911_v56  ;;  %v3068_v17 = vsub.f32 %v17364_v57, %v13080_v28  ;;  %v3291_v5 = vmul.f32 1.442695, %v3064_v1  ;;  %v17366_v56 = vld [vmem:[#allocation161_spill] sm:$0xff] }
 0x571   : > { %17360 = vst [vmem:[#allocation78_spill] sm:$0xff] %v13981_v24  ;;  %v13985_v18 = vpop.eup %9383  ;;  %v13988_v20 = vadd.f32 %v9382_v8, %v9380_v12  ;;  %9403 = vpow2.f32 %v3283_v48  ;;  %v3295_v24 = vmul.f32 1.442695, %v3066_v23  ;;  %v3411_v50 = vadd.f32 %v13914_v53, %v3410_v59 }
 0x572   : > { %17361 = vst [vmem:[#allocation81_spill] sm:$0xff] %v13985_v18  ;;  %v9386_v61 = vpop.eup %9385  ;;  %v3458_v32 = vadd.f32 %v13956_v9, %v3457_v37  ;;  %6112 = vmatmul.mubr.f32.gmra.mrb[210].mxu0 %v9376_v31  ;;  %9405 = vpow2.f32 %v3287_v33  ;;  %v4257_v13 = vsub.f32 %v17366_v56, %v17154_v15  ;;  %v17367_v31 = vld [vmem:[#allocation236_spill] sm:$0xff]  ;;  %v4913_v48 = vmul.f32 1.442695, %v4773_v11  ;;  %v17371_v15 = vld [vmem:[#allocation235_spill] sm:$0xff] }
 0x573   : > { %17363 = vst [vmem:[#allocation80_spill] sm:$0xff] %v13988_v20  ;;  %v9388_v54 = vpop.eup %9387  ;;  %6116 = vmatprep.mubr.f32.mxu0 %v9382_v8  ;;  %v3070_v20 = vsub.f32 %v17367_v31, %v13080_v28  ;;  %9407 = vpow2.f32 %v4909_v63  ;;  %v4070_v33 = vmax.f32 %v17121_v40, %v17354_v34  ;;  %v3299_v56 = vmul.f32 1.442695, %v3068_v17  ;;  %v14012_v63 = vpop.permute.xlu0 %5675 }
 0x574   : > { %v9390_v0 = vpop.eup %9389  ;;  %v3459_v27 = vadd.f32 %v13960_v58, %v3458_v32  ;;  %v13995_v26 = vadd.f32 %v9388_v54, %v9386_v61  ;;  %9409 = vpow2.f32 %v4915_v16  ;;  %v3072_v32 = vsub.f32 %v17371_v15, %v13080_v28  ;;  %17372 = vst [vmem:[#allocation339_spill] sm:$0xff] %v14012_v63 }
 0x575   : > { %v9392_v37 = vpop.eup %9391  ;;  %9411 = vpow2.f32 %v3291_v5  ;;  %v3412_v11 = vrot.slane %v3411_v50, 4  ;;  %v3303_v40 = vmul.f32 1.442695, %v3070_v20  ;;  %v4329_v17 = vmul.f32 1.442695, %v4257_v13 }
 0x576   : > { %17365 = vst [vmem:[#allocation336_spill] sm:$0xff] %v13995_v26  ;;  %v14001_v1 = vpop.eup %9393  ;;  %v3460_v23 = vadd.f32 %v13985_v18, %v3459_v27  ;;  %6117 = vmatmul.mubr.f32.gmra.mrb[212].mxu0 %v9380_v12  ;;  %v14006_v8 = vadd.f32 %v9392_v37, %v9390_v0  ;;  %9413 = vpow2.f32 %v3295_v24  ;;  %v17374_v27 = vld [vmem:[#allocation155_spill] sm:$0xff]  ;;  %v14020_v26 = vld [vmem:[#allocation4 + $0x160] sm:$0xff]  ;;  %v17377_v24 = vld [vmem:[#allocation237_spill] sm:$0xff] }
 0x577   : > { %17368 = vst [vmem:[#allocation161_spill] sm:$0xff] %v14001_v1  ;;  %v14008_v59 = vpop.eup %9395  ;;  %6121 = vmatprep.mubr.f32.mxu0 %v9388_v54  ;;  %5705 = vperm.xlu0 %9138, %v14001_v1   ;;  %v3074_v34 = vsub.f32 %v17374_v27, %v13080_v28  ;;  %9415 = vpow2.f32 %v4913_v48  ;;  %17375 = vst [vmem:[#allocation341_spill] sm:$0xff] %v14020_v26  ;;  %v3076_v1 = vsub.f32 %v17377_v24, %v13080_v28  ;;  %v17406_v18 = vld [vmem:[#allocation86_spill] sm:$0xff] }
 0x578   : > { %17369 = vst [vmem:[#allocation337_spill] sm:$0xff] %v14006_v8  ;;  %17370 = vst [vmem:[#allocation338_spill] sm:$0xff] %v14008_v59  ;;  %v3461_v12 = vadd.f32 %v14008_v59, %v3460_v23  ;;  %v14016_v16 = vpop.eup %9397  ;;  %9417 = vpow2.f32 %v3299_v56  ;;  %v3307_v23 = vmul.f32 1.442695, %v3072_v32  ;;  %v4063_v8 = vpop.xlane.xlu0 %4062  ;;  %v3413_v20 = vadd.f32 %v3412_v11, %v3411_v50  ;;  %v17405_v59 = vld [vmem:[#allocation85_spill] sm:$0xff] }
 0x579   : > { %17373 = vst [vmem:[#allocation340_spill] sm:$0xff] %v14016_v16  ;;  %v14023_v5 = vpop.eup %9399  ;;  %v14032_v13 = vmax.f32 %v14020_v26, %v4063_v8  ;;  %9419 = vpow2.f32 %v3303_v40  ;;  %v3311_v56 = vmul.f32 1.442695, %v3074_v34  ;;  %v17383_v8 = vld [vmem:[#allocation238_spill] sm:$0xff] }
 0x57a   : > { %4071 = vmax.xlane.f32.xlu1 %v4070_v33  ;;  %v3462_v54 = vadd.f32 %v14016_v16, %v3461_v12  ;;  %6122 = vmatmul.mubr.f32.gmra.mrb[214].mxu0 %v9386_v61  ;;  %17376 = vst [vmem:[#allocation342_spill] sm:$0xff] %v14023_v5  ;;  %v17378_v33 = vld [vmem:[#allocation180_spill] sm:$0xff]  ;;  %v14028_v63 = vpop.eup %9401  ;;  %v17381_v12 = vld [vmem:[#allocation239_spill] sm:$0xff]  ;;  %9421 = vpow2.f32 %v4329_v17  ;;  %v3080_v11 = vsub.f32 %v17383_v8, %v13080_v28  ;;  %v3414_v34 = vrot.slane %v3413_v20, 2 }
 0x57b   : > { %6126 = vmatprep.mubr.f32.mxu0 %v9392_v37  ;;  %4508 = vperm.xlu0 %9138, %v17378_v33   ;;  %17379 = vst [vmem:[#allocation180_spill] sm:$0xff] %v14032_v13  ;;  %v14034_v61 = vpop.eup %9403  ;;  %v3078_v15 = vsub.f32 %v17381_v12, %v13080_v28  ;;  %6599 = vst.msk [vmem:[#allocation4 + $0x160] sm:$0xff] %vm5529_vm6, %v14032_v13  ;;  %9423 = vpow2.f32 %v3307_v23  ;;  %v17387_v23 = vld [vmem:[#allocation240_spill] sm:$0xff] }
 0x57c   : > { %v3463_v48 = vadd.f32 %v14023_v5, %v3462_v54  ;;  %17380 = vst [vmem:[#allocation343_spill] sm:$0xff] %v14034_v61  ;;  %v14038_v32 = vpop.eup %9405  ;;  %v3315_v54 = vmul.f32 1.442695, %v3076_v1  ;;  %9425 = vpow2.f32 %v3311_v56  ;;  %v3084_v12 = vsub.f32 %v17387_v23, %v13080_v28 }
 0x57d   : > { %17382 = vst [vmem:[#allocation344_spill] sm:$0xff] %v14038_v32  ;;  %v14043_v50 = vpop.eup %9407  ;;  %v3319_v13 = vmul.f32 1.442695, %v3078_v15  ;;  %v17389_v15 = vld [vmem:[#allocation244_spill] sm:$0xff] }
 0x57e   : > { %v3464_v37 = vadd.f32 %v14034_v61, %v3463_v48  ;;  %6127 = vmatmul.mubr.f32.gmra.mrb[216].mxu0 %v9390_v0  ;;  %v14048_v40 = vpop.eup %9409  ;;  %v17385_v0 = vld [vmem:[#allocation241_spill] sm:$0xff]  ;;  %9427 = vpow2.f32 %v3315_v54  ;;  %v3086_v61 = vsub.f32 %v17389_v15, %v13080_v28 }
 0x57f   : > { %6131 = vmatprep.mubr.f32.mxu0 %v14028_v63  ;;  %v14051_v26 = vpop.eup %9411  ;;  %v3082_v48 = vsub.f32 %v17385_v0, %v13080_v28  ;;  %9429 = vpow2.f32 %v3319_v13  ;;  %v17394_v13 = vld [vmem:[#allocation247_spill] sm:$0xff] }
 0x580   : > { %v3465_v17 = vadd.f32 %v14038_v32, %v3464_v37  ;;  %17384 = vst [vmem:[#allocation345_spill] sm:$0xff] %v14051_v26  ;;  %v14055_v24 = vpop.eup %9413  ;;  %v3323_v37 = vmul.f32 1.442695, %v3080_v11  ;;  %v3415_v32 = vadd.f32 %v3414_v34, %v3413_v20  ;;  %v17391_v11 = vld [vmem:[#allocation242_spill] sm:$0xff]  ;;  %v3331_v20 = vmul.f32 1.442695, %v3084_v12 }
 0x581   : > { %17386 = vst [vmem:[#allocation346_spill] sm:$0xff] %v14055_v24  ;;  %v14059_v1 = vpop.eup %9415  ;;  %v3088_v54 = vsub.f32 %v17391_v11, %v13080_v28  ;;  %v17395_v12 = vld [vmem:[#allocation245_spill] sm:$0xff] }
 0x582   : > { %v3466_v8 = vadd.f32 %v14051_v26, %v3465_v17  ;;  %6132 = vmatmul.mubr.f32.gmra.mrb[218].mxu0 %v14043_v50  ;;  %v14065_v56 = vpop.eup %9417  ;;  %v3327_v17 = vmul.f32 1.442695, %v3082_v48  ;;  %9431 = vpow2.f32 %v3323_v37  ;;  %v3090_v48 = vsub.f32 %v17394_v13, %v13080_v28 }
 0x583   : > { %6136 = vmatprep.mubr.f32.mxu0 %v14048_v40  ;;  %17388 = vst [vmem:[#allocation347_spill] sm:$0xff] %v14065_v56  ;;  %v14071_v5 = vpop.eup %9419  ;;  %v3092_v37 = vsub.f32 %v17395_v12, %v13080_v28  ;;  %v3339_v11 = vmul.f32 1.442695, %v3088_v54  ;;  %v14098_v54 = vpop.permute.xlu0 %5685 }
 0x584   : > { %v3467_v0 = vadd.f32 %v14055_v24, %v3466_v8  ;;  %17390 = vst [vmem:[#allocation348_spill] sm:$0xff] %v14071_v5  ;;  %v14075_v34 = vpop.eup %9421  ;;  %v3416_v8 = vrot.slane %v3415_v32, 1  ;;  %9433 = vpow2.f32 %v3327_v17  ;;  %v3343_v13 = vmul.f32 1.442695, %v3090_v48  ;;  %v17396_v17 = vld [vmem:[#allocation176_spill] sm:$0xff]  ;;  %17398 = vst [vmem:[#allocation351_spill] sm:$0xff] %v14098_v54 }
 0x585   : > { %17392 = vst [vmem:[#allocation349_spill] sm:$0xff] %v14075_v34  ;;  %v14078_v24 = vpop.eup %9423  ;;  %9435 = vpow2.f32 %v3331_v20 }
 0x586   : > { %v3468_v26 = vadd.f32 %v14065_v56, %v3467_v0  ;;  %6137 = vmatmul.mubr.f32.gmra.mrb[220].mxu0 %v14059_v1  ;;  %17393 = vst [vmem:[#allocation350_spill] sm:$0xff] %v14078_v24  ;;  %v3335_v0 = vmul.f32 1.442695, %v3086_v61  ;;  %v14084_v56 = vpop.eup %9425  ;;  %v3417_v27 = vadd.f32 %v3416_v8, %v3415_v32  ;;  %v14092_v61 = vld [vmem:[#allocation4 + $0x158] sm:$0xff] }
 0x587   : > { %17397 = vst [vmem:[#allocation176_spill] sm:$0xff] %v14092_v61 }
 0x588   : > { %v3469_v23 = vadd.f32 %v14071_v5, %v3468_v26  ;;  %v14089_v5 = vpop.eup %9427  ;;  %9437 = vpow2.f32 %v3335_v0  ;;  %v17400_v0 = vld [vmem:[#allocation82_spill] sm:$0xff] }
 0x589   : > { %9439 = vpow2.f32 %v3339_v11 }
 0x58a   : > { %v3470_v15 = vadd.f32 %v14078_v24, %v3469_v23  ;;  %v3347_v24 = vmul.f32 1.442695, %v3092_v37  ;;  %9441 = vrcp.f32 %v3417_v27 }
 0x58b   : > { %5700 = vperm.xlu1 %9139, %v14075_v34   ;;  %v14095_v34 = vpop.eup %9429  ;;  %v4060_v28 = vpop.xlane.xlu1 %4059  ;;  %9443 = vpow2.f32 %v3343_v13 }
 0x58c   : > { %v3471_v26 = vadd.f32 %v14084_v56, %v3470_v15  ;;  %v14101_v15 = vmax.f32 %v14092_v61, %v4060_v28  ;;  %v14103_v20 = vpop.eup %9431  ;;  %9445 = vpow2.f32 %v3347_v24  ;;  %v4489_v13 = vpop.permute.xlu0 %4488  ;;  %v17403_v24 = vld [vmem:[#allocation171_spill] sm:$0xff] }
 0x58d   : > { %v4260_v16 = vsub.f32 %v17403_v24, %v17273_v30 }
 0x58e   : > { %v3472_v23 = vadd.f32 %v14089_v5, %v3471_v26  ;;  %17399 = vst [vmem:[#allocation352_spill] sm:$0xff] %v14101_v15  ;;  %6598 = vst.msk [vmem:[#allocation4 + $0x158] sm:$0xff] %vm5529_vm6, %v14101_v15  ;;  %v14108_v48 = vpop.eup %9433  ;;  %v17401_v26 = vld [vmem:[#allocation83_spill] sm:$0xff] }
 0x58f   : > { %4503 = vperm.xlu1 %9139, %v17396_v17   ;;  %v4479_v11 = vpop.permute.xlu1 %4478  ;;  %v14113_v28 = vpop.eup %9435  ;;  %v4335_v30 = vmul.f32 1.442695, %v4260_v16 }
 0x590   : > { %v3473_v32 = vadd.f32 %v14095_v34, %v3472_v23  ;;  %v4775_v37 = vsub.f32 %v17400_v0, %v4479_v11  ;;  %v4776_v23 = vsub.f32 %v17401_v26, %v4479_v11  ;;  %v4079_v11 = vmax.f32 %v17240_v10, %v17359_v43 }
 0x592   : > { %v3474_v8 = vadd.f32 %v14103_v20, %v3473_v32  ;;  %v4917_v12 = vmul.f32 1.442695, %v4775_v37  ;;  %v4919_v32 = vmul.f32 1.442695, %v4776_v23  ;;  %v14116_v54 = vpop.eup %9437 }
 0x593   : > { %v14118_v15 = vpop.permute.xlu1 %5680  ;;  %v14125_v0 = vpop.eup %9439 }
 0x594   : > { %v3475_v27 = vadd.f32 %v14108_v48, %v3474_v8  ;;  %17402 = vst [vmem:[#allocation82_spill] sm:$0xff] %v14118_v15  ;;  %9447 = vpow2.f32 %v4917_v12  ;;  %v14128_v37 = vpop.eup %9441  ;;  %v17404_v12 = vld [vmem:[#allocation84_spill] sm:$0xff] }
 0x595   : > { %9449 = vpow2.f32 %v4919_v32  ;;  %v14131_v23 = vpop.eup %9443  ;;  %v14141_v58 = vmul.f32 %v14128_v37, %v13863_v62  ;;  %v14160_v62 = vmul.f32 %v14128_v37, %v13903_v25 }
 0x596   : > { %v3476_v61 = vadd.f32 %v14113_v28, %v3475_v27  ;;  %v4780_v27 = vsub.f32 %v17168_v47, %v4489_v13  ;;  %v14136_v10 = vpop.eup %9445  ;;  %v4779_v47 = vsub.f32 %v17406_v18, %v4489_v13  ;;  %v14172_v13 = vadd.f32 %v14043_v50, %v14028_v63 }
 0x597   : > { %v4484_v15 = vpop.permute.xlu1 %4483 }
 0x598   : > { %v3477_v8 = vadd.f32 %v14116_v54, %v3476_v61  ;;  %v4777_v24 = vsub.f32 %v17404_v12, %v4484_v15  ;;  %v4778_v43 = vsub.f32 %v17405_v59, %v4484_v15  ;;  %v4927_v32 = vmul.f32 1.442695, %v4780_v27  ;;  %v17413_v27 = vld [vmem:[#allocation246_spill] sm:$0xff] }
 0x599   : > { %v14150_v59 = vmul.f32 %v14128_v37, %v13882_v6  ;;  %v14156_v15 = vmul.f32 %v14128_v37, %v13893_v39  ;;  %v14168_v6 = vadd.f32 %v14059_v1, %v14048_v40  ;;  %v4925_v39 = vmul.f32 1.442695, %v4779_v47 }
 0x59a   : > { %v3478_v26 = vadd.f32 %v14125_v0, %v3477_v8  ;;  %4080 = vmax.xlane.f32.xlu0 %v4079_v11  ;;  %v14145_v8 = vmul.f32 %v14128_v37, %v13874_v42  ;;  %v4921_v11 = vmul.f32 1.442695, %v4777_v24  ;;  %v14164_v42 = vmul.f32 %v14128_v37, %v13914_v53 }
 0x59b   : > { %v3491_v25 = vmul.f32 %v14128_v37, %v17413_v27 }
 0x59c   : > { %v3479_v61 = vadd.f32 %v14131_v23, %v3478_v26  ;;  %v4923_v26 = vmul.f32 1.442695, %v4778_v43  ;;  %9451 = vpow2.f32 %v4921_v11 }
 0x59e   : > { %v3480_v16 = vadd.f32 %v14136_v10, %v3479_v61  ;;  %9453 = vpow2.f32 %v4923_v26  ;;  %v14178_v53 = vpop.eup %9447 }
 0x59f   : > { %v14180_v12 = vpop.eup %9449  ;;  %9455 = vpow2.f32 %v4927_v32  ;;  %v17408_v32 = vld [vmem:[#allocation168_spill] sm:$0xff] }
 0x5a0   : > { %v3481_v43 = vrot.slane %v3480_v16, 4  ;;  %9457 = vpow2.f32 %v4335_v30  ;;  %6141 = vmatprep.mubr.f32.mxu0 %v14180_v12  ;;  %v4259_v11 = vsub.f32 %v17408_v32, %v17318_v14  ;;  %v17412_v14 = vld [vmem:[#allocation243_spill] sm:$0xff] }
 0x5a1   : > { %9459 = vpow2.f32 %v4925_v39  ;;  %6142 = vmatmul.mubr.f32.gmra.mrb[222].mxu0 %v14178_v53  ;;  %v3488_v32 = vmul.f32 %v14128_v37, %v17412_v14  ;;  %v17415_v14 = vld [vmem:[#allocation248_spill] sm:$0xff] }
 0x5a2   : > { %v3482_v61 = vadd.f32 %v3481_v43, %v3480_v16  ;;  %v4076_v43 = vmax.f32 %v17125_v7, %v17357_v19  ;;  %v4333_v39 = vmul.f32 1.442695, %v4259_v11  ;;  %v17417_v19 = vld [vmem:[#allocation250_spill] sm:$0xff] }
 0x5a3   : > { %v8670_v27 = vpack.c.bf16 %v3491_v25, %v3488_v32  ;;  %v3497_v25 = vmul.f32 %v14128_v37, %v17417_v19  ;;  %v17418_v32 = vld [vmem:[#allocation251_spill] sm:$0xff] }
 0x5a4   : > { %v3483_v40 = vrot.slane %v3482_v61, 2 }
 0x5a6   : > { %v3484_v63 = vadd.f32 %v3483_v40, %v3482_v61  ;;  %v14184_v1 = vpop.eup %9451  ;;  %v14199_v40 = vld [vmem:[#allocation4 + $0x170] sm:$0xff] }
 0x5a7   : > { %17410 = vst [vmem:[#allocation84_spill] sm:$0xff] %v14199_v40 }
 0x5a8   : > { %v3485_v50 = vrot.slane %v3484_v63, 1  ;;  %v14186_v47 = vpop.eup %9453 }
 0x5a9   : > { %6146 = vmatprep.mubr.f32.mxu0 %v14186_v47  ;;  %v9456_v16 = vpop.eup %9455 }
 0x5aa   : > { %v3486_v24 = vadd.f32 %v3485_v50, %v3484_v63  ;;  %6147 = vmatmul.mubr.f32.gmra.mrb[224].mxu0 %v14184_v1  ;;  %v14190_v30 = vpop.eup %9457  ;;  %v17411_v63 = vld [vmem:[#allocation186_spill] sm:$0xff] }
 0x5ab   : > { %17407 = vst [vmem:[#allocation83_spill] sm:$0xff] %v14190_v30  ;;  %6151 = vmatprep.mubr.f32.mxu0 %v9456_v16  ;;  %v9460_v26 = vpop.eup %9459 }
 0x5ac   : > { %9461 = vrcp.f32 %v3486_v24  ;;  %v14197_v61 = vadd.f32 %v9460_v26, %v9456_v16 }
 0x5ad   : > { %9463 = vpow2.f32 %v4333_v39 }
 0x5ae   : > { %6152 = vmatmul.mubr.f32.gmra.mrb[226].mxu0 %v9460_v26  ;;  %17409 = vst [vmem:[#allocation171_spill] sm:$0xff] %v14197_v61 }
 0x5b0   : > { %5715 = vperm.xlu0 %9138, %v14190_v30  }
 0x5b3   : > { %4077 = vmax.xlane.f32.xlu1 %v4076_v43  ;;  %v4069_v50 = vpop.xlane.xlu0 %4068 }
 0x5b4   : > { %4518 = vperm.xlu0 %9138, %v17411_v63   ;;  %v14209_v18 = vmax.f32 %v14199_v40, %v4069_v50  ;;  %v3493_v50 = vmul.f32 %v14128_v37, %v17415_v14  ;;  %v17416_v40 = vld [vmem:[#allocation249_spill] sm:$0xff] }
 0x5b6   : > { %v14202_v24 = vpop.eup %9461  ;;  %17414 = vst [vmem:[#allocation85_spill] sm:$0xff] %v14209_v18  ;;  %6601 = vst.msk [vmem:[#allocation4 + $0x170] sm:$0xff] %vm5529_vm6, %v14209_v18  ;;  %v17510_v18 = vld [vmem:[#allocation92_spill] sm:$0xff] }
 0x5b7   : > { %v3490_v16 = vmul.f32 %v14202_v24, %v13347_v35  ;;  %v3492_v11 = vmul.f32 %v14202_v24, %v13363_v60  ;;  %v3494_v26 = vmul.f32 %v14202_v24, %v13390_v41  ;;  %v3496_v43 = vmul.f32 %v14202_v24, %v13419_v51 }
 0x5b8   : > { %v3495_v35 = vmul.f32 %v14128_v37, %v17416_v40  ;;  %v3498_v60 = vmul.f32 %v14202_v24, %v13447_v49  ;;  %v3500_v41 = vmul.f32 %v14202_v24, %v13478_v46  ;;  %v3502_v40 = vmul.f32 %v14202_v24, %v13498_v55  ;;  %v14237_v49 = vpop.eup %9463 }
 0x5b9   : > { %v8668_v39 = vpack.c.bf16 %v3492_v11, %v3490_v16  ;;  %v8672_v30 = vpack.c.bf16 %v3496_v43, %v3494_v26  ;;  %v3499_v16 = vmul.f32 %v14128_v37, %v17418_v32  ;;  %v3504_v26 = vmul.f32 %v14202_v24, %v13525_v4  ;;  %17419 = vst [vmem:[#allocation86_spill] sm:$0xff] %v14237_v49 }
 0x5ba   : > { %v8674_v51 = vpack.c.bf16 %v3495_v35, %v3493_v50  ;;  %v8676_v11 = vpack.c.bf16 %v3500_v41, %v3498_v60  ;;  %v3506_v55 = vmul.f32 %v14202_v24, %v13543_v21  ;;  %v3508_v4 = vmul.f32 %v14202_v24, %v13562_v44  ;;  %v17422_v50 = vld [vmem:[#allocation117_spill] sm:$0xff]  ;;  %v17423_v60 = vld [vmem:[#allocation55_spill] sm:$0xff] }
 0x5bb   : > { %8669 = vmatprep.subr.bf16.mxu1 %v8668_v39  ;;  %v8678_v46 = vpack.c.bf16 %v3499_v16, %v3497_v25  ;;  %v17421_v39 = vld [vmem:[#allocation252_spill] sm:$0xff]  ;;  %v3505_v35 = vmul.f32 %v14128_v37, %v17422_v50  ;;  %v3507_v41 = vmul.f32 %v14128_v37, %v17423_v60  ;;  %v17424_v25 = vld [vmem:[#allocation182_spill] sm:$0xff]  ;;  %v3510_v21 = vmul.f32 %v14202_v24, %v13582_v36 }
 0x5bc   : > { %8671 = vmatpush1.bf16.msra.mxu1 %v8670_v27  ;;  %v3503_v19 = vmul.f32 %v14128_v37, %v17421_v39  ;;  %v8680_v27 = vpack.c.bf16 %v3504_v26, %v3502_v40  ;;  %v8684_v32 = vpack.c.bf16 %v3508_v4, %v3506_v55  ;;  %v3512_v44 = vmul.f32 %v14202_v24, %v13601_v38  ;;  %v17426_v26 = vld [vmem:[#allocation149_spill] sm:$0xff] }
 0x5bd   : > { %8673 = vmatprep.subr.bf16.mxu1 %v8672_v30  ;;  %v17420_v30 = vld [vmem:[#allocation151_spill] sm:$0xff]  ;;  %v3514_v36 = vmul.f32 %v14202_v24, %v13618_v29  ;;  %v3516_v38 = vmul.f32 %v14202_v24, %v13636_v45  ;;  %v17429_v4 = vld [vmem:[#allocation157_spill] sm:$0xff]  ;;  %v3518_v29 = vmul.f32 %v14202_v24, %v13650_v3  ;;  %v14300_v3 = vmul.f32 %v14202_v24, %v14108_v48 }
 0x5be   : > { %v3501_v43 = vmul.f32 %v14128_v37, %v17420_v30  ;;  %v8686_v30 = vpack.c.bf16 %v3507_v41, %v3505_v35  ;;  %v8688_v39 = vpack.c.bf16 %v3512_v44, %v3510_v21  ;;  %v4085_v35 = vmax.f32 %v17251_v52, %v17367_v31 }
 0x5bf   : > { %v14284_v41 = vmul.f32 %v14202_v24, %v14084_v56  ;;  %v14292_v21 = vmul.f32 %v14202_v24, %v14095_v34  ;;  %v14296_v44 = vmul.f32 %v14202_v24, %v14103_v20  ;;  %v3520_v56 = vmul.f32 %v14202_v24, %v13669_v2 }
 0x5c0   : > { %8675 = vmatpush1.bf16.msra.mxu1 %v8674_v51  ;;  %v8682_v14 = vpack.c.bf16 %v3503_v19, %v3501_v43  ;;  %v14252_v51 = vpop.f32.mrb[16].mxu1  ;;  %v14263_v43 = vld [vmem:[#allocation4 + $0x168] sm:$0xff]  ;;  %v14269_v19 = vpop.permute.xlu0 %5695  ;;  %v14312_v34 = vmul.f32 %v14202_v24, %v14116_v54 }
 0x5c1   : > { %8677 = vmatprep.subr.bf16.mxu1 %v8676_v11  ;;  %v1899_v16 = vpop.f32.mrb[17].mxu1  ;;  %v17425_v11 = vld [vmem:[#allocation54_spill] sm:$0xff]  ;;  %17427 = vst [vmem:[#allocation168_spill] sm:$0xff] %v14263_v43 }
 0x5c2   : > { %3681 = vmatprep.mubr.f32.mxu1 %v1899_v16  ;;  %v3509_v40 = vmul.f32 %v14128_v37, %v17425_v11  ;;  %v8692_v16 = vpack.c.bf16 %v3516_v38, %v3514_v36  ;;  %v14322_v11 = vmul.f32 %v14202_v24, %v14125_v0  ;;  %v17431_v36 = vld [vmem:[#allocation255_spill] sm:$0xff]  ;;  %v14342_v38 = vadd.f32 %v14186_v47, %v14184_v1  ;;  %v17436_v47 = vld [vmem:[#allocation177_spill] sm:$0xff] }
 0x5c3   : > { %v3519_v0 = vmul.f32 %v14128_v37, %v17431_v36  ;;  %v4262_v36 = vsub.f32 %v17436_v47, %v17378_v33 }
 0x5c4   : > { %5710 = vperm.xlu1 %9139, %v14237_v49   ;;  %8679 = vmatpush1.bf16.msra.mxu1 %v8678_v46  ;;  %v3511_v46 = vmul.f32 %v14128_v37, %v17426_v26 }
 0x5c5   : > { %8681 = vmatprep.subr.bf16.mxu1 %v8680_v27  ;;  %v17428_v27 = vld [vmem:[#allocation154_spill] sm:$0xff] }
 0x5c6   : > { %v3513_v55 = vmul.f32 %v14128_v37, %v17428_v27  ;;  %v8690_v60 = vpack.c.bf16 %v3511_v46, %v3509_v40  ;;  %v17430_v40 = vld [vmem:[#allocation253_spill] sm:$0xff]  ;;  %v4499_v46 = vpop.permute.xlu0 %4498  ;;  %v14346_v27 = vadd.f32 %v14180_v12, %v14178_v53  ;;  %v17437_v53 = vld [vmem:[#allocation59_spill] sm:$0xff] }
 0x5c7   : > { %v3517_v26 = vmul.f32 %v14128_v37, %v17430_v40  ;;  %v3521_v12 = vmul.f32 %v14128_v37, %v17437_v53 }
 0x5c8   : > { %4513 = vperm.xlu1 %9139, %v17424_v25   ;;  %8683 = vmatpush1.bf16.msra.mxu1 %v8682_v14  ;;  %v3515_v14 = vmul.f32 %v14128_v37, %v17429_v4  ;;  %17432 = vst [vmem:[#allocation186_spill] sm:$0xff] %v14346_v27  ;;  %v17433_v4 = vld [vmem:[#allocation306_spill] sm:$0xff]  ;;  %v17518_v27 = vld [vmem:[#allocation344_spill] sm:$0xff] }
 0x5c9   : > { %8685 = vmatprep.subr.bf16.mxu1 %v8684_v32  ;;  %v14288_v32 = vmul.f32 %v14202_v24, %v14089_v5  ;;  %v14308_v5 = vmul.f32 %v14202_v24, %v14113_v28  ;;  %v14326_v28 = vmul.f32 %v14202_v24, %v14131_v23 }
 0x5ca   : > { %v8694_v54 = vpack.c.bf16 %v3515_v14, %v3513_v55  ;;  %v8696_v55 = vpack.c.bf16 %v3520_v56, %v3518_v29  ;;  %v3522_v14 = vmul.f32 %v14202_v24, %v17433_v4  ;;  %v17438_v29 = vld [vmem:[#allocation88_spill] sm:$0xff]  ;;  %v17439_v4 = vld [vmem:[#allocation89_spill] sm:$0xff] }
 0x5cc   : > { %8687 = vmatpush1.bf16.msra.mxu1 %v8686_v30 }
 0x5cd   : > { %8689 = vmatprep.subr.bf16.mxu1 %v8688_v39  ;;  %v14334_v39 = vmul.f32 %v14202_v24, %v14136_v10  ;;  %v17434_v10 = vld [vmem:[#allocation309_spill] sm:$0xff] }
 0x5ce   : > { %v4066_v50 = vpop.xlane.xlu1 %4065 }
 0x5cf   : > { %v14280_v45 = vmax.f32 %v14263_v43, %v4066_v50  ;;  %v3524_v50 = vmul.f32 %v14202_v24, %v17434_v10  ;;  %v8698_v10 = vpack.c.bf16 %v3519_v0, %v3517_v26  ;;  %v17443_v43 = vld [vmem:[#allocation314_spill] sm:$0xff] }
 0x5d0   : > { %8691 = vmatpush1.bf16.msra.mxu1 %v8690_v60  ;;  %v17441_v60 = vld [vmem:[#allocation173_spill] sm:$0xff]  ;;  %v3528_v33 = vmul.f32 %v14202_v24, %v17443_v43 }
 0x5d1   : > { %6600 = vst.msk [vmem:[#allocation4 + $0x168] sm:$0xff] %vm5529_vm6, %v14280_v45  ;;  %8693 = vmatprep.subr.bf16.mxu1 %v8692_v16  ;;  %v17435_v16 = vld [vmem:[#allocation91_spill] sm:$0xff]  ;;  %v8700_v48 = vpack.c.bf16 %v3524_v50, %v3522_v14  ;;  %v17446_v14 = vld [vmem:[#allocation316_spill] sm:$0xff] }
 0x5d2   : > { %v14314_v20 = vpop.permute.xlu1 %5690  ;;  %v4784_v40 = vsub.f32 %v17435_v16, %v4499_v46  ;;  %v17442_v16 = vld [vmem:[#allocation90_spill] sm:$0xff]  ;;  %v3530_v43 = vmul.f32 %v14202_v24, %v17446_v14  ;;  %v17447_v50 = vld [vmem:[#allocation319_spill] sm:$0xff] }
 0x5d3   : > { %4086 = vmax.xlane.f32.xlu0 %v4085_v35  ;;  %v17440_v35 = vld [vmem:[#allocation58_spill] sm:$0xff]  ;;  %v4783_v2 = vsub.f32 %v17442_v16, %v4499_v46 }
 0x5d4   : > { %8695 = vmatpush1.bf16.msra.mxu1 %v8694_v54  ;;  %v3523_v30 = vmul.f32 %v14128_v37, %v17440_v35  ;;  %v3526_v54 = vmul.f32 %v14202_v24, %v17441_v60  ;;  %v4935_v53 = vmul.f32 1.442695, %v4784_v40  ;;  %v17448_v40 = vld [vmem:[#allocation61_spill] sm:$0xff] }
 0x5d5   : > { %8697 = vmatprep.subr.bf16.mxu1 %v8696_v55  ;;  %v4933_v35 = vmul.f32 1.442695, %v4783_v2 }
 0x5d6   : > { %v4494_v1 = vpop.permute.xlu1 %4493  ;;  %v8702_v0 = vpack.c.bf16 %v3523_v30, %v3521_v12  ;;  %v8704_v46 = vpack.c.bf16 %v3528_v33, %v3526_v54  ;;  %v3529_v30 = vmul.f32 %v14128_v37, %v17448_v40  ;;  %v17451_v54 = vld [vmem:[#allocation323_spill] sm:$0xff] }
 0x5d7   : > { %v4781_v56 = vsub.f32 %v17438_v29, %v4494_v1  ;;  %v4782_v23 = vsub.f32 %v17439_v4, %v4494_v1  ;;  %v4339_v29 = vmul.f32 1.442695, %v4262_v36  ;;  %v17444_v1 = vld [vmem:[#allocation257_spill] sm:$0xff]  ;;  %v17445_v4 = vld [vmem:[#allocation259_spill] sm:$0xff]  ;;  %v17449_v36 = vld [vmem:[#allocation60_spill] sm:$0xff]  ;;  %v3536_v16 = vmul.f32 %v14202_v24, %v17451_v54 }
 0x5d8   : > { %8699 = vmatpush1.bf16.msra.mxu1 %v8698_v10  ;;  %v3525_v26 = vmul.f32 %v14128_v37, %v17444_v1  ;;  %v3527_v60 = vmul.f32 %v14128_v37, %v17445_v4  ;;  %v3531_v12 = vmul.f32 %v14128_v37, %v17449_v36 }
 0x5d9   : > { %v4929_v55 = vmul.f32 1.442695, %v4781_v56  ;;  %v4931_v47 = vmul.f32 1.442695, %v4782_v23  ;;  %8701 = vmatprep.subr.bf16.mxu1 %v8700_v48  ;;  %v3532_v23 = vmul.f32 %v14202_v24, %v17447_v50  ;;  %v17450_v56 = vld [vmem:[#allocation321_spill] sm:$0xff]  ;;  %v17456_v50 = vld [vmem:[#allocation63_spill] sm:$0xff] }
 0x5da   : > { %v8706_v48 = vpack.c.bf16 %v3527_v60, %v3525_v26  ;;  %v3534_v10 = vmul.f32 %v14202_v24, %v17450_v56  ;;  %v8710_v33 = vpack.c.bf16 %v3531_v12, %v3529_v30  ;;  %v17455_v60 = vld [vmem:[#allocation329_spill] sm:$0xff]  ;;  %v17459_v12 = vld [vmem:[#allocation331_spill] sm:$0xff] }
 0x5db   : > { %9465 = vpow2.f32 %v4929_v55  ;;  %v8708_v2 = vpack.c.bf16 %v3532_v23, %v3530_v43  ;;  %v17452_v55 = vld [vmem:[#allocation261_spill] sm:$0xff]  ;;  %v3537_v23 = vmul.f32 %v14128_v37, %v17456_v50  ;;  %v17466_v50 = vld [vmem:[#allocation335_spill] sm:$0xff] }
 0x5dc   : > { %9467 = vpow2.f32 %v4931_v47  ;;  %8703 = vmatpush1.bf16.msra.mxu1 %v8702_v0  ;;  %v3533_v47 = vmul.f32 %v14128_v37, %v17452_v55  ;;  %v8712_v26 = vpack.c.bf16 %v3536_v16, %v3534_v10  ;;  %v17454_v0 = vld [vmem:[#allocation326_spill] sm:$0xff]  ;;  %v17460_v56 = vld [vmem:[#allocation169_spill] sm:$0xff]  ;;  %v17461_v16 = vld [vmem:[#allocation175_spill] sm:$0xff] }
 0x5dd   : > { %9469 = vpow2.f32 %v4935_v53  ;;  %8705 = vmatprep.subr.bf16.mxu1 %v8704_v46  ;;  %v17453_v53 = vld [vmem:[#allocation262_spill] sm:$0xff]  ;;  %v3538_v4 = vmul.f32 %v14202_v24, %v17454_v0  ;;  %v3544_v10 = vmul.f32 %v14202_v24, %v17460_v56  ;;  %v17462_v55 = vld [vmem:[#allocation204_spill] sm:$0xff]  ;;  %v17469_v56 = vld [vmem:[#allocation191_spill] sm:$0xff] }
 0x5de   : > { %9471 = vpow2.f32 %v4339_v29  ;;  %v3535_v29 = vmul.f32 %v14128_v37, %v17453_v53  ;;  %v17464_v0 = vld [vmem:[#allocation266_spill] sm:$0xff] }
 0x5df   : > { %9473 = vpow2.f32 %v4933_v35  ;;  %v3540_v35 = vmul.f32 %v14202_v24, %v17455_v60 }
 0x5e0   : > { %8707 = vmatpush1.bf16.msra.mxu1 %v8706_v48  ;;  %v8714_v43 = vpack.c.bf16 %v3535_v29, %v3533_v47  ;;  %v17457_v48 = vld [vmem:[#allocation62_spill] sm:$0xff]  ;;  %v4082_v47 = vmax.f32 %v17462_v55, %v17364_v57  ;;  %v17463_v29 = vld [vmem:[#allocation265_spill] sm:$0xff]  ;;  %v14417_v60 = vpop.f32.mrb[18].mxu1 }
 0x5e1   : > { %8709 = vmatprep.subr.bf16.mxu1 %v8708_v2  ;;  %v3539_v40 = vmul.f32 %v14128_v37, %v17457_v48  ;;  %v8716_v36 = vpack.c.bf16 %v3540_v35, %v3538_v4  ;;  %v3542_v2 = vmul.f32 %v14202_v24, %v17459_v12  ;;  %v3543_v4 = vmul.f32 %v14128_v37, %v17464_v0 }
 0x5e2   : > { %v3548_v48 = vmul.f32 %v14202_v24, %v17466_v50 }
 0x5e3   : > { %v8718_v53 = vpack.c.bf16 %v3539_v40, %v3537_v23  ;;  %v8720_v35 = vpack.c.bf16 %v3544_v10, %v3542_v2  ;;  %v14425_v40 = vld [vmem:[#allocation4 + $0x180] sm:$0xff]  ;;  %v17471_v10 = vld [vmem:[#allocation272_spill] sm:$0xff] }
 0x5e4   : > { %8711 = vmatpush1.bf16.msra.mxu1 %v8710_v33  ;;  %v4261_v33 = vsub.f32 %v17461_v16, %v17396_v17  ;;  %v17465_v17 = vld [vmem:[#allocation334_spill] sm:$0xff]  ;;  %17468 = vst [vmem:[#allocation248_spill] sm:$0xff] %v14425_v40 }
 0x5e5   : > { %v14388_v1 = vpop.eup %9465  ;;  %8713 = vmatprep.subr.bf16.mxu1 %v8712_v26  ;;  %v3541_v26 = vmul.f32 %v14128_v37, %v17463_v29  ;;  %v17470_v29 = vld [vmem:[#allocation162_spill] sm:$0xff] }
 0x5e6   : > { %v14394_v46 = vpop.eup %9467  ;;  %v4337_v23 = vmul.f32 1.442695, %v4261_v33  ;;  %v3545_v2 = vmul.f32 %v14128_v37, %v17470_v29  ;;  %v17473_v33 = vld [vmem:[#allocation69_spill] sm:$0xff] }
 0x5e7   : > { %6156 = vmatprep.mubr.f32.mxu0 %v14394_v46  ;;  %v9470_v14 = vpop.eup %9469  ;;  %v8722_v16 = vpack.c.bf16 %v3543_v4, %v3541_v26  ;;  %v17475_v4 = vld [vmem:[#allocation65_spill] sm:$0xff] }
 0x5e8   : > { %6157 = vmatmul.mubr.f32.gmra.mrb[228].mxu0 %v14388_v1  ;;  %v14402_v30 = vpop.eup %9471  ;;  %8715 = vmatpush1.bf16.msra.mxu1 %v8714_v43  ;;  %v3546_v43 = vmul.f32 %v14202_v24, %v17465_v17  ;;  %9475 = vpow2.f32 %v4337_v23 }
 0x5e9   : > { %17458 = vst [vmem:[#allocation243_spill] sm:$0xff] %v14402_v30  ;;  %6161 = vmatprep.mubr.f32.mxu0 %v9470_v14  ;;  %v9474_v54 = vpop.eup %9473  ;;  %8717 = vmatprep.subr.bf16.mxu1 %v8716_v36  ;;  %v1905_v36 = vpop.f32.mrb[19].mxu1 }
 0x5ea   : > { %5725 = vperm.xlu0 %9138, %v14402_v30   ;;  %v14423_v12 = vadd.f32 %v9474_v54, %v9470_v14  ;;  %v14432_v0 = vpop.f32.mrb[20].mxu1  ;;  %v8724_v50 = vpack.c.bf16 %v3548_v48, %v3546_v43  ;;  %v17472_v14 = vld [vmem:[#allocation68_spill] sm:$0xff]  ;;  %v3549_v43 = vmul.f32 %v14128_v37, %v17475_v4  ;;  %v17476_v48 = vld [vmem:[#allocation87_spill] sm:$0xff]  ;;  %v17480_v4 = vld [vmem:[#allocation282_spill] sm:$0xff] }
 0x5eb   : > { %v3551_v29 = vmul.f32 %v14128_v37, %v17476_v48  ;;  %v3555_v52 = vmul.f32 %v14128_v37, %v17480_v4 }
 0x5ec   : > { %6162 = vmatmul.mubr.f32.gmra.mrb[230].mxu0 %v9474_v54  ;;  %4083 = vmax.xlane.f32.xlu1 %v4082_v47  ;;  %17467 = vst [vmem:[#allocation246_spill] sm:$0xff] %v14423_v12  ;;  %v3547_v47 = vmul.f32 %v14128_v37, %v17471_v10  ;;  %v3550_v54 = vmul.f32 %v14202_v24, %v17472_v14  ;;  %v17509_v12 = vld [vmem:[#allocation303_spill] sm:$0xff] }
 0x5ed   : > { %8719 = vmatpush1.bf16.msra.mxu1 %v8718_v53  ;;  %v3552_v53 = vmul.f32 %v14202_v24, %v17473_v33  ;;  %v17477_v33 = vld [vmem:[#allocation70_spill] sm:$0xff] }
 0x5ee   : > { %8721 = vmatprep.subr.bf16.mxu1 %v8720_v35  ;;  %4528 = vperm.xlu0 %9138, %v17469_v56   ;;  %v4075_v17 = vpop.xlane.xlu0 %4074  ;;  %v1911_v35 = vpop.f32.mrb[21].mxu1  ;;  %v8726_v26 = vpack.c.bf16 %v3547_v47, %v3545_v2  ;;  %v17479_v2 = vld [vmem:[#allocation278_spill] sm:$0xff] }
 0x5ef   : > { %v14439_v31 = vmax.f32 %v14425_v40, %v4075_v17  ;;  %v14447_v10 = vpop.f32.mrb[22].mxu1  ;;  %v8728_v14 = vpack.c.bf16 %v3552_v53, %v3550_v54  ;;  %v3554_v17 = vmul.f32 %v14202_v24, %v17477_v33  ;;  %v17478_v40 = vld [vmem:[#allocation71_spill] sm:$0xff]  ;;  %v3553_v47 = vmul.f32 %v14128_v37, %v17479_v2  ;;  %v17481_v54 = vld [vmem:[#allocation72_spill] sm:$0xff]  ;;  %v17482_v33 = vld [vmem:[#allocation73_spill] sm:$0xff] }
 0x5f0   : > { %v3556_v23 = vmul.f32 %v14202_v24, %v17478_v40  ;;  %v3558_v53 = vmul.f32 %v14202_v24, %v17481_v54  ;;  %v3560_v57 = vmul.f32 %v14202_v24, %v17482_v33  ;;  %v17485_v2 = vld [vmem:[#allocation289_spill] sm:$0xff]  ;;  %v17487_v33 = vld [vmem:[#allocation75_spill] sm:$0xff] }
 0x5f1   : > { %17474 = vst [vmem:[#allocation249_spill] sm:$0xff] %v14439_v31  ;;  %8723 = vmatpush1.bf16.msra.mxu1 %v8722_v16  ;;  %6603 = vst.msk [vmem:[#allocation4 + $0x180] sm:$0xff] %vm5529_vm6, %v14439_v31  ;;  %v1917_v16 = vpop.f32.mrb[23].mxu1  ;;  %v3559_v4 = vmul.f32 %v14128_v37, %v17485_v2  ;;  %v17489_v2 = vld [vmem:[#allocation293_spill] sm:$0xff] }
 0x5f2   : > { %8725 = vmatprep.subr.bf16.mxu1 %v8724_v50  ;;  %v8730_v50 = vpack.c.bf16 %v3551_v29, %v3549_v43  ;;  %v14457_v48 = vpop.f32.mrb[24].mxu1  ;;  %v8732_v30 = vpack.c.bf16 %v3556_v23, %v3554_v17  ;;  %v8734_v43 = vpack.c.bf16 %v3555_v52, %v3553_v47  ;;  %v17484_v29 = vld [vmem:[#allocation67_spill] sm:$0xff]  ;;  %v8736_v17 = vpack.c.bf16 %v3560_v57, %v3558_v53  ;;  %v17486_v23 = vld [vmem:[#allocation74_spill] sm:$0xff] }
 0x5f3   : > { %v1923_v40 = vpop.f32.mrb[25].mxu1  ;;  %v3562_v54 = vmul.f32 %v14202_v24, %v17486_v23  ;;  %v17488_v47 = vld [vmem:[#allocation291_spill] sm:$0xff]  ;;  %v17490_v57 = vld [vmem:[#allocation166_spill] sm:$0xff] }
 0x5f4   : > { %v3566_v53 = vmul.f32 %v14202_v24, %v17490_v57  ;;  %v3570_v57 = vmul.f32 %v14202_v24, %v13952_v22  ;;  %v17497_v22 = vld [vmem:[#allocation56_spill] sm:$0xff] }
 0x5f5   : > { %8727 = vmatpush1.bf16.msra.mxu1 %v8726_v26  ;;  %v14463_v26 = vpop.eup %9475 }
 0x5f6   : > { %8729 = vmatprep.subr.bf16.mxu1 %v8728_v14  ;;  %17483 = vst [vmem:[#allocation250_spill] sm:$0xff] %v14463_v26  ;;  %v3557_v14 = vmul.f32 %v14128_v37, %v17484_v29  ;;  %v14469_v55 = vpop.f32.mrb[26].mxu1  ;;  %v3561_v29 = vmul.f32 %v14128_v37, %v17488_v47 }
 0x5f8   : > { %v8738_v52 = vpack.c.bf16 %v3559_v4, %v3557_v14  ;;  %v14493_v14 = vadd.f32 %v14394_v46, %v14388_v1  ;;  %v3572_v1 = vmul.f32 %v14202_v24, %v13956_v9 }
 0x5f9   : > { %8731 = vmatpush1.bf16.msra.mxu1 %v8730_v50  ;;  %v1929_v50 = vpop.f32.mrb[27].mxu1 }
 0x5fa   : > { %8733 = vmatprep.subr.bf16.mxu1 %v8732_v30  ;;  %v3564_v30 = vmul.f32 %v14202_v24, %v17487_v33  ;;  %v14483_v23 = vpop.f32.mrb[28].mxu1  ;;  %v17491_v33 = vld [vmem:[#allocation164_spill] sm:$0xff] }
 0x5fb   : > { %v3568_v49 = vmul.f32 %v14202_v24, %v17491_v33  ;;  %v8748_v33 = vpack.c.bf16 %v3572_v1, %v3570_v57  ;;  %v17501_v57 = vld [vmem:[#allocation298_spill] sm:$0xff] }
 0x5fc   : > { %3682 = vmatmul.mubr.f32.vlgmr.msra.gmra.mrb[48].mxu1 %v14252_v51  ;;  %v3563_v51 = vmul.f32 %v14128_v37, %v17489_v2  ;;  %v8740_v7 = vpack.c.bf16 %v3564_v30, %v3562_v54  ;;  %v17494_v30 = vld [vmem:[#allocation52_spill] sm:$0xff]  ;;  %v3573_v1 = vmul.f32 %v14128_v37, %v17501_v57 }
 0x5fd   : > { %5720 = vperm.xlu1 %9139, %v14463_v26   ;;  %8735 = vmatpush1.bf16.msra.mxu1 %v8734_v43  ;;  %v17492_v43 = vld [vmem:[#allocation189_spill] sm:$0xff]  ;;  %v3567_v47 = vmul.f32 %v14128_v37, %v17494_v30 }
 0x5fe   : > { %3687 = vmatprep.mubr.f32.mxu1 %v1905_v36  ;;  %8737 = vmatprep.subr.bf16.mxu1 %v8736_v17  ;;  %v14488_v36 = vpop.f32.mrb[29].mxu1  ;;  %v8742_v4 = vpack.c.bf16 %v3563_v51, %v3561_v29  ;;  %v17493_v17 = vld [vmem:[#allocation53_spill] sm:$0xff] }
 0x5ff   : > { %v3565_v54 = vmul.f32 %v14128_v37, %v17493_v17  ;;  %v14499_v2 = vpop.f32.mrb[30].mxu1  ;;  %v17499_v17 = vld [vmem:[#allocation77_spill] sm:$0xff] }
 0x600   : > { %3688 = vmatmul.mubr.f32.gmra.mrb[50].mxu1 %v14417_v60  ;;  %v8744_v60 = vpack.c.bf16 %v3568_v49, %v3566_v53  ;;  %v14506_v46 = vpop.f32.mrb[31].mxu1  ;;  %v17496_v49 = vld [vmem:[#allocation296_spill] sm:$0xff]  ;;  %v3571_v53 = vmul.f32 %v14128_v37, %v17497_v22 }
 0x601   : > { %4523 = vperm.xlu1 %9139, %v17492_v43   ;;  %8739 = vmatpush1.bf16.msra.mxu1 %v8738_v52  ;;  %v8746_v29 = vpack.c.bf16 %v3567_v47, %v3565_v54  ;;  %v3569_v51 = vmul.f32 %v14128_v37, %v17496_v49 }
 0x602   : > { %3693 = vmatprep.mubr.f32.mxu1 %v1911_v35  ;;  %8741 = vmatprep.subr.bf16.mxu1 %v8740_v7  ;;  %v14508_v7 = vld [vmem:[#allocation4 + $0x178] sm:$0xff]  ;;  %v14510_v35 = vpop.permute.xlu0 %5705 }
 0x603   : > { %17495 = vst [vmem:[#allocation251_spill] sm:$0xff] %v14508_v7 }
 0x604   : > { %3694 = vmatmul.mubr.f32.gmra.mrb[52].mxu1 %v14432_v0 }
 0x605   : > { %8743 = vmatpush1.bf16.msra.mxu1 %v8742_v4  ;;  %3699 = vmatprep.mubr.f32.mxu1 %v1917_v16  ;;  %v14516_v9 = vpop.f32.mrb[32].mxu1  ;;  %v3574_v16 = vmul.f32 %v14202_v24, %v17499_v17  ;;  %v17500_v4 = vld [vmem:[#allocation81_spill] sm:$0xff] }
 0x606   : > { %8745 = vmatprep.subr.bf16.mxu1 %v8744_v60  ;;  %v3576_v30 = vmul.f32 %v14202_v24, %v17500_v4  ;;  %v14526_v54 = vpop.f32.mrb[33].mxu1  ;;  %v8750_v60 = vpack.c.bf16 %v3571_v53, %v3569_v51  ;;  %v17503_v4 = vld [vmem:[#allocation338_spill] sm:$0xff]  ;;  %v17505_v51 = vld [vmem:[#allocation155_spill] sm:$0xff]  ;;  %v17506_v53 = vld [vmem:[#allocation212_spill] sm:$0xff] }
 0x607   : > { %v4072_v52 = vpop.xlane.xlu1 %4071  ;;  %v4091_v57 = vmax.f32 %v17506_v53, %v17505_v51  ;;  %v17513_v53 = vld [vmem:[#allocation343_spill] sm:$0xff] }
 0x608   : > { %v14519_v0 = vmax.f32 %v14508_v7, %v4072_v52  ;;  %3700 = vmatmul.mubr.f32.gmra.mrb[54].mxu1 %v14447_v10  ;;  %v17502_v52 = vld [vmem:[#allocation300_spill] sm:$0xff]  ;;  %v4509_v10 = vpop.permute.xlu0 %4508  ;;  %v8752_v17 = vpack.c.bf16 %v3576_v30, %v3574_v16  ;;  %v17508_v16 = vld [vmem:[#allocation95_spill] sm:$0xff] }
 0x609   : > { %8747 = vmatpush1.bf16.msra.mxu1 %v8746_v29  ;;  %3705 = vmatprep.mubr.f32.mxu1 %v1923_v40  ;;  %v3575_v49 = vmul.f32 %v14128_v37, %v17502_v52  ;;  %v14536_v22 = vpop.f32.mrb[34].mxu1  ;;  %v3578_v40 = vmul.f32 %v14202_v24, %v17503_v4  ;;  %v17504_v29 = vld [vmem:[#allocation340_spill] sm:$0xff]  ;;  %v17507_v52 = vld [vmem:[#allocation302_spill] sm:$0xff]  ;;  %v4788_v30 = vsub.f32 %v17508_v16, %v4509_v10 }
 0x60a   : > { %17498 = vst [vmem:[#allocation151_spill] sm:$0xff] %v14519_v0  ;;  %6602 = vst.msk [vmem:[#allocation4 + $0x178] sm:$0xff] %vm5529_vm6, %v14519_v0  ;;  %8749 = vmatprep.subr.bf16.mxu1 %v8748_v33  ;;  %v3580_v7 = vmul.f32 %v14202_v24, %v17504_v29  ;;  %v14543_v33 = vpop.f32.mrb[35].mxu1  ;;  %v3577_v26 = vmul.f32 %v14128_v37, %v17507_v52  ;;  %v3579_v29 = vmul.f32 %v14128_v37, %v17509_v12  ;;  %v17511_v0 = vld [vmem:[#allocation93_spill] sm:$0xff]  ;;  %v17515_v12 = vld [vmem:[#allocation183_spill] sm:$0xff] }
 0x60b   : > { %v14530_v47 = vpop.permute.xlu1 %5700  ;;  %v8754_v31 = vpack.c.bf16 %v3575_v49, %v3573_v1  ;;  %v3584_v52 = vmul.f32 %v14202_v24, %v17513_v53  ;;  %v17514_v1 = vld [vmem:[#allocation94_spill] sm:$0xff]  ;;  %v4264_v16 = vsub.f32 %v17515_v12, %v17411_v63  ;;  %v17519_v63 = vld [vmem:[#allocation345_spill] sm:$0xff] }
 0x60c   : > { %3706 = vmatmul.mubr.f32.gmra.mrb[56].mxu1 %v14457_v48  ;;  %v4787_v49 = vsub.f32 %v17514_v1, %v4509_v10  ;;  %v8758_v53 = vpack.c.bf16 %v3579_v29, %v3577_v26  ;;  %v3586_v10 = vmul.f32 %v14202_v24, %v17518_v27  ;;  %v17522_v12 = vld [vmem:[#allocation346_spill] sm:$0xff] }
 0x60d   : > { %8751 = vmatpush1.bf16.msra.mxu1 %v8750_v60  ;;  %3711 = vmatprep.mubr.f32.mxu1 %v1929_v50  ;;  %v14552_v48 = vpop.f32.mrb[36].mxu1  ;;  %v8756_v60 = vpack.c.bf16 %v3580_v7, %v3578_v40  ;;  %v17512_v50 = vld [vmem:[#allocation342_spill] sm:$0xff]  ;;  %v4343_v26 = vmul.f32 1.442695, %v4264_v16 }
 0x60e   : > { %8753 = vmatprep.subr.bf16.mxu1 %v8752_v17  ;;  %4092 = vmax.xlane.f32.xlu0 %v4091_v57  ;;  %v3582_v17 = vmul.f32 %v14202_v24, %v17512_v50  ;;  %v14561_v57 = vpop.f32.mrb[37].mxu1  ;;  %v17517_v50 = vld [vmem:[#allocation307_spill] sm:$0xff] }
 0x60f   : > { %v4504_v4 = vpop.permute.xlu1 %4503 }
 0x610   : > { %v4785_v61 = vsub.f32 %v17510_v18, %v4504_v4  ;;  %v4786_v51 = vsub.f32 %v17511_v0, %v4504_v4  ;;  %3712 = vmatmul.mubr.f32.gmra.mrb[58].mxu1 %v14469_v55  ;;  %v17516_v0 = vld [vmem:[#allocation304_spill] sm:$0xff]  ;;  %v4943_v4 = vmul.f32 1.442695, %v4788_v30  ;;  %v3583_v55 = vmul.f32 %v14128_v37, %v17517_v50  ;;  %v17520_v30 = vld [vmem:[#allocation310_spill] sm:$0xff] }
 0x611   : > { %8755 = vmatpush1.bf16.msra.mxu1 %v8754_v31  ;;  %3717 = vmatprep.mubr.f32.mxu1 %v14488_v36  ;;  %v3581_v40 = vmul.f32 %v14128_v37, %v17516_v0  ;;  %v14573_v1 = vpop.f32.mrb[38].mxu1  ;;  %v8760_v31 = vpack.c.bf16 %v3584_v52, %v3582_v17  ;;  %v3585_v29 = vmul.f32 %v14128_v37, %v17520_v30  ;;  %v17524_v0 = vld [vmem:[#allocation315_spill] sm:$0xff] }
 0x612   : > { %v4937_v18 = vmul.f32 1.442695, %v4785_v61  ;;  %v4939_v7 = vmul.f32 1.442695, %v4786_v51  ;;  %8757 = vmatprep.subr.bf16.mxu1 %v8756_v60  ;;  %v3588_v61 = vmul.f32 %v14202_v24, %v17519_v63  ;;  %v14578_v36 = vpop.f32.mrb[39].mxu1  ;;  %v17521_v60 = vld [vmem:[#allocation312_spill] sm:$0xff] }
 0x613   : > { %v4941_v51 = vmul.f32 1.442695, %v4787_v49  ;;  %v8762_v27 = vpack.c.bf16 %v3583_v55, %v3581_v40  ;;  %v3587_v17 = vmul.f32 %v14128_v37, %v17521_v60  ;;  %v3590_v49 = vmul.f32 %v14202_v24, %v17522_v12 }
 0x614   : > { %9477 = vpow2.f32 %v4937_v18  ;;  %3718 = vmatmul.mubr.f32.gmra.mrb[60].mxu1 %v14483_v23  ;;  %v8764_v23 = vpack.c.bf16 %v3588_v61, %v3586_v10  ;;  %v17523_v18 = vld [vmem:[#allocation347_spill] sm:$0xff]  ;;  %v3589_v40 = vmul.f32 %v14128_v37, %v17524_v0  ;;  %v17526_v10 = vld [vmem:[#allocation348_spill] sm:$0xff] }
 0x615   : > { %9479 = vpow2.f32 %v4939_v7  ;;  %8759 = vmatpush1.bf16.msra.mxu1 %v8758_v53  ;;  %3723 = vmatprep.mubr.f32.mxu1 %v14506_v46  ;;  %v14585_v52 = vpop.f32.mrb[40].mxu1  ;;  %v3592_v16 = vmul.f32 %v14202_v24, %v17523_v18  ;;  %v8766_v7 = vpack.c.bf16 %v3587_v17, %v3585_v29  ;;  %v17529_v29 = vld [vmem:[#allocation322_spill] sm:$0xff]  ;;  %v17530_v18 = vld [vmem:[#allocation181_spill] sm:$0xff] }
 0x616   : > { %8761 = vmatprep.subr.bf16.mxu1 %v8760_v31  ;;  %9481 = vpow2.f32 %v4943_v4  ;;  %v14592_v46 = vpop.f32.mrb[41].mxu1  ;;  %v17525_v4 = vld [vmem:[#allocation318_spill] sm:$0xff]  ;;  %v3595_v60 = vmul.f32 %v14128_v37, %v17529_v29 }
 0x617   : > { %9483 = vpow2.f32 %v4941_v51  ;;  %v3591_v53 = vmul.f32 %v14128_v37, %v17525_v4  ;;  %v8768_v55 = vpack.c.bf16 %v3592_v16, %v3590_v49  ;;  %v17527_v31 = vld [vmem:[#allocation350_spill] sm:$0xff]  ;;  %v4263_v16 = vsub.f32 %v17530_v18, %v17424_v25 }
 0x618   : > { %3724 = vmatmul.mubr.f32.gmra.mrb[62].mxu1 %v14499_v2  ;;  %9485 = vpow2.f32 %v4343_v26  ;;  %v3594_v2 = vmul.f32 %v14202_v24, %v17526_v10  ;;  %v3596_v63 = vmul.f32 %v14202_v24, %v17527_v31  ;;  %v17535_v31 = vld [vmem:[#allocation208_spill] sm:$0xff] }
 0x619   : > { %8763 = vmatpush1.bf16.msra.mxu1 %v8762_v27  ;;  %3794 = vmatprep.mubr.f32.mxu1 %v14526_v54  ;;  %v14599_v50 = vpop.f32.mrb[42].mxu1  ;;  %v8770_v26 = vpack.c.bf16 %v3591_v53, %v3589_v40  ;;  %v17528_v27 = vld [vmem:[#allocation320_spill] sm:$0xff]  ;;  %v17533_v53 = vld [vmem:[#allocation327_spill] sm:$0xff]  ;;  %v4341_v29 = vmul.f32 1.442695, %v4263_v16  ;;  %v17544_v16 = vpack.c.bf16 %v14322_v11, %v14312_v34 }
 0x61a   : > { %8765 = vmatprep.subr.bf16.mxu1 %v8764_v23  ;;  %v14605_v61 = vpop.f32.mrb[43].mxu1  ;;  %v3593_v30 = vmul.f32 %v14128_v37, %v17528_v27  ;;  %v8772_v12 = vpack.c.bf16 %v3596_v63, %v3594_v2  ;;  %v17532_v40 = vld [vmem:[#allocation324_spill] sm:$0xff]  ;;  %v17534_v2 = vld [vmem:[#allocation235_spill] sm:$0xff]  ;;  %v17536_v27 = vpack.c.bf16 %v14288_v32, %v14284_v41  ;;  %v17541_v41 = vpack.c.bf16 %v14296_v44, %v14292_v21 }
 0x61b   : > { %v3597_v4 = vmul.f32 %v14128_v37, %v17532_v40  ;;  %v4088_v63 = vmax.f32 %v17535_v31, %v17534_v2  ;;  %v17539_v40 = vld [vmem:[#allocation333_spill] sm:$0xff]  ;;  %9487 = vpow2.f32 %v4341_v29  ;;  %v17545_v44 = vpack.c.bf16 %v14156_v15, %v14150_v59  ;;  %v14676_v59 = vld [vmem:[#allocation4 + $0x188] sm:$0xff]  ;;  %v5594_v15 = vld [vmem:[#allocation6] sm:$0xff] }
 0x61c   : > { %v8774_v0 = vpack.c.bf16 %v3595_v60, %v3593_v30  ;;  %v14635_v30 = vld [vmem:[#allocation4 + $0x190] sm:$0xff]  ;;  %17549 = vst [vmem:[#allocation55_spill] sm:$0xff] %v14676_v59 }
 0x61d   : > { %8767 = vmatpush1.bf16.msra.mxu1 %v8766_v7  ;;  %v14611_v17 = vpop.f32.mrb[44].mxu1  ;;  %17537 = vst [vmem:[#allocation117_spill] sm:$0xff] %v14635_v30  ;;  %v5596_v29 = vld [vmem:[#allocation6 + $0x10] sm:$0xff] }
 0x61e   : > { %v9478_v54 = vpop.eup %9477  ;;  %8769 = vmatprep.subr.bf16.mxu1 %v8768_v55  ;;  %v14613_v49 = vpop.f32.mrb[45].mxu1  ;;  %v3599_v55 = vmul.f32 %v14128_v37, %v17533_v53  ;;  %v3603_v53 = vmul.f32 %v14128_v37, %v17539_v40  ;;  %v17554_v40 = vld [vmem:[#allocation99_spill] sm:$0xff] }
 0x61f   : > { %v9480_v51 = vpop.eup %9479 }
 0x620   : > { %6166 = vmatprep.mubr.f32.mxu0 %v9480_v51  ;;  %v9482_v23 = vpop.eup %9481  ;;  %v8778_v60 = vpack.c.bf16 %v3599_v55, %v3597_v4  ;;  %v17546_v4 = vpack.c.bf16 %v14334_v39, %v14326_v28  ;;  %v5595_v28 = vld [vmem:[#allocation6 + $0x8] sm:$0xff] }
 0x621   : > { %6167 = vmatmul.mubr.f32.gmra.mrb[232].mxu0 %v9478_v54  ;;  %8771 = vmatpush1.bf16.msra.mxu1 %v8770_v26  ;;  %v9484_v24 = vpop.eup %9483  ;;  %v14623_v10 = vpop.f32.mrb[46].mxu1 }
 0x622   : > { %6171 = vmatprep.mubr.f32.mxu0 %v9482_v23  ;;  %8773 = vmatprep.subr.bf16.mxu1 %v8772_v12  ;;  %v14617_v7 = vpop.eup %9485  ;;  %v14627_v26 = vpop.f32.mrb[47].mxu1  ;;  %v14630_v25 = vadd.f32 %v9484_v24, %v9482_v23  ;;  %v17538_v12 = vld [vmem:[#allocation330_spill] sm:$0xff] }
 0x623   : > { %17531 = vst [vmem:[#allocation252_spill] sm:$0xff] %v14617_v7  ;;  %v3601_v18 = vmul.f32 %v14128_v37, %v17538_v12  ;;  %v17542_v37 = vpack.c.bf16 %v14308_v5, %v14300_v3  ;;  %v17548_v3 = vld [vmem:[#allocation197_spill] sm:$0xff] }
 0x624   : > { %5735 = vperm.xlu0 %9138, %v14617_v7   ;;  %v17540_v7 = vld [vmem:[#allocation202_spill] sm:$0xff] }
 0x625   : > { %6172 = vmatmul.mubr.f32.gmra.mrb[234].mxu0 %v9484_v24  ;;  %8775 = vmatpush1.bf16.msra.mxu1 %v8774_v0  ;;  %v8782_v32 = vpack.c.bf16 %v3603_v53, %v3601_v18  ;;  %v17543_v24 = vpack.c.bf16 %v14145_v8, %v14141_v58  ;;  %v14659_v21 = vpop.eup %9487  ;;  %v17547_v58 = vpack.c.bf16 %v14164_v42, %v14160_v62  ;;  %v17550_v62 = vld [vmem:[#allocation305_spill] sm:$0xff] }
 0x626   : > { %4089 = vmax.xlane.f32.xlu1 %v4088_v63  ;;  %8777 = vmatprep.subr.bf16.mxu1 %v17536_v27  ;;  %v14671_v8 = vadd.f32 %v9480_v51, %v9478_v54  ;;  %v5978_v42 = vmul.f32 %v17550_v62, %v5594_v15  ;;  %v17552_v63 = vld [vmem:[#allocation239_spill] sm:$0xff]  ;;  %v5597_v15 = vld [vmem:[#allocation6 + $0x18] sm:$0xff] }
 0x627   : > { %v4081_v0 = vpop.xlane.xlu0 %4080 }
 0x628   : > { %4538 = vperm.xlu0 %9138, %v17540_v7   ;;  %v14643_v23 = vmax.f32 %v14635_v30, %v4081_v0 }
 0x629   : > { %8779 = vmatpush1.bf16.msra.mxu1 %v8778_v60 }
 0x62a   : > { %8781 = vmatprep.subr.bf16.mxu1 %v17541_v41  ;;  %6605 = vst.msk [vmem:[#allocation4 + $0x190] sm:$0xff] %vm5529_vm6, %v14643_v23 }
 0x62d   : > { %8783 = vmatpush1.bf16.msra.mxu1 %v8782_v32  ;;  %v17556_v32 = vld [vmem:[#allocation97_spill] sm:$0xff] }
 0x62e   : > { %8785 = vmatprep.subr.bf16.mxu1 %v17542_v37 }
 0x62f   : > { %v14678_v5 = vpop.permute.xlu0 %5715 }
 0x631   : > { %8787 = vmatpush1.bf16.msra.mxu1 %v17543_v24  ;;  %v17557_v24 = vld [vmem:[#allocation76_spill] sm:$0xff] }
 0x632   : > { %8789 = vmatprep.subr.bf16.mxu1 %v17544_v16  ;;  %v5980_v16 = vmul.f32 %v17557_v24, %v5596_v29  ;;  %v17561_v29 = vld [vmem:[#allocation82_spill] sm:$0xff] }
 0x633   : > { %v4519_v51 = vpop.permute.xlu0 %4518 }
 0x634   : > { %v4792_v53 = vsub.f32 %v17554_v40, %v4519_v51  ;;  %v17562_v40 = vld [vmem:[#allocation351_spill] sm:$0xff] }
 0x635   : > { %8791 = vmatpush1.bf16.msra.mxu1 %v17545_v44 }
 0x636   : > { %8793 = vmatprep.subr.bf16.mxu1 %v17546_v4  ;;  %v17559_v4 = vld [vmem:[#allocation190_spill] sm:$0xff] }
 0x637   : > { %5730 = vperm.xlu1 %9139, %v14659_v21  }
 0x639   : > { %8795 = vmatpush1.bf16.msra.mxu1 %v17547_v58  ;;  %v4266_v58 = vsub.f32 %v17559_v4, %v17469_v56  ;;  %v5598_v56 = vld [vmem:[#allocation6 + $0x20] sm:$0xff] }
 0x63b   : > { %4533 = vperm.xlu1 %9139, %v17548_v3  }
 0x63c   : > { %3795 = vmatmul.mubr.f32.vlgmr.msra.gmra.mrb[48].mxu1 %v14516_v9 }
 0x63d   : > { %3800 = vmatprep.mubr.f32.mxu1 %v14543_v33 }
 0x640   : > { %v4078_v34 = vpop.xlane.xlu1 %4077  ;;  %3801 = vmatmul.mubr.f32.gmra.mrb[50].mxu1 %v14536_v22  ;;  %v17551_v22 = vld [vmem:[#allocation325_spill] sm:$0xff] }
 0x641   : > { %v14682_v11 = vmax.f32 %v14676_v59, %v4078_v34  ;;  %3806 = vmatprep.mubr.f32.mxu1 %v14561_v57  ;;  %v6108_v39 = vpop.f32.mrb[208].mxu0  ;;  %v5979_v55 = vmul.f32 %v17551_v22, %v5595_v28  ;;  %v17553_v57 = vld [vmem:[#allocation215_spill] sm:$0xff] }
 0x642   : > { %v6427_v9 = vadd.f32 %v6108_v39, %v5978_v42  ;;  %v6110_v33 = vpop.f32.mrb[209].mxu0  ;;  %v4097_v27 = vmax.f32 %v17553_v57, %v17552_v63  ;;  %v4951_v39 = vmul.f32 1.442695, %v4792_v53 }
 0x643   : > { %6604 = vst.msk [vmem:[#allocation4 + $0x188] sm:$0xff] %vm5529_vm6, %v14682_v11 }
 0x644   : > { %v14688_v54 = vpop.permute.xlu1 %5710  ;;  %3807 = vmatmul.mubr.f32.gmra.mrb[52].mxu1 %v14552_v48  ;;  %6491 = vst.msk [vmem:[#allocation6] sm:$0xff] %vm2057_vm4, %v6427_v9  ;;  %v17555_v48 = vld [vmem:[#allocation96_spill] sm:$0xff]  ;;  %v17560_v9 = vld [vmem:[#allocation339_spill] sm:$0xff] }
 0x645   : > { %3812 = vmatprep.mubr.f32.mxu1 %v14578_v36  ;;  %v6113_v60 = vpop.f32.mrb[210].mxu0  ;;  %v17558_v36 = vld [vmem:[#allocation98_spill] sm:$0xff]  ;;  %v5981_v33 = vmul.f32 %v17560_v9, %v5597_v15 }
 0x646   : > { %v6428_v12 = vadd.f32 %v6113_v60, %v5979_v55  ;;  %v6115_v18 = vpop.f32.mrb[211].mxu0  ;;  %v4791_v44 = vsub.f32 %v17558_v36, %v4519_v51  ;;  %v4347_v51 = vmul.f32 1.442695, %v4266_v58  ;;  %v5982_v60 = vmul.f32 %v17561_v29, %v5598_v56  ;;  %v17565_v58 = vld [vmem:[#allocation187_spill] sm:$0xff]  ;;  %v14746_v56 = vld [vmem:[#allocation4 + $0x198] sm:$0xff] }
 0x647   : > { %4098 = vmax.xlane.f32.xlu0 %v4097_v27  ;;  %v4265_v15 = vsub.f32 %v17565_v58, %v17492_v43  ;;  %17571 = vst [vmem:[#allocation149_spill] sm:$0xff] %v14746_v56 }
 0x648   : > { %v4514_v0 = vpop.permute.xlu1 %4513  ;;  %3813 = vmatmul.mubr.f32.gmra.mrb[54].mxu1 %v14573_v1  ;;  %6492 = vst.msk [vmem:[#allocation6 + $0x8] sm:$0xff] %vm2057_vm4, %v6428_v12 }
 0x649   : > { %v4789_v41 = vsub.f32 %v17555_v48, %v4514_v0  ;;  %v4790_v37 = vsub.f32 %v17556_v32, %v4514_v0  ;;  %3818 = vmatprep.mubr.f32.mxu1 %v14592_v46  ;;  %v6118_v34 = vpop.f32.mrb[212].mxu0  ;;  %v4949_v46 = vmul.f32 1.442695, %v4791_v44  ;;  %v5600_v0 = vld [vmem:[#allocation6 + $0x30] sm:$0xff] }
 0x64a   : > { %v6429_v1 = vadd.f32 %v6118_v34, %v5980_v16  ;;  %v6120_v28 = vpop.f32.mrb[213].mxu0  ;;  %v5984_v24 = vmul.f32 %v14314_v20, %v5600_v0  ;;  %v17567_v34 = vld [vmem:[#allocation210_spill] sm:$0xff] }
 0x64b   : > { %v4945_v62 = vmul.f32 1.442695, %v4789_v41  ;;  %v4947_v42 = vmul.f32 1.442695, %v4790_v37  ;;  %v17569_v28 = vld [vmem:[#allocation213_spill] sm:$0xff] }
 0x64c   : > { %3819 = vmatmul.mubr.f32.gmra.mrb[56].mxu1 %v14585_v52  ;;  %6493 = vst.msk [vmem:[#allocation6 + $0x10] sm:$0xff] %vm2057_vm4, %v6429_v1  ;;  %v5599_v52 = vld [vmem:[#allocation6 + $0x28] sm:$0xff]  ;;  %v4345_v1 = vmul.f32 1.442695, %v4265_v15 }
 0x64d   : > { %9489 = vpow2.f32 %v4945_v62  ;;  %3824 = vmatprep.mubr.f32.mxu1 %v14605_v61  ;;  %v6123_v22 = vpop.f32.mrb[214].mxu0  ;;  %v5983_v53 = vmul.f32 %v17562_v40, %v5599_v52 }
 0x64e   : > { %9491 = vpow2.f32 %v4947_v42  ;;  %v6430_v55 = vadd.f32 %v6123_v22, %v5981_v33  ;;  %v6125_v27 = vpop.f32.mrb[215].mxu0  ;;  %v14732_v42 = vld [vmem:[#allocation4 + $0x1a0] sm:$0xff] }
 0x64f   : > { %9493 = vpow2.f32 %v4951_v39  ;;  %17568 = vst [vmem:[#allocation54_spill] sm:$0xff] %v14732_v42 }
 0x650   : > { %3825 = vmatmul.mubr.f32.gmra.mrb[58].mxu1 %v14599_v50  ;;  %6494 = vst.msk [vmem:[#allocation6 + $0x18] sm:$0xff] %vm2057_vm4, %v6430_v55  ;;  %9495 = vpow2.f32 %v4949_v46  ;;  %v17570_v46 = vld [vmem:[#allocation207_spill] sm:$0xff] }
 0x651   : > { %3830 = vmatprep.mubr.f32.mxu1 %v14613_v49  ;;  %9497 = vpow2.f32 %v4347_v51  ;;  %v6128_v61 = vpop.f32.mrb[216].mxu0  ;;  %v5601_v51 = vld [vmem:[#allocation6 + $0x38] sm:$0xff] }
 0x652   : > { %v6431_v12 = vadd.f32 %v6128_v61, %v5982_v60  ;;  %v6130_v18 = vpop.f32.mrb[217].mxu0  ;;  %9499 = vpow2.f32 %v4345_v1  ;;  %v5985_v55 = vmul.f32 %v14269_v19, %v5601_v51 }
 0x653   : > { %v5602_v18 = vld [vmem:[#allocation6 + $0x40] sm:$0xff] }
 0x654   : > { %3831 = vmatmul.mubr.f32.gmra.mrb[60].mxu1 %v14611_v17  ;;  %6495 = vst.msk [vmem:[#allocation6 + $0x20] sm:$0xff] %vm2057_vm4, %v6431_v12  ;;  %v17563_v17 = vmov 0.0   ;;  %v5986_v19 = vmul.f32 %v14530_v47, %v5602_v18 }
 0x655   : > { %3836 = vmatprep.mubr.f32.mxu1 %v14627_v26  ;;  %v6133_v48 = vpop.f32.mrb[218].mxu0 }
 0x656   : > { %v6432_v32 = vadd.f32 %v6133_v48, %v5983_v53  ;;  %v6135_v49 = vpop.f32.mrb[219].mxu0  ;;  %v17572_v53 = vld [vmem:[#allocation241_spill] sm:$0xff]  ;;  %v17574_v48 = vld [vmem:[#allocation103_spill] sm:$0xff] }
 0x657   : > { %v9490_v50 = vpop.eup %9489  ;;  %v5603_v49 = vld [vmem:[#allocation6 + $0x48] sm:$0xff] }
 0x658   : > { %v9492_v41 = vpop.eup %9491  ;;  %3837 = vmatmul.mubr.f32.gmra.mrb[62].mxu1 %v14623_v10  ;;  %6496 = vst.msk [vmem:[#allocation6 + $0x28] sm:$0xff] %vm2057_vm4, %v6432_v32  ;;  %v17566_v10 = vld [vmem:[#allocation237_spill] sm:$0xff]  ;;  %v5987_v47 = vmul.f32 %v14510_v35, %v5603_v49  ;;  %v17582_v49 = vld [vmem:[#allocation214_spill] sm:$0xff] }
 0x659   : > { %6176 = vmatprep.mubr.f32.mxu0 %v9492_v41  ;;  %v9494_v37 = vpop.eup %9493  ;;  %3918 = vmatprep.mubr.f32.mxu1 %v17563_v17  ;;  %v6138_v16 = vpop.f32.mrb[220].mxu0  ;;  %v4094_v62 = vmax.f32 %v17567_v34, %v17566_v10  ;;  %v14743_v33 = vadd.f32 %v9492_v41, %v9490_v50  ;;  %v17576_v17 = vld [vmem:[#allocation101_spill] sm:$0xff]  ;;  %v5147_v10 = vld [vmem:[#allocation5 + $0x10] sm:$0xff] }
 0x65a   : > { %6177 = vmatmul.mubr.f32.gmra.mrb[236].mxu0 %v9490_v50  ;;  %v9496_v26 = vpop.eup %9495  ;;  %v6433_v36 = vadd.f32 %v6138_v16, %v5984_v24  ;;  %v6140_v44 = vpop.f32.mrb[221].mxu0  ;;  %v17573_v50 = vld [vmem:[#allocation218_spill] sm:$0xff] }
 0x65b   : > { %6181 = vmatprep.mubr.f32.mxu0 %v9494_v37  ;;  %v14722_v4 = vpop.eup %9497  ;;  %v14730_v20 = vadd.f32 %v9496_v26, %v9494_v37  ;;  %v4103_v0 = vmax.f32 %v17573_v50, %v17572_v53  ;;  %v17575_v37 = vld [vmem:[#allocation100_spill] sm:$0xff]  ;;  %v17594_v50 = vld [vmem:[#allocation211_spill] sm:$0xff] }
 0x65c   : > { %17564 = vst [vmem:[#allocation182_spill] sm:$0xff] %v14722_v4  ;;  %6497 = vst.msk [vmem:[#allocation6 + $0x30] sm:$0xff] %vm2057_vm4, %v6433_v36  ;;  %v14740_v43 = vpop.eup %9499  ;;  %v17577_v36 = vld [vmem:[#allocation102_spill] sm:$0xff]  ;;  %v4270_v30 = vsub.f32 %v17594_v50, %v17569_v28 }
 0x65d   : > { %5745 = vperm.xlu0 %9138, %v14722_v4  }
 0x65e   : > { %6182 = vmatmul.mubr.f32.gmra.mrb[238].mxu0 %v9496_v26 }
 0x65f   : > { %4095 = vmax.xlane.f32.xlu1 %v4094_v62  ;;  %v17578_v62 = vld [vmem:[#allocation201_spill] sm:$0xff] }
 0x660   : > { %v4087_v39 = vpop.xlane.xlu0 %4086  ;;  %v4268_v1 = vsub.f32 %v17578_v62, %v17540_v7  ;;  %v14794_v62 = vld [vmem:[#allocation4 + $0x1a8] sm:$0xff] }
 0x661   : > { %4548 = vperm.xlu0 %9138, %v17569_v28   ;;  %v14736_v9 = vmax.f32 %v14732_v42, %v4087_v39  ;;  %17587 = vst [vmem:[#allocation255_spill] sm:$0xff] %v14794_v62 }
 0x662   : > { %v4351_v18 = vmul.f32 1.442695, %v4268_v1 }
 0x663   : > { %6607 = vst.msk [vmem:[#allocation4 + $0x1a0] sm:$0xff] %vm5529_vm6, %v14736_v9 }
 0x669   : > { %v14748_v22 = vpop.permute.xlu0 %5725 }
 0x66d   : > { %v4529_v40 = vpop.permute.xlu0 %4528 }
 0x66e   : > { %v4796_v41 = vsub.f32 %v17574_v48, %v4529_v40  ;;  %v4795_v44 = vsub.f32 %v17577_v36, %v4529_v40  ;;  %v17580_v48 = vld [vmem:[#allocation195_spill] sm:$0xff] }
 0x670   : > { %5740 = vperm.xlu1 %9139, %v14740_v43  }
 0x674   : > { %4543 = vperm.xlu1 %9139, %v17570_v46   ;;  %v6143_v60 = vpop.f32.mrb[222].mxu0 }
 0x675   : > { %v6434_v52 = vadd.f32 %v6143_v60, %v5985_v55  ;;  %v6145_v61 = vpop.f32.mrb[223].mxu0  ;;  %v4959_v55 = vmul.f32 1.442695, %v4796_v41  ;;  %v4957_v60 = vmul.f32 1.442695, %v4795_v44  ;;  %v4267_v41 = vsub.f32 %v17580_v48, %v17548_v3 }
 0x677   : > { %6498 = vst.msk [vmem:[#allocation6 + $0x38] sm:$0xff] %vm2057_vm4, %v6434_v52 }
 0x679   : > { %v4084_v27 = vpop.xlane.xlu1 %4083 }
 0x67a   : > { %v14752_v29 = vmax.f32 %v14746_v56, %v4084_v27  ;;  %v17633_v56 = vld [vmem:[#allocation115_spill] sm:$0xff] }
 0x67c   : > { %6606 = vst.msk [vmem:[#allocation4 + $0x198] sm:$0xff] %vm5529_vm6, %v14752_v29 }
 0x67d   : > { %v14757_v12 = vpop.permute.xlu1 %5720  ;;  %v6148_v26 = vpop.f32.mrb[224].mxu0 }
 0x67e   : > { %v6435_v58 = vadd.f32 %v6148_v26, %v5986_v19  ;;  %v6150_v15 = vpop.f32.mrb[225].mxu0  ;;  %v17584_v26 = vld [vmem:[#allocation224_spill] sm:$0xff] }
 0x67f   : > { %v17586_v15 = vld [vmem:[#allocation219_spill] sm:$0xff] }
 0x680   : > { %4104 = vmax.xlane.f32.xlu0 %v4103_v0  ;;  %6499 = vst.msk [vmem:[#allocation6 + $0x40] sm:$0xff] %vm2057_vm4, %v6435_v58 }
 0x681   : > { %v4524_v32 = vpop.permute.xlu1 %4523  ;;  %v6153_v27 = vpop.f32.mrb[226].mxu0 }
 0x682   : > { %v4793_v24 = vsub.f32 %v17575_v37, %v4524_v32  ;;  %v4794_v16 = vsub.f32 %v17576_v17, %v4524_v32  ;;  %v6436_v52 = vadd.f32 %v6153_v27, %v5987_v47  ;;  %v6155_v61 = vpop.f32.mrb[227].mxu0  ;;  %v17581_v32 = vld [vmem:[#allocation238_spill] sm:$0xff]  ;;  %v4349_v17 = vmul.f32 1.442695, %v4267_v41  ;;  %v5604_v47 = vld [vmem:[#allocation6 + $0x50] sm:$0xff] }
 0x683   : > { %v4100_v37 = vmax.f32 %v17582_v49, %v17581_v32  ;;  %v17591_v41 = vld [vmem:[#allocation106_spill] sm:$0xff] }
 0x684   : > { %v4953_v39 = vmul.f32 1.442695, %v4793_v24  ;;  %v4955_v51 = vmul.f32 1.442695, %v4794_v16  ;;  %6500 = vst.msk [vmem:[#allocation6 + $0x48] sm:$0xff] %vm2057_vm4, %v6436_v52  ;;  %v14780_v16 = vld [vmem:[#allocation4 + $0x1b0] sm:$0xff] }
 0x685   : > { %17583 = vst [vmem:[#allocation157_spill] sm:$0xff] %v14780_v16  ;;  %v17589_v52 = vld [vmem:[#allocation221_spill] sm:$0xff] }
 0x686   : > { %9501 = vpow2.f32 %v4953_v39  ;;  %v3850_v49 = vld [vmem:[%s10979_s6] sm:$0xff] }
 0x687   : > { %9503 = vpow2.f32 %v4955_v51 }
 0x688   : > { %9505 = vpow2.f32 %v4959_v55 }
 0x689   : > { %9507 = vpow2.f32 %v4957_v60  ;;  %v17588_v60 = vld [vmem:[#allocation244_spill] sm:$0xff] }
 0x68a   : > { %9509 = vpow2.f32 %v4351_v18  ;;  %v4109_v61 = vmax.f32 %v17589_v52, %v17588_v60  ;;  %v5988_v18 = vmul.f32 %v14688_v54, %v5604_v47 }
 0x68b   : > { %9511 = vpow2.f32 %v4349_v17  ;;  %v17592_v17 = vld [vmem:[#allocation104_spill] sm:$0xff] }
 0x690   : > { %v9502_v7 = vpop.eup %9501 }
 0x691   : > { %v9504_v40 = vpop.eup %9503 }
 0x692   : > { %6186 = vmatprep.mubr.f32.mxu0 %v9504_v40  ;;  %v9506_v0 = vpop.eup %9505  ;;  %v14791_v58 = vadd.f32 %v9504_v40, %v9502_v7  ;;  %v17590_v40 = vld [vmem:[#allocation107_spill] sm:$0xff] }
 0x693   : > { %6187 = vmatmul.mubr.f32.gmra.mrb[240].mxu0 %v9502_v7  ;;  %v9508_v35 = vpop.eup %9507  ;;  %v5605_v7 = vld [vmem:[#allocation6 + $0x58] sm:$0xff] }
 0x694   : > { %6191 = vmatprep.mubr.f32.mxu0 %v9506_v0  ;;  %v14771_v19 = vpop.eup %9509  ;;  %v14778_v24 = vadd.f32 %v9508_v35, %v9506_v0  ;;  %v5989_v60 = vmul.f32 %v14678_v5, %v5605_v7 }
 0x695   : > { %17579 = vst [vmem:[#allocation154_spill] sm:$0xff] %v14771_v19  ;;  %v14788_v3 = vpop.eup %9511 }
 0x696   : > { %5755 = vperm.xlu0 %9138, %v14771_v19   ;;  %17585 = vst [vmem:[#allocation253_spill] sm:$0xff] %v14788_v3 }
 0x697   : > { %6192 = vmatmul.mubr.f32.gmra.mrb[242].mxu0 %v9508_v35 }
 0x698   : > { %4101 = vmax.xlane.f32.xlu1 %v4100_v37 }
 0x69a   : > { %4558 = vperm.xlu0 %9138, %v17584_v26  }
 0x69b   : > { %v4093_v36 = vpop.xlane.xlu0 %4092 }
 0x69c   : > { %v14784_v44 = vmax.f32 %v14780_v16, %v4093_v36 }
 0x69e   : > { %6609 = vst.msk [vmem:[#allocation4 + $0x1b0] sm:$0xff] %vm5529_vm6, %v14784_v44 }
 0x6a3   : > { %v14796_v1 = vpop.permute.xlu0 %5735 }
 0x6a7   : > { %v4539_v27 = vpop.permute.xlu0 %4538 }
 0x6a8   : > { %v4800_v0 = vsub.f32 %v17590_v40, %v4539_v27  ;;  %v4799_v37 = vsub.f32 %v17591_v41, %v4539_v27 }
 0x6a9   : > { %5750 = vperm.xlu1 %9139, %v14788_v3  }
 0x6aa   : > { %v4965_v52 = vmul.f32 1.442695, %v4799_v37 }
 0x6ad   : > { %4553 = vperm.xlu1 %9139, %v17586_v15  }
 0x6b3   : > { %v4090_v39 = vpop.xlane.xlu1 %4089 }
 0x6b4   : > { %v14799_v51 = vmax.f32 %v14794_v62, %v4090_v39  ;;  %v17593_v39 = vld [vmem:[#allocation105_spill] sm:$0xff]  ;;  %v17632_v62 = vld [vmem:[#allocation66_spill] sm:$0xff] }
 0x6b6   : > { %6608 = vst.msk [vmem:[#allocation4 + $0x1a8] sm:$0xff] %vm5529_vm6, %v14799_v51 }
 0x6b7   : > { %v14803_v55 = vpop.permute.xlu1 %5730 }
 0x6b9   : > { %4110 = vmax.xlane.f32.xlu0 %v4109_v61  ;;  %v4967_v61 = vmul.f32 1.442695, %v4800_v0 }
 0x6bb   : > { %v4534_v35 = vpop.permute.xlu1 %4533  ;;  %v6158_v48 = vpop.f32.mrb[228].mxu0 }
 0x6bc   : > { %v4797_v36 = vsub.f32 %v17592_v17, %v4534_v35  ;;  %v4798_v16 = vsub.f32 %v17593_v39, %v4534_v35  ;;  %v6437_v42 = vadd.f32 %v6158_v48, %v5988_v18  ;;  %v6160_v53 = vpop.f32.mrb[229].mxu0  ;;  %v4355_v17 = vmul.f32 1.442695, %v4270_v30  ;;  %v17597_v18 = vld [vmem:[#allocation240_spill] sm:$0xff]  ;;  %v14826_v35 = vld [vmem:[#allocation4 + $0x1c0] sm:$0xff]  ;;  %v17600_v48 = vld [vmem:[#allocation229_spill] sm:$0xff] }
 0x6bd   : > { %v17598_v30 = vld [vmem:[#allocation216_spill] sm:$0xff]  ;;  %17599 = vst [vmem:[#allocation309_spill] sm:$0xff] %v14826_v35 }
 0x6be   : > { %v4961_v54 = vmul.f32 1.442695, %v4797_v36  ;;  %v4963_v47 = vmul.f32 1.442695, %v4798_v16  ;;  %6501 = vst.msk [vmem:[#allocation6 + $0x50] sm:$0xff] %vm2057_vm4, %v6437_v42  ;;  %v17596_v16 = vld [vmem:[#allocation205_spill] sm:$0xff]  ;;  %v4106_v7 = vmax.f32 %v17598_v30, %v17597_v18 }
 0x6bf   : > { %v6163_v40 = vpop.f32.mrb[230].mxu0 }
 0x6c0   : > { %9513 = vpow2.f32 %v4961_v54  ;;  %v6438_v27 = vadd.f32 %v6163_v40, %v5989_v60  ;;  %v6165_v41 = vpop.f32.mrb[231].mxu0  ;;  %v4269_v60 = vsub.f32 %v17596_v16, %v17570_v46  ;;  %v17603_v54 = vld [vmem:[#allocation227_spill] sm:$0xff] }
 0x6c1   : > { %9515 = vpow2.f32 %v4963_v47  ;;  %v14840_v47 = vld [vmem:[#allocation4 + $0x1b8] sm:$0xff]  ;;  %v17605_v41 = vld [vmem:[#allocation247_spill] sm:$0xff] }
 0x6c2   : > { %6502 = vst.msk [vmem:[#allocation6 + $0x58] sm:$0xff] %vm2057_vm4, %v6438_v27  ;;  %9517 = vpow2.f32 %v4967_v61  ;;  %v4353_v0 = vmul.f32 1.442695, %v4269_v60  ;;  %17604 = vst [vmem:[#allocation59_spill] sm:$0xff] %v14840_v47  ;;  %v5606_v27 = vld [vmem:[#allocation6 + $0x60] sm:$0xff] }
 0x6c3   : > { %9519 = vpow2.f32 %v4965_v52 }
 0x6c4   : > { %9521 = vpow2.f32 %v4355_v17  ;;  %v17606_v17 = vld [vmem:[#allocation223_spill] sm:$0xff] }
 0x6c5   : > { %9523 = vpow2.f32 %v4353_v0 }
 0x6ca   : > { %v9514_v28 = vpop.eup %9513 }
 0x6cb   : > { %v9516_v53 = vpop.eup %9515 }
 0x6cc   : > { %6196 = vmatprep.mubr.f32.mxu0 %v9516_v53  ;;  %v9518_v5 = vpop.eup %9517  ;;  %v14837_v39 = vadd.f32 %v9516_v53, %v9514_v28 }
 0x6cd   : > { %6197 = vmatmul.mubr.f32.gmra.mrb[244].mxu0 %v9514_v28  ;;  %v9520_v50 = vpop.eup %9519  ;;  %v5607_v28 = vld [vmem:[#allocation6 + $0x68] sm:$0xff] }
 0x6ce   : > { %6201 = vmatprep.mubr.f32.mxu0 %v9518_v5  ;;  %v14817_v42 = vpop.eup %9521  ;;  %v14824_v52 = vadd.f32 %v9520_v50, %v9518_v5  ;;  %v4115_v5 = vmax.f32 %v17606_v17, %v17605_v41  ;;  %v14874_v17 = vld [vmem:[#allocation4 + $0x1d0] sm:$0xff] }
 0x6cf   : > { %17595 = vst [vmem:[#allocation306_spill] sm:$0xff] %v14817_v42  ;;  %5765 = vperm.xlu0 %9138, %v14817_v42   ;;  %v14834_v46 = vpop.eup %9523  ;;  %17617 = vst [vmem:[#allocation89_spill] sm:$0xff] %v14874_v17 }
 0x6d0   : > { %17602 = vst [vmem:[#allocation177_spill] sm:$0xff] %v14834_v46 }
 0x6d1   : > { %6202 = vmatmul.mubr.f32.gmra.mrb[246].mxu0 %v9520_v50  ;;  %4107 = vmax.xlane.f32.xlu1 %v4106_v7  ;;  %v5990_v50 = vmul.f32 %v14757_v12, %v5606_v27  ;;  %v17607_v7 = vld [vmem:[#allocation222_spill] sm:$0xff]  ;;  %v17608_v12 = vld [vmem:[#allocation228_spill] sm:$0xff] }
 0x6d2   : > { %v4272_v0 = vsub.f32 %v17607_v7, %v17584_v26  ;;  %v4274_v27 = vsub.f32 %v17608_v12, %v17600_v48 }
 0x6d3   : > { %4568 = vperm.xlu0 %9138, %v17600_v48  }
 0x6d4   : > { %v4099_v37 = vpop.xlane.xlu0 %4098  ;;  %v4359_v18 = vmul.f32 1.442695, %v4272_v0  ;;  %v17614_v0 = vld [vmem:[#allocation242_spill] sm:$0xff] }
 0x6d5   : > { %v14830_v36 = vmax.f32 %v14826_v35, %v4099_v37  ;;  %v5991_v37 = vmul.f32 %v14748_v22, %v5607_v28  ;;  %v17609_v22 = vld [vmem:[#allocation232_spill] sm:$0xff]  ;;  %v17610_v28 = vld [vmem:[#allocation231_spill] sm:$0xff] }
 0x6d6   : > { %9525 = vpow2.f32 %v4359_v18 }
 0x6d7   : > { %17601 = vst [vmem:[#allocation91_spill] sm:$0xff] %v14830_v36  ;;  %6611 = vst.msk [vmem:[#allocation4 + $0x1c0] sm:$0xff] %vm5529_vm6, %v14830_v36 }
 0x6e0   : > { %v14865_v7 = vpop.eup %9525 }
 0x6e1   : > { %17612 = vst [vmem:[#allocation88_spill] sm:$0xff] %v14865_v7 }
 0x6e2   : > { %5760 = vperm.xlu1 %9139, %v14834_v46  }
 0x6e6   : > { %4563 = vperm.xlu1 %9139, %v17603_v54  }
 0x6ec   : > { %v4096_v61 = vpop.xlane.xlu1 %4095 }
 0x6ed   : > { %v14843_v40 = vmax.f32 %v14840_v47, %v4096_v61  ;;  %v5609_v47 = vld [vmem:[#allocation6 + $0x78] sm:$0xff] }
 0x6ef   : > { %6610 = vst.msk [vmem:[#allocation4 + $0x1b8] sm:$0xff] %vm5529_vm6, %v14843_v40 }
 0x6f2   : > { %4116 = vmax.xlane.f32.xlu0 %v4115_v5  ;;  %v14857_v5 = vpop.permute.xlu1 %5740 }
 0x6f4   : > { %v6168_v53 = vpop.f32.mrb[232].mxu0 }
 0x6f5   : > { %v6439_v16 = vadd.f32 %v6168_v53, %v5990_v50  ;;  %v6170_v60 = vpop.f32.mrb[233].mxu0  ;;  %v4363_v50 = vmul.f32 1.442695, %v4274_v27  ;;  %v14859_v53 = vpop.permute.xlu0 %5745 }
 0x6f6   : > { %v4544_v26 = vpop.permute.xlu1 %4543  ;;  %v17611_v60 = vld [vmem:[#allocation217_spill] sm:$0xff] }
 0x6f7   : > { %6503 = vst.msk [vmem:[#allocation6 + $0x60] sm:$0xff] %vm2057_vm4, %v6439_v16  ;;  %9527 = vpow2.f32 %v4363_v50  ;;  %v4276_v16 = vsub.f32 %v17610_v28, %v17609_v22 }
 0x6f8   : > { %v6173_v61 = vpop.f32.mrb[234].mxu0 }
 0x6f9   : > { %v6440_v35 = vadd.f32 %v6173_v61, %v5991_v37  ;;  %v6175_v42 = vpop.f32.mrb[235].mxu0  ;;  %v17615_v37 = vld [vmem:[#allocation220_spill] sm:$0xff]  ;;  %v17616_v61 = vld [vmem:[#allocation109_spill] sm:$0xff]  ;;  %v4367_v27 = vmul.f32 1.442695, %v4276_v16  ;;  %v14872_v41 = vpop.permute.xlu0 %4548 }
 0x6fa   : > { %v4271_v42 = vsub.f32 %v17611_v60, %v17586_v15  ;;  %v4112_v48 = vmax.f32 %v17615_v37, %v17614_v0  ;;  %v4802_v12 = vsub.f32 %v17616_v61, %v4544_v26  ;;  %v17618_v60 = vld [vmem:[#allocation269_spill] sm:$0xff] }
 0x6fb   : > { %6504 = vst.msk [vmem:[#allocation6 + $0x68] sm:$0xff] %vm2057_vm4, %v6440_v35  ;;  %v17613_v35 = vld [vmem:[#allocation108_spill] sm:$0xff]  ;;  %9529 = vpow2.f32 %v4367_v27  ;;  %v17623_v27 = vld [vmem:[#allocation270_spill] sm:$0xff] }
 0x6fc   : > { %v4801_v18 = vsub.f32 %v17613_v35, %v4544_v26  ;;  %v4357_v50 = vmul.f32 1.442695, %v4271_v42  ;;  %v4971_v15 = vmul.f32 1.442695, %v4802_v12  ;;  %v17619_v35 = vld [vmem:[#allocation264_spill] sm:$0xff] }
 0x6fd   : > { %v4278_v30 = vsub.f32 %v17619_v35, %v17618_v60 }
 0x6fe   : > { %v4969_v28 = vmul.f32 1.442695, %v4801_v18  ;;  %9531 = vpow2.f32 %v4357_v50 }
 0x700   : > { %9533 = vpow2.f32 %v4969_v28 }
 0x701   : > { %v14882_v16 = vpop.eup %9527  ;;  %9535 = vpow2.f32 %v4971_v15 }
 0x702   : > { %17621 = vst [vmem:[#allocation173_spill] sm:$0xff] %v14882_v16 }
 0x708   : > { %5775 = vperm.xlu0 %9138, %v14865_v7   ;;  %v14890_v7 = vpop.eup %9529 }
 0x709   : > { %17624 = vst [vmem:[#allocation90_spill] sm:$0xff] %v14890_v7  ;;  %v14892_v15 = vpop.eup %9531 }
 0x70a   : > { %4113 = vmax.xlane.f32.xlu1 %v4112_v48  ;;  %17625 = vst [vmem:[#allocation314_spill] sm:$0xff] %v14892_v15 }
 0x70c   : > { %4578 = vperm.xlu0 %9138, %v17609_v22   ;;  %v4371_v22 = vmul.f32 1.442695, %v4278_v30  ;;  %v14895_v30 = vpop.eup %9533 }
 0x70d   : > { %v4105_v0 = vpop.xlane.xlu0 %4104 }
 0x70e   : > { %v14880_v26 = vmax.f32 %v14874_v17, %v4105_v0  ;;  %9537 = vpow2.f32 %v4371_v22  ;;  %v17622_v0 = vld [vmem:[#allocation275_spill] sm:$0xff] }
 0x70f   : > { %v3796_v61 = vpop.f32.mrb[48].mxu1  ;;  %v4280_v50 = vsub.f32 %v17623_v27, %v17622_v0 }
 0x710   : > { %17620 = vst [vmem:[#allocation58_spill] sm:$0xff] %v14880_v26  ;;  %v3798_v42 = vpop.f32.mrb[49].mxu1  ;;  %6613 = vst.msk [vmem:[#allocation4 + $0x1d0] sm:$0xff] %vm5529_vm6, %v14880_v26  ;;  %5785 = vperm.xlu0 %9138, %v14882_v16   ;;  %v14906_v16 = vld [vmem:[#allocation4 + $0x1c8] sm:$0xff] }
 0x711   : > { %17628 = vst [vmem:[#allocation259_spill] sm:$0xff] %v14906_v16 }
 0x713   : > { %v3802_v18 = vpop.f32.mrb[50].mxu1 }
 0x714   : > { %v8798_v48 = vpack.c.bf16 %v3802_v18, %v3796_v61  ;;  %v3804_v12 = vpop.f32.mrb[51].mxu1  ;;  %4588 = vperm.xlu0 %9138, %v17618_v60   ;;  %v4375_v61 = vmul.f32 1.442695, %v4280_v50  ;;  %v9536_v18 = vpop.eup %9535 }
 0x715   : > { %v8796_v35 = vpack.c.bf16 %v3804_v12, %v3798_v42  ;;  %v14900_v12 = vadd.f32 %v9536_v18, %v14895_v30 }
 0x716   : > { %9539 = vpow2.f32 %v4375_v61  ;;  %v17629_v61 = vld [vmem:[#allocation279_spill] sm:$0xff] }
 0x717   : > { %v3808_v28 = vpop.f32.mrb[52].mxu1  ;;  %8797 = vmatprep.subr.bf16.mxu1 %v8796_v35  ;;  %v17626_v35 = vld [vmem:[#allocation230_spill] sm:$0xff] }
 0x718   : > { %v3810_v17 = vpop.f32.mrb[53].mxu1  ;;  %8799 = vmatpush1.bf16.msra.mxu1 %v8798_v48  ;;  %5795 = vperm.xlu0 %9138, %v14890_v7   ;;  %v14903_v48 = vpop.eup %9537 }
 0x719   : > { %17627 = vst [vmem:[#allocation257_spill] sm:$0xff] %v14903_v48 }
 0x71b   : > { %5770 = vperm.xlu1 %9139, %v14892_v15   ;;  %v3814_v60 = vpop.f32.mrb[54].mxu1 }
 0x71c   : > { %v8802_v22 = vpack.c.bf16 %v3814_v60, %v3808_v28  ;;  %v3816_v27 = vpop.f32.mrb[55].mxu1  ;;  %4598 = vperm.xlu0 %9138, %v17622_v0   ;;  %v14908_v60 = vpop.permute.xlu0 %5755 }
 0x71d   : > { %v8800_v42 = vpack.c.bf16 %v3816_v27, %v3810_v17 }
 0x71f   : > { %4573 = vperm.xlu1 %9139, %v17626_v35   ;;  %v3820_v7 = vpop.f32.mrb[56].mxu1  ;;  %8801 = vmatprep.subr.bf16.mxu1 %v8800_v42 }
 0x720   : > { %v3822_v50 = vpop.f32.mrb[57].mxu1  ;;  %8803 = vmatpush1.bf16.msra.mxu1 %v8802_v22  ;;  %5805 = vperm.xlu0 %9138, %v14903_v48   ;;  %v14914_v57 = vpop.eup %9539 }
 0x721   : > { %17630 = vst [vmem:[#allocation316_spill] sm:$0xff] %v14914_v57 }
 0x723   : > { %v3826_v28 = vpop.f32.mrb[58].mxu1 }
 0x724   : > { %v8806_v0 = vpack.c.bf16 %v3826_v28, %v3820_v7  ;;  %v3828_v17 = vpop.f32.mrb[59].mxu1  ;;  %4608 = vperm.xlu0 %9138, %v17629_v61   ;;  %v5608_v7 = vld [vmem:[#allocation6 + $0x70] sm:$0xff]  ;;  %v4559_v28 = vpop.permute.xlu0 %4558 }
 0x725   : > { %v4102_v27 = vpop.xlane.xlu1 %4101  ;;  %v8804_v37 = vpack.c.bf16 %v3828_v17, %v3822_v50  ;;  %v5992_v50 = vmul.f32 %v14803_v55, %v5608_v7  ;;  %v4808_v59 = vsub.f32 %v17633_v56, %v4559_v28  ;;  %v17634_v55 = vld [vmem:[#allocation290_spill] sm:$0xff] }
 0x726   : > { %v14912_v63 = vmax.f32 %v14906_v16, %v4102_v27  ;;  %v17631_v16 = vld [vmem:[#allocation114_spill] sm:$0xff] }
 0x727   : > { %v3832_v42 = vpop.f32.mrb[60].mxu1  ;;  %8805 = vmatprep.subr.bf16.mxu1 %v8804_v37  ;;  %v4807_v19 = vsub.f32 %v17631_v16, %v4559_v28  ;;  %v17635_v16 = vld [vmem:[#allocation274_spill] sm:$0xff]  ;;  %v17639_v28 = vld [vmem:[#allocation112_spill] sm:$0xff] }
 0x728   : > { %6612 = vst.msk [vmem:[#allocation4 + $0x1c8] sm:$0xff] %vm5529_vm6, %v14912_v63  ;;  %v3834_v22 = vpop.f32.mrb[61].mxu1  ;;  %8807 = vmatpush1.bf16.msra.mxu1 %v8806_v0  ;;  %5815 = vperm.xlu0 %9138, %v14914_v57   ;;  %v5993_v57 = vmul.f32 %v14796_v1, %v5609_v47 }
 0x729   : > { %v4981_v61 = vmul.f32 1.442695, %v4807_v19  ;;  %v14930_v56 = vpop.permute.xlu1 %5750  ;;  %v17636_v19 = vld [vmem:[#allocation273_spill] sm:$0xff] }
 0x72b   : > { %v3838_v48 = vpop.f32.mrb[62].mxu1  ;;  %9541 = vpow2.f32 %v4981_v61  ;;  %v17642_v61 = vld [vmem:[#allocation283_spill] sm:$0xff] }
 0x72c   : > { %v8810_v17 = vpack.c.bf16 %v3838_v48, %v3832_v42  ;;  %v3840_v27 = vpop.f32.mrb[63].mxu1  ;;  %4618 = vperm.xlu0 %9138, %v17632_v62   ;;  %v4983_v42 = vmul.f32 1.442695, %v4808_v59  ;;  %v17638_v59 = vld [vmem:[#allocation226_spill] sm:$0xff] }
 0x72d   : > { %v8808_v37 = vpack.c.bf16 %v3840_v27, %v3834_v22  ;;  %v6178_v15 = vpop.f32.mrb[236].mxu0  ;;  %v4554_v1 = vpop.permute.xlu1 %4553  ;;  %v17643_v27 = vld [vmem:[#allocation113_spill] sm:$0xff] }
 0x72e   : > { %v6441_v0 = vadd.f32 %v6178_v15, %v5992_v50  ;;  %v6180_v32 = vpop.f32.mrb[237].mxu0  ;;  %9543 = vpow2.f32 %v4983_v42  ;;  %v17640_v50 = vld [vmem:[#allocation245_spill] sm:$0xff] }
 0x72f   : > { %8809 = vmatprep.subr.bf16.mxu1 %v8808_v37  ;;  %v17637_v32 = vld [vmem:[#allocation285_spill] sm:$0xff]  ;;  %v4806_v37 = vsub.f32 %v17643_v27, %v4554_v1  ;;  %v17652_v27 = vld [vmem:[#allocation159_spill] sm:$0xff] }
 0x730   : > { %8811 = vmatpush1.bf16.msra.mxu1 %v8810_v17  ;;  %6505 = vst.msk [vmem:[#allocation6 + $0x70] sm:$0xff] %vm2057_vm4, %v6441_v0  ;;  %4628 = vperm.xlu0 %9138, %v17634_v55   ;;  %v17641_v17 = vld [vmem:[#allocation225_spill] sm:$0xff]  ;;  %v17644_v0 = vld [vmem:[#allocation294_spill] sm:$0xff] }
 0x731   : > { %v6183_v48 = vpop.f32.mrb[238].mxu0  ;;  %8924 = vmatprep.subr.bf16.mxu1 %v17635_v16 }
 0x732   : > { %v6442_v22 = vadd.f32 %v6183_v48, %v5993_v57  ;;  %v6185_v7 = vpop.f32.mrb[239].mxu0  ;;  %v4273_v57 = vsub.f32 %v17638_v59, %v17603_v54  ;;  %v4979_v54 = vmul.f32 1.442695, %v4806_v37 }
 0x733   : > { %8147 = vmatmul.mubr.msk.f32.vlgmr.msra.gmra.mrb[64].mxu1 %vm2057_vm4, %v3850_v49  ;;  %v4805_v49 = vsub.f32 %v17639_v28, %v4554_v1  ;;  %v17647_v7 = vld [vmem:[#allocation111_spill] sm:$0xff] }
 0x734   : > { %6506 = vst.msk [vmem:[#allocation6 + $0x78] sm:$0xff] %vm2057_vm4, %v6442_v22  ;;  %6206 = vmatprep.mubr.f32.mxu1 %v9536_v18  ;;  %v4118_v18 = vmax.f32 %v17641_v17, %v17640_v50  ;;  %v4361_v16 = vmul.f32 1.442695, %v4273_v57  ;;  %v14947_v22 = vld [vmem:[#allocation4 + $0x1e0] sm:$0xff]  ;;  %v17649_v1 = vld [vmem:[#allocation147_spill] sm:$0xff]  ;;  %v17651_v57 = vld [vmem:[#allocation292_spill] sm:$0xff] }
 0x735   : > { %v14934_v47 = vpop.eup %9541  ;;  %v4977_v42 = vmul.f32 1.442695, %v4805_v49  ;;  %17646 = vst [vmem:[#allocation61_spill] sm:$0xff] %v14947_v22  ;;  %v4275_v28 = vsub.f32 %v17649_v1, %v17626_v35  ;;  %v17654_v35 = vld [vmem:[#allocation268_spill] sm:$0xff] }
 0x736   : > { %9545 = vpow2.f32 %v4361_v16  ;;  %v17653_v16 = vld [vmem:[#allocation78_spill] sm:$0xff]  ;;  %v17669_v17 = vld [vmem:[#allocation116_spill] sm:$0xff] }
 0x737   : > { %9547 = vpow2.f32 %v4977_v42  ;;  %v4365_v37 = vmul.f32 1.442695, %v4275_v28  ;;  %v17655_v42 = vld [vmem:[#allocation263_spill] sm:$0xff] }
 0x738   : > { %v9544_v15 = vpop.eup %9543  ;;  %9549 = vpow2.f32 %v4979_v54 }
 0x739   : > { %8928 = vmatpush1.bf16.xpose.msra.mxu1 %v17636_v19  ;;  %v14945_v48 = vadd.f32 %v9544_v15, %v14934_v47  ;;  %v4804_v19 = vsub.f32 %v17647_v7, %v14872_v41  ;;  %v4277_v7 = vsub.f32 %v17655_v42, %v17654_v35 }
 0x73a   : > { %8925 = vmatprep.subr.bf16.mxu1 %v17637_v32 }
 0x73b   : > { %17645 = vst [vmem:[#allocation319_spill] sm:$0xff] %v14945_v48  ;;  %v4975_v49 = vmul.f32 1.442695, %v4804_v19  ;;  %v4369_v19 = vmul.f32 1.442695, %v4277_v7  ;;  %v17671_v48 = vld [vmem:[#allocation276_spill] sm:$0xff] }
 0x73d   : > { %9551 = vpow2.f32 %v4975_v49  ;;  %v17661_v49 = vld [vmem:[#allocation267_spill] sm:$0xff] }
 0x73e   : > { %9553 = vpow2.f32 %v4365_v37 }
 0x741   : > { %8929 = vmatpush1.bf16.xpose.msra.mxu1 %v17642_v61 }
 0x742   : > { %8926 = vmatprep.subr.bf16.mxu1 %v17644_v0 }
 0x743   : > { %4119 = vmax.xlane.f32.xlu1 %v4118_v18  ;;  %v17650_v18 = vld [vmem:[#allocation110_spill] sm:$0xff] }
 0x744   : > { %v4803_v61 = vsub.f32 %v17650_v18, %v14872_v41  ;;  %v17657_v41 = vld [vmem:[#allocation57_spill] sm:$0xff]  ;;  %v17658_v18 = vld [vmem:[#allocation80_spill] sm:$0xff] }
 0x746   : > { %v4111_v32 = vpop.xlane.xlu0 %4110  ;;  %v4973_v0 = vmul.f32 1.442695, %v4803_v61 }
 0x747   : > { %v14952_v59 = vmax.f32 %v14947_v22, %v4111_v32  ;;  %v14965_v32 = vpop.eup %9545  ;;  %v17668_v22 = vld [vmem:[#allocation119_spill] sm:$0xff] }
 0x748   : > { %17656 = vst [vmem:[#allocation321_spill] sm:$0xff] %v14965_v32  ;;  %9555 = vpow2.f32 %v4973_v0  ;;  %v9548_v54 = vpop.eup %9547 }
 0x749   : > { %17648 = vst [vmem:[#allocation60_spill] sm:$0xff] %v14952_v59  ;;  %8930 = vmatpush1.bf16.xpose.msra.mxu1 %v17651_v57  ;;  %6615 = vst.msk [vmem:[#allocation4 + $0x1e0] sm:$0xff] %vm5529_vm6, %v14952_v59  ;;  %v9550_v1 = vpop.eup %9549  ;;  %9557 = vpow2.f32 %v4369_v19  ;;  %v17660_v57 = vld [vmem:[#allocation64_spill] sm:$0xff] }
 0x74a   : > { %8927 = vmatprep.subr.bf16.mxu1 %v17652_v27  ;;  %v14970_v28 = vadd.f32 %v9550_v1, %v9548_v54  ;;  %v14973_v61 = vpop.eup %9551  ;;  %v4279_v27 = vsub.f32 %v17661_v49, %v17660_v57 }
 0x74b   : > { %17659 = vst [vmem:[#allocation323_spill] sm:$0xff] %v14973_v61  ;;  %v14979_v37 = vpop.eup %9553 }
 0x74c   : > { %17662 = vst [vmem:[#allocation261_spill] sm:$0xff] %v14979_v37  ;;  %v4373_v42 = vmul.f32 1.442695, %v4279_v27  ;;  %v5611_v27 = vld [vmem:[#allocation6 + $0x88] sm:$0xff] }
 0x74e   : > { %9559 = vpow2.f32 %v4373_v42 }
 0x74f   : > { %5277 = vadd.xlane.f32.xlu0 %v17653_v16  ;;  %v14984_v16 = vld [vmem:[#allocation4 + $0x1d8] sm:$0xff] }
 0x750   : > { %17664 = vst [vmem:[#allocation326_spill] sm:$0xff] %v14984_v16 }
 0x751   : > { %8931 = vmatpush1.bf16.xpose.msra.mxu1 %v17657_v41 }
 0x752   : > { %v14981_v0 = vpop.eup %9555 }
 0x753   : > { %5280 = vadd.xlane.f32.xlu0 %v17658_v18  ;;  %17663 = vst [vmem:[#allocation262_spill] sm:$0xff] %v14981_v0  ;;  %v14997_v19 = vpop.eup %9557 }
 0x754   : > { %5780 = vperm.xlu1 %9139, %v14965_v32   ;;  %17666 = vst [vmem:[#allocation63_spill] sm:$0xff] %v14997_v19 }
 0x758   : > { %4583 = vperm.xlu1 %9139, %v17654_v35   ;;  %6207 = vmatmul.mubr.f32.vlgmr.msra.gmra.mrb[66].mxu1 %v14895_v30  ;;  %v14987_v35 = vpop.permute.xlu0 %5765  ;;  %v5610_v30 = vld [vmem:[#allocation6 + $0x80] sm:$0xff]  ;;  %v15010_v62 = vpop.eup %9559 }
 0x759   : > { %6211 = vmatprep.mubr.f32.mxu1 %v14973_v61  ;;  %17673 = vst [vmem:[#allocation62_spill] sm:$0xff] %v15010_v62 }
 0x75c   : > { %5790 = vperm.xlu1 %9139, %v14979_v37   ;;  %6212 = vmatmul.mubr.f32.gmra.mrb[68].mxu1 %v14981_v0  ;;  %v4569_v49 = vpop.permute.xlu0 %4568  ;;  %v17670_v37 = vld [vmem:[#allocation118_spill] sm:$0xff] }
 0x75d   : > { %6216 = vmatprep.mubr.f32.mxu1 %v9550_v1  ;;  %v5994_v1 = vmul.f32 %v14857_v5, %v5610_v30  ;;  %v4811_v50 = vsub.f32 %v17668_v22, %v4569_v49 }
 0x75e   : > { %v4108_v7 = vpop.xlane.xlu1 %4107 }
 0x75f   : > { %v14990_v41 = vmax.f32 %v14984_v16, %v4108_v7  ;;  %v4989_v22 = vmul.f32 1.442695, %v4811_v50 }
 0x760   : > { %4593 = vperm.xlu1 %9139, %v17660_v57   ;;  %6217 = vmatmul.mubr.f32.gmra.mrb[70].mxu1 %v9548_v54  ;;  %v17667_v57 = vld [vmem:[#allocation120_spill] sm:$0xff] }
 0x761   : > { %17665 = vst [vmem:[#allocation329_spill] sm:$0xff] %v14990_v41  ;;  %6614 = vst.msk [vmem:[#allocation4 + $0x1d8] sm:$0xff] %vm5529_vm6, %v14990_v41  ;;  %6221 = vmatprep.mubr.f32.mxu1 %v9544_v15  ;;  %v4812_v42 = vsub.f32 %v17667_v57, %v4569_v49  ;;  %v17672_v57 = vld [vmem:[#allocation297_spill] sm:$0xff] }
 0x762   : > { %v14995_v18 = vpop.permute.xlu1 %5760 }
 0x764   : > { %5800 = vperm.xlu1 %9139, %v14997_v19   ;;  %6222 = vmatmul.mubr.f32.gmra.mrb[72].mxu1 %v14934_v47  ;;  %v5995_v19 = vmul.f32 %v14859_v53, %v5611_v27  ;;  %v4991_v47 = vmul.f32 1.442695, %v4812_v42  ;;  %v17674_v53 = vld [vmem:[#allocation286_spill] sm:$0xff] }
 0x766   : > { %v4564_v54 = vpop.permute.xlu1 %4563  ;;  %v6188_v7 = vpop.f32.mrb[240].mxu0 }
 0x767   : > { %v4809_v15 = vsub.f32 %v17669_v17, %v4564_v54  ;;  %v4810_v32 = vsub.f32 %v17670_v37, %v4564_v54  ;;  %v6443_v16 = vadd.f32 %v6188_v7, %v5994_v1  ;;  %v6190_v59 = vpop.f32.mrb[241].mxu0  ;;  %v17679_v54 = vld [vmem:[#allocation337_spill] sm:$0xff] }
 0x768   : > { %4603 = vperm.xlu1 %9139, %v17671_v48   ;;  %v17675_v59 = vld [vmem:[#allocation288_spill] sm:$0xff] }
 0x769   : > { %v4985_v5 = vmul.f32 1.442695, %v4809_v15  ;;  %v4987_v30 = vmul.f32 1.442695, %v4810_v32  ;;  %6507 = vst.msk [vmem:[#allocation6 + $0x80] sm:$0xff] %vm2057_vm4, %v6443_v16  ;;  %4638 = vperm.xlu0 %9138, %v17672_v57  }
 0x76a   : > { %v6193_v55 = vpop.f32.mrb[242].mxu0 }
 0x76b   : > { %9561 = vpow2.f32 %v4985_v5  ;;  %v6444_v17 = vadd.f32 %v6193_v55, %v5995_v19  ;;  %v6195_v37 = vpop.f32.mrb[243].mxu0  ;;  %v15018_v19 = vld [vmem:[#allocation4 + $0x1f0] sm:$0xff] }
 0x76c   : > { %9563 = vpow2.f32 %v4987_v30  ;;  %5810 = vperm.xlu1 %9139, %v15010_v62   ;;  %17677 = vst [vmem:[#allocation169_spill] sm:$0xff] %v15018_v19  ;;  %v15032_v30 = vld [vmem:[#allocation4 + $0x1e8] sm:$0xff]  ;;  %v17685_v62 = vld [vmem:[#allocation332_spill] sm:$0xff] }
 0x76d   : > { %6508 = vst.msk [vmem:[#allocation6 + $0x88] sm:$0xff] %vm2057_vm4, %v6444_v17  ;;  %9565 = vpow2.f32 %v4991_v47  ;;  %17681 = vst [vmem:[#allocation266_spill] sm:$0xff] %v15032_v30  ;;  %v17683_v37 = vld [vmem:[#allocation79_spill] sm:$0xff] }
 0x76e   : > { %9567 = vpow2.f32 %v4989_v22 }
 0x770   : > { %4613 = vperm.xlu1 %9139, %v17674_v53   ;;  %v17688_v53 = vld [vmem:[#allocation122_spill] sm:$0xff] }
 0x774   : > { %4623 = vperm.xlu1 %9139, %v17675_v59   ;;  %v17687_v59 = vld [vmem:[#allocation121_spill] sm:$0xff] }
 0x775   : > { %v9562_v32 = vpop.eup %9561 }
 0x776   : > { %v9564_v16 = vpop.eup %9563 }
 0x777   : > { %6226 = vmatprep.mubr.f32.mxu1 %v9564_v16  ;;  %v9566_v49 = vpop.eup %9565  ;;  %v15030_v5 = vadd.f32 %v9564_v16, %v9562_v32  ;;  %v17684_v16 = vld [vmem:[#allocation124_spill] sm:$0xff] }
 0x778   : > { %6227 = vmatmul.mubr.f32.gmra.mrb[74].mxu1 %v9562_v32  ;;  %v9568_v50 = vpop.eup %9567 }
 0x779   : > { %6231 = vmatprep.mubr.f32.mxu1 %v9566_v49  ;;  %v15016_v55 = vadd.f32 %v9568_v50, %v9566_v49  ;;  %17680 = vst [vmem:[#allocation265_spill] sm:$0xff] %v15030_v5  ;;  %v17714_v5 = vld [vmem:[#allocation311_spill] sm:$0xff] }
 0x77b   : > { %17676 = vst [vmem:[#allocation331_spill] sm:$0xff] %v15016_v55 }
 0x77c   : > { %6232 = vmatmul.mubr.f32.gmra.mrb[76].mxu1 %v9568_v50  ;;  %v5612_v50 = vld [vmem:[#allocation6 + $0x90] sm:$0xff] }
 0x77d   : > { %v5996_v32 = vmul.f32 %v14930_v56, %v5612_v50 }
 0x77f   : > { %v4117_v1 = vpop.xlane.xlu0 %4116 }
 0x780   : > { %v15021_v27 = vmax.f32 %v15018_v19, %v4117_v1 }
 0x782   : > { %17678 = vst [vmem:[#allocation175_spill] sm:$0xff] %v15021_v27  ;;  %6617 = vst.msk [vmem:[#allocation4 + $0x1f0] sm:$0xff] %vm5529_vm6, %v15021_v27  ;;  %v5613_v27 = vld [vmem:[#allocation6 + $0x98] sm:$0xff] }
 0x783   : > { %v5997_v56 = vmul.f32 %v14908_v60, %v5613_v27  ;;  %v17691_v60 = vld [vmem:[#allocation301_spill] sm:$0xff] }
 0x787   : > { %v15025_v42 = vpop.permute.xlu0 %5775 }
 0x788   : > { %5286 = vadd.xlane.f32.xlu0 %v17679_v54 }
 0x78b   : > { %v4579_v7 = vpop.permute.xlu0 %4578 }
 0x78c   : > { %v4816_v54 = vsub.f32 %v17684_v16, %v4579_v7 }
 0x78e   : > { %v4999_v50 = vmul.f32 1.442695, %v4816_v54 }
 0x78f   : > { %v15028_v15 = vpop.permute.xlu0 %5785 }
 0x793   : > { %v4589_v47 = vpop.permute.xlu0 %4588 }
 0x797   : > { %v4114_v22 = vpop.xlane.xlu1 %4113  ;;  %v15042_v1 = vpop.permute.xlu0 %5795 }
 0x798   : > { %v15035_v17 = vmax.f32 %v15032_v30, %v4114_v22  ;;  %5274 = vadd.xlane.f32.xlu1 %v17683_v37  ;;  %v17686_v22 = vld [vmem:[#allocation123_spill] sm:$0xff] }
 0x799   : > { %v4815_v30 = vsub.f32 %v17686_v22, %v4579_v7 }
 0x79a   : > { %17682 = vst [vmem:[#allocation334_spill] sm:$0xff] %v15035_v17  ;;  %6616 = vst.msk [vmem:[#allocation4 + $0x1e8] sm:$0xff] %vm5529_vm6, %v15035_v17 }
 0x79b   : > { %v15040_v49 = vpop.permute.xlu1 %5770  ;;  %v4599_v46 = vpop.permute.xlu0 %4598  ;;  %v4997_v16 = vmul.f32 1.442695, %v4815_v30 }
 0x79e   : > { %4648 = vperm.xlu0 %9138, %v17685_v62  }
 0x79f   : > { %v4574_v19 = vpop.permute.xlu1 %4573 }
 0x7a0   : > { %v4813_v37 = vsub.f32 %v17687_v59, %v4574_v19  ;;  %v4814_v48 = vsub.f32 %v17688_v53, %v4574_v19  ;;  %v6198_v55 = vpop.f32.mrb[244].mxu0  ;;  %v17689_v59 = vld [vmem:[#allocation127_spill] sm:$0xff] }
 0x7a1   : > { %v6445_v57 = vadd.f32 %v6198_v55, %v5996_v32  ;;  %v6200_v4 = vpop.f32.mrb[245].mxu0  ;;  %v4819_v53 = vsub.f32 %v17689_v59, %v4589_v47  ;;  %v17693_v32 = vld [vmem:[#allocation132_spill] sm:$0xff] }
 0x7a2   : > { %v4993_v26 = vmul.f32 1.442695, %v4813_v37  ;;  %v4995_v17 = vmul.f32 1.442695, %v4814_v48  ;;  %v17690_v4 = vld [vmem:[#allocation128_spill] sm:$0xff]  ;;  %v15055_v48 = vpop.permute.xlu0 %5805  ;;  %v4824_v54 = vsub.f32 %v17693_v32, %v4599_v46  ;;  %v17698_v32 = vld [vmem:[#allocation139_spill] sm:$0xff] }
 0x7a3   : > { %6509 = vst.msk [vmem:[#allocation6 + $0x90] sm:$0xff] %vm2057_vm4, %v6445_v57  ;;  %v4820_v55 = vsub.f32 %v17690_v4, %v4589_v47  ;;  %v5005_v19 = vmul.f32 1.442695, %v4819_v53  ;;  %v17696_v53 = vld [vmem:[#allocation136_spill] sm:$0xff] }
 0x7a4   : > { %9569 = vpow2.f32 %v4993_v26  ;;  %v6203_v62 = vpop.f32.mrb[246].mxu0 }
 0x7a5   : > { %9571 = vpow2.f32 %v4995_v17  ;;  %v6446_v7 = vadd.f32 %v6203_v62, %v5997_v56  ;;  %v6205_v22 = vpop.f32.mrb[247].mxu0  ;;  %v5007_v57 = vmul.f32 1.442695, %v4820_v55  ;;  %v17692_v62 = vld [vmem:[#allocation131_spill] sm:$0xff] }
 0x7a6   : > { %9573 = vpow2.f32 %v4999_v50  ;;  %v4609_v26 = vpop.permute.xlu0 %4608  ;;  %v4823_v17 = vsub.f32 %v17692_v62, %v4599_v46  ;;  %v5015_v50 = vmul.f32 1.442695, %v4824_v54  ;;  %v17695_v22 = vld [vmem:[#allocation135_spill] sm:$0xff] }
 0x7a7   : > { %6510 = vst.msk [vmem:[#allocation6 + $0x98] sm:$0xff] %vm2057_vm4, %v6446_v7  ;;  %9575 = vpow2.f32 %v4997_v16  ;;  %v4827_v59 = vsub.f32 %v17695_v22, %v4609_v26  ;;  %v4828_v4 = vsub.f32 %v17696_v53, %v4609_v26 }
 0x7a8   : > { %9577 = vpow2.f32 %v5005_v19  ;;  %v5013_v47 = vmul.f32 1.442695, %v4823_v17 }
 0x7a9   : > { %4633 = vperm.xlu1 %9139, %v17691_v60   ;;  %9579 = vpow2.f32 %v5007_v57  ;;  %v5021_v57 = vmul.f32 1.442695, %v4827_v59  ;;  %v5023_v62 = vmul.f32 1.442695, %v4828_v4  ;;  %v17700_v59 = vld [vmem:[#allocation143_spill] sm:$0xff] }
 0x7aa   : > { %v15060_v16 = vpop.permute.xlu0 %5815  ;;  %9581 = vpow2.f32 %v5013_v47 }
 0x7ab   : > { %9583 = vpow2.f32 %v5015_v50 }
 0x7ac   : > { %9585 = vpow2.f32 %v5021_v57 }
 0x7ad   : > { %9587 = vpow2.f32 %v5023_v62 }
 0x7ae   : > { %v9570_v27 = vpop.eup %9569  ;;  %v4619_v19 = vpop.permute.xlu0 %4618 }
 0x7af   : > { %v9572_v30 = vpop.eup %9571  ;;  %v4831_v54 = vsub.f32 %v17698_v32, %v4619_v19 }
 0x7b0   : > { %6236 = vmatprep.mubr.f32.mxu1 %v9572_v30  ;;  %v9574_v37 = vpop.eup %9573  ;;  %v15089_v32 = vadd.f32 %v9572_v30, %v9570_v27  ;;  %v17708_v30 = vld [vmem:[#allocation352_spill] sm:$0xff] }
 0x7b1   : > { %6237 = vmatmul.mubr.f32.gmra.mrb[78].mxu1 %v9570_v27  ;;  %v9576_v56 = vpop.eup %9575  ;;  %v5029_v22 = vmul.f32 1.442695, %v4831_v54  ;;  %v17704_v54 = vld [vmem:[#allocation336_spill] sm:$0xff] }
 0x7b2   : > { %6241 = vmatprep.mubr.f32.mxu1 %v9574_v37  ;;  %v15062_v7 = vadd.f32 %v9576_v56, %v9574_v37  ;;  %v15066_v55 = vpop.eup %9577  ;;  %v17699_v37 = vld [vmem:[#allocation140_spill] sm:$0xff]  ;;  %v4629_v26 = vpop.permute.xlu0 %4628  ;;  %17703 = vst [vmem:[#allocation272_spill] sm:$0xff] %v15089_v32  ;;  %v17713_v32 = vld [vmem:[#allocation199_spill] sm:$0xff] }
 0x7b3   : > { %v15068_v46 = vpop.eup %9579  ;;  %v4835_v53 = vsub.f32 %v17700_v59, %v4629_v26  ;;  %9589 = vpow2.f32 %v5029_v22 }
 0x7b4   : > { %17694 = vst [vmem:[#allocation335_spill] sm:$0xff] %v15062_v7  ;;  %v15072_v17 = vadd.f32 %v15068_v46, %v15066_v55  ;;  %v15077_v47 = vpop.eup %9581  ;;  %v17701_v7 = vld [vmem:[#allocation144_spill] sm:$0xff] }
 0x7b5   : > { %6242 = vmatmul.mubr.f32.gmra.mrb[80].mxu1 %v9576_v56  ;;  %v4832_v56 = vsub.f32 %v17699_v37, %v4619_v19  ;;  %v15079_v50 = vpop.eup %9583  ;;  %v4836_v60 = vsub.f32 %v17701_v7, %v4629_v26  ;;  %v5037_v57 = vmul.f32 1.442695, %v4835_v53 }
 0x7b6   : > { %17697 = vst [vmem:[#allocation191_spill] sm:$0xff] %v15072_v17  ;;  %v15087_v19 = vpop.eup %9585 }
 0x7b7   : > { %v5031_v4 = vmul.f32 1.442695, %v4832_v56  ;;  %v5039_v62 = vmul.f32 1.442695, %v4836_v60  ;;  %v15091_v37 = vpop.eup %9587  ;;  %v15098_v56 = vld [vmem:[#allocation4 + $0x1f8] sm:$0xff] }
 0x7b8   : > { %v15096_v7 = vadd.f32 %v15091_v37, %v15087_v19  ;;  %17706 = vst [vmem:[#allocation69_spill] sm:$0xff] %v15098_v56 }
 0x7b9   : > { %9591 = vpow2.f32 %v5031_v4 }
 0x7ba   : > { %9593 = vpow2.f32 %v5037_v57  ;;  %17705 = vst [vmem:[#allocation68_spill] sm:$0xff] %v15096_v7  ;;  %v17711_v7 = vld [vmem:[#allocation126_spill] sm:$0xff] }
 0x7bb   : > { %9595 = vpow2.f32 %v5039_v62 }
 0x7bd   : > { %5292 = vadd.xlane.f32.xlu0 %v14168_v6  ;;  %v15085_v6 = vadd.f32 %v15079_v50, %v15077_v47  ;;  %v15100_v22 = vpop.eup %9589 }
 0x7bf   : > { %17702 = vst [vmem:[#allocation162_spill] sm:$0xff] %v15085_v6  ;;  %v5146_v6 = vld [vmem:[#allocation5 + $0x8] sm:$0xff] }
 0x7c0   : > { %v5210_v0 = vmul.f32 %v17713_v32, %v5146_v6 }
 0x7c3   : > { %v15105_v27 = vpop.eup %9591 }
 0x7c4   : > { %v15112_v53 = vpop.eup %9593  ;;  %v15116_v4 = vadd.f32 %v15105_v27, %v15100_v22 }
 0x7c5   : > { %v15118_v57 = vpop.eup %9595 }
 0x7c6   : > { %17709 = vst [vmem:[#allocation87_spill] sm:$0xff] %v15116_v4  ;;  %v15124_v17 = vadd.f32 %v15118_v57, %v15112_v53 }
 0x7c8   : > { %17712 = vst [vmem:[#allocation70_spill] sm:$0xff] %v15124_v17  ;;  %v17716_v17 = vld [vmem:[#allocation129_spill] sm:$0xff] }
 0x7cd   : > { %5283 = vadd.xlane.f32.xlu1 %v17704_v54  ;;  %v17710_v54 = vld [vmem:[#allocation125_spill] sm:$0xff] }
 0x7d0   : > { %v4120_v26 = vpop.xlane.xlu1 %4119 }
 0x7d1   : > { %v15103_v60 = vmax.f32 %v15098_v56, %v4120_v26 }
 0x7d3   : > { %17707 = vst [vmem:[#allocation65_spill] sm:$0xff] %v15103_v60  ;;  %6618 = vst.msk [vmem:[#allocation4 + $0x1f8] sm:$0xff] %vm5529_vm6, %v15103_v60  ;;  %4658 = vperm.xlu0 %9138, %v17708_v30  }
 0x7d4   : > { %v15110_v59 = vpop.permute.xlu1 %5780 }
 0x7d8   : > { %v4584_v62 = vpop.permute.xlu1 %4583 }
 0x7d9   : > { %v4817_v26 = vsub.f32 %v17710_v54, %v4584_v62  ;;  %v4818_v56 = vsub.f32 %v17711_v7, %v4584_v62  ;;  %v17715_v7 = vld [vmem:[#allocation152_spill] sm:$0xff] }
 0x7da   : > { %v5211_v62 = vmul.f32 %v17715_v7, %v5147_v10  ;;  %v17719_v7 = vld [vmem:[#allocation134_spill] sm:$0xff] }
 0x7db   : > { %v5001_v30 = vmul.f32 1.442695, %v4817_v26  ;;  %v5003_v60 = vmul.f32 1.442695, %v4818_v56  ;;  %v17717_v56 = vld [vmem:[#allocation130_spill] sm:$0xff] }
 0x7dc   : > { %v15127_v61 = vpop.permute.xlu1 %5790  ;;  %v5278_v4 = vpop.xlane.xlu0 %5277 }
 0x7dd   : > { %9597 = vpow2.f32 %v5001_v30  ;;  %v5466_v34 = vadd.f32 %v5278_v4, %v5210_v0  ;;  %v17718_v4 = vld [vmem:[#allocation133_spill] sm:$0xff] }
 0x7de   : > { %9599 = vpow2.f32 %v5003_v60  ;;  %4643 = vperm.xlu1 %9139, %v17714_v5  }
 0x7df   : > { %5531 = vst.msk [vmem:[#allocation5 + $0x8] sm:$0xff] %vm5529_vm6, %v5466_v34 }
 0x7e0   : > { %v4594_v54 = vpop.permute.xlu1 %4593  ;;  %v5281_v3 = vpop.xlane.xlu0 %5280 }
 0x7e1   : > { %v4821_v26 = vsub.f32 %v17716_v17, %v4594_v54  ;;  %v4822_v36 = vsub.f32 %v17717_v56, %v4594_v54  ;;  %v5467_v6 = vadd.f32 %v5281_v3, %v5211_v62 }
 0x7e3   : > { %v5009_v32 = vmul.f32 1.442695, %v4821_v26  ;;  %v5011_v41 = vmul.f32 1.442695, %v4822_v36  ;;  %5532 = vst.msk [vmem:[#allocation5 + $0x10] sm:$0xff] %vm5529_vm6, %v5467_v6  ;;  %v17721_v26 = vld [vmem:[#allocation137_spill] sm:$0xff] }
 0x7e4   : > { %v15135_v30 = vpop.permute.xlu1 %5800  ;;  %v17722_v6 = vld [vmem:[#allocation138_spill] sm:$0xff] }
 0x7e5   : > { %9601 = vpow2.f32 %v5009_v32 }
 0x7e6   : > { %9603 = vpow2.f32 %v5011_v41 }
 0x7e7   : > { %v9598_v0 = vpop.eup %9597 }
 0x7e8   : > { %v9600_v60 = vpop.eup %9599  ;;  %v4604_v34 = vpop.permute.xlu1 %4603 }
 0x7e9   : > { %v4825_v10 = vsub.f32 %v17718_v4, %v4604_v34  ;;  %v4826_v5 = vsub.f32 %v17719_v7, %v4604_v34  ;;  %6246 = vmatprep.mubr.f32.mxu1 %v9600_v60  ;;  %v4639_v7 = vpop.permute.xlu0 %4638 }
 0x7ea   : > { %6247 = vmatmul.mubr.f32.gmra.mrb[82].mxu1 %v9598_v0 }
 0x7eb   : > { %v5017_v17 = vmul.f32 1.442695, %v4825_v10  ;;  %6251 = vmatprep.mubr.f32.mxu1 %v15068_v46  ;;  %v5019_v3 = vmul.f32 1.442695, %v4826_v5 }
 0x7ec   : > { %v15140_v36 = vpop.permute.xlu1 %5810 }
 0x7ed   : > { %9605 = vpow2.f32 %v5017_v17  ;;  %v17724_v17 = vld [vmem:[#allocation141_spill] sm:$0xff] }
 0x7ee   : > { %6252 = vmatmul.mubr.f32.gmra.mrb[84].mxu1 %v15066_v55  ;;  %9607 = vpow2.f32 %v5019_v3  ;;  %v17723_v55 = vld [vmem:[#allocation142_spill] sm:$0xff] }
 0x7ef   : > { %v9602_v62 = vpop.eup %9601 }
 0x7f0   : > { %v9604_v41 = vpop.eup %9603  ;;  %v4614_v54 = vpop.permute.xlu1 %4613 }
 0x7f1   : > { %v4829_v56 = vsub.f32 %v17721_v26, %v4614_v54  ;;  %v4830_v32 = vsub.f32 %v17722_v6, %v4614_v54  ;;  %6256 = vmatprep.mubr.f32.mxu1 %v9604_v41 }
 0x7f2   : > { %6257 = vmatmul.mubr.f32.gmra.mrb[86].mxu1 %v9602_v62  ;;  %5298 = vadd.xlane.f32.xlu0 %v14342_v38 }
 0x7f3   : > { %v5025_v34 = vmul.f32 1.442695, %v4829_v56  ;;  %v5027_v4 = vmul.f32 1.442695, %v4830_v32  ;;  %6261 = vmatprep.mubr.f32.mxu1 %v15079_v50  ;;  %v17725_v56 = vld [vmem:[#allocation184_spill] sm:$0xff]  ;;  %v17726_v50 = vld [vmem:[#allocation185_spill] sm:$0xff] }
 0x7f4   : > { %v4624_v5 = vpop.permute.xlu1 %4623  ;;  %v4839_v38 = vsub.f32 %v17725_v56, %v4639_v7  ;;  %v4840_v6 = vsub.f32 %v17726_v50, %v4639_v7  ;;  %v5149_v56 = vld [vmem:[#allocation5 + $0x20] sm:$0xff]  ;;  %v17728_v50 = vld [vmem:[#allocation317_spill] sm:$0xff] }
 0x7f5   : > { %9609 = vpow2.f32 %v5027_v4  ;;  %v4834_v46 = vsub.f32 %v17723_v55, %v4624_v5  ;;  %v4833_v3 = vsub.f32 %v17724_v17, %v4624_v5  ;;  %v15156_v55 = vadd.f32 %v9600_v60, %v9598_v0 }
 0x7f6   : > { %6262 = vmatmul.mubr.f32.gmra.mrb[88].mxu1 %v15077_v47  ;;  %9611 = vpow2.f32 %v5025_v34  ;;  %v5045_v34 = vmul.f32 1.442695, %v4839_v38  ;;  %v5047_v5 = vmul.f32 1.442695, %v4840_v6 }
 0x7f7   : > { %v9606_v10 = vpop.eup %9605  ;;  %v5035_v26 = vmul.f32 1.442695, %v4834_v46  ;;  %v5033_v32 = vmul.f32 1.442695, %v4833_v3  ;;  %v3848_v46 = vld [vmem:[%s3847_s4] sm:$0xff] }
 0x7f8   : > { %v9608_v54 = vpop.eup %9607 }
 0x7f9   : > { %6266 = vmatprep.mubr.f32.mxu1 %v9608_v54  ;;  %9613 = vpow2.f32 %v5035_v26  ;;  %v15167_v38 = vadd.f32 %v9608_v54, %v9606_v10 }
 0x7fa   : > { %6267 = vmatmul.mubr.f32.gmra.mrb[90].mxu1 %v9606_v10  ;;  %9615 = vpow2.f32 %v5033_v32 }
 0x7fb   : > { %6271 = vmatprep.mubr.f32.mxu1 %v15091_v37  ;;  %9617 = vpow2.f32 %v5045_v34  ;;  %v3849_v37 = vld [vmem:[%s3847_s4 + $0x8] sm:$0xff] }
 0x7fc   : > { %9619 = vpow2.f32 %v5047_v5  ;;  %v5145_v5 = vld [vmem:[#allocation5] sm:$0xff] }
 0x7fe   : > { %6272 = vmatmul.mubr.f32.gmra.mrb[92].mxu1 %v15087_v19 }
 0x7ff   : > { %v9610_v47 = vpop.eup %9609 }
 0x800   : > { %v9612_v4 = vpop.eup %9611  ;;  %6276 = vmatprep.mubr.f32.mxu1 %v9610_v47 }
 0x802   : > { %5289 = vadd.xlane.f32.xlu1 %v14172_v13  ;;  %6277 = vmatmul.mubr.f32.gmra.mrb[94].mxu1 %v9612_v4  ;;  %v15161_v13 = vadd.f32 %v9604_v41, %v9602_v62  ;;  %v17729_v62 = vld [vmem:[#allocation256_spill] sm:$0xff] }
 0x803   : > { %6281 = vmatprep.mubr.f32.mxu1 %v15105_v27  ;;  %v9614_v17 = vpop.eup %9613  ;;  %v5213_v41 = vmul.f32 %v17729_v62, %v5149_v56 }
 0x804   : > { %v9616_v0 = vpop.eup %9615 }
 0x805   : > { %v15164_v27 = vpop.eup %9617  ;;  %v15177_v34 = vadd.f32 %v9616_v0, %v9614_v17 }
 0x806   : > { %v3920_v7 = vpop.f32.mrb[64].mxu1  ;;  %6282 = vmatmul.mubr.f32.gmra.mrb[96].mxu1 %v15100_v22  ;;  %v9620_v60 = vpop.eup %9619 }
 0x807   : > { %v3925_v3 = vadd.f32 %v3920_v7, %v3848_v46  ;;  %v3922_v19 = vpop.f32.mrb[65].mxu1  ;;  %6286 = vmatprep.mubr.f32.mxu1 %v9614_v17  ;;  %v15170_v22 = vadd.f32 %v9620_v60, %v15164_v27 }
 0x808   : > { %v3926_v26 = vadd.f32 %v3922_v19, %v3849_v37  ;;  %4668 = vperm.xlu0 %9138, %v14280_v45   ;;  %v5614_v37 = vld [vmem:[#allocation6 + $0xa0] sm:$0xff] }
 0x809   : > { %3927 = vst [vmem:[%s3847_s4] sm:$0xff] %v3925_v3  ;;  %17727 = vst [vmem:[#allocation71_spill] sm:$0xff] %v15170_v22  ;;  %v17731_v3 = vld [vmem:[#allocation178_spill] sm:$0xff]  ;;  %v17803_v22 = vld [vmem:[#allocation155_spill] sm:$0xff] }
 0x80a   : > { %3928 = vst [vmem:[%s3847_s4 + $0x8] sm:$0xff] %v3926_v26  ;;  %6287 = vmatmul.mubr.f32.gmra.mrb[98].mxu1 %v9616_v0  ;;  %v17732_v26 = vld [vmem:[#allocation179_spill] sm:$0xff] }
 0x80b   : > { %6291 = vmatprep.mubr.f32.mxu1 %v15118_v57  ;;  %v15175_v57 = vadd.f32 %v9612_v4, %v9610_v47  ;;  %v5998_v47 = vmul.f32 %v14995_v18, %v5614_v37  ;;  %v5615_v4 = vld [vmem:[#allocation6 + $0xa8] sm:$0xff]  ;;  %v17734_v18 = vld [vmem:[#allocation150_spill] sm:$0xff] }
 0x80e   : > { %6292 = vmatmul.mubr.f32.gmra.mrb[100].mxu1 %v15112_v53  ;;  %v17730_v53 = vld [vmem:[#allocation188_spill] sm:$0xff] }
 0x80f   : > { %v5209_v46 = vmul.f32 %v17730_v53, %v5145_v5  ;;  %v5999_v5 = vmul.f32 %v14987_v35, %v5615_v4 }
 0x813   : > { %4653 = vperm.xlu1 %9139, %v17728_v50  }
 0x815   : > { %v5287_v6 = vpop.xlane.xlu0 %5286 }
 0x816   : > { %v5469_v32 = vadd.f32 %v5287_v6, %v5213_v41 }
 0x818   : > { %5534 = vst.msk [vmem:[#allocation5 + $0x20] sm:$0xff] %vm5529_vm6, %v5469_v32 }
 0x81d   : > { %v4649_v32 = vpop.permute.xlu0 %4648 }
 0x81e   : > { %v4844_v37 = vsub.f32 %v17734_v18, %v4649_v32  ;;  %v17739_v18 = vld [vmem:[#allocation258_spill] sm:$0xff] }
 0x820   : > { %v5055_v4 = vmul.f32 1.442695, %v4844_v37 }
 0x825   : > { %v5275_v10 = vpop.xlane.xlu1 %5274 }
 0x826   : > { %v5465_v54 = vadd.f32 %v5275_v10, %v5209_v46 }
 0x827   : > { %5304 = vadd.xlane.f32.xlu0 %v14493_v14  ;;  %v5616_v14 = vld [vmem:[#allocation6 + $0xb0] sm:$0xff] }
 0x828   : > { %5530 = vst.msk [vmem:[#allocation5] sm:$0xff] %vm5529_vm6, %v5465_v54  ;;  %v17733_v54 = vld [vmem:[#allocation192_spill] sm:$0xff] }
 0x829   : > { %v4634_v7 = vpop.permute.xlu1 %4633 }
 0x82a   : > { %v4837_v19 = vsub.f32 %v17731_v3, %v4634_v7  ;;  %v4838_v56 = vsub.f32 %v17732_v26, %v4634_v7  ;;  %v4843_v7 = vsub.f32 %v17733_v54, %v4649_v32  ;;  %v6000_v3 = vmul.f32 %v15040_v49, %v5616_v14  ;;  %v17736_v49 = vld [vmem:[#allocation151_spill] sm:$0xff]  ;;  %v17738_v54 = vld [vmem:[#allocation180_spill] sm:$0xff] }
 0x82b   : > { %v6208_v17 = vpop.f32.mrb[66].mxu1 }
 0x82c   : > { %v5041_v0 = vmul.f32 1.442695, %v4837_v19  ;;  %v5043_v62 = vmul.f32 1.442695, %v4838_v56  ;;  %v6447_v41 = vadd.f32 %v6208_v17, %v5998_v47  ;;  %v6210_v6 = vpop.f32.mrb[67].mxu1  ;;  %v5617_v19 = vld [vmem:[#allocation6 + $0xb8] sm:$0xff] }
 0x82d   : > { %v5053_v35 = vmul.f32 1.442695, %v4843_v7  ;;  %v6001_v17 = vmul.f32 %v15025_v42, %v5617_v19 }
 0x82e   : > { %9621 = vpow2.f32 %v5041_v0  ;;  %6511 = vst.msk [vmem:[#allocation6 + $0xa0] sm:$0xff] %vm2057_vm4, %v6447_v41  ;;  %v17735_v0 = vld [vmem:[#allocation186_spill] sm:$0xff] }
 0x82f   : > { %9623 = vpow2.f32 %v5043_v62  ;;  %v6213_v53 = vpop.f32.mrb[68].mxu1 }
 0x830   : > { %v6448_v46 = vadd.f32 %v6213_v53, %v5999_v5  ;;  %v6215_v10 = vpop.f32.mrb[69].mxu1  ;;  %9625 = vpow2.f32 %v5053_v35  ;;  %v5618_v53 = vld [vmem:[#allocation6 + $0xc0] sm:$0xff] }
 0x831   : > { %9627 = vpow2.f32 %v5055_v4  ;;  %v6002_v7 = vmul.f32 %v15110_v59, %v5618_v53 }
 0x832   : > { %6512 = vst.msk [vmem:[#allocation6 + $0xa8] sm:$0xff] %vm2057_vm4, %v6448_v46  ;;  %v5151_v46 = vld [vmem:[#allocation5 + $0x30] sm:$0xff] }
 0x833   : > { %v6218_v26 = vpop.f32.mrb[70].mxu1  ;;  %v5215_v37 = vmul.f32 %v17739_v18, %v5151_v46  ;;  %v17741_v46 = vld [vmem:[#allocation193_spill] sm:$0xff]  ;;  %v17742_v18 = vld [vmem:[#allocation148_spill] sm:$0xff] }
 0x834   : > { %v6449_v56 = vadd.f32 %v6218_v26, %v6000_v3  ;;  %v6220_v47 = vpop.f32.mrb[71].mxu1  ;;  %v5619_v3 = vld [vmem:[#allocation6 + $0xc8] sm:$0xff] }
 0x836   : > { %6513 = vst.msk [vmem:[#allocation6 + $0xb0] sm:$0xff] %vm2057_vm4, %v6449_v56 }
 0x837   : > { %5295 = vadd.xlane.f32.xlu1 %v17735_v0  ;;  %v6223_v41 = vpop.f32.mrb[72].mxu1  ;;  %v5148_v0 = vld [vmem:[#allocation5 + $0x18] sm:$0xff] }
 0x838   : > { %v9622_v62 = vpop.eup %9621  ;;  %v6450_v32 = vadd.f32 %v6223_v41, %v6001_v17  ;;  %v6225_v5 = vpop.f32.mrb[73].mxu1  ;;  %v17740_v41 = vld [vmem:[#allocation145_spill] sm:$0xff] }
 0x839   : > { %v9624_v6 = vpop.eup %9623 }
 0x83a   : > { %6296 = vmatprep.mubr.f32.mxu1 %v9624_v6  ;;  %6514 = vst.msk [vmem:[#allocation6 + $0xb8] sm:$0xff] %vm2057_vm4, %v6450_v32  ;;  %v9626_v42 = vpop.eup %9625  ;;  %v15206_v59 = vadd.f32 %v9624_v6, %v9622_v62  ;;  %v5212_v32 = vmul.f32 %v17740_v41, %v5148_v0  ;;  %v5153_v41 = vld [vmem:[#allocation5 + $0x40] sm:$0xff] }
 0x83b   : > { %6297 = vmatmul.mubr.f32.gmra.mrb[102].mxu1 %v9622_v62  ;;  %v9628_v14 = vpop.eup %9627  ;;  %v17743_v62 = vld [vmem:[#allocation194_spill] sm:$0xff] }
 0x83c   : > { %6301 = vmatprep.mubr.f32.mxu1 %v9620_v60  ;;  %v15197_v10 = vadd.f32 %v9628_v14, %v9626_v42 }
 0x83d   : > { %4678 = vperm.xlu0 %9138, %v17736_v49  }
 0x83e   : > { %17737 = vst [vmem:[#allocation278_spill] sm:$0xff] %v15197_v10 }
 0x83f   : > { %6302 = vmatmul.mubr.f32.gmra.mrb[104].mxu1 %v15164_v27  ;;  %v6003_v27 = vmul.f32 %v15028_v15, %v5619_v3 }
 0x848   : > { %4663 = vperm.xlu1 %9139, %v17738_v54  }
 0x84a   : > { %v5293_v19 = vpop.xlane.xlu0 %5292 }
 0x84b   : > { %v6228_v26 = vpop.f32.mrb[74].mxu1  ;;  %v5471_v60 = vadd.f32 %v5293_v19, %v5215_v37 }
 0x84c   : > { %v6451_v56 = vadd.f32 %v6228_v26, %v6002_v7  ;;  %v6230_v47 = vpop.f32.mrb[75].mxu1 }
 0x84d   : > { %5536 = vst.msk [vmem:[#allocation5 + $0x30] sm:$0xff] %vm5529_vm6, %v5471_v60  ;;  %v17744_v60 = vld [vmem:[#allocation146_spill] sm:$0xff] }
 0x84e   : > { %6515 = vst.msk [vmem:[#allocation6 + $0xc0] sm:$0xff] %vm2057_vm4, %v6451_v56 }
 0x84f   : > { %v6233_v35 = vpop.f32.mrb[76].mxu1 }
 0x850   : > { %v6452_v4 = vadd.f32 %v6233_v35, %v6003_v27  ;;  %v6235_v17 = vpop.f32.mrb[77].mxu1  ;;  %v17745_v35 = vld [vmem:[#allocation171_spill] sm:$0xff] }
 0x852   : > { %6516 = vst.msk [vmem:[#allocation6 + $0xc8] sm:$0xff] %vm2057_vm4, %v6452_v4  ;;  %v4659_v26 = vpop.permute.xlu0 %4658 }
 0x853   : > { %v4847_v6 = vsub.f32 %v17743_v62, %v4659_v26  ;;  %v4848_v56 = vsub.f32 %v17744_v60, %v4659_v26 }
 0x855   : > { %v5061_v47 = vmul.f32 1.442695, %v4847_v6  ;;  %v5063_v27 = vmul.f32 1.442695, %v4848_v56 }
 0x85a   : > { %v5284_v5 = vpop.xlane.xlu1 %5283 }
 0x85b   : > { %v5468_v53 = vadd.f32 %v5284_v5, %v5212_v32  ;;  %v17747_v5 = vld [vmem:[#allocation85_spill] sm:$0xff] }
 0x85c   : > { %5310 = vadd.xlane.f32.xlu0 %v14671_v8 }
 0x85d   : > { %5533 = vst.msk [vmem:[#allocation5 + $0x18] sm:$0xff] %vm5529_vm6, %v5468_v53  ;;  %v17748_v53 = vld [vmem:[#allocation349_spill] sm:$0xff] }
 0x85e   : > { %v4644_v15 = vpop.permute.xlu1 %4643 }
 0x85f   : > { %v4841_v7 = vsub.f32 %v17741_v46, %v4644_v15  ;;  %v4842_v37 = vsub.f32 %v17742_v18, %v4644_v15  ;;  %v5217_v15 = vmul.f32 %v17748_v53, %v5153_v41  ;;  %v5620_v46 = vld [vmem:[#allocation6 + $0xd0] sm:$0xff] }
 0x861   : > { %v5049_v3 = vmul.f32 1.442695, %v4841_v7  ;;  %v5051_v19 = vmul.f32 1.442695, %v4842_v37  ;;  %v6004_v37 = vmul.f32 %v15127_v61, %v5620_v46  ;;  %v17751_v46 = vld [vmem:[#allocation153_spill] sm:$0xff] }
 0x863   : > { %9629 = vpow2.f32 %v5049_v3 }
 0x864   : > { %9631 = vpow2.f32 %v5051_v19 }
 0x865   : > { %9633 = vpow2.f32 %v5061_v47  ;;  %v5150_v47 = vld [vmem:[#allocation5 + $0x28] sm:$0xff] }
 0x866   : > { %9635 = vpow2.f32 %v5063_v27  ;;  %v17749_v27 = vld [vmem:[#allocation254_spill] sm:$0xff] }
 0x867   : > { %v5214_v61 = vmul.f32 %v17749_v27, %v5150_v47  ;;  %v5155_v27 = vld [vmem:[#allocation5 + $0x50] sm:$0xff] }
 0x86c   : > { %5301 = vadd.xlane.f32.xlu1 %v17745_v35 }
 0x86d   : > { %v9630_v4 = vpop.eup %9629 }
 0x86e   : > { %v9632_v8 = vpop.eup %9631 }
 0x86f   : > { %6306 = vmatprep.mubr.f32.mxu1 %v9632_v8  ;;  %v9634_v17 = vpop.eup %9633  ;;  %v15225_v6 = vadd.f32 %v9632_v8, %v9630_v4 }
 0x870   : > { %6307 = vmatmul.mubr.f32.gmra.mrb[106].mxu1 %v9630_v4  ;;  %v9636_v0 = vpop.eup %9635 }
 0x871   : > { %6311 = vmatprep.mubr.f32.mxu1 %v9628_v14  ;;  %v15217_v32 = vadd.f32 %v9636_v0, %v9634_v17  ;;  %v5621_v14 = vld [vmem:[#allocation6 + $0xd8] sm:$0xff] }
 0x872   : > { %4688 = vperm.xlu0 %9138, %v14682_v11   ;;  %v6005_v26 = vmul.f32 %v15042_v1, %v5621_v14  ;;  %v17750_v1 = vld [vmem:[#allocation196_spill] sm:$0xff] }
 0x873   : > { %17746 = vst [vmem:[#allocation282_spill] sm:$0xff] %v15217_v32  ;;  %v17802_v32 = vld [vmem:[#allocation212_spill] sm:$0xff] }
 0x874   : > { %6312 = vmatmul.mubr.f32.gmra.mrb[108].mxu1 %v9626_v42 }
 0x87d   : > { %4673 = vperm.xlu1 %9139, %v17747_v5  }
 0x87f   : > { %v5299_v7 = vpop.xlane.xlu0 %5298 }
 0x880   : > { %v5473_v18 = vadd.f32 %v5299_v7, %v5217_v15 }
 0x882   : > { %5538 = vst.msk [vmem:[#allocation5 + $0x40] sm:$0xff] %vm5529_vm6, %v5473_v18 }
 0x884   : > { %v6238_v3 = vpop.f32.mrb[78].mxu1 }
 0x885   : > { %v6453_v19 = vadd.f32 %v6238_v3, %v6004_v37  ;;  %v6240_v42 = vpop.f32.mrb[79].mxu1  ;;  %v17752_v37 = vld [vmem:[#allocation198_spill] sm:$0xff]  ;;  %v17753_v3 = vld [vmem:[#allocation156_spill] sm:$0xff] }
 0x887   : > { %6517 = vst.msk [vmem:[#allocation6 + $0xd0] sm:$0xff] %vm2057_vm4, %v6453_v19  ;;  %v4669_v18 = vpop.permute.xlu0 %4668 }
 0x888   : > { %v6243_v62 = vpop.f32.mrb[80].mxu1  ;;  %v4851_v14 = vsub.f32 %v17752_v37, %v4669_v18  ;;  %v4852_v19 = vsub.f32 %v17753_v3, %v4669_v18  ;;  %v5624_v3 = vld [vmem:[#allocation6 + $0xf0] sm:$0xff] }
 0x889   : > { %v6454_v60 = vadd.f32 %v6243_v62, %v6005_v26  ;;  %v6245_v56 = vpop.f32.mrb[81].mxu1  ;;  %v17754_v62 = vld [vmem:[#allocation246_spill] sm:$0xff] }
 0x88a   : > { %v5069_v42 = vmul.f32 1.442695, %v4851_v14  ;;  %v5071_v26 = vmul.f32 1.442695, %v4852_v19  ;;  %v5152_v14 = vld [vmem:[#allocation5 + $0x38] sm:$0xff] }
 0x88b   : > { %6518 = vst.msk [vmem:[#allocation6 + $0xd8] sm:$0xff] %vm2057_vm4, %v6454_v60 }
 0x88f   : > { %v5290_v35 = vpop.xlane.xlu1 %5289 }
 0x890   : > { %v5470_v41 = vadd.f32 %v5290_v35, %v5214_v61  ;;  %v17756_v35 = vld [vmem:[#allocation249_spill] sm:$0xff] }
 0x891   : > { %5316 = vadd.xlane.f32.xlu0 %v14743_v33 }
 0x892   : > { %5535 = vst.msk [vmem:[#allocation5 + $0x28] sm:$0xff] %vm5529_vm6, %v5470_v41  ;;  %v17757_v41 = vld [vmem:[#allocation86_spill] sm:$0xff] }
 0x893   : > { %v4654_v53 = vpop.permute.xlu1 %4653 }
 0x894   : > { %v4845_v15 = vsub.f32 %v17750_v1, %v4654_v53  ;;  %v4846_v7 = vsub.f32 %v17751_v46, %v4654_v53  ;;  %v5219_v53 = vmul.f32 %v17757_v41, %v5155_v27  ;;  %v5623_v46 = vld [vmem:[#allocation6 + $0xe8] sm:$0xff]  ;;  %v6008_v41 = vmul.f32 %v15140_v36, %v5624_v3 }
 0x895   : > { %v6007_v37 = vmul.f32 %v15055_v48, %v5623_v46  ;;  %v17760_v36 = vld [vmem:[#allocation163_spill] sm:$0xff] }
 0x896   : > { %v5057_v4 = vmul.f32 1.442695, %v4845_v15  ;;  %v5059_v8 = vmul.f32 1.442695, %v4846_v7 }
 0x898   : > { %9637 = vpow2.f32 %v5057_v4 }
 0x899   : > { %9639 = vpow2.f32 %v5059_v8 }
 0x89a   : > { %9641 = vpow2.f32 %v5069_v42 }
 0x89b   : > { %9643 = vpow2.f32 %v5071_v26 }
 0x8a1   : > { %5307 = vadd.xlane.f32.xlu1 %v17754_v62  ;;  %v17758_v62 = vld [vmem:[#allocation260_spill] sm:$0xff] }
 0x8a2   : > { %v9638_v60 = vpop.eup %9637  ;;  %v5216_v27 = vmul.f32 %v17758_v62, %v5152_v14  ;;  %v17762_v62 = vld [vmem:[#allocation160_spill] sm:$0xff] }
 0x8a3   : > { %v9640_v33 = vpop.eup %9639 }
 0x8a4   : > { %6316 = vmatprep.mubr.f32.mxu1 %v9640_v33  ;;  %v15237_v56 = vpop.eup %9641  ;;  %v15249_v4 = vadd.f32 %v9640_v33, %v9638_v60 }
 0x8a5   : > { %6317 = vmatmul.mubr.f32.gmra.mrb[110].mxu1 %v9638_v60  ;;  %v15239_v47 = vpop.eup %9643  ;;  %v5625_v60 = vld [vmem:[#allocation6 + $0xf8] sm:$0xff] }
 0x8a6   : > { %6321 = vmatprep.mubr.f32.mxu1 %v9636_v0  ;;  %v15243_v61 = vadd.f32 %v15239_v47, %v15237_v56  ;;  %v5622_v0 = vld [vmem:[#allocation6 + $0xe0] sm:$0xff]  ;;  %v6009_v48 = vmul.f32 %v15060_v16, %v5625_v60  ;;  %v17761_v16 = vld [vmem:[#allocation200_spill] sm:$0xff] }
 0x8a7   : > { %4698 = vperm.xlu0 %9138, %v14752_v29  }
 0x8a8   : > { %17755 = vst [vmem:[#allocation72_spill] sm:$0xff] %v15243_v61 }
 0x8a9   : > { %6322 = vmatmul.mubr.f32.gmra.mrb[112].mxu1 %v9634_v17  ;;  %v6006_v17 = vmul.f32 %v15135_v30, %v5622_v0 }
 0x8b2   : > { %4683 = vperm.xlu1 %9139, %v17756_v35  }
 0x8b4   : > { %v5305_v1 = vpop.xlane.xlu0 %5304 }
 0x8b5   : > { %v5475_v15 = vadd.f32 %v5305_v1, %v5219_v53 }
 0x8b7   : > { %5540 = vst.msk [vmem:[#allocation5 + $0x50] sm:$0xff] %vm5529_vm6, %v5475_v15 }
 0x8bd   : > { %v6248_v7 = vpop.f32.mrb[82].mxu1 }
 0x8be   : > { %v6455_v8 = vadd.f32 %v6248_v7, %v6006_v17  ;;  %v6250_v18 = vpop.f32.mrb[83].mxu1  ;;  %v17759_v17 = vld [vmem:[#allocation158_spill] sm:$0xff] }
 0x8c0   : > { %6519 = vst.msk [vmem:[#allocation6 + $0xe0] sm:$0xff] %vm2057_vm4, %v6455_v8 }
 0x8c1   : > { %v6253_v19 = vpop.f32.mrb[84].mxu1 }
 0x8c2   : > { %v6456_v42 = vadd.f32 %v6253_v19, %v6007_v37  ;;  %v6255_v26 = vpop.f32.mrb[85].mxu1  ;;  %v4679_v19 = vpop.permute.xlu0 %4678 }
 0x8c4   : > { %6520 = vst.msk [vmem:[#allocation6 + $0xe8] sm:$0xff] %vm2057_vm4, %v6456_v42  ;;  %v5296_v30 = vpop.xlane.xlu1 %5295  ;;  %v4855_v42 = vsub.f32 %v17761_v16, %v4679_v19 }
 0x8c5   : > { %v5472_v33 = vadd.f32 %v5296_v30, %v5216_v27  ;;  %v6258_v53 = vpop.f32.mrb[86].mxu1  ;;  %v4856_v27 = vsub.f32 %v17762_v62, %v4679_v19 }
 0x8c6   : > { %v6457_v1 = vadd.f32 %v6258_v53, %v6008_v41  ;;  %v6260_v15 = vpop.f32.mrb[87].mxu1  ;;  %5322 = vadd.xlane.f32.xlu0 %v14791_v58  ;;  %v5077_v30 = vmul.f32 1.442695, %v4855_v42  ;;  %v5154_v42 = vld [vmem:[#allocation5 + $0x48] sm:$0xff] }
 0x8c7   : > { %5537 = vst.msk [vmem:[#allocation5 + $0x38] sm:$0xff] %vm5529_vm6, %v5472_v33  ;;  %v5079_v33 = vmul.f32 1.442695, %v4856_v27 }
 0x8c8   : > { %6521 = vst.msk [vmem:[#allocation6 + $0xf0] sm:$0xff] %vm2057_vm4, %v6457_v1  ;;  %v4664_v0 = vpop.permute.xlu1 %4663 }
 0x8c9   : > { %v4849_v46 = vsub.f32 %v17759_v17, %v4664_v0  ;;  %v4850_v7 = vsub.f32 %v17760_v36, %v4664_v0  ;;  %v6263_v8 = vpop.f32.mrb[88].mxu1 }
 0x8ca   : > { %v6458_v18 = vadd.f32 %v6263_v8, %v6009_v48  ;;  %v6265_v37 = vpop.f32.mrb[89].mxu1 }
 0x8cb   : > { %v5065_v14 = vmul.f32 1.442695, %v4849_v46  ;;  %v5067_v3 = vmul.f32 1.442695, %v4850_v7  ;;  %v5157_v37 = vld [vmem:[#allocation5 + $0x60] sm:$0xff] }
 0x8cc   : > { %6522 = vst.msk [vmem:[#allocation6 + $0xf8] sm:$0xff] %vm2057_vm4, %v6458_v18 }
 0x8cd   : > { %9645 = vpow2.f32 %v5065_v14  ;;  %v15263_v58 = vpop.f32.mrb[90].mxu1 }
 0x8ce   : > { %9647 = vpow2.f32 %v5067_v3  ;;  %v6270_v26 = vpop.f32.mrb[91].mxu1  ;;  %v17764_v3 = vld [vmem:[#allocation250_spill] sm:$0xff] }
 0x8cf   : > { %9649 = vpow2.f32 %v5077_v30  ;;  %v17765_v26 = vld [vmem:[#allocation161_spill] sm:$0xff] }
 0x8d0   : > { %9651 = vpow2.f32 %v5079_v33  ;;  %v5218_v62 = vmul.f32 %v17765_v26, %v5154_v42  ;;  %v17766_v33 = vld [vmem:[#allocation165_spill] sm:$0xff] }
 0x8d1   : > { %v15267_v41 = vpop.f32.mrb[92].mxu1 }
 0x8d2   : > { %v6275_v60 = vpop.f32.mrb[93].mxu1 }
 0x8d5   : > { %v15270_v1 = vpop.f32.mrb[94].mxu1 }
 0x8d6   : > { %5313 = vadd.xlane.f32.xlu1 %v14630_v25  ;;  %v6280_v48 = vpop.f32.mrb[95].mxu1 }
 0x8d7   : > { %v9646_v53 = vpop.eup %9645 }
 0x8d8   : > { %v9648_v15 = vpop.eup %9647 }
 0x8d9   : > { %6326 = vmatprep.mubr.f32.mxu1 %v9648_v15  ;;  %v15272_v0 = vpop.f32.mrb[96].mxu1  ;;  %v9650_v36 = vpop.eup %9649 }
 0x8da   : > { %6327 = vmatmul.mubr.f32.gmra.mrb[114].mxu1 %v9646_v53  ;;  %v6285_v17 = vpop.f32.mrb[97].mxu1  ;;  %v9652_v7 = vpop.eup %9651 }
 0x8db   : > { %6331 = vmatprep.mubr.f32.mxu1 %v15239_v47  ;;  %v15281_v14 = vadd.f32 %v9652_v7, %v9650_v36  ;;  %v5221_v47 = vmul.f32 %v17764_v3, %v5157_v37  ;;  %v17767_v17 = vld [vmem:[#allocation170_spill] sm:$0xff] }
 0x8dc   : > { %4708 = vperm.xlu0 %9138, %v14799_v51  }
 0x8dd   : > { %v15277_v46 = vpop.f32.mrb[98].mxu1  ;;  %17763 = vst [vmem:[#allocation73_spill] sm:$0xff] %v15281_v14 }
 0x8de   : > { %6332 = vmatmul.mubr.f32.gmra.mrb[116].mxu1 %v15237_v56  ;;  %v6290_v25 = vpop.f32.mrb[99].mxu1  ;;  %v15286_v56 = vadd.f32 %v9648_v15, %v9646_v53  ;;  %v17768_v53 = vld [vmem:[#allocation203_spill] sm:$0xff] }
 0x8e1   : > { %v15279_v8 = vpop.f32.mrb[100].mxu1 }
 0x8e2   : > { %v6295_v18 = vpop.f32.mrb[101].mxu1 }
 0x8e7   : > { %4693 = vperm.xlu1 %9139, %v14643_v23  }
 0x8e9   : > { %v5311_v19 = vpop.xlane.xlu0 %5310 }
 0x8ea   : > { %v5477_v16 = vadd.f32 %v5311_v19, %v5221_v47  ;;  %v17769_v47 = vld [vmem:[#allocation167_spill] sm:$0xff] }
 0x8ec   : > { %5542 = vst.msk [vmem:[#allocation5 + $0x60] sm:$0xff] %vm5529_vm6, %v5477_v16 }
 0x8f1   : > { %v4689_v3 = vpop.permute.xlu0 %4688 }
 0x8f2   : > { %v4859_v15 = vsub.f32 %v17768_v53, %v4689_v3  ;;  %v4860_v19 = vsub.f32 %v17769_v47, %v4689_v3  ;;  %v5156_v3 = vld [vmem:[#allocation5 + $0x58] sm:$0xff]  ;;  %v17772_v53 = vld [vmem:[#allocation83_spill] sm:$0xff] }
 0x8f4   : > { %v5085_v16 = vmul.f32 1.442695, %v4859_v15  ;;  %v5087_v42 = vmul.f32 1.442695, %v4860_v19  ;;  %v5220_v15 = vmul.f32 %v17772_v53, %v5156_v3 }
 0x8f9   : > { %v5302_v27 = vpop.xlane.xlu1 %5301 }
 0x8fa   : > { %v5474_v30 = vadd.f32 %v5302_v27, %v5218_v62 }
 0x8fb   : > { %5328 = vadd.xlane.f32.xlu0 %v14837_v39 }
 0x8fc   : > { %5539 = vst.msk [vmem:[#allocation5 + $0x48] sm:$0xff] %vm5529_vm6, %v5474_v30 }
 0x8fd   : > { %v4674_v60 = vpop.permute.xlu1 %4673 }
 0x8fe   : > { %v4853_v48 = vsub.f32 %v17766_v33, %v4674_v60  ;;  %v4854_v25 = vsub.f32 %v17767_v17, %v4674_v60  ;;  %v5159_v17 = vld [vmem:[#allocation5 + $0x70] sm:$0xff] }
 0x900   : > { %v5073_v18 = vmul.f32 1.442695, %v4853_v48  ;;  %v5075_v37 = vmul.f32 1.442695, %v4854_v25  ;;  %v5223_v25 = vmul.f32 %v14659_v21, %v5159_v17 }
 0x902   : > { %9653 = vpow2.f32 %v5073_v18 }
 0x903   : > { %9655 = vpow2.f32 %v5075_v37 }
 0x904   : > { %9657 = vpow2.f32 %v5085_v16  ;;  %v17773_v16 = vld [vmem:[#allocation172_spill] sm:$0xff] }
 0x905   : > { %9659 = vpow2.f32 %v5087_v42 }
 0x90b   : > { %5319 = vadd.xlane.f32.xlu1 %v14730_v20 }
 0x90c   : > { %v9654_v26 = vpop.eup %9653 }
 0x90d   : > { %v9656_v39 = vpop.eup %9655 }
 0x90e   : > { %v15296_v62 = vpop.f32.mrb[102].mxu1  ;;  %6336 = vmatprep.mubr.f32.mxu1 %v9656_v39  ;;  %v9658_v33 = vpop.eup %9657 }
 0x90f   : > { %17770 = vst [vmem:[#allocation67_spill] sm:$0xff] %v15296_v62  ;;  %v6300_v27 = vpop.f32.mrb[103].mxu1  ;;  %6337 = vmatmul.mubr.f32.gmra.mrb[118].mxu1 %v9654_v26  ;;  %v9660_v48 = vpop.eup %9659 }
 0x910   : > { %6341 = vmatprep.mubr.f32.mxu1 %v9652_v7  ;;  %v15301_v20 = vadd.f32 %v9660_v48, %v9658_v33  ;;  %v15306_v7 = vadd.f32 %v9656_v39, %v9654_v26  ;;  %v17774_v27 = vld [vmem:[#allocation174_spill] sm:$0xff]  ;;  %v17775_v26 = vld [vmem:[#allocation204_spill] sm:$0xff] }
 0x911   : > { %4718 = vperm.xlu0 %9138, %v14843_v40  }
 0x912   : > { %v15299_v30 = vpop.f32.mrb[104].mxu1  ;;  %17771 = vst [vmem:[#allocation289_spill] sm:$0xff] %v15301_v20  ;;  %v17790_v20 = vld [vmem:[#allocation236_spill] sm:$0xff] }
 0x913   : > { %v6305_v60 = vpop.f32.mrb[105].mxu1  ;;  %6342 = vmatmul.mubr.f32.gmra.mrb[120].mxu1 %v9650_v36 }
 0x91c   : > { %4703 = vperm.xlu1 %9139, %v14736_v9  }
 0x91e   : > { %v5317_v18 = vpop.xlane.xlu0 %5316 }
 0x91f   : > { %v5479_v37 = vadd.f32 %v5317_v18, %v5223_v25  ;;  %v17776_v18 = vld [vmem:[#allocation233_spill] sm:$0xff] }
 0x921   : > { %5544 = vst.msk [vmem:[#allocation5 + $0x70] sm:$0xff] %vm5529_vm6, %v5479_v37 }
 0x926   : > { %v4699_v25 = vpop.permute.xlu0 %4698 }
 0x927   : > { %v4863_v39 = vsub.f32 %v17775_v26, %v4699_v25  ;;  %v4864_v37 = vsub.f32 %v17776_v18, %v4699_v25  ;;  %v5158_v26 = vld [vmem:[#allocation5 + $0x68] sm:$0xff] }
 0x929   : > { %v5093_v3 = vmul.f32 1.442695, %v4863_v39  ;;  %v5095_v53 = vmul.f32 1.442695, %v4864_v37  ;;  %v17779_v39 = vld [vmem:[#allocation243_spill] sm:$0xff] }
 0x92a   : > { %v5222_v18 = vmul.f32 %v17779_v39, %v5158_v26 }
 0x92e   : > { %v5308_v47 = vpop.xlane.xlu1 %5307 }
 0x92f   : > { %v5476_v36 = vadd.f32 %v5308_v47, %v5220_v15 }
 0x930   : > { %5334 = vadd.xlane.f32.xlu0 %v14900_v12 }
 0x931   : > { %5541 = vst.msk [vmem:[#allocation5 + $0x58] sm:$0xff] %vm5529_vm6, %v5476_v36 }
 0x932   : > { %v4684_v19 = vpop.permute.xlu1 %4683 }
 0x933   : > { %v4857_v42 = vsub.f32 %v17773_v16, %v4684_v19  ;;  %v4858_v21 = vsub.f32 %v17774_v27, %v4684_v19 }
 0x935   : > { %v5081_v60 = vmul.f32 1.442695, %v4857_v42  ;;  %v5083_v17 = vmul.f32 1.442695, %v4858_v21  ;;  %v5161_v21 = vld [vmem:[#allocation5 + $0x80] sm:$0xff] }
 0x937   : > { %9661 = vpow2.f32 %v5081_v60  ;;  %v5225_v60 = vmul.f32 %v14740_v43, %v5161_v21 }
 0x938   : > { %9663 = vpow2.f32 %v5083_v17 }
 0x939   : > { %9665 = vpow2.f32 %v5093_v3 }
 0x93a   : > { %9667 = vpow2.f32 %v5095_v53  ;;  %v17780_v53 = vld [vmem:[#allocation206_spill] sm:$0xff] }
 0x940   : > { %5325 = vadd.xlane.f32.xlu1 %v14778_v24 }
 0x941   : > { %v9662_v15 = vpop.eup %9661 }
 0x942   : > { %v9664_v12 = vpop.eup %9663 }
 0x943   : > { %v15316_v47 = vpop.f32.mrb[106].mxu1  ;;  %6346 = vmatprep.mubr.f32.mxu1 %v9664_v12  ;;  %v9666_v42 = vpop.eup %9665 }
 0x944   : > { %17777 = vst [vmem:[#allocation74_spill] sm:$0xff] %v15316_v47  ;;  %v6310_v36 = vpop.f32.mrb[107].mxu1  ;;  %6347 = vmatmul.mubr.f32.gmra.mrb[122].mxu1 %v9662_v15  ;;  %v9668_v27 = vpop.eup %9667 }
 0x945   : > { %6351 = vmatprep.mubr.f32.mxu1 %v9660_v48  ;;  %v15321_v24 = vadd.f32 %v9668_v27, %v9666_v42  ;;  %v15326_v48 = vadd.f32 %v9664_v12, %v9662_v15 }
 0x946   : > { %4728 = vperm.xlu0 %9138, %v14912_v63  }
 0x947   : > { %v15319_v19 = vpop.f32.mrb[108].mxu1  ;;  %17778 = vst [vmem:[#allocation75_spill] sm:$0xff] %v15321_v24 }
 0x948   : > { %v6315_v16 = vpop.f32.mrb[109].mxu1  ;;  %6352 = vmatmul.mubr.f32.gmra.mrb[124].mxu1 %v9658_v33 }
 0x949   : > { %v17781_v16 = vld [vmem:[#allocation234_spill] sm:$0xff] }
 0x951   : > { %4713 = vperm.xlu1 %9139, %v14784_v44  }
 0x953   : > { %v5323_v17 = vpop.xlane.xlu0 %5322 }
 0x954   : > { %v5481_v25 = vadd.f32 %v5323_v17, %v5225_v60 }
 0x956   : > { %5546 = vst.msk [vmem:[#allocation5 + $0x80] sm:$0xff] %vm5529_vm6, %v5481_v25 }
 0x95b   : > { %v4709_v17 = vpop.permute.xlu0 %4708 }
 0x95c   : > { %v4867_v15 = vsub.f32 %v17535_v31, %v4709_v17  ;;  %v4868_v12 = vsub.f32 %v17534_v2, %v4709_v17 }
 0x95e   : > { %v5101_v25 = vmul.f32 1.442695, %v4867_v15  ;;  %v5103_v26 = vmul.f32 1.442695, %v4868_v12  ;;  %v5160_v15 = vld [vmem:[#allocation5 + $0x78] sm:$0xff]  ;;  %v17787_v12 = vld [vmem:[#allocation252_spill] sm:$0xff] }
 0x963   : > { %v5314_v37 = vpop.xlane.xlu1 %5313 }
 0x964   : > { %v5478_v33 = vadd.f32 %v5314_v37, %v5222_v18 }
 0x965   : > { %5340 = vadd.xlane.f32.xlu0 %v14970_v28 }
 0x966   : > { %5543 = vst.msk [vmem:[#allocation5 + $0x68] sm:$0xff] %vm5529_vm6, %v5478_v33  ;;  %v17783_v33 = vld [vmem:[#allocation329_spill] sm:$0xff] }
 0x967   : > { %v4694_v3 = vpop.permute.xlu1 %4693 }
 0x968   : > { %v4861_v36 = vsub.f32 %v17780_v53, %v4694_v3  ;;  %v4862_v43 = vsub.f32 %v17781_v16, %v4694_v3  ;;  %v17785_v16 = vld [vmem:[#allocation91_spill] sm:$0xff] }
 0x96a   : > { %v5089_v21 = vmul.f32 1.442695, %v4861_v36  ;;  %v5091_v60 = vmul.f32 1.442695, %v4862_v43  ;;  %v5163_v36 = vld [vmem:[#allocation5 + $0x90] sm:$0xff]  ;;  %v17786_v43 = vld [vmem:[#allocation253_spill] sm:$0xff] }
 0x96c   : > { %9669 = vpow2.f32 %v5089_v21  ;;  %v5227_v21 = vmul.f32 %v17786_v43, %v5163_v36 }
 0x96d   : > { %9671 = vpow2.f32 %v5091_v60 }
 0x96e   : > { %9673 = vpow2.f32 %v5101_v25  ;;  %v5224_v25 = vmul.f32 %v17787_v12, %v5160_v15 }
 0x96f   : > { %9675 = vpow2.f32 %v5103_v26 }
 0x975   : > { %5331 = vadd.xlane.f32.xlu1 %v14824_v52 }
 0x976   : > { %v9670_v39 = vpop.eup %9669 }
 0x977   : > { %v9672_v28 = vpop.eup %9671 }
 0x978   : > { %v15336_v18 = vpop.f32.mrb[110].mxu1  ;;  %6356 = vmatprep.mubr.f32.mxu1 %v9672_v28  ;;  %v9674_v2 = vpop.eup %9673 }
 0x979   : > { %17782 = vst [vmem:[#allocation291_spill] sm:$0xff] %v15336_v18  ;;  %v6320_v37 = vpop.f32.mrb[111].mxu1  ;;  %6357 = vmatmul.mubr.f32.gmra.mrb[126].mxu1 %v9670_v39  ;;  %v9676_v53 = vpop.eup %9675 }
 0x97a   : > { %6361 = vmatprep.mubr.f32.mxu1 %v9668_v27  ;;  %v15341_v52 = vadd.f32 %v9676_v53, %v9674_v2  ;;  %v15346_v27 = vadd.f32 %v9672_v28, %v9670_v39  ;;  %v17788_v37 = vld [vmem:[#allocation265_spill] sm:$0xff]  ;;  %v17791_v39 = vld [vmem:[#allocation210_spill] sm:$0xff] }
 0x97b   : > { %4738 = vperm.xlu0 %9138, %v17783_v33  }
 0x97c   : > { %v15339_v3 = vpop.f32.mrb[112].mxu1  ;;  %17784 = vst [vmem:[#allocation293_spill] sm:$0xff] %v15341_v52  ;;  %v17789_v52 = vld [vmem:[#allocation209_spill] sm:$0xff] }
 0x97d   : > { %v6325_v31 = vpop.f32.mrb[113].mxu1  ;;  %6362 = vmatmul.mubr.f32.gmra.mrb[128].mxu1 %v9666_v42 }
 0x986   : > { %4723 = vperm.xlu1 %9139, %v17785_v16  }
 0x988   : > { %v5329_v60 = vpop.xlane.xlu0 %5328 }
 0x989   : > { %v5483_v17 = vadd.f32 %v5329_v60, %v5227_v21 }
 0x98b   : > { %5548 = vst.msk [vmem:[#allocation5 + $0x90] sm:$0xff] %vm5529_vm6, %v5483_v17  ;;  %v17792_v17 = vld [vmem:[#allocation237_spill] sm:$0xff] }
 0x990   : > { %v4719_v60 = vpop.permute.xlu0 %4718 }
 0x991   : > { %v4871_v28 = vsub.f32 %v17791_v39, %v4719_v60  ;;  %v4872_v15 = vsub.f32 %v17792_v17, %v4719_v60  ;;  %v5165_v60 = vld [vmem:[#allocation5 + $0xa0] sm:$0xff] }
 0x993   : > { %v5109_v12 = vmul.f32 1.442695, %v4871_v28  ;;  %v5111_v14 = vmul.f32 1.442695, %v4872_v15  ;;  %v17798_v28 = vld [vmem:[#allocation58_spill] sm:$0xff] }
 0x998   : > { %v5320_v26 = vpop.xlane.xlu1 %5319 }
 0x999   : > { %v5480_v42 = vadd.f32 %v5320_v26, %v5224_v25  ;;  %v17793_v25 = vld [vmem:[#allocation323_spill] sm:$0xff]  ;;  %v17794_v26 = vld [vmem:[#allocation262_spill] sm:$0xff] }
 0x99a   : > { %5346 = vadd.xlane.f32.xlu0 %v17788_v37 }
 0x99b   : > { %5545 = vst.msk [vmem:[#allocation5 + $0x78] sm:$0xff] %vm5529_vm6, %v5480_v42  ;;  %v5336_v42 = vadd.f32 %v17794_v26, %v17793_v25  ;;  %v5162_v25 = vld [vmem:[#allocation5 + $0x88] sm:$0xff]  ;;  %v17800_v26 = vld [vmem:[#allocation182_spill] sm:$0xff] }
 0x99c   : > { %v4704_v31 = vpop.permute.xlu1 %4703 }
 0x99d   : > { %v4865_v24 = vsub.f32 %v17789_v52, %v4704_v31  ;;  %v4866_v36 = vsub.f32 %v17790_v20, %v4704_v31  ;;  %v17796_v52 = vld [vmem:[#allocation334_spill] sm:$0xff] }
 0x99f   : > { %v5097_v43 = vmul.f32 1.442695, %v4865_v24  ;;  %v5099_v21 = vmul.f32 1.442695, %v4866_v36 }
 0x9a1   : > { %9677 = vpow2.f32 %v5097_v43 }
 0x9a2   : > { %9679 = vpow2.f32 %v5099_v21 }
 0x9a3   : > { %9681 = vpow2.f32 %v5109_v12 }
 0x9a4   : > { %9683 = vpow2.f32 %v5111_v14  ;;  %v17799_v14 = vld [vmem:[#allocation177_spill] sm:$0xff] }
 0x9a5   : > { %v5229_v17 = vmul.f32 %v17799_v14, %v5165_v60 }
 0x9aa   : > { %5337 = vadd.xlane.f32.xlu1 %v5336_v42  ;;  %v5226_v42 = vmul.f32 %v17800_v26, %v5162_v25  ;;  %v17806_v25 = vld [vmem:[#allocation214_spill] sm:$0xff] }
 0x9ab   : > { %v9678_v37 = vpop.eup %9677 }
 0x9ac   : > { %v9680_v61 = vpop.eup %9679 }
 0x9ad   : > { %v15357_v20 = vpop.f32.mrb[114].mxu1  ;;  %6366 = vmatprep.mubr.f32.mxu1 %v9680_v61  ;;  %v9682_v43 = vpop.eup %9681 }
 0x9ae   : > { %17795 = vst [vmem:[#allocation166_spill] sm:$0xff] %v15357_v20  ;;  %v6330_v24 = vpop.f32.mrb[115].mxu1  ;;  %6367 = vmatmul.mubr.f32.gmra.mrb[130].mxu1 %v9678_v37  ;;  %v9684_v21 = vpop.eup %9683  ;;  %v17808_v20 = vld [vmem:[#allocation66_spill] sm:$0xff] }
 0x9af   : > { %6371 = vmatprep.mubr.f32.mxu1 %v9676_v53  ;;  %v15362_v39 = vadd.f32 %v9684_v21, %v9682_v43  ;;  %v15367_v53 = vadd.f32 %v9680_v61, %v9678_v37  ;;  %v17804_v61 = vld [vmem:[#allocation279_spill] sm:$0xff]  ;;  %v17805_v37 = vld [vmem:[#allocation277_spill] sm:$0xff] }
 0x9b0   : > { %4748 = vperm.xlu0 %9138, %v17796_v52  }
 0x9b1   : > { %v15360_v31 = vpop.f32.mrb[116].mxu1  ;;  %17797 = vst [vmem:[#allocation164_spill] sm:$0xff] %v15362_v39 }
 0x9b2   : > { %v6335_v36 = vpop.f32.mrb[117].mxu1  ;;  %6372 = vmatmul.mubr.f32.gmra.mrb[132].mxu1 %v9674_v2 }
 0x9b3   : > { %v17801_v36 = vld [vmem:[#allocation272_spill] sm:$0xff] }
 0x9bb   : > { %4733 = vperm.xlu1 %9139, %v17798_v28  }
 0x9bd   : > { %v5335_v15 = vpop.xlane.xlu0 %5334 }
 0x9be   : > { %v5485_v12 = vadd.f32 %v5335_v15, %v5229_v17 }
 0x9c0   : > { %5550 = vst.msk [vmem:[#allocation5 + $0xa0] sm:$0xff] %vm5529_vm6, %v5485_v12  ;;  %v4282_v12 = vsub.f32 %v17805_v37, %v17804_v61  ;;  %v17813_v37 = vld [vmem:[#allocation297_spill] sm:$0xff] }
 0x9c5   : > { %v4729_v15 = vpop.permute.xlu0 %4728 }
 0x9c6   : > { %v4875_v26 = vsub.f32 %v17806_v25, %v4729_v15 }
 0x9c8   : > { %v5117_v47 = vmul.f32 1.442695, %v4875_v26 }
 0x9cd   : > { %v5326_v24 = vpop.xlane.xlu1 %5325 }
 0x9ce   : > { %v5482_v2 = vadd.f32 %v5326_v24, %v5226_v42  ;;  %v17807_v42 = vld [vmem:[#allocation238_spill] sm:$0xff] }
 0x9cf   : > { %5352 = vadd.xlane.f32.xlu0 %v17801_v36  ;;  %v4876_v24 = vsub.f32 %v17807_v42, %v4729_v15  ;;  %v17809_v36 = vld [vmem:[#allocation281_spill] sm:$0xff] }
 0x9d0   : > { %5547 = vst.msk [vmem:[#allocation5 + $0x88] sm:$0xff] %vm5529_vm6, %v5482_v2  ;;  %v4379_v2 = vmul.f32 1.442695, %v4282_v12  ;;  %v4284_v18 = vsub.f32 %v17809_v36, %v17808_v20  ;;  %v17814_v20 = vld [vmem:[#allocation295_spill] sm:$0xff] }
 0x9d1   : > { %v4714_v39 = vpop.permute.xlu1 %4713  ;;  %v4288_v12 = vsub.f32 %v17814_v20, %v17813_v37 }
 0x9d2   : > { %v4869_v10 = vsub.f32 %v17802_v32, %v4714_v39  ;;  %v4870_v60 = vsub.f32 %v17803_v22, %v4714_v39  ;;  %v5119_v32 = vmul.f32 1.442695, %v4876_v24  ;;  %v4383_v22 = vmul.f32 1.442695, %v4284_v18  ;;  %v17811_v39 = vld [vmem:[#allocation287_spill] sm:$0xff]  ;;  %v17815_v18 = vld [vmem:[#allocation65_spill] sm:$0xff] }
 0x9d3   : > { %v4391_v42 = vmul.f32 1.442695, %v4288_v12  ;;  %v17816_v24 = vld [vmem:[#allocation332_spill] sm:$0xff] }
 0x9d4   : > { %v5105_v14 = vmul.f32 1.442695, %v4869_v10  ;;  %v5107_v17 = vmul.f32 1.442695, %v4870_v60  ;;  %v17810_v10 = vld [vmem:[#allocation290_spill] sm:$0xff]  ;;  %v5167_v12 = vld [vmem:[#allocation5 + $0xb0] sm:$0xff] }
 0x9d5   : > { %v4286_v60 = vsub.f32 %v17811_v39, %v17810_v10  ;;  %v17820_v39 = vld [vmem:[#allocation176_spill] sm:$0xff] }
 0x9d6   : > { %9685 = vpow2.f32 %v5105_v14  ;;  %v17812_v14 = vld [vmem:[#allocation319_spill] sm:$0xff] }
 0x9d7   : > { %9687 = vpow2.f32 %v5107_v17  ;;  %v4387_v15 = vmul.f32 1.442695, %v4286_v60 }
 0x9d8   : > { %9689 = vpow2.f32 %v4379_v2 }
 0x9d9   : > { %9691 = vpow2.f32 %v5117_v47  ;;  %v17817_v47 = vld [vmem:[#allocation328_spill] sm:$0xff] }
 0x9da   : > { %9693 = vpow2.f32 %v5119_v32  ;;  %v4290_v2 = vsub.f32 %v17817_v47, %v17816_v24  ;;  %v17825_v47 = vld [vmem:[#allocation314_spill] sm:$0xff] }
 0x9db   : > { %9695 = vpow2.f32 %v4383_v22 }
 0x9dc   : > { %9697 = vpow2.f32 %v4387_v15  ;;  %v4395_v10 = vmul.f32 1.442695, %v4290_v2  ;;  %v5231_v2 = vmul.f32 %v17825_v47, %v5167_v12 }
 0x9dd   : > { %9699 = vpow2.f32 %v4391_v42  ;;  %v17823_v42 = vld [vmem:[#allocation60_spill] sm:$0xff] }
 0x9de   : > { %9701 = vpow2.f32 %v4395_v10  ;;  %v17826_v10 = vld [vmem:[#allocation251_spill] sm:$0xff] }
 0x9df   : > { %5343 = vadd.xlane.f32.xlu1 %v17812_v14 }
 0x9e0   : > { %v9686_v62 = vpop.eup %9685 }
 0x9e1   : > { %v9688_v61 = vpop.eup %9687 }
 0x9e2   : > { %v15383_v17 = vpop.f32.mrb[118].mxu1  ;;  %6376 = vmatprep.mubr.f32.mxu1 %v9688_v61  ;;  %v15392_v32 = vpop.eup %9689  ;;  %v15428_v12 = vadd.f32 %v9688_v61, %v9686_v62 }
 0x9e3   : > { %v6340_v25 = vpop.f32.mrb[119].mxu1  ;;  %6377 = vmatmul.mubr.f32.gmra.mrb[134].mxu1 %v9686_v62  ;;  %17818 = vst [vmem:[#allocation189_spill] sm:$0xff] %v15392_v32  ;;  %v15395_v22 = vpop.eup %9691 }
 0x9e4   : > { %6381 = vmatprep.mubr.f32.mxu1 %v9684_v21  ;;  %v17819_v21 = vld [vmem:[#allocation352_spill] sm:$0xff]  ;;  %v15399_v14 = vpop.eup %9693 }
 0x9e5   : > { %4758 = vperm.xlu0 %9138, %v17815_v18   ;;  %v4292_v60 = vsub.f32 %v17820_v39, %v17819_v21  ;;  %v15401_v15 = vpop.eup %9695  ;;  %v15408_v25 = vadd.f32 %v15399_v14, %v15395_v22  ;;  %v4296_v21 = vsub.f32 %v17826_v10, %v17736_v49  ;;  %v17830_v49 = vld [vmem:[#allocation149_spill] sm:$0xff] }
 0x9e6   : > { %v15388_v26 = vpop.f32.mrb[120].mxu1  ;;  %17821 = vst [vmem:[#allocation53_spill] sm:$0xff] %v15401_v15  ;;  %v15411_v24 = vpop.eup %9697 }
 0x9e7   : > { %v6345_v36 = vpop.f32.mrb[121].mxu1  ;;  %6382 = vmatmul.mubr.f32.gmra.mrb[136].mxu1 %v9682_v43  ;;  %v4399_v37 = vmul.f32 1.442695, %v4292_v60  ;;  %v17822_v43 = vld [vmem:[#allocation168_spill] sm:$0xff]  ;;  %17824 = vst [vmem:[#allocation52_spill] sm:$0xff] %v15411_v24  ;;  %v15417_v60 = vpop.eup %9699 }
 0x9e8   : > { %v4294_v20 = vsub.f32 %v17822_v43, %v14280_v45  ;;  %17827 = vst [vmem:[#allocation296_spill] sm:$0xff] %v15417_v60  ;;  %v4407_v43 = vmul.f32 1.442695, %v4296_v21  ;;  %v17834_v21 = vld [vmem:[#allocation154_spill] sm:$0xff] }
 0x9e9   : > { %5825 = vperm.xlu0 %9138, %v15392_v32   ;;  %9703 = vpow2.f32 %v4399_v37  ;;  %v15423_v32 = vpop.eup %9701 }
 0x9ea   : > { %v4403_v36 = vmul.f32 1.442695, %v4294_v20  ;;  %17829 = vst [vmem:[#allocation56_spill] sm:$0xff] %v15423_v32  ;;  %v4300_v20 = vsub.f32 %v17830_v49, %v14752_v29  ;;  %v17837_v49 = vld [vmem:[#allocation259_spill] sm:$0xff] }
 0x9ec   : > { %9705 = vpow2.f32 %v4403_v36  ;;  %v4415_v36 = vmul.f32 1.442695, %v4300_v20  ;;  %v4306_v20 = vsub.f32 %v17837_v49, %v14912_v63  ;;  %v17843_v63 = vld [vmem:[#allocation216_spill] sm:$0xff] }
 0x9ed   : > { %5835 = vperm.xlu0 %9138, %v15401_v15   ;;  %v17828_v15 = vld [vmem:[#allocation55_spill] sm:$0xff]  ;;  %9707 = vpow2.f32 %v4407_v43 }
 0x9f0   : > { %4743 = vperm.xlu1 %9139, %v17823_v42  }
 0x9f1   : > { %5845 = vperm.xlu0 %9138, %v15411_v24   ;;  %v4298_v24 = vsub.f32 %v17828_v15, %v14682_v11  ;;  %v17832_v11 = vld [vmem:[#allocation255_spill] sm:$0xff] }
 0x9f2   : > { %v5341_v39 = vpop.xlane.xlu0 %5340  ;;  %v4302_v15 = vsub.f32 %v17832_v11, %v14799_v51  ;;  %v17839_v11 = vld [vmem:[#allocation239_spill] sm:$0xff] }
 0x9f3   : > { %v5487_v45 = vadd.f32 %v5341_v39, %v5231_v2  ;;  %v4411_v37 = vmul.f32 1.442695, %v4298_v24  ;;  %v15430_v47 = vpop.eup %9703  ;;  %v5164_v2 = vld [vmem:[#allocation5 + $0x98] sm:$0xff]  ;;  %v17835_v24 = vld [vmem:[#allocation59_spill] sm:$0xff] }
 0x9f4   : > { %17831 = vst [vmem:[#allocation77_spill] sm:$0xff] %v15430_v47  ;;  %v5228_v39 = vmul.f32 %v17834_v21, %v5164_v2  ;;  %v4419_v62 = vmul.f32 1.442695, %v4302_v15  ;;  %v17838_v2 = vld [vmem:[#allocation215_spill] sm:$0xff] }
 0x9f5   : > { %5552 = vst.msk [vmem:[#allocation5 + $0xb0] sm:$0xff] %vm5529_vm6, %v5487_v45  ;;  %5855 = vperm.xlu0 %9138, %v15417_v60   ;;  %9709 = vpow2.f32 %v4411_v37  ;;  %v4304_v45 = vsub.f32 %v17835_v24, %v14843_v40  ;;  %v5627_v60 = vld [vmem:[#allocation6 + $0x108] sm:$0xff] }
 0x9f6   : > { %v15435_v10 = vpop.eup %9705  ;;  %9711 = vpow2.f32 %v4415_v36 }
 0x9f7   : > { %17833 = vst [vmem:[#allocation81_spill] sm:$0xff] %v15435_v10  ;;  %v15441_v43 = vpop.eup %9707  ;;  %v4423_v37 = vmul.f32 1.442695, %v4304_v45  ;;  %9713 = vpow2.f32 %v4419_v62  ;;  %v17841_v45 = vld [vmem:[#allocation326_spill] sm:$0xff] }
 0x9f8   : > { %17836 = vst [vmem:[#allocation298_spill] sm:$0xff] %v15441_v43 }
 0x9f9   : > { %5865 = vperm.xlu0 %9138, %v15423_v32   ;;  %9715 = vpow2.f32 %v4423_v37 }
 0x9fd   : > { %5875 = vperm.xlu0 %9138, %v15430_v47   ;;  %v17869_v47 = vld [vmem:[#allocation241_spill] sm:$0xff] }
 0x9ff   : > { %v15449_v24 = vpop.eup %9709 }
 0xa00   : > { %17840 = vst [vmem:[#allocation300_spill] sm:$0xff] %v15449_v24  ;;  %v15454_v62 = vpop.eup %9711 }
 0xa01   : > { %5885 = vperm.xlu0 %9138, %v15435_v10   ;;  %17842 = vst [vmem:[#allocation338_spill] sm:$0xff] %v15454_v62  ;;  %v15459_v37 = vpop.eup %9713 }
 0xa02   : > { %v5332_v29 = vpop.xlane.xlu1 %5331  ;;  %17845 = vst [vmem:[#allocation340_spill] sm:$0xff] %v15459_v37 }
 0xa03   : > { %v5484_v61 = vadd.f32 %v5332_v29, %v5228_v39  ;;  %v4427_v39 = vmul.f32 1.442695, %v4306_v20  ;;  %v4308_v29 = vsub.f32 %v17841_v45, %v17783_v33  ;;  %v15462_v20 = vpop.eup %9715  ;;  %v17848_v45 = vld [vmem:[#allocation276_spill] sm:$0xff] }
 0xa04   : > { %17846 = vst [vmem:[#allocation302_spill] sm:$0xff] %v15462_v20 }
 0xa05   : > { %5549 = vst.msk [vmem:[#allocation5 + $0x98] sm:$0xff] %vm5529_vm6, %v5484_v61  ;;  %5895 = vperm.xlu0 %9138, %v15441_v43   ;;  %v4739_v61 = vpop.permute.xlu0 %4738  ;;  %v17861_v43 = vld [vmem:[#allocation321_spill] sm:$0xff] }
 0xa06   : > { %v4724_v51 = vpop.permute.xlu1 %4723  ;;  %v4879_v49 = vsub.f32 %v17843_v63, %v4739_v61  ;;  %v17849_v63 = vld [vmem:[#allocation271_spill] sm:$0xff] }
 0xa07   : > { %v4873_v40 = vsub.f32 %v17838_v2, %v4724_v51  ;;  %v4874_v21 = vsub.f32 %v17839_v11, %v4724_v51  ;;  %v4431_v51 = vmul.f32 1.442695, %v4308_v29  ;;  %v17844_v2 = vld [vmem:[#allocation240_spill] sm:$0xff] }
 0xa08   : > { %v5125_v11 = vmul.f32 1.442695, %v4879_v49 }
 0xa09   : > { %v5113_v36 = vmul.f32 1.442695, %v4873_v40  ;;  %v5115_v15 = vmul.f32 1.442695, %v4874_v21  ;;  %5905 = vperm.xlu0 %9138, %v15449_v24   ;;  %v4880_v40 = vsub.f32 %v17844_v2, %v4739_v61  ;;  %v17847_v21 = vld [vmem:[#allocation331_spill] sm:$0xff]  ;;  %v17852_v2 = vld [vmem:[#allocation280_spill] sm:$0xff] }
 0xa0b   : > { %9717 = vpow2.f32 %v5113_v36  ;;  %v5127_v33 = vmul.f32 1.442695, %v4880_v40 }
 0xa0c   : > { %9719 = vpow2.f32 %v5115_v15 }
 0xa0d   : > { %5915 = vperm.xlu0 %9138, %v15454_v62   ;;  %9721 = vpow2.f32 %v4427_v39  ;;  %v4281_v62 = vsub.f32 %v17849_v63, %v17848_v45  ;;  %v17854_v63 = vld [vmem:[#allocation288_spill] sm:$0xff] }
 0xa0e   : > { %9723 = vpow2.f32 %v4431_v51  ;;  %v17851_v51 = vld [vmem:[#allocation286_spill] sm:$0xff] }
 0xa0f   : > { %9725 = vpow2.f32 %v5125_v11  ;;  %v4377_v49 = vmul.f32 1.442695, %v4281_v62  ;;  %v4283_v40 = vsub.f32 %v17852_v2, %v17851_v51  ;;  %v17856_v2 = vld [vmem:[#allocation301_spill] sm:$0xff] }
 0xa10   : > { %9727 = vpow2.f32 %v5127_v33 }
 0xa11   : > { %5925 = vperm.xlu0 %9138, %v15459_v37   ;;  %9729 = vpow2.f32 %v4377_v49  ;;  %v4381_v45 = vmul.f32 1.442695, %v4283_v40  ;;  %v5169_v37 = vld [vmem:[#allocation5 + $0xc0] sm:$0xff]  ;;  %v17858_v40 = vld [vmem:[#allocation175_spill] sm:$0xff] }
 0xa13   : > { %9731 = vpow2.f32 %v4381_v45  ;;  %v5233_v45 = vmul.f32 %v17861_v43, %v5169_v37  ;;  %v17863_v43 = vld [vmem:[#allocation341_spill] sm:$0xff] }
 0xa14   : > { %5349 = vadd.xlane.f32.xlu1 %v17847_v21  ;;  %v4293_v37 = vsub.f32 %v17863_v43, %v17738_v54  ;;  %v17866_v54 = vld [vmem:[#allocation306_spill] sm:$0xff] }
 0xa15   : > { %v9718_v36 = vpop.eup %9717  ;;  %5935 = vperm.xlu0 %9138, %v15462_v20  }
 0xa16   : > { %v9720_v15 = vpop.eup %9719 }
 0xa17   : > { %v15468_v39 = vpop.f32.mrb[122].mxu1  ;;  %6386 = vmatprep.mubr.f32.mxu1 %v9720_v15  ;;  %v15470_v61 = vpop.eup %9721 }
 0xa18   : > { %v6350_v29 = vpop.f32.mrb[123].mxu1  ;;  %6387 = vmatmul.mubr.f32.gmra.mrb[138].mxu1 %v9718_v36  ;;  %17850 = vst [vmem:[#allocation95_spill] sm:$0xff] %v15470_v61  ;;  %v15479_v33 = vpop.eup %9723 }
 0xa19   : > { %6391 = vmatprep.mubr.f32.mxu1 %v15399_v14  ;;  %5945 = vperm.xlu0 %9138, %v15470_v61   ;;  %17853 = vst [vmem:[#allocation303_spill] sm:$0xff] %v15479_v33  ;;  %v17855_v29 = vld [vmem:[#allocation284_spill] sm:$0xff]  ;;  %v15484_v14 = vpop.eup %9725  ;;  %v17857_v61 = vld [vmem:[#allocation299_spill] sm:$0xff] }
 0xa1a   : > { %v4285_v20 = vsub.f32 %v17855_v29, %v17854_v63  ;;  %v15486_v62 = vpop.eup %9727  ;;  %v17859_v29 = vld [vmem:[#allocation311_spill] sm:$0xff] }
 0xa1b   : > { %v15476_v21 = vpop.f32.mrb[124].mxu1  ;;  %v15494_v49 = vadd.f32 %v15486_v62, %v15484_v14 }
 0xa1c   : > { %v6355_v11 = vpop.f32.mrb[125].mxu1  ;;  %6392 = vmatmul.mubr.f32.gmra.mrb[140].mxu1 %v15395_v22  ;;  %v4385_v51 = vmul.f32 1.442695, %v4285_v20  ;;  %v15490_v22 = vadd.f32 %v9720_v15, %v9718_v36  ;;  %v15500_v20 = vpop.eup %9729  ;;  %v17862_v15 = vld [vmem:[#allocation313_spill] sm:$0xff] }
 0xa1d   : > { %5955 = vperm.xlu0 %9138, %v15479_v33   ;;  %v4287_v11 = vsub.f32 %v17857_v61, %v17856_v2  ;;  %v17860_v33 = vld [vmem:[#allocation308_spill] sm:$0xff]  ;;  %v4291_v2 = vsub.f32 %v17862_v15, %v17728_v50 }
 0xa1e   : > { %9733 = vpow2.f32 %v4385_v51  ;;  %v4289_v24 = vsub.f32 %v17860_v33, %v17859_v29  ;;  %v15506_v51 = vpop.eup %9731 }
 0xa1f   : > { %v4389_v63 = vmul.f32 1.442695, %v4287_v11  ;;  %v4397_v33 = vmul.f32 1.442695, %v4291_v2 }
 0xa20   : > { %v4393_v36 = vmul.f32 1.442695, %v4289_v24  ;;  %v17864_v24 = vld [vmem:[#allocation84_spill] sm:$0xff] }
 0xa21   : > { %9735 = vpow2.f32 %v4389_v63  ;;  %v4295_v50 = vsub.f32 %v17864_v24, %v17747_v5  ;;  %v5166_v63 = vld [vmem:[#allocation5 + $0xa8] sm:$0xff]  ;;  %v17867_v5 = vld [vmem:[#allocation117_spill] sm:$0xff] }
 0xa22   : > { %9737 = vpow2.f32 %v4393_v36  ;;  %v5230_v15 = vmul.f32 %v17866_v54, %v5166_v63  ;;  %v4299_v24 = vsub.f32 %v17867_v5, %v14643_v23 }
 0xa23   : > { %9739 = vpow2.f32 %v4397_v33  ;;  %v4405_v36 = vmul.f32 1.442695, %v4295_v50 }
 0xa25   : > { %4753 = vperm.xlu1 %9139, %v17858_v40  }
 0xa27   : > { %v5347_v10 = vpop.xlane.xlu0 %5346 }
 0xa28   : > { %v5489_v61 = vadd.f32 %v5347_v10, %v5233_v45  ;;  %v15511_v11 = vpop.eup %9733  ;;  %v4401_v10 = vmul.f32 1.442695, %v4293_v37  ;;  %v17865_v45 = vld [vmem:[#allocation248_spill] sm:$0xff] }
 0xa29   : > { %5820 = vperm.xlu1 %9139, %v15500_v20  }
 0xa2a   : > { %5554 = vst.msk [vmem:[#allocation5 + $0xc0] sm:$0xff] %vm5529_vm6, %v5489_v61  ;;  %v4297_v61 = vsub.f32 %v17865_v45, %v17756_v35  ;;  %9741 = vpow2.f32 %v4401_v10  ;;  %v17868_v10 = vld [vmem:[#allocation218_spill] sm:$0xff] }
 0xa2b   : > { %v15516_v29 = vpop.eup %9735  ;;  %9743 = vpow2.f32 %v4405_v36  ;;  %v17870_v36 = vld [vmem:[#allocation54_spill] sm:$0xff] }
 0xa2c   : > { %v15522_v43 = vpop.eup %9737  ;;  %v4409_v37 = vmul.f32 1.442695, %v4297_v61  ;;  %v4413_v61 = vmul.f32 1.442695, %v4299_v24  ;;  %v4301_v54 = vsub.f32 %v17870_v36, %v14736_v9  ;;  %v17873_v24 = vld [vmem:[#allocation220_spill] sm:$0xff]  ;;  %v17876_v36 = vld [vmem:[#allocation309_spill] sm:$0xff] }
 0xa2d   : > { %5830 = vperm.xlu1 %9139, %v15506_v51   ;;  %v15528_v45 = vpop.eup %9739 }
 0xa2e   : > { %9745 = vpow2.f32 %v4409_v37 }
 0xa2f   : > { %v4749_v32 = vpop.permute.xlu0 %4748 }
 0xa31   : > { %5840 = vperm.xlu1 %9139, %v15511_v11  }
 0xa35   : > { %5850 = vperm.xlu1 %9139, %v15516_v29  }
 0xa37   : > { %v5338_v2 = vpop.xlane.xlu1 %5337 }
 0xa38   : > { %v5486_v33 = vadd.f32 %v5338_v2, %v5230_v15  ;;  %v15536_v2 = vpop.eup %9741 }
 0xa39   : > { %5860 = vperm.xlu1 %9139, %v15522_v43   ;;  %v15544_v9 = vpop.eup %9743 }
 0xa3a   : > { %5551 = vst.msk [vmem:[#allocation5 + $0xa8] sm:$0xff] %vm5529_vm6, %v5486_v33  ;;  %v17871_v33 = vld [vmem:[#allocation266_spill] sm:$0xff]  ;;  %17874 = vst [vmem:[#allocation92_spill] sm:$0xff] %v15544_v9 }
 0xa3b   : > { %v4734_v35 = vpop.permute.xlu1 %4733  ;;  %v4310_v5 = vsub.f32 %v17871_v33, %v17796_v52 }
 0xa3c   : > { %v4877_v50 = vsub.f32 %v17868_v10, %v4734_v35  ;;  %v4878_v63 = vsub.f32 %v17869_v47, %v4734_v35  ;;  %5358 = vadd.xlane.f32.xlu0 %v15156_v55  ;;  %v4417_v55 = vmul.f32 1.442695, %v4301_v54  ;;  %v17872_v47 = vld [vmem:[#allocation157_spill] sm:$0xff]  ;;  %v4883_v35 = vsub.f32 %v17873_v24, %v4749_v32 }
 0xa3d   : > { %5870 = vperm.xlu1 %9139, %v15528_v45   ;;  %v4303_v37 = vsub.f32 %v17872_v47, %v14784_v44  ;;  %v4435_v10 = vmul.f32 1.442695, %v4310_v5  ;;  %v17878_v5 = vld [vmem:[#allocation89_spill] sm:$0xff] }
 0xa3e   : > { %v5121_v15 = vmul.f32 1.442695, %v4877_v50  ;;  %v5123_v23 = vmul.f32 1.442695, %v4878_v63  ;;  %v17875_v50 = vld [vmem:[#allocation242_spill] sm:$0xff] }
 0xa3f   : > { %v4884_v63 = vsub.f32 %v17875_v50, %v4749_v32  ;;  %v4421_v52 = vmul.f32 1.442695, %v4303_v37  ;;  %v4307_v32 = vsub.f32 %v17878_v5, %v17798_v28 }
 0xa40   : > { %9747 = vpow2.f32 %v5121_v15  ;;  %v4305_v15 = vsub.f32 %v17876_v36, %v17785_v16 }
 0xa41   : > { %9749 = vpow2.f32 %v5123_v23  ;;  %5880 = vperm.xlu1 %9139, %v15536_v2   ;;  %v15550_v23 = vpop.eup %9745  ;;  %v5135_v54 = vmul.f32 1.442695, %v4884_v63 }
 0xa42   : > { %9751 = vpow2.f32 %v4413_v61  ;;  %17877 = vst [vmem:[#allocation93_spill] sm:$0xff] %v15550_v23  ;;  %v5133_v61 = vmul.f32 1.442695, %v4883_v35  ;;  %v4425_v33 = vmul.f32 1.442695, %v4305_v15 }
 0xa43   : > { %9753 = vpow2.f32 %v4417_v55  ;;  %v4429_v35 = vmul.f32 1.442695, %v4307_v32 }
 0xa44   : > { %9755 = vpow2.f32 %v4435_v10 }
 0xa45   : > { %5890 = vperm.xlu1 %9139, %v15544_v9   ;;  %9757 = vpow2.f32 %v4421_v52 }
 0xa46   : > { %9759 = vpow2.f32 %v5133_v61 }
 0xa47   : > { %9761 = vpow2.f32 %v5135_v54 }
 0xa48   : > { %9763 = vpow2.f32 %v4425_v33 }
 0xa49   : > { %5900 = vperm.xlu1 %9139, %v15550_v23   ;;  %9765 = vpow2.f32 %v4429_v35 }
 0xa4a   : > { %v9748_v44 = vpop.eup %9747 }
 0xa4b   : > { %v9750_v47 = vpop.eup %9749 }
 0xa4c   : > { %v15555_v55 = vpop.eup %9751  ;;  %v15557_v37 = vpop.f32.mrb[126].mxu1  ;;  %6396 = vmatprep.mubr.f32.mxu1 %v9750_v47  ;;  %v15559_v16 = vadd.f32 %v9750_v47, %v9748_v44 }
 0xa4d   : > { %17879 = vst [vmem:[#allocation342_spill] sm:$0xff] %v15555_v55  ;;  %v6360_v24 = vpop.f32.mrb[127].mxu1  ;;  %6397 = vmatmul.mubr.f32.gmra.mrb[142].mxu1 %v9748_v44  ;;  %5910 = vperm.xlu1 %9139, %v15555_v55   ;;  %v15563_v10 = vpop.eup %9753  ;;  %v17885_v44 = vld [vmem:[#allocation261_spill] sm:$0xff] }
 0xa4e   : > { %6401 = vmatprep.mubr.f32.mxu1 %v15486_v62  ;;  %17880 = vst [vmem:[#allocation343_spill] sm:$0xff] %v15563_v10  ;;  %v15569_v63 = vpop.eup %9755  ;;  %v17886_v24 = vld [vmem:[#allocation225_spill] sm:$0xff] }
 0xa4f   : > { %17881 = vst [vmem:[#allocation94_spill] sm:$0xff] %v15569_v63  ;;  %v15572_v52 = vpop.eup %9757 }
 0xa50   : > { %v15565_v28 = vpop.f32.mrb[128].mxu1  ;;  %17882 = vst [vmem:[#allocation183_spill] sm:$0xff] %v15572_v52  ;;  %v15574_v36 = vpop.eup %9759 }
 0xa51   : > { %v6365_v50 = vpop.f32.mrb[129].mxu1  ;;  %6402 = vmatmul.mubr.f32.gmra.mrb[144].mxu1 %v15484_v14  ;;  %5920 = vperm.xlu1 %9139, %v15563_v10   ;;  %v15577_v62 = vpop.eup %9761  ;;  %v5171_v14 = vld [vmem:[#allocation5 + $0xd0] sm:$0xff]  ;;  %v5168_v10 = vld [vmem:[#allocation5 + $0xb8] sm:$0xff] }
 0xa52   : > { %5965 = vperm.xlu0 %9138, %v15569_v63   ;;  %v15579_v15 = vpop.eup %9763  ;;  %v15584_v61 = vadd.f32 %v15577_v62, %v15574_v36  ;;  %v5235_v33 = vmul.f32 %v17885_v44, %v5171_v14  ;;  %v17887_v50 = vld [vmem:[#allocation245_spill] sm:$0xff]  ;;  %v17888_v44 = vld [vmem:[#allocation88_spill] sm:$0xff] }
 0xa53   : > { %17883 = vst [vmem:[#allocation304_spill] sm:$0xff] %v15579_v15  ;;  %v15586_v54 = vpop.eup %9765  ;;  %v5629_v14 = vld [vmem:[#allocation6 + $0x118] sm:$0xff]  ;;  %v5232_v9 = vmul.f32 %v17888_v44, %v5168_v10 }
 0xa54   : > { %17884 = vst [vmem:[#allocation307_spill] sm:$0xff] %v15586_v54  ;;  %v5633_v10 = vld [vmem:[#allocation6 + $0x138] sm:$0xff] }
 0xa55   : > { %5930 = vperm.xlu1 %9139, %v15572_v52  }
 0xa59   : > { %5940 = vperm.xlu1 %9139, %v15579_v15  }
 0xa5c   : > { %v5353_v5 = vpop.xlane.xlu0 %5352 }
 0xa5d   : > { %5950 = vperm.xlu1 %9139, %v15586_v54   ;;  %v5491_v32 = vadd.f32 %v5353_v5, %v5235_v33 }
 0xa5f   : > { %5556 = vst.msk [vmem:[#allocation5 + $0xd0] sm:$0xff] %vm5529_vm6, %v5491_v32 }
 0xa64   : > { %v4759_v47 = vpop.permute.xlu0 %4758 }
 0xa65   : > { %v4887_v35 = vsub.f32 %v17886_v24, %v4759_v47  ;;  %v4888_v63 = vsub.f32 %v17887_v50, %v4759_v47  ;;  %v5631_v47 = vld [vmem:[#allocation6 + $0x128] sm:$0xff] }
 0xa67   : > { %v5141_v15 = vmul.f32 1.442695, %v4887_v35  ;;  %v5143_v52 = vmul.f32 1.442695, %v4888_v63 }
 0xa68   : > { %v5826_v55 = vpop.permute.xlu0 %5825 }
 0xa69   : > { %9767 = vpow2.f32 %v5141_v15  ;;  %v6011_v23 = vmul.f32 %v5826_v55, %v5627_v60  ;;  %v17889_v60 = vld [vmem:[#allocation221_spill] sm:$0xff] }
 0xa6a   : > { %9769 = vpow2.f32 %v5143_v52  ;;  %v17890_v52 = vld [vmem:[#allocation244_spill] sm:$0xff] }
 0xa6b   : > { %v6460_v33 = vadd.f32 %v15267_v41, %v6011_v23 }
 0xa6c   : > { %v5344_v5 = vpop.xlane.xlu1 %5343  ;;  %v5836_v32 = vpop.permute.xlu0 %5835 }
 0xa6d   : > { %v5488_v54 = vadd.f32 %v5344_v5, %v5232_v9  ;;  %6524 = vst.msk [vmem:[#allocation6 + $0x108] sm:$0xff] %vm2057_vm4, %v6460_v33  ;;  %v6013_v24 = vmul.f32 %v5836_v32, %v5629_v14  ;;  %v5635_v5 = vld [vmem:[#allocation6 + $0x148] sm:$0xff] }
 0xa6f   : > { %5553 = vst.msk [vmem:[#allocation5 + $0xb8] sm:$0xff] %vm5529_vm6, %v5488_v54  ;;  %v6462_v63 = vadd.f32 %v15272_v0, %v6013_v24 }
 0xa70   : > { %v4744_v35 = vpop.permute.xlu1 %4743  ;;  %v5846_v15 = vpop.permute.xlu0 %5845 }
 0xa71   : > { %v4881_v55 = vsub.f32 %v17889_v60, %v4744_v35  ;;  %v4882_v50 = vsub.f32 %v17890_v52, %v4744_v35  ;;  %6526 = vst.msk [vmem:[#allocation6 + $0x118] sm:$0xff] %vm2057_vm4, %v6462_v63  ;;  %v6015_v41 = vmul.f32 %v5846_v15, %v5631_v47  ;;  %5364 = vadd.xlane.f32.xlu0 %v15161_v13  ;;  %v5637_v47 = vld [vmem:[#allocation6 + $0x158] sm:$0xff] }
 0xa72   : > { %v17891_v60 = vld [vmem:[#allocation61_spill] sm:$0xff] }
 0xa73   : > { %v5129_v9 = vmul.f32 1.442695, %v4881_v55  ;;  %v5131_v23 = vmul.f32 1.442695, %v4882_v50  ;;  %v15602_v14 = vpop.eup %9767  ;;  %v6464_v54 = vadd.f32 %v15279_v8, %v6015_v41  ;;  %v5639_v55 = vld [vmem:[#allocation6 + $0x168] sm:$0xff] }
 0xa74   : > { %v15605_v44 = vpop.eup %9769  ;;  %v5856_v0 = vpop.permute.xlu0 %5855 }
 0xa75   : > { %9771 = vpow2.f32 %v5129_v9  ;;  %6528 = vst.msk [vmem:[#allocation6 + $0x128] sm:$0xff] %vm2057_vm4, %v6464_v54  ;;  %v6017_v33 = vmul.f32 %v5856_v0, %v5633_v10  ;;  %5370 = vadd.xlane.f32.xlu0 %v15167_v38  ;;  %v15611_v13 = vadd.f32 %v15605_v44, %v15602_v14 }
 0xa76   : > { %9773 = vpow2.f32 %v5131_v23  ;;  %v5641_v23 = vld [vmem:[#allocation6 + $0x178] sm:$0xff] }
 0xa77   : > { %v6466_v32 = vadd.f32 %v15299_v30, %v6017_v33  ;;  %v4309_v30 = vsub.f32 %v17891_v60, %v17823_v42 }
 0xa78   : > { %v5866_v24 = vpop.permute.xlu0 %5865 }
 0xa79   : > { %6530 = vst.msk [vmem:[#allocation6 + $0x138] sm:$0xff] %vm2057_vm4, %v6466_v32  ;;  %v6019_v8 = vmul.f32 %v5866_v24, %v5635_v5  ;;  %5376 = vadd.xlane.f32.xlu0 %v15175_v57  ;;  %v4433_v42 = vmul.f32 1.442695, %v4309_v30  ;;  %v17894_v30 = vld [vmem:[#allocation223_spill] sm:$0xff] }
 0xa7b   : > { %v6468_v63 = vadd.f32 %v15319_v19, %v6019_v8  ;;  %v17892_v19 = vld [vmem:[#allocation335_spill] sm:$0xff]  ;;  %9775 = vpow2.f32 %v4433_v42 }
 0xa7c   : > { %v5876_v35 = vpop.permute.xlu0 %5875 }
 0xa7d   : > { %6532 = vst.msk [vmem:[#allocation6 + $0x148] sm:$0xff] %vm2057_vm4, %v6468_v63  ;;  %v6021_v38 = vmul.f32 %v5876_v35, %v5637_v47  ;;  %5382 = vadd.xlane.f32.xlu0 %v15177_v34 }
 0xa7f   : > { %v15619_v15 = vpop.eup %9771  ;;  %v6470_v50 = vadd.f32 %v15339_v3, %v6021_v38 }
 0xa80   : > { %v15623_v52 = vpop.eup %9773  ;;  %v5886_v57 = vpop.permute.xlu0 %5885 }
 0xa81   : > { %v15626_v41 = vpop.f32.mrb[130].mxu1  ;;  %6406 = vmatprep.mubr.f32.mxu1 %v15623_v52  ;;  %5355 = vadd.xlane.f32.xlu1 %v17892_v19  ;;  %6534 = vst.msk [vmem:[#allocation6 + $0x158] sm:$0xff] %vm2057_vm4, %v6470_v50  ;;  %v6023_v34 = vmul.f32 %v5886_v57, %v5639_v55  ;;  %v17895_v50 = vld [vmem:[#allocation247_spill] sm:$0xff]  ;;  %v5626_v57 = vld [vmem:[#allocation6 + $0x100] sm:$0xff]  ;;  %v5453_v42 = vadd.f32 %v15623_v52, %v15619_v15 }
 0xa82   : > { %5388 = vadd.xlane.f32.xlu0 %v15206_v59  ;;  %v6370_v9 = vpop.f32.mrb[131].mxu1  ;;  %6407 = vmatmul.mubr.f32.gmra.mrb[146].mxu1 %v15619_v15  ;;  %v5643_v59 = vld [vmem:[#allocation6 + $0x188] sm:$0xff] }
 0xa83   : > { %6411 = vmatprep.mubr.f32.mxu1 %v15577_v62  ;;  %v6472_v3 = vadd.f32 %v15360_v31, %v6023_v34  ;;  %v5645_v31 = vld [vmem:[#allocation6 + $0x198] sm:$0xff] }
 0xa84   : > { %v5896_v10 = vpop.permute.xlu0 %5895 }
 0xa85   : > { %v6373_v54 = vpop.f32.mrb[132].mxu1  ;;  %6536 = vst.msk [vmem:[#allocation6 + $0x168] sm:$0xff] %vm2057_vm4, %v6472_v3  ;;  %v6025_v0 = vmul.f32 %v5896_v10, %v5641_v23  ;;  %v15645_v63 = vpop.eup %9775  ;;  %v5630_v3 = vld [vmem:[#allocation6 + $0x120] sm:$0xff] }
 0xa86   : > { %5394 = vadd.xlane.f32.xlu0 %v15225_v6  ;;  %v6375_v33 = vpop.f32.mrb[133].mxu1  ;;  %6412 = vmatmul.mubr.f32.gmra.mrb[148].mxu1 %v15574_v36  ;;  %v5647_v36 = vld [vmem:[#allocation6 + $0x1a8] sm:$0xff] }
 0xa87   : > { %v6474_v5 = vadd.f32 %v15388_v26, %v6025_v0  ;;  %v5632_v0 = vld [vmem:[#allocation6 + $0x130] sm:$0xff] }
 0xa88   : > { %v5906_v32 = vpop.permute.xlu0 %5905 }
 0xa89   : > { %6538 = vst.msk [vmem:[#allocation6 + $0x178] sm:$0xff] %vm2057_vm4, %v6474_v5  ;;  %v6027_v62 = vmul.f32 %v5906_v32, %v5643_v59  ;;  %v5649_v32 = vld [vmem:[#allocation6 + $0x1b8] sm:$0xff] }
 0xa8a   : > { %5400 = vadd.xlane.f32.xlu0 %v15249_v4 }
 0xa8b   : > { %v6476_v24 = vadd.f32 %v15476_v21, %v6027_v62  ;;  %v17893_v21 = vld [vmem:[#allocation173_spill] sm:$0xff] }
 0xa8c   : > { %v5916_v8 = vpop.permute.xlu0 %5915 }
 0xa8d   : > { %6540 = vst.msk [vmem:[#allocation6 + $0x188] sm:$0xff] %vm2057_vm4, %v6476_v24  ;;  %v6029_v6 = vmul.f32 %v5916_v8, %v5645_v31  ;;  %v17896_v31 = vld [vmem:[#allocation191_spill] sm:$0xff]  ;;  %v5634_v8 = vld [vmem:[#allocation6 + $0x140] sm:$0xff] }
 0xa8e   : > { %5406 = vadd.xlane.f32.xlu0 %v15286_v56  ;;  %v5170_v56 = vld [vmem:[#allocation5 + $0xc8] sm:$0xff] }
 0xa8f   : > { %v6478_v47 = vadd.f32 %v15565_v28, %v6029_v6  ;;  %v5234_v28 = vmul.f32 %v17893_v21, %v5170_v56  ;;  %v17897_v6 = vld [vmem:[#allocation67_spill] sm:$0xff]  ;;  %v17899_v56 = vld [vmem:[#allocation69_spill] sm:$0xff] }
 0xa90   : > { %v5926_v26 = vpop.permute.xlu0 %5925  ;;  %v4312_v21 = vsub.f32 %v17899_v56, %v17815_v18 }
 0xa91   : > { %6542 = vst.msk [vmem:[#allocation6 + $0x198] sm:$0xff] %vm2057_vm4, %v6478_v47  ;;  %v6031_v35 = vmul.f32 %v5926_v26, %v5647_v36 }
 0xa92   : > { %5412 = vadd.xlane.f32.xlu0 %v15306_v7  ;;  %5960 = vperm.xlu1 %9139, %v15645_v63  }
 0xa93   : > { %v6480_v4 = vadd.f32 %v6373_v54, %v6031_v35 }
 0xa94   : > { %v5936_v15 = vpop.permute.xlu0 %5935 }
 0xa95   : > { %6544 = vst.msk [vmem:[#allocation6 + $0x1a8] sm:$0xff] %vm2057_vm4, %v6480_v4  ;;  %v17898_v4 = vld [vmem:[#allocation162_spill] sm:$0xff] }
 0xa96   : > { %5418 = vadd.xlane.f32.xlu0 %v15326_v48 }
 0xa9a   : > { %5424 = vadd.xlane.f32.xlu0 %v15346_v27 }
 0xa9e   : > { %5430 = vadd.xlane.f32.xlu0 %v15367_v53 }
 0xaa1   : > { %v5350_v38 = vpop.xlane.xlu1 %5349 }
 0xaa2   : > { %5436 = vadd.xlane.f32.xlu0 %v15428_v12  ;;  %v5490_v60 = vadd.f32 %v5350_v38, %v5234_v28  ;;  %v5628_v12 = vld [vmem:[#allocation6 + $0x110] sm:$0xff] }
 0xaa4   : > { %5555 = vst.msk [vmem:[#allocation5 + $0xc8] sm:$0xff] %vm5529_vm6, %v5490_v60  ;;  %v5636_v60 = vld [vmem:[#allocation6 + $0x150] sm:$0xff] }
 0xaa5   : > { %v4754_v7 = vpop.permute.xlu1 %4753 }
 0xaa6   : > { %5442 = vadd.xlane.f32.xlu0 %v15490_v22  ;;  %v4885_v55 = vsub.f32 %v17894_v30, %v4754_v7  ;;  %v4886_v48 = vsub.f32 %v17895_v50, %v4754_v7  ;;  %v17900_v7 = vld [vmem:[#allocation74_spill] sm:$0xff]  ;;  %v17901_v50 = vld [vmem:[#allocation68_spill] sm:$0xff] }
 0xaa8   : > { %v5137_v27 = vmul.f32 1.442695, %v4885_v55  ;;  %v5139_v19 = vmul.f32 1.442695, %v4886_v48  ;;  %v4439_v48 = vmul.f32 1.442695, %v4312_v21 }
 0xaa9   : > { %v5821_v34 = vpop.permute.xlu1 %5820 }
 0xaaa   : > { %9777 = vpow2.f32 %v5137_v27  ;;  %5448 = vadd.xlane.f32.xlu0 %v15559_v16  ;;  %v6010_v53 = vmul.f32 %v5821_v34, %v5626_v57  ;;  %v5638_v57 = vld [vmem:[#allocation6 + $0x160] sm:$0xff]  ;;  %v5946_v27 = vpop.permute.xlu0 %5945 }
 0xaab   : > { %9779 = vpow2.f32 %v5139_v19  ;;  %v17902_v19 = vld [vmem:[#allocation291_spill] sm:$0xff] }
 0xaac   : > { %v6459_v9 = vadd.f32 %v15263_v58, %v6010_v53  ;;  %v17903_v53 = vld [vmem:[#allocation87_spill] sm:$0xff]  ;;  %9781 = vpow2.f32 %v4439_v48 }
 0xaad   : > { %v5831_v22 = vpop.permute.xlu1 %5830  ;;  %v5651_v48 = vld [vmem:[#allocation6 + $0x1c8] sm:$0xff] }
 0xaae   : > { %6523 = vst.msk [vmem:[#allocation6 + $0x100] sm:$0xff] %vm2057_vm4, %v6459_v9  ;;  %5454 = vadd.xlane.f32.xlu0 %v5453_v42  ;;  %v6012_v23 = vmul.f32 %v5831_v22, %v5628_v12  ;;  %v5640_v12 = vld [vmem:[#allocation6 + $0x170] sm:$0xff]  ;;  %v17904_v9 = vld [vmem:[#allocation166_spill] sm:$0xff] }
 0xab0   : > { %v6461_v10 = vadd.f32 %v15270_v1, %v6012_v23  ;;  %v15687_v23 = vpop.permute.xlu0 %5955 }
 0xab1   : > { %v5841_v54 = vpop.permute.xlu1 %5840 }
 0xab2   : > { %6525 = vst.msk [vmem:[#allocation6 + $0x110] sm:$0xff] %vm2057_vm4, %v6461_v10  ;;  %v6014_v16 = vmul.f32 %v5841_v54, %v5630_v3  ;;  %v17905_v10 = vld [vmem:[#allocation70_spill] sm:$0xff] }
 0xab3   : > { %v5173_v54 = vld [vmem:[#allocation5 + $0xe0] sm:$0xff] }
 0xab4   : > { %v9778_v33 = vpop.eup %9777  ;;  %v6463_v59 = vadd.f32 %v15277_v46, %v6014_v16  ;;  %v6033_v46 = vmul.f32 %v5936_v15, %v5649_v32  ;;  %v5642_v16 = vld [vmem:[#allocation6 + $0x180] sm:$0xff]  ;;  %v17907_v15 = vld [vmem:[#allocation71_spill] sm:$0xff] }
 0xab5   : > { %v9780_v58 = vpop.eup %9779  ;;  %v5851_v5 = vpop.permute.xlu1 %5850 }
 0xab6   : > { %6527 = vst.msk [vmem:[#allocation6 + $0x120] sm:$0xff] %vm2057_vm4, %v6463_v59  ;;  %v6016_v52 = vmul.f32 %v5851_v5, %v5632_v0  ;;  %v15669_v62 = vpop.f32.mrb[134].mxu1  ;;  %6416 = vmatprep.mubr.f32.mxu1 %v9780_v58  ;;  %5361 = vadd.xlane.f32.xlu1 %v17896_v31  ;;  %v5459_v1 = vadd.f32 %v9780_v58, %v9778_v33  ;;  %v5644_v31 = vld [vmem:[#allocation6 + $0x190] sm:$0xff] }
 0xab7   : > { %v6380_v24 = vpop.f32.mrb[135].mxu1  ;;  %6417 = vmatmul.mubr.f32.gmra.mrb[150].mxu1 %v9778_v33  ;;  %v17906_v33 = vld [vmem:[#allocation63_spill] sm:$0xff] }
 0xab8   : > { %v6465_v36 = vadd.f32 %v17897_v6, %v6016_v52  ;;  %5460 = vadd.xlane.f32.xlu0 %v5459_v1  ;;  %6421 = vmatprep.mubr.f32.mxu1 %v15605_v44  ;;  %v5237_v59 = vmul.f32 %v17906_v33, %v5173_v54  ;;  %v15696_v24 = vpop.eup %9781  ;;  %v17908_v6 = vld [vmem:[#allocation278_spill] sm:$0xff] }
 0xab9   : > { %v5861_v47 = vpop.permute.xlu1 %5860  ;;  %v5177_v54 = vld [vmem:[#allocation5 + $0x100] sm:$0xff] }
 0xaba   : > { %6529 = vst.msk [vmem:[#allocation6 + $0x130] sm:$0xff] %vm2057_vm4, %v6465_v36  ;;  %v6018_v26 = vmul.f32 %v5861_v47, %v5634_v8  ;;  %v6383_v35 = vpop.f32.mrb[136].mxu1  ;;  %5367 = vadd.xlane.f32.xlu1 %v17898_v4  ;;  %v5646_v36 = vld [vmem:[#allocation6 + $0x1a0] sm:$0xff] }
 0xabb   : > { %v6482_v28 = vadd.f32 %v6383_v35, %v6033_v46  ;;  %v6385_v38 = vpop.f32.mrb[137].mxu1  ;;  %6422 = vmatmul.mubr.f32.gmra.mrb[152].mxu1 %v15602_v14  ;;  %v5648_v35 = vld [vmem:[#allocation6 + $0x1b0] sm:$0xff] }
 0xabc   : > { %v6467_v30 = vadd.f32 %v17900_v7, %v6018_v26  ;;  %v17913_v7 = vld [vmem:[#allocation75_spill] sm:$0xff] }
 0xabd   : > { %6546 = vst.msk [vmem:[#allocation6 + $0x1b8] sm:$0xff] %vm2057_vm4, %v6482_v28  ;;  %v5871_v44 = vpop.permute.xlu1 %5870  ;;  %v17910_v28 = vld [vmem:[#allocation72_spill] sm:$0xff] }
 0xabe   : > { %6531 = vst.msk [vmem:[#allocation6 + $0x140] sm:$0xff] %vm2057_vm4, %v6467_v30  ;;  %v6020_v55 = vmul.f32 %v5871_v44, %v5636_v60  ;;  %5373 = vadd.xlane.f32.xlu1 %v17901_v50  ;;  %v17912_v60 = vld [vmem:[#allocation289_spill] sm:$0xff]  ;;  %v5650_v44 = vld [vmem:[#allocation6 + $0x1c0] sm:$0xff]  ;;  %v17915_v50 = vld [vmem:[#allocation164_spill] sm:$0xff] }
 0xabf   : > { %v17914_v30 = vld [vmem:[#allocation293_spill] sm:$0xff] }
 0xac0   : > { %v6469_v18 = vadd.f32 %v17902_v19, %v6020_v55 }
 0xac1   : > { %v5881_v34 = vpop.permute.xlu1 %5880 }
 0xac2   : > { %6533 = vst.msk [vmem:[#allocation6 + $0x150] sm:$0xff] %vm2057_vm4, %v6469_v18  ;;  %v6022_v14 = vmul.f32 %v5881_v34, %v5638_v57  ;;  %5379 = vadd.xlane.f32.xlu1 %v17903_v53 }
 0xac4   : > { %v6471_v42 = vadd.f32 %v17904_v9, %v6022_v14 }
 0xac5   : > { %v5891_v22 = vpop.permute.xlu1 %5890 }
 0xac6   : > { %6535 = vst.msk [vmem:[#allocation6 + $0x160] sm:$0xff] %vm2057_vm4, %v6471_v42  ;;  %v6024_v3 = vmul.f32 %v5891_v22, %v5640_v12  ;;  %5385 = vadd.xlane.f32.xlu1 %v17905_v10  ;;  %v17916_v12 = vld [vmem:[#allocation169_spill] sm:$0xff] }
 0xac7   : > { %v4311_v9 = vsub.f32 %v17916_v12, %v17858_v40 }
 0xac8   : > { %v6473_v0 = vadd.f32 %v15383_v17, %v6024_v3  ;;  %v17917_v3 = vld [vmem:[#allocation62_spill] sm:$0xff] }
 0xac9   : > { %v5901_v58 = vpop.permute.xlu1 %5900  ;;  %v5359_v5 = vpop.xlane.xlu0 %5358  ;;  %v4437_v22 = vmul.f32 1.442695, %v4311_v9 }
 0xaca   : > { %6537 = vst.msk [vmem:[#allocation6 + $0x170] sm:$0xff] %vm2057_vm4, %v6473_v0  ;;  %v6026_v32 = vmul.f32 %v5901_v58, %v5642_v16  ;;  %5391 = vadd.xlane.f32.xlu1 %v17907_v15  ;;  %v5493_v52 = vadd.f32 %v5359_v5, %v5237_v59  ;;  %v5179_v0 = vld [vmem:[#allocation5 + $0x110] sm:$0xff]  ;;  %v5181_v59 = vld [vmem:[#allocation5 + $0x120] sm:$0xff] }
 0xacb   : > { %9783 = vpow2.f32 %v4437_v22  ;;  %v5243_v40 = vmul.f32 %v15506_v51, %v5179_v0  ;;  %v5245_v15 = vmul.f32 %v15511_v11, %v5181_v59  ;;  %v5199_v0 = vld [vmem:[#allocation5 + $0x1b0] sm:$0xff] }
 0xacc   : > { %v6475_v1 = vadd.f32 %v15468_v39, %v6026_v32  ;;  %5558 = vst.msk [vmem:[#allocation5 + $0xe0] sm:$0xff] %vm5529_vm6, %v5493_v52  ;;  %v17909_v39 = vld [vmem:[#allocation282_spill] sm:$0xff]  ;;  %v5172_v52 = vld [vmem:[#allocation5 + $0xd8] sm:$0xff] }
 0xacd   : > { %v5911_v8 = vpop.permute.xlu1 %5910 }
 0xace   : > { %6539 = vst.msk [vmem:[#allocation6 + $0x180] sm:$0xff] %vm2057_vm4, %v6475_v1  ;;  %5975 = vperm.xlu0 %9138, %v15696_v24   ;;  %v6028_v17 = vmul.f32 %v5911_v8, %v5644_v31  ;;  %5397 = vadd.xlane.f32.xlu1 %v17908_v6  ;;  %v5183_v31 = vld [vmem:[#allocation5 + $0x130] sm:$0xff]  ;;  %v17918_v8 = vld [vmem:[#allocation90_spill] sm:$0xff] }
 0xacf   : > { %v5247_v51 = vmul.f32 %v15516_v29, %v5183_v31  ;;  %v5203_v31 = vld [vmem:[#allocation5 + $0x1d0] sm:$0xff] }
 0xad0   : > { %v6477_v46 = vadd.f32 %v15557_v37, %v6028_v17  ;;  %v17911_v37 = vld [vmem:[#allocation73_spill] sm:$0xff]  ;;  %v5236_v17 = vmul.f32 %v17918_v8, %v5172_v52  ;;  %v17925_v8 = vld [vmem:[#allocation307_spill] sm:$0xff] }
 0xad1   : > { %v5921_v47 = vpop.permute.xlu1 %5920  ;;  %v15723_v42 = vpop.permute.xlu0 %5965 }
 0xad2   : > { %6541 = vst.msk [vmem:[#allocation6 + $0x190] sm:$0xff] %vm2057_vm4, %v6477_v46  ;;  %v6030_v26 = vmul.f32 %v5921_v47, %v5646_v36  ;;  %5403 = vadd.xlane.f32.xlu1 %v17909_v39  ;;  %v5185_v47 = vld [vmem:[#allocation5 + $0x140] sm:$0xff] }
 0xad3   : > { %v5249_v11 = vmul.f32 %v15522_v43, %v5185_v47  ;;  %v17919_v43 = vld [vmem:[#allocation92_spill] sm:$0xff] }
 0xad4   : > { %v6479_v4 = vadd.f32 %v15626_v41, %v6030_v26 }
 0xad5   : > { %v5931_v56 = vpop.permute.xlu1 %5930  ;;  %v15730_v5 = vpop.eup %9783 }
 0xad6   : > { %6543 = vst.msk [vmem:[#allocation6 + $0x1a0] sm:$0xff] %vm2057_vm4, %v6479_v4  ;;  %v6032_v21 = vmul.f32 %v5931_v56, %v5648_v35  ;;  %5409 = vadd.xlane.f32.xlu1 %v17910_v28  ;;  %v5187_v35 = vld [vmem:[#allocation5 + $0x150] sm:$0xff] }
 0xad7   : > { %v5251_v56 = vmul.f32 %v15528_v45, %v5187_v35  ;;  %v5207_v35 = vld [vmem:[#allocation5 + $0x1f0] sm:$0xff] }
 0xad8   : > { %v6481_v38 = vadd.f32 %v15669_v62, %v6032_v21  ;;  %v6035_v62 = vmul.f32 %v5946_v27, %v5651_v48  ;;  %v5175_v27 = vld [vmem:[#allocation5 + $0xf0] sm:$0xff]  ;;  %v5189_v21 = vld [vmem:[#allocation5 + $0x160] sm:$0xff]  ;;  %v5653_v48 = vld [vmem:[#allocation6 + $0x1d8] sm:$0xff] }
 0xad9   : > { %v5941_v41 = vpop.permute.xlu1 %5940 }
 0xada   : > { %6545 = vst.msk [vmem:[#allocation6 + $0x1b0] sm:$0xff] %vm2057_vm4, %v6481_v38  ;;  %5415 = vadd.xlane.f32.xlu1 %v17911_v37  ;;  %v6034_v55 = vmul.f32 %v5941_v41, %v5650_v44  ;;  %v5253_v38 = vmul.f32 %v15536_v2, %v5189_v21  ;;  %v5176_v21 = vld [vmem:[#allocation5 + $0xf8] sm:$0xff] }
 0xadd   : > { %v5951_v32 = vpop.permute.xlu1 %5950 }
 0xade   : > { %5421 = vadd.xlane.f32.xlu1 %v17912_v60  ;;  %v5191_v60 = vld [vmem:[#allocation5 + $0x170] sm:$0xff] }
 0xadf   : > { %v5255_v44 = vmul.f32 %v17919_v43, %v5191_v60  ;;  %v5178_v43 = vld [vmem:[#allocation5 + $0x108] sm:$0xff] }
 0xae2   : > { %5427 = vadd.xlane.f32.xlu1 %v17913_v7  ;;  %v5652_v7 = vld [vmem:[#allocation6 + $0x1d0] sm:$0xff] }
 0xae3   : > { %v6036_v41 = vmul.f32 %v5951_v32, %v5652_v7  ;;  %v17927_v7 = vld [vmem:[#allocation316_spill] sm:$0xff] }
 0xae6   : > { %5433 = vadd.xlane.f32.xlu1 %v17914_v30 }
 0xaea   : > { %5439 = vadd.xlane.f32.xlu1 %v17915_v50  ;;  %v5193_v50 = vld [vmem:[#allocation5 + $0x180] sm:$0xff] }
 0xaeb   : > { %v6388_v57 = vpop.f32.mrb[138].mxu1 }
 0xaec   : > { %v6483_v19 = vadd.f32 %v6388_v57, %v6034_v55  ;;  %v6390_v18 = vpop.f32.mrb[139].mxu1 }
 0xaee   : > { %6547 = vst.msk [vmem:[#allocation6 + $0x1c0] sm:$0xff] %vm2057_vm4, %v6483_v19  ;;  %5445 = vadd.xlane.f32.xlu1 %v15408_v25  ;;  %v5239_v25 = vmul.f32 %v17917_v3, %v5175_v27  ;;  %v17921_v3 = vld [vmem:[#allocation342_spill] sm:$0xff] }
 0xaef   : > { %v6393_v34 = vpop.f32.mrb[140].mxu1 }
 0xaf0   : > { %v6484_v14 = vadd.f32 %v6393_v34, %v6035_v62  ;;  %v6395_v53 = vpop.f32.mrb[141].mxu1  ;;  %v17920_v62 = vld [vmem:[#allocation93_spill] sm:$0xff]  ;;  %v6037_v34 = vmul.f32 %v15687_v23, %v5653_v48  ;;  %v17922_v23 = vld [vmem:[#allocation343_spill] sm:$0xff] }
 0xaf1   : > { %v5257_v2 = vmul.f32 %v17920_v62, %v5193_v50  ;;  %v5195_v53 = vld [vmem:[#allocation5 + $0x190] sm:$0xff]  ;;  %v5180_v48 = vld [vmem:[#allocation5 + $0x118] sm:$0xff] }
 0xaf2   : > { %6548 = vst.msk [vmem:[#allocation6 + $0x1c8] sm:$0xff] %vm2057_vm4, %v6484_v14  ;;  %5451 = vadd.xlane.f32.xlu1 %v15494_v49  ;;  %v5241_v49 = vmul.f32 %v15500_v20, %v5177_v54  ;;  %v5197_v54 = vld [vmem:[#allocation5 + $0x1a0] sm:$0xff] }
 0xaf6   : > { %5457 = vadd.xlane.f32.xlu1 %v15584_v61 }
 0xafa   : > { %5463 = vadd.xlane.f32.xlu1 %v15611_v13 }
 0xafe   : > { %v5365_v10 = vpop.xlane.xlu0 %5364 }
 0xaff   : > { %v5495_v16 = vadd.f32 %v5365_v10, %v5239_v25  ;;  %v5259_v25 = vmul.f32 %v17921_v3, %v5195_v53 }
 0xb01   : > { %5560 = vst.msk [vmem:[#allocation5 + $0xf0] sm:$0xff] %vm5529_vm6, %v5495_v16 }
 0xb02   : > { %v5371_v61 = vpop.xlane.xlu0 %5370 }
 0xb03   : > { %v5497_v33 = vadd.f32 %v5371_v61, %v5241_v49  ;;  %v5261_v49 = vmul.f32 %v17922_v23, %v5197_v54  ;;  %v17931_v54 = vld [vmem:[#allocation296_spill] sm:$0xff] }
 0xb05   : > { %5562 = vst.msk [vmem:[#allocation5 + $0x100] sm:$0xff] %vm5529_vm6, %v5497_v33 }
 0xb06   : > { %v5377_v13 = vpop.xlane.xlu0 %5376 }
 0xb07   : > { %v5499_v58 = vadd.f32 %v5377_v13, %v5243_v40  ;;  %v17923_v40 = vld [vmem:[#allocation183_spill] sm:$0xff] }
 0xb08   : > { %v5263_v13 = vmul.f32 %v17923_v40, %v5199_v0 }
 0xb09   : > { %5564 = vst.msk [vmem:[#allocation5 + $0x110] sm:$0xff] %vm5529_vm6, %v5499_v58  ;;  %v5201_v58 = vld [vmem:[#allocation5 + $0x1c0] sm:$0xff] }
 0xb0a   : > { %v5383_v20 = vpop.xlane.xlu0 %5382 }
 0xb0b   : > { %5970 = vperm.xlu1 %9139, %v15730_v5   ;;  %v5501_v1 = vadd.f32 %v5383_v20, %v5245_v15  ;;  %v17924_v15 = vld [vmem:[#allocation304_spill] sm:$0xff] }
 0xb0c   : > { %v5265_v52 = vmul.f32 %v17924_v15, %v5201_v58  ;;  %v5188_v15 = vld [vmem:[#allocation5 + $0x158] sm:$0xff] }
 0xb0d   : > { %5566 = vst.msk [vmem:[#allocation5 + $0x120] sm:$0xff] %vm5529_vm6, %v5501_v1 }
 0xb0e   : > { %v5356_v6 = vpop.xlane.xlu1 %5355 }
 0xb0f   : > { %v5389_v36 = vpop.xlane.xlu0 %5388  ;;  %v5492_v46 = vadd.f32 %v5356_v6, %v5236_v17  ;;  %v5267_v17 = vmul.f32 %v17925_v8, %v5203_v31  ;;  %v5205_v6 = vld [vmem:[#allocation5 + $0x1e0] sm:$0xff] }
 0xb10   : > { %v5503_v26 = vadd.f32 %v5389_v36, %v5247_v51 }
 0xb11   : > { %5557 = vst.msk [vmem:[#allocation5 + $0xd8] sm:$0xff] %vm5529_vm6, %v5492_v46  ;;  %v5269_v46 = vmul.f32 %v15645_v63, %v5205_v6  ;;  %v5240_v63 = vmul.f32 %v17927_v7, %v5176_v21  ;;  %v5196_v21 = vld [vmem:[#allocation5 + $0x198] sm:$0xff]  ;;  %v5198_v7 = vld [vmem:[#allocation5 + $0x1a8] sm:$0xff] }
 0xb12   : > { %5568 = vst.msk [vmem:[#allocation5 + $0x130] sm:$0xff] %vm5529_vm6, %v5503_v26 }
 0xb13   : > { %v5395_v39 = vpop.xlane.xlu0 %5394 }
 0xb14   : > { %v5505_v4 = vadd.f32 %v5395_v39, %v5249_v11  ;;  %v5961_v11 = vpop.permute.xlu1 %5960  ;;  %v5174_v39 = vld [vmem:[#allocation5 + $0xe8] sm:$0xff] }
 0xb16   : > { %5570 = vst.msk [vmem:[#allocation5 + $0x140] sm:$0xff] %vm5529_vm6, %v5505_v4  ;;  %v17926_v4 = vld [vmem:[#allocation257_spill] sm:$0xff] }
 0xb17   : > { %v5401_v29 = vpop.xlane.xlu0 %5400 }
 0xb18   : > { %v5507_v28 = vadd.f32 %v5401_v29, %v5251_v56  ;;  %v5238_v56 = vmul.f32 %v17926_v4, %v5174_v39  ;;  %v5194_v39 = vld [vmem:[#allocation5 + $0x188] sm:$0xff]  ;;  %v17936_v4 = vld [vmem:[#allocation300_spill] sm:$0xff] }
 0xb1a   : > { %5572 = vst.msk [vmem:[#allocation5 + $0x150] sm:$0xff] %vm5529_vm6, %v5507_v28 }
 0xb1b   : > { %v5407_v37 = vpop.xlane.xlu0 %5406 }
 0xb1c   : > { %v5509_v30 = vadd.f32 %v5407_v37, %v5253_v38  ;;  %v5271_v38 = vmul.f32 %v15730_v5, %v5207_v35  ;;  %v17929_v5 = vld [vmem:[#allocation53_spill] sm:$0xff] }
 0xb1e   : > { %5574 = vst.msk [vmem:[#allocation5 + $0x160] sm:$0xff] %vm5529_vm6, %v5509_v30 }
 0xb1f   : > { %v5413_v55 = vpop.xlane.xlu0 %5412 }
 0xb20   : > { %v5511_v45 = vadd.f32 %v5413_v55, %v5255_v44  ;;  %v6398_v57 = vpop.f32.mrb[142].mxu1 }
 0xb21   : > { %v6485_v19 = vadd.f32 %v6398_v57, %v6036_v41  ;;  %v6400_v18 = vpop.f32.mrb[143].mxu1  ;;  %v17928_v41 = vld [vmem:[#allocation189_spill] sm:$0xff]  ;;  %v5244_v57 = vmul.f32 %v17929_v5, %v5180_v48  ;;  %v5202_v5 = vld [vmem:[#allocation5 + $0x1c8] sm:$0xff] }
 0xb22   : > { %5576 = vst.msk [vmem:[#allocation5 + $0x170] sm:$0xff] %vm5529_vm6, %v5511_v45  ;;  %v5242_v55 = vmul.f32 %v17928_v41, %v5178_v43  ;;  %v5182_v18 = vld [vmem:[#allocation5 + $0x128] sm:$0xff]  ;;  %v5200_v41 = vld [vmem:[#allocation5 + $0x1b8] sm:$0xff] }
 0xb23   : > { %6549 = vst.msk [vmem:[#allocation6 + $0x1d0] sm:$0xff] %vm2057_vm4, %v6485_v19  ;;  %v5419_v14 = vpop.xlane.xlu0 %5418 }
 0xb24   : > { %v5513_v12 = vadd.f32 %v5419_v14, %v5257_v2  ;;  %v6403_v9 = vpop.f32.mrb[144].mxu1  ;;  %v5654_v2 = vld [vmem:[#allocation6 + $0x1e0] sm:$0xff] }
 0xb25   : > { %v6486_v27 = vadd.f32 %v6403_v9, %v6037_v34  ;;  %v6405_v22 = vpop.f32.mrb[145].mxu1  ;;  %v17930_v34 = vld [vmem:[#allocation52_spill] sm:$0xff]  ;;  %v6038_v9 = vmul.f32 %v5961_v11, %v5654_v2  ;;  %v5204_v2 = vld [vmem:[#allocation5 + $0x1d8] sm:$0xff] }
 0xb26   : > { %5578 = vst.msk [vmem:[#allocation5 + $0x180] sm:$0xff] %vm5529_vm6, %v5513_v12  ;;  %v5246_v14 = vmul.f32 %v17930_v34, %v5182_v18  ;;  %v5184_v12 = vld [vmem:[#allocation5 + $0x138] sm:$0xff]  ;;  %v5655_v22 = vld [vmem:[#allocation6 + $0x1e8] sm:$0xff] }
 0xb27   : > { %6550 = vst.msk [vmem:[#allocation6 + $0x1d8] sm:$0xff] %vm2057_vm4, %v6486_v27  ;;  %v5425_v10 = vpop.xlane.xlu0 %5424 }
 0xb28   : > { %v5515_v16 = vadd.f32 %v5425_v10, %v5259_v25 }
 0xb2a   : > { %5580 = vst.msk [vmem:[#allocation5 + $0x190] sm:$0xff] %vm5529_vm6, %v5515_v16  ;;  %v5248_v16 = vmul.f32 %v17931_v54, %v5184_v12 }
 0xb2b   : > { %v5431_v61 = vpop.xlane.xlu0 %5430 }
 0xb2c   : > { %v5517_v33 = vadd.f32 %v5431_v61, %v5261_v49  ;;  %v5186_v49 = vld [vmem:[#allocation5 + $0x148] sm:$0xff]  ;;  %v6039_v61 = vmul.f32 %v15723_v42, %v5655_v22  ;;  %v17942_v22 = vld [vmem:[#allocation94_spill] sm:$0xff] }
 0xb2e   : > { %5582 = vst.msk [vmem:[#allocation5 + $0x1a0] sm:$0xff] %vm5529_vm6, %v5517_v33 }
 0xb2f   : > { %v5437_v59 = vpop.xlane.xlu0 %5436 }
 0xb30   : > { %v5519_v32 = vadd.f32 %v5437_v59, %v5263_v13  ;;  %v17932_v59 = vld [vmem:[#allocation56_spill] sm:$0xff] }
 0xb31   : > { %v5250_v58 = vmul.f32 %v17932_v59, %v5186_v49 }
 0xb32   : > { %5584 = vst.msk [vmem:[#allocation5 + $0x1b0] sm:$0xff] %vm5529_vm6, %v5519_v32 }
 0xb33   : > { %v5443_v20 = vpop.xlane.xlu0 %5442 }
 0xb34   : > { %v5521_v1 = vadd.f32 %v5443_v20, %v5265_v52  ;;  %v17933_v20 = vld [vmem:[#allocation77_spill] sm:$0xff] }
 0xb35   : > { %v5252_v31 = vmul.f32 %v17933_v20, %v5188_v15 }
 0xb36   : > { %5586 = vst.msk [vmem:[#allocation5 + $0x1c0] sm:$0xff] %vm5529_vm6, %v5521_v1  ;;  %v5190_v1 = vld [vmem:[#allocation5 + $0x168] sm:$0xff] }
 0xb37   : > { %v5449_v51 = vpop.xlane.xlu0 %5448 }
 0xb38   : > { %v5523_v36 = vadd.f32 %v5449_v51, %v5267_v17  ;;  %v17934_v17 = vld [vmem:[#allocation81_spill] sm:$0xff] }
 0xb39   : > { %v5254_v51 = vmul.f32 %v17934_v17, %v5190_v1  ;;  %v10410_v1 = vmov (!%p8148_p5), 0   ;;  %v6704_v17 = vld [vmem:[#allocation5 + $0x88] sm:$0xff] (!%p8148_p5) }
 0xb3a   : > { %5588 = vst.msk [vmem:[#allocation5 + $0x1d0] sm:$0xff] %vm5529_vm6, %v5523_v36  ;;  %v5192_v36 = vld [vmem:[#allocation5 + $0x178] sm:$0xff]  ;;  %9810 = vset.pattern.permute.xlu1 (!%p8148_p5), %v10410_v1  ;;  %9809 = vset.pattern.permute.xlu0 (!%p8148_p5), %v10410_v1 }
 0xb3b   : > { %v5455_v47 = vpop.xlane.xlu0 %5454 }
 0xb3c   : > { %v5525_v26 = vadd.f32 %v5455_v47, %v5269_v46  ;;  %v17935_v47 = vld [vmem:[#allocation298_spill] sm:$0xff] }
 0xb3e   : > { %5590 = vst.msk [vmem:[#allocation5 + $0x1e0] sm:$0xff] %vm5529_vm6, %v5525_v26  ;;  %v5256_v26 = vmul.f32 %v17935_v47, %v5192_v36  ;;  %v6706_v47 = vld [vmem:[#allocation5 + $0x98] sm:$0xff] (!%p8148_p5) }
 0xb43   : > { %v5362_v29 = vpop.xlane.xlu1 %5361 }
 0xb44   : > { %v5494_v28 = vadd.f32 %v5362_v29, %v5238_v56  ;;  %v5258_v56 = vmul.f32 %v17936_v4, %v5194_v39  ;;  %v6737_v39 = vld [vmem:[#allocation5 + $0x190] sm:$0xff] (!%p8148_p5) }
 0xb45   : > { %v5461_v37 = vpop.xlane.xlu0 %5460  ;;  %v6689_v4 = vld [vmem:[#allocation5 + $0x10] sm:$0xff] (!%p8148_p5) }
 0xb46   : > { %5559 = vst.msk [vmem:[#allocation5 + $0xe8] sm:$0xff] %vm5529_vm6, %v5494_v28  ;;  %v5527_v60 = vadd.f32 %v5461_v37, %v5271_v38  ;;  %v17937_v38 = vld [vmem:[#allocation338_spill] sm:$0xff] }
 0xb47   : > { %v5368_v30 = vpop.xlane.xlu1 %5367  ;;  %v5260_v37 = vmul.f32 %v17937_v38, %v5196_v21  ;;  %v6708_v21 = vld [vmem:[#allocation5 + $0xa8] sm:$0xff] (!%p8148_p5) }
 0xb48   : > { %5592 = vst.msk [vmem:[#allocation5 + $0x1f0] sm:$0xff] %vm5529_vm6, %v5527_v60  ;;  %v5496_v44 = vadd.f32 %v5368_v30, %v5240_v63  ;;  %v17938_v30 = vld [vmem:[#allocation340_spill] sm:$0xff] }
 0xb49   : > { %v5262_v43 = vmul.f32 %v17938_v30, %v5198_v7  ;;  %v6691_v7 = vld [vmem:[#allocation5 + $0x20] sm:$0xff] (!%p8148_p5) }
 0xb4a   : > { %5561 = vst.msk [vmem:[#allocation5 + $0xf8] sm:$0xff] %vm5529_vm6, %v5496_v44  ;;  %v6723_v30 = vld [vmem:[#allocation5 + $0x120] sm:$0xff] (!%p8148_p5) }
 0xb4b   : > { %v5374_v50 = vpop.xlane.xlu1 %5373 }
 0xb4c   : > { %v5498_v45 = vadd.f32 %v5374_v50, %v5242_v55  ;;  %v17939_v50 = vld [vmem:[#allocation302_spill] sm:$0xff] }
 0xb4d   : > { %v5264_v48 = vmul.f32 %v17939_v50, %v5200_v41  ;;  %v6694_v50 = vld [vmem:[#allocation5 + $0x38] sm:$0xff] (!%p8148_p5) }
 0xb4e   : > { %5563 = vst.msk [vmem:[#allocation5 + $0x108] sm:$0xff] %vm5529_vm6, %v5498_v45 }
 0xb4f   : > { %v5380_v19 = vpop.xlane.xlu1 %5379 }
 0xb50   : > { %v5500_v62 = vadd.f32 %v5380_v19, %v5244_v57  ;;  %v17940_v19 = vld [vmem:[#allocation95_spill] sm:$0xff] }
 0xb51   : > { %v5266_v18 = vmul.f32 %v17940_v19, %v5202_v5  ;;  %v6725_v5 = vld [vmem:[#allocation5 + $0x130] sm:$0xff] (!%p8148_p5)  ;;  %v6711_v19 = vld [vmem:[#allocation5 + $0xc0] sm:$0xff] (!%p8148_p5) }
 0xb52   : > { %5565 = vst.msk [vmem:[#allocation5 + $0x118] sm:$0xff] %vm5529_vm6, %v5500_v62 }
 0xb53   : > { %v5386_v53 = vpop.xlane.xlu1 %5385 }
 0xb54   : > { %v5502_v27 = vadd.f32 %v5386_v53, %v5246_v14  ;;  %v17941_v14 = vld [vmem:[#allocation303_spill] sm:$0xff] }
 0xb55   : > { %v6408_v3 = vpop.f32.mrb[146].mxu1  ;;  %v5268_v53 = vmul.f32 %v17941_v14, %v5204_v2  ;;  %v6720_v36 = vld [vmem:[#allocation5 + $0x108] sm:$0xff] (!%p8148_p5) }
 0xb56   : > { %5567 = vst.msk [vmem:[#allocation5 + $0x128] sm:$0xff] %vm5529_vm6, %v5502_v27  ;;  %v6487_v25 = vadd.f32 %v6408_v3, %v6038_v9  ;;  %v6410_v10 = vpop.f32.mrb[147].mxu1  ;;  %v5206_v9 = vld [vmem:[#allocation5 + $0x1e8] sm:$0xff] }
 0xb57   : > { %v5392_v23 = vpop.xlane.xlu1 %5391  ;;  %v5270_v3 = vmul.f32 %v17942_v22, %v5206_v9  ;;  %v5208_v10 = vld [vmem:[#allocation5 + $0x1f8] sm:$0xff]  ;;  %v6696_v2 = vld [vmem:[#allocation5 + $0x48] sm:$0xff] (!%p8148_p5)  ;;  %v6713_v9 = vld [vmem:[#allocation5 + $0xd0] sm:$0xff] (!%p8148_p5) }
 0xb58   : > { %6551 = vst.msk [vmem:[#allocation6 + $0x1e0] sm:$0xff] %vm2057_vm4, %v6487_v25  ;;  %v5504_v0 = vadd.f32 %v5392_v23, %v5248_v16  ;;  %v5272_v16 = vmul.f32 %v15696_v24, %v5208_v10  ;;  %v6735_v24 = vld [vmem:[#allocation5 + $0x180] sm:$0xff] (!%p8148_p5)  ;;  %v6745_v22 = vld [vmem:[#allocation5 + $0x1d0] sm:$0xff] (!%p8148_p5) }
 0xb59   : > { %v6413_v33 = vpop.f32.mrb[148].mxu1  ;;  %6993 = vperm.xlu1 (!%p8148_p5), %9810, %v6735_v24   ;;  %v6733_v24 = vld [vmem:[#allocation5 + $0x170] sm:$0xff] (!%p8148_p5) }
 0xb5a   : > { %5569 = vst.msk [vmem:[#allocation5 + $0x138] sm:$0xff] %vm5529_vm6, %v5504_v0  ;;  %v6488_v40 = vadd.f32 %v6413_v33, %v6039_v61  ;;  %v6415_v13 = vpop.f32.mrb[149].mxu1  ;;  %v5656_v61 = vld [vmem:[#allocation6 + $0x1f0] sm:$0xff]  ;;  %v5657_v0 = vld [vmem:[#allocation6 + $0x1f8] sm:$0xff]  ;;  %v5976_v33 = vpop.permute.xlu0 %5975 }
 0xb5b   : > { %v5398_v32 = vpop.xlane.xlu1 %5397 }
 0xb5c   : > { %6552 = vst.msk [vmem:[#allocation6 + $0x1e8] sm:$0xff] %vm2057_vm4, %v6488_v40  ;;  %v5506_v52 = vadd.f32 %v5398_v32, %v5250_v58  ;;  %v6041_v32 = vmul.f32 %v5976_v33, %v5657_v0  ;;  %v6700_v0 = vld [vmem:[#allocation5 + $0x68] sm:$0xff] (!%p8148_p5)  ;;  %v6699_v33 = vld [vmem:[#allocation5 + $0x60] sm:$0xff] (!%p8148_p5) }
 0xb5e   : > { %5571 = vst.msk [vmem:[#allocation5 + $0x148] sm:$0xff] %vm5529_vm6, %v5506_v52 }
 0xb5f   : > { %v5404_v42 = vpop.xlane.xlu1 %5403 }
 0xb60   : > { %v5508_v8 = vadd.f32 %v5404_v42, %v5252_v31  ;;  %v6703_v42 = vld [vmem:[#allocation5 + $0x80] sm:$0xff] (!%p8148_p5) }
 0xb61   : > { %6833 = vperm.xlu0 (!%p8148_p5), %9809, %v6703_v42  }
 0xb62   : > { %5573 = vst.msk [vmem:[#allocation5 + $0x158] sm:$0xff] %vm5529_vm6, %v5508_v8 }
 0xb63   : > { %v5410_v6 = vpop.xlane.xlu1 %5409 }
 0xb64   : > { %v5510_v46 = vadd.f32 %v5410_v6, %v5254_v51  ;;  %v6688_v51 = vld [vmem:[#allocation5 + $0x8] sm:$0xff] (!%p8148_p5)  ;;  %v6687_v6 = vld [vmem:[#allocation5] sm:$0xff] (!%p8148_p5) }
 0xb65   : > { %6838 = vperm.xlu0 (!%p8148_p5), %9809, %v6704_v17   ;;  %v6728_v14 = vld [vmem:[#allocation5 + $0x148] sm:$0xff] (!%p8148_p5) }
 0xb66   : > { %5575 = vst.msk [vmem:[#allocation5 + $0x168] sm:$0xff] %vm5529_vm6, %v5510_v46  ;;  %v6719_v46 = vld [vmem:[#allocation5 + $0x100] sm:$0xff] (!%p8148_p5) }
 0xb67   : > { %v5416_v11 = vpop.xlane.xlu1 %5415 }
 0xb68   : > { %v5512_v35 = vadd.f32 %v5416_v11, %v5256_v26  ;;  %v6705_v26 = vld [vmem:[#allocation5 + $0x90] sm:$0xff] (!%p8148_p5) }
 0xb69   : > { %6753 = vperm.xlu0 (!%p8148_p5), %9809, %v6687_v6   ;;  %v6730_v10 = vld [vmem:[#allocation5 + $0x158] sm:$0xff] (!%p8148_p5) }
 0xb6a   : > { %5577 = vst.msk [vmem:[#allocation5 + $0x178] sm:$0xff] %vm5529_vm6, %v5512_v35  ;;  %v6690_v35 = vld [vmem:[#allocation5 + $0x18] sm:$0xff] (!%p8148_p5) }
 0xb6b   : > { %v5422_v29 = vpop.xlane.xlu1 %5421 }
 0xb6c   : > { %v5514_v28 = vadd.f32 %v5422_v29, %v5258_v56  ;;  %v6722_v56 = vld [vmem:[#allocation5 + $0x118] sm:$0xff] (!%p8148_p5)  ;;  %v6721_v29 = vld [vmem:[#allocation5 + $0x110] sm:$0xff] (!%p8148_p5) }
 0xb6d   : > { %6913 = vperm.xlu0 (!%p8148_p5), %9809, %v6719_v46  }
 0xb6e   : > { %5579 = vst.msk [vmem:[#allocation5 + $0x188] sm:$0xff] %vm5529_vm6, %v5514_v28  ;;  %v6707_v28 = vld [vmem:[#allocation5 + $0xa0] sm:$0xff] (!%p8148_p5) }
 0xb6f   : > { %v5428_v60 = vpop.xlane.xlu1 %5427 }
 0xb70   : > { %v5516_v63 = vadd.f32 %v5428_v60, %v5260_v37  ;;  %v6739_v37 = vld [vmem:[#allocation5 + $0x1a0] sm:$0xff] (!%p8148_p5)  ;;  %v6692_v60 = vld [vmem:[#allocation5 + $0x28] sm:$0xff] (!%p8148_p5) }
 0xb71   : > { %6843 = vperm.xlu0 (!%p8148_p5), %9809, %v6705_v26   ;;  %v6671_v26 = vld [vmem:[#allocation6 + $0x180] sm:$0xff] (!%p8148_p5) }
 0xb72   : > { %5581 = vst.msk [vmem:[#allocation5 + $0x198] sm:$0xff] %vm5529_vm6, %v5516_v63  ;;  %v6724_v63 = vld [vmem:[#allocation5 + $0x128] sm:$0xff] (!%p8148_p5) }
 0xb73   : > { %v5434_v44 = vpop.xlane.xlu1 %5433 }
 0xb74   : > { %v5518_v55 = vadd.f32 %v5434_v44, %v5262_v43  ;;  %v6710_v43 = vld [vmem:[#allocation5 + $0xb8] sm:$0xff] (!%p8148_p5)  ;;  %v6709_v44 = vld [vmem:[#allocation5 + $0xb0] sm:$0xff] (!%p8148_p5) }
 0xb75   : > { %v6736_v8 = vld [vmem:[#allocation5 + $0x188] sm:$0xff] (!%p8148_p5)  ;;  %7003 = vperm.xlu0 (!%p8148_p5), %9809, %v6737_v39  }
 0xb76   : > { %5583 = vst.msk [vmem:[#allocation5 + $0x1a8] sm:$0xff] %vm5529_vm6, %v5518_v55  ;;  %6998 = vperm.xlu1 (!%p8148_p5), %9810, %v6736_v8   ;;  %v6741_v55 = vld [vmem:[#allocation5 + $0x1b0] sm:$0xff] (!%p8148_p5)  ;;  %v15811_v39 = vld [vmem:[%s10981_s16] sm:$0xf] (!%p8148_p5) }
 0xb77   : > { %v5440_v45 = vpop.xlane.xlu1 %5439  ;;  %8422 = vmatprep.mubr.msk.f32.mxu0 (!%p8148_p5), %vm2057_vm4, %v15811_v39  ;;  %8456 = vmatprep.mubr.msk.f32.mxu1 (!%p8148_p5), %vm2057_vm4, %v15811_v39 }
 0xb78   : > { %v5520_v57 = vadd.f32 %v5440_v45, %v5264_v48  ;;  %v6693_v48 = vld [vmem:[#allocation5 + $0x30] sm:$0xff] (!%p8148_p5)  ;;  %v6726_v45 = vld [vmem:[#allocation5 + $0x138] sm:$0xff] (!%p8148_p5) }
 0xb79   : > { %v6738_v11 = vld [vmem:[#allocation5 + $0x198] sm:$0xff] (!%p8148_p5)  ;;  %6763 = vperm.xlu0 (!%p8148_p5), %9809, %v6689_v4   ;;  %v6639_v4 = vld [vmem:[#allocation6 + $0x80] sm:$0xff] (!%p8148_p5) }
 0xb7a   : > { %5585 = vst.msk [vmem:[#allocation5 + $0x1b8] sm:$0xff] %vm5529_vm6, %v5520_v57  ;;  %6758 = vperm.xlu1 (!%p8148_p5), %9810, %v6688_v51   ;;  %v6712_v57 = vld [vmem:[#allocation5 + $0xc8] sm:$0xff] (!%p8148_p5) }
 0xb7b   : > { %v5446_v62 = vpop.xlane.xlu1 %5445 }
 0xb7c   : > { %v5522_v34 = vadd.f32 %v5446_v62, %v5266_v18  ;;  %v6743_v62 = vld [vmem:[#allocation5 + $0x1c0] sm:$0xff] (!%p8148_p5) }
 0xb7d   : > { %6923 = vperm.xlu0 (!%p8148_p5), %9809, %v6721_v29   ;;  %v6740_v38 = vld [vmem:[#allocation5 + $0x1a8] sm:$0xff] (!%p8148_p5) }
 0xb7e   : > { %5587 = vst.msk [vmem:[#allocation5 + $0x1c8] sm:$0xff] %vm5529_vm6, %v5522_v34  ;;  %6918 = vperm.xlu1 (!%p8148_p5), %9810, %v6720_v36   ;;  %v6695_v34 = vld [vmem:[#allocation5 + $0x40] sm:$0xff] (!%p8148_p5) }
 0xb7f   : > { %v5452_v12 = vpop.xlane.xlu1 %5451 }
 0xb80   : > { %v5524_v27 = vadd.f32 %v5452_v12, %v5268_v53  ;;  %v6727_v53 = vld [vmem:[#allocation5 + $0x140] sm:$0xff] (!%p8148_p5)  ;;  %v6714_v12 = vld [vmem:[#allocation5 + $0xd8] sm:$0xff] (!%p8148_p5) }
 0xb81   : > { %6853 = vperm.xlu0 (!%p8148_p5), %9809, %v6707_v28   ;;  %v6742_v41 = vld [vmem:[#allocation5 + $0x1b8] sm:$0xff] (!%p8148_p5) }
 0xb82   : > { %5589 = vst.msk [vmem:[#allocation5 + $0x1d8] sm:$0xff] %vm5529_vm6, %v5524_v27  ;;  %6848 = vperm.xlu1 (!%p8148_p5), %9810, %v6706_v47  }
 0xb83   : > { %v5458_v25 = vpop.xlane.xlu1 %5457 }
 0xb84   : > { %v5526_v54 = vadd.f32 %v5458_v25, %v5270_v3  ;;  %v6698_v3 = vld [vmem:[#allocation5 + $0x58] sm:$0xff] (!%p8148_p5)  ;;  %v6697_v25 = vld [vmem:[#allocation5 + $0x50] sm:$0xff] (!%p8148_p5) }
 0xb85   : > { %7013 = vperm.xlu0 (!%p8148_p5), %9809, %v6739_v37   ;;  %v6744_v18 = vld [vmem:[#allocation5 + $0x1c8] sm:$0xff] (!%p8148_p5) }
 0xb86   : > { %5591 = vst.msk [vmem:[#allocation5 + $0x1e8] sm:$0xff] %vm5529_vm6, %v5526_v54  ;;  %7008 = vperm.xlu1 (!%p8148_p5), %9810, %v6738_v11   ;;  %v6729_v54 = vld [vmem:[#allocation5 + $0x150] sm:$0xff] (!%p8148_p5)  ;;  %v6672_v11 = vld [vmem:[#allocation6 + $0x188] sm:$0xff] (!%p8148_p5) }
 0xb87   : > { %v5464_v23 = vpop.xlane.xlu1 %5463 }
 0xb88   : > { %v5528_v49 = vadd.f32 %v5464_v23, %v5272_v16  ;;  %v6716_v16 = vld [vmem:[#allocation5 + $0xe8] sm:$0xff] (!%p8148_p5)  ;;  %v6715_v23 = vld [vmem:[#allocation5 + $0xe0] sm:$0xff] (!%p8148_p5) }
 0xb89   : > { %6773 = vperm.xlu0 (!%p8148_p5), %9809, %v6691_v7   ;;  %v6746_v27 = vld [vmem:[#allocation5 + $0x1d8] sm:$0xff] (!%p8148_p5) }
 0xb8a   : > { %5593 = vst.msk [vmem:[#allocation5 + $0x1f8] sm:$0xff] %vm5529_vm6, %v5528_v49  ;;  %v6418_v40 = vpop.f32.mrb[150].mxu1  ;;  %6768 = vperm.xlu1 (!%p8148_p5), %9810, %v6690_v35  }
 0xb8b   : > { %v6420_v13 = vpop.f32.mrb[151].mxu1  ;;  %v5971_v59 = vpop.permute.xlu1 %5970  ;;  %6622 = sbr.rel (%p8148_p5) target bundleno = 3423 (0xd5f), region = 96 }
 0xb8c   : > { %v6040_v58 = vmul.f32 %v5971_v59, %v5656_v61  ;;  %v6747_v61 = vld [vmem:[#allocation5 + $0x1e0] sm:$0xff] (!%p8148_p5)  ;;  %v6718_v59 = vld [vmem:[#allocation5 + $0xf8] sm:$0xff] (!%p8148_p5) }
 0xb8d   : > { %6933 = vperm.xlu0 (!%p8148_p5), %9809, %v6723_v30   ;;  %v6748_v49 = vld [vmem:[#allocation5 + $0x1e8] sm:$0xff] (!%p8148_p5)  ;;  %v6731_v13 = vld [vmem:[#allocation5 + $0x160] sm:$0xff] (!%p8148_p5) }
 0xb8e   : > { %v6489_v15 = vadd.f32 %v6418_v40, %v6040_v58  ;;  %v6423_v52 = vpop.f32.mrb[152].mxu1  ;;  %6928 = vperm.xlu1 (!%p8148_p5), %9810, %v6722_v56   ;;  %v6732_v40 = vld [vmem:[#allocation5 + $0x168] sm:$0xff] (!%p8148_p5)  ;;  %v6717_v58 = vld [vmem:[#allocation5 + $0xf0] sm:$0xff] (!%p8148_p5) }
 0xb8f   : > { %v6490_v20 = vadd.f32 %v6423_v52, %v6041_v32  ;;  %v6425_v31 = vpop.f32.mrb[153].mxu1  ;;  %v6702_v52 = vld [vmem:[#allocation5 + $0x78] sm:$0xff] (!%p8148_p5)  ;;  %v6640_v56 = vld [vmem:[#allocation6 + $0x88] sm:$0xff] (!%p8148_p5) }
 0xb90   : > { %6553 = vst.msk [vmem:[#allocation6 + $0x1f0] sm:$0xff] %vm2057_vm4, %v6489_v15  ;;  %v6749_v15 = vld [vmem:[#allocation5 + $0x1f0] sm:$0xff] (!%p8148_p5)  ;;  %v6734_v31 = vld [vmem:[#allocation5 + $0x178] sm:$0xff] (!%p8148_p5) }
 0xb91   : > { %6554 = vst.msk [vmem:[#allocation6 + $0x1f8] sm:$0xff] %vm2057_vm4, %v6490_v20  ;;  %6863 = vperm.xlu0 (!%p8148_p5), %9809, %v6709_v44   ;;  %v6750_v32 = vld [vmem:[#allocation5 + $0x1f8] sm:$0xff] (!%p8148_p5)  ;;  %v6701_v20 = vld [vmem:[#allocation5 + $0x70] sm:$0xff] (!%p8148_p5) }
 0xb92   : > { %6858 = vperm.xlu1 %9810, %v6708_v21  }
 0xb95   : > { %7023 = vperm.xlu0 %9809, %v6741_v55  }
 0xb96   : > { %7018 = vperm.xlu1 %9810, %v6740_v38  }
 0xb99   : > { %6783 = vperm.xlu0 %9809, %v6693_v48  }
 0xb9a   : > { %6778 = vperm.xlu1 %9810, %v6692_v60  }
 0xb9d   : > { %6943 = vperm.xlu0 %9809, %v6725_v5  }
 0xb9e   : > { %6938 = vperm.xlu1 %9810, %v6724_v63  }
 0xba1   : > { %6873 = vperm.xlu0 %9809, %v6711_v19  }
 0xba2   : > { %6868 = vperm.xlu1 %9810, %v6710_v43   ;;  %v6624_v43 = vld [vmem:[#allocation6 + $0x8] sm:$0xff] }
 0xba5   : > { %7033 = vperm.xlu0 %9809, %v6743_v62   ;;  %v6655_v62 = vld [vmem:[#allocation6 + $0x100] sm:$0xff] }
 0xba6   : > { %7028 = vperm.xlu1 %9810, %v6742_v41   ;;  %v6623_v41 = vld [vmem:[#allocation6] sm:$0xff] }
 0xba9   : > { %6793 = vperm.xlu0 %9809, %v6695_v34  }
 0xbaa   : > { %6788 = vperm.xlu1 %9810, %v6694_v50  }
 0xbad   : > { %6953 = vperm.xlu0 %9809, %v6727_v53  }
 0xbae   : > { %6948 = vperm.xlu1 %9810, %v6726_v45  }
 0xbb1   : > { %6883 = vperm.xlu0 %9809, %v6713_v9  }
 0xbb2   : > { %6878 = vperm.xlu1 %9810, %v6712_v57  }
 0xbb5   : > { %7043 = vperm.xlu0 %9809, %v6745_v22   ;;  %v6642_v22 = vld [vmem:[#allocation6 + $0x98] sm:$0xff] }
 0xbb6   : > { %7038 = vperm.xlu1 %9810, %v6744_v18   ;;  %v6656_v18 = vld [vmem:[#allocation6 + $0x108] sm:$0xff] }
 0xbb9   : > { %6803 = vperm.xlu0 %9809, %v6697_v25  }
 0xbba   : > { %6798 = vperm.xlu1 %9810, %v6696_v2  }
 0xbbd   : > { %6963 = vperm.xlu0 %9809, %v6729_v54  }
 0xbbe   : > { %6958 = vperm.xlu1 %9810, %v6728_v14  }
 0xbc1   : > { %6893 = vperm.xlu0 %9809, %v6715_v23  }
 0xbc2   : > { %6888 = vperm.xlu1 %9810, %v6714_v12  }
 0xbc5   : > { %7053 = vperm.xlu0 %9809, %v6747_v61  }
 0xbc6   : > { %7048 = vperm.xlu1 %9810, %v6746_v27  }
 0xbc9   : > { %6813 = vperm.xlu0 %9809, %v6699_v33   ;;  %v6673_v33 = vld [vmem:[#allocation6 + $0x190] sm:$0xff] }
 0xbca   : > { %6808 = vperm.xlu1 %9810, %v6698_v3   ;;  %v6641_v3 = vld [vmem:[#allocation6 + $0x90] sm:$0xff] }
 0xbcd   : > { %6973 = vperm.xlu0 %9809, %v6731_v13  }
 0xbce   : > { %6968 = vperm.xlu1 %9810, %v6730_v10  }
 0xbd1   : > { %6903 = vperm.xlu0 %9809, %v6717_v58  }
 0xbd2   : > { %6898 = vperm.xlu1 %9810, %v6716_v16  }
 0xbd5   : > { %7063 = vperm.xlu0 %9809, %v6749_v15  }
 0xbd6   : > { %7058 = vperm.xlu1 %9810, %v6748_v49  }
 0xbd8   : > { %v6994_v42 = vpop.permute.xlu1 %6993 }
 0xbd9   : > { %6823 = vperm.xlu0 %9809, %v6701_v20   ;;  %9811 = vrcp.f32 %v6994_v42  ;;  %v6626_v20 = vld [vmem:[#allocation6 + $0x18] sm:$0xff] }
 0xbda   : > { %6818 = vperm.xlu1 %9810, %v6700_v0   ;;  %v6674_v0 = vld [vmem:[#allocation6 + $0x198] sm:$0xff] }
 0xbdd   : > { %6983 = vperm.xlu0 %9809, %v6733_v24  }
 0xbde   : > { %6978 = vperm.xlu1 %9810, %v6732_v40  }
 0xbe0   : > { %v6834_v1 = vpop.permute.xlu0 %6833 }
 0xbe1   : > { %9813 = vrcp.f32 %v6834_v1 }
 0xbe2   : > { %6908 = vperm.xlu1 %9810, %v6718_v59  }
 0xbe3   : > { %v9812_v47 = vpop.eup %9811 }
 0xbe4   : > { %v6839_v17 = vpop.permute.xlu0 %6838  ;;  %v7168_v37 = vmul.f32 %v9812_v47, %v6671_v26 }
 0xbe6   : > { %7068 = vperm.xlu1 %9810, %v6750_v32  }
 0xbe8   : > { %v6754_v6 = vpop.permute.xlu0 %6753 }
 0xbea   : > { %6828 = vperm.xlu1 %9810, %v6702_v52  }
 0xbeb   : > { %v9814_v35 = vpop.eup %9813 }
 0xbec   : > { %v6914_v46 = vpop.permute.xlu0 %6913  ;;  %v7104_v7 = vmul.f32 %v9814_v35, %v6639_v4 }
 0xbee   : > { %6988 = vperm.xlu1 %9810, %v6734_v31   ;;  %v6625_v31 = vld [vmem:[#allocation6 + $0x10] sm:$0xff] }
 0xbf0   : > { %v6844_v38 = vpop.permute.xlu0 %6843 }
 0xbf4   : > { %v7004_v5 = vpop.permute.xlu0 %7003 }
 0xbf5   : > { %v6999_v8 = vpop.permute.xlu1 %6998 }
 0xbf6   : > { %9815 = vrcp.f32 %v6999_v8 }
 0xbf7   : > { %9817 = vrcp.f32 %v6839_v17 }
 0xbf8   : > { %v6764_v12 = vpop.permute.xlu0 %6763 }
 0xbf9   : > { %v6759_v51 = vpop.permute.xlu1 %6758 }
 0xbfa   : > { %9819 = vrcp.f32 %v6759_v51 }
 0xbfb   : > { %9821 = vrcp.f32 %v6754_v6 }
 0xbfc   : > { %v6924_v23 = vpop.permute.xlu0 %6923 }
 0xbfd   : > { %v6919_v36 = vpop.permute.xlu1 %6918 }
 0xbfe   : > { %9823 = vrcp.f32 %v6919_v36  ;;  %v6658_v36 = vld [vmem:[#allocation6 + $0x118] sm:$0xff] }
 0xbff   : > { %9825 = vrcp.f32 %v6914_v46  ;;  %v6657_v46 = vld [vmem:[#allocation6 + $0x110] sm:$0xff] }
 0xc00   : > { %v9816_v29 = vpop.eup %9815  ;;  %v6854_v32 = vpop.permute.xlu0 %6853 }
 0xc01   : > { %v9818_v21 = vpop.eup %9817  ;;  %v6849_v28 = vpop.permute.xlu1 %6848  ;;  %v7170_v60 = vmul.f32 %v9816_v29, %v6672_v11 }
 0xc02   : > { %9827 = vrcp.f32 %v6849_v28  ;;  %v7106_v63 = vmul.f32 %v9818_v21, %v6640_v56  ;;  %v6644_v21 = vld [vmem:[#allocation6 + $0xa8] sm:$0xff]  ;;  %v6643_v28 = vld [vmem:[#allocation6 + $0xa0] sm:$0xff] }
 0xc03   : > { %9829 = vrcp.f32 %v6844_v38  ;;  %v8876_v44 = vpack.c.bf16 %v7170_v60, %v7168_v37 }
 0xc04   : > { %v9820_v55 = vpop.eup %9819  ;;  %v8828_v50 = vpack.c.bf16 %v7106_v63, %v7104_v7  ;;  %v7014_v17 = vpop.permute.xlu0 %7013 }
 0xc05   : > { %v9822_v48 = vpop.eup %9821  ;;  %v7009_v45 = vpop.permute.xlu1 %7008  ;;  %8878 = vmatprep.subr.msk.bf16.mxu1 %vm15819_vm7, %v8876_v44  ;;  %v7074_v57 = vmul.f32 %v9820_v55, %v6624_v43  ;;  %v6675_v55 = vld [vmem:[#allocation6 + $0x1a0] sm:$0xff] }
 0xc06   : > { %9831 = vrcp.f32 %v7009_v45  ;;  %8830 = vmatprep.subr.msk.bf16.mxu0 %vm15819_vm7, %v8828_v50  ;;  %v7072_v19 = vmul.f32 %v9822_v48, %v6623_v41  ;;  %v6676_v41 = vld [vmem:[#allocation6 + $0x1a8] sm:$0xff] }
 0xc07   : > { %9833 = vrcp.f32 %v7004_v5 }
 0xc08   : > { %v9824_v2 = vpop.eup %9823  ;;  %v8831_v34 = vpack.c.bf16 %v7074_v57, %v7072_v19  ;;  %v6774_v4 = vpop.permute.xlu0 %6773 }
 0xc09   : > { %v9826_v14 = vpop.eup %9825  ;;  %v6769_v53 = vpop.permute.xlu1 %6768  ;;  %v7138_v9 = vmul.f32 %v9824_v2, %v6656_v18  ;;  %v6627_v2 = vld [vmem:[#allocation6 + $0x20] sm:$0xff] }
 0xc0a   : > { %9835 = vrcp.f32 %v6769_v53  ;;  %8833 = vmatpush3.bf16.xpose.msk.msra.mxu0 %vm15819_vm7, %v8831_v34  ;;  %v7136_v27 = vmul.f32 %v9826_v14, %v6655_v62  ;;  %v6628_v62 = vld [vmem:[#allocation6 + $0x28] sm:$0xff] }
 0xc0b   : > { %9837 = vrcp.f32 %v6764_v12 }
 0xc0c   : > { %v9828_v25 = vpop.eup %9827  ;;  %v8879_v10 = vpack.c.bf16 %v7138_v9, %v7136_v27  ;;  %v6934_v63 = vpop.permute.xlu0 %6933 }
 0xc0d   : > { %v9830_v54 = vpop.eup %9829  ;;  %v6929_v16 = vpop.permute.xlu1 %6928  ;;  %v7110_v49 = vmul.f32 %v9828_v25, %v6642_v22  ;;  %v6659_v25 = vld [vmem:[#allocation6 + $0x120] sm:$0xff] }
 0xc0e   : > { %9839 = vrcp.f32 %v6929_v16  ;;  %8881 = vmatpush3.bf16.xpose.msk.msra.mxu1 %vm15819_vm7, %v8879_v10  ;;  %v7108_v61 = vmul.f32 %v9830_v54, %v6641_v3  ;;  %v6660_v3 = vld [vmem:[#allocation6 + $0x128] sm:$0xff] }
 0xc0f   : > { %9841 = vrcp.f32 %v6924_v23 }
 0xc10   : > { %v9832_v40 = vpop.eup %9831  ;;  %v8834_v13 = vpack.c.bf16 %v7110_v49, %v7108_v61  ;;  %v6864_v57 = vpop.permute.xlu0 %6863 }
 0xc11   : > { %v9834_v59 = vpop.eup %9833  ;;  %v6859_v58 = vpop.permute.xlu1 %6858  ;;  %v7174_v15 = vmul.f32 %v9832_v40, %v6674_v0  ;;  %v6645_v40 = vld [vmem:[#allocation6 + $0xb0] sm:$0xff] }
 0xc12   : > { %9843 = vrcp.f32 %v6859_v58  ;;  %8836 = vmatprep.subr.msk.bf16.mxu0 %vm15819_vm7, %v8834_v13  ;;  %v7172_v52 = vmul.f32 %v9834_v59, %v6673_v33  ;;  %v6646_v33 = vld [vmem:[#allocation6 + $0xb8] sm:$0xff] }
 0xc13   : > { %9845 = vrcp.f32 %v6854_v32 }
 0xc14   : > { %v9836_v24 = vpop.eup %9835  ;;  %v8882_v42 = vpack.c.bf16 %v7174_v15, %v7172_v52  ;;  %v7024_v9 = vpop.permute.xlu0 %7023 }
 0xc15   : > { %v9838_v1 = vpop.eup %9837  ;;  %v7019_v8 = vpop.permute.xlu1 %7018  ;;  %v7078_v51 = vmul.f32 %v9836_v24, %v6626_v20  ;;  %v6677_v24 = vld [vmem:[#allocation6 + $0x1b0] sm:$0xff] }
 0xc16   : > { %9847 = vrcp.f32 %v7019_v8  ;;  %8884 = vmatprep.subr.msk.bf16.mxu1 %vm15819_vm7, %v8882_v42  ;;  %v7076_v6 = vmul.f32 %v9838_v1, %v6625_v31  ;;  %v6678_v31 = vld [vmem:[#allocation6 + $0x1b8] sm:$0xff] }
 0xc17   : > { %9849 = vrcp.f32 %v7014_v17 }
 0xc18   : > { %v9840_v47 = vpop.eup %9839  ;;  %v8837_v26 = vpack.c.bf16 %v7078_v51, %v7076_v6  ;;  %v6784_v49 = vpop.permute.xlu0 %6783 }
 0xc19   : > { %v9842_v11 = vpop.eup %9841  ;;  %v6779_v35 = vpop.permute.xlu1 %6778  ;;  %v7142_v56 = vmul.f32 %v9840_v47, %v6658_v36  ;;  %v6629_v47 = vld [vmem:[#allocation6 + $0x30] sm:$0xff] }
 0xc1a   : > { %9851 = vrcp.f32 %v6779_v35  ;;  %8839 = vmatpush3.bf16.xpose.msk.msra.mxu0 %vm15819_vm7, %v8837_v26  ;;  %v7140_v29 = vmul.f32 %v9842_v11, %v6657_v46  ;;  %v6630_v46 = vld [vmem:[#allocation6 + $0x38] sm:$0xff] }
 0xc1b   : > { %9853 = vrcp.f32 %v6774_v4 }
 0xc1c   : > { %v9844_v38 = vpop.eup %9843  ;;  %v8885_v37 = vpack.c.bf16 %v7142_v56, %v7140_v29  ;;  %v6944_v15 = vpop.permute.xlu0 %6943 }
 0xc1d   : > { %v9846_v60 = vpop.eup %9845  ;;  %v6939_v7 = vpop.permute.xlu1 %6938  ;;  %v7114_v43 = vmul.f32 %v9844_v38, %v6644_v21  ;;  %v6661_v38 = vld [vmem:[#allocation6 + $0x130] sm:$0xff] }
 0xc1e   : > { %9855 = vrcp.f32 %v6939_v7  ;;  %8887 = vmatpush3.bf16.xpose.msk.msra.mxu1 %vm15819_vm7, %v8885_v37  ;;  %v7112_v44 = vmul.f32 %v9846_v60, %v6643_v28  ;;  %v6662_v28 = vld [vmem:[#allocation6 + $0x138] sm:$0xff] }
 0xc1f   : > { %9857 = vrcp.f32 %v6934_v63 }
 0xc20   : > { %v9848_v50 = vpop.eup %9847  ;;  %v8840_v48 = vpack.c.bf16 %v7114_v43, %v7112_v44  ;;  %v6874_v51 = vpop.permute.xlu0 %6873 }
 0xc21   : > { %v9850_v45 = vpop.eup %9849  ;;  %v6869_v5 = vpop.permute.xlu1 %6868  ;;  %v7178_v19 = vmul.f32 %v9848_v50, %v6676_v41  ;;  %v6647_v50 = vld [vmem:[#allocation6 + $0xc0] sm:$0xff] }
 0xc22   : > { %9859 = vrcp.f32 %v6869_v5  ;;  %8842 = vmatprep.subr.msk.bf16.mxu0 %vm15819_vm7, %v8840_v48  ;;  %v7176_v18 = vmul.f32 %v9850_v45, %v6675_v55  ;;  %v6648_v55 = vld [vmem:[#allocation6 + $0xc8] sm:$0xff] }
 0xc23   : > { %9861 = vrcp.f32 %v6864_v57 }
 0xc24   : > { %v9852_v34 = vpop.eup %9851  ;;  %v8888_v14 = vpack.c.bf16 %v7178_v19, %v7176_v18  ;;  %v7034_v56 = vpop.permute.xlu0 %7033 }
 0xc25   : > { %v9854_v53 = vpop.eup %9853  ;;  %v7029_v12 = vpop.permute.xlu1 %7028  ;;  %v7082_v27 = vmul.f32 %v9852_v34, %v6628_v62  ;;  %v6679_v34 = vld [vmem:[#allocation6 + $0x1c0] sm:$0xff] }
 0xc26   : > { %9863 = vrcp.f32 %v7029_v12  ;;  %8890 = vmatprep.subr.msk.bf16.mxu1 %vm15819_vm7, %v8888_v14  ;;  %v7080_v22 = vmul.f32 %v9854_v53, %v6627_v2  ;;  %v6680_v2 = vld [vmem:[#allocation6 + $0x1c8] sm:$0xff] }
 0xc27   : > { %9865 = vrcp.f32 %v7024_v9 }
 0xc28   : > { %v9856_v10 = vpop.eup %9855  ;;  %v8843_v54 = vpack.c.bf16 %v7082_v27, %v7080_v22  ;;  %v6794_v43 = vpop.permute.xlu0 %6793 }
 0xc29   : > { %v9858_v16 = vpop.eup %9857  ;;  %v6789_v23 = vpop.permute.xlu1 %6788  ;;  %v7146_v61 = vmul.f32 %v9856_v10, %v6660_v3  ;;  %v6631_v10 = vld [vmem:[#allocation6 + $0x40] sm:$0xff] }
 0xc2a   : > { %9867 = vrcp.f32 %v6789_v23  ;;  %8845 = vmatpush3.bf16.xpose.msk.msra.mxu0 %vm15819_vm7, %v8843_v54  ;;  %v7144_v0 = vmul.f32 %v9858_v16, %v6659_v25  ;;  %v6632_v25 = vld [vmem:[#allocation6 + $0x48] sm:$0xff] }
 0xc2b   : > { %9869 = vrcp.f32 %v6784_v49 }
 0xc2c   : > { %v9860_v13 = vpop.eup %9859  ;;  %v8891_v59 = vpack.c.bf16 %v7146_v61, %v7144_v0  ;;  %v6954_v19 = vpop.permute.xlu0 %6953 }
 0xc2d   : > { %v9862_v58 = vpop.eup %9861  ;;  %v6949_v32 = vpop.permute.xlu1 %6948  ;;  %v7118_v52 = vmul.f32 %v9860_v13, %v6646_v33  ;;  %v6663_v13 = vld [vmem:[#allocation6 + $0x140] sm:$0xff] }
 0xc2e   : > { %9871 = vrcp.f32 %v6949_v32  ;;  %8893 = vmatpush3.bf16.xpose.msk.msra.mxu1 %vm15819_vm7, %v8891_v59  ;;  %v7116_v20 = vmul.f32 %v9862_v58, %v6645_v40  ;;  %v6664_v40 = vld [vmem:[#allocation6 + $0x148] sm:$0xff] }
 0xc2f   : > { %9873 = vrcp.f32 %v6944_v15 }
 0xc30   : > { %v9864_v42 = vpop.eup %9863  ;;  %v8846_v1 = vpack.c.bf16 %v7118_v52, %v7116_v20  ;;  %v6884_v27 = vpop.permute.xlu0 %6883 }
 0xc31   : > { %v9866_v8 = vpop.eup %9865  ;;  %v6879_v17 = vpop.permute.xlu1 %6878  ;;  %v7182_v6 = vmul.f32 %v9864_v42, %v6678_v31  ;;  %v6649_v42 = vld [vmem:[#allocation6 + $0xd0] sm:$0xff] }
 0xc32   : > { %9875 = vrcp.f32 %v6879_v17  ;;  %8848 = vmatprep.subr.msk.bf16.mxu0 %vm15819_vm7, %v8846_v1  ;;  %v7180_v36 = vmul.f32 %v9866_v8, %v6677_v24  ;;  %v6650_v24 = vld [vmem:[#allocation6 + $0xd8] sm:$0xff] }
 0xc33   : > { %9877 = vrcp.f32 %v6874_v51 }
 0xc34   : > { %v9868_v26 = vpop.eup %9867  ;;  %v8894_v11 = vpack.c.bf16 %v7182_v6, %v7180_v36  ;;  %v7044_v61 = vpop.permute.xlu0 %7043 }
 0xc35   : > { %v9870_v35 = vpop.eup %9869  ;;  %v7039_v4 = vpop.permute.xlu1 %7038  ;;  %v7086_v29 = vmul.f32 %v9868_v26, %v6630_v46  ;;  %v6681_v26 = vld [vmem:[#allocation6 + $0x1d0] sm:$0xff] }
 0xc36   : > { %9879 = vrcp.f32 %v7039_v4  ;;  %8896 = vmatprep.subr.msk.bf16.mxu1 %vm15819_vm7, %v8894_v11  ;;  %v7084_v21 = vmul.f32 %v9870_v35, %v6629_v47  ;;  %v6682_v47 = vld [vmem:[#allocation6 + $0x1d8] sm:$0xff] }
 0xc37   : > { %9881 = vrcp.f32 %v7034_v56 }
 0xc38   : > { %v9872_v37 = vpop.eup %9871  ;;  %v8849_v60 = vpack.c.bf16 %v7086_v29, %v7084_v21  ;;  %v6804_v52 = vpop.permute.xlu0 %6803 }
 0xc39   : > { %v9874_v7 = vpop.eup %9873  ;;  %v6799_v63 = vpop.permute.xlu1 %6798  ;;  %v7150_v44 = vmul.f32 %v9872_v37, %v6662_v28  ;;  %v6633_v37 = vld [vmem:[#allocation6 + $0x50] sm:$0xff] }
 0xc3a   : > { %9883 = vrcp.f32 %v6799_v63  ;;  %8851 = vmatpush3.bf16.xpose.msk.msra.mxu0 %vm15819_vm7, %v8849_v60  ;;  %v7148_v41 = vmul.f32 %v9874_v7, %v6661_v38  ;;  %v6634_v38 = vld [vmem:[#allocation6 + $0x58] sm:$0xff] }
 0xc3b   : > { %9885 = vrcp.f32 %v6794_v43 }
 0xc3c   : > { %v9876_v48 = vpop.eup %9875  ;;  %v8897_v45 = vpack.c.bf16 %v7150_v44, %v7148_v41  ;;  %v6964_v6 = vpop.permute.xlu0 %6963 }
 0xc3d   : > { %v9878_v5 = vpop.eup %9877  ;;  %v6959_v57 = vpop.permute.xlu1 %6958  ;;  %v7122_v18 = vmul.f32 %v9876_v48, %v6648_v55  ;;  %v6665_v48 = vld [vmem:[#allocation6 + $0x150] sm:$0xff] }
 0xc3e   : > { %9887 = vrcp.f32 %v6959_v57  ;;  %8899 = vmatpush3.bf16.xpose.msk.msra.mxu1 %vm15819_vm7, %v8897_v45  ;;  %v7120_v62 = vmul.f32 %v9878_v5, %v6647_v50  ;;  %v6666_v50 = vld [vmem:[#allocation6 + $0x158] sm:$0xff] }
 0xc3f   : > { %9889 = vrcp.f32 %v6954_v19 }
 0xc40   : > { %v9880_v14 = vpop.eup %9879  ;;  %v8852_v53 = vpack.c.bf16 %v7122_v18, %v7120_v62  ;;  %v6894_v29 = vpop.permute.xlu0 %6893 }
 0xc41   : > { %v9882_v12 = vpop.eup %9881  ;;  %v6889_v9 = vpop.permute.xlu1 %6888  ;;  %v7186_v22 = vmul.f32 %v9880_v14, %v6680_v2  ;;  %v6651_v14 = vld [vmem:[#allocation6 + $0xe0] sm:$0xff] }
 0xc42   : > { %9891 = vrcp.f32 %v6889_v9  ;;  %8854 = vmatprep.subr.msk.bf16.mxu0 %vm15819_vm7, %v8852_v53  ;;  %v7184_v3 = vmul.f32 %v9882_v12, %v6679_v34  ;;  %v6652_v34 = vld [vmem:[#allocation6 + $0xe8] sm:$0xff] }
 0xc43   : > { %9893 = vrcp.f32 %v6884_v27 }
 0xc44   : > { %v9884_v54 = vpop.eup %9883  ;;  %v8900_v16 = vpack.c.bf16 %v7186_v22, %v7184_v3  ;;  %v7054_v44 = vpop.permute.xlu0 %7053 }
 0xc45   : > { %v9886_v23 = vpop.eup %9885  ;;  %v7049_v49 = vpop.permute.xlu1 %7048  ;;  %v7090_v0 = vmul.f32 %v9884_v54, %v6632_v25  ;;  %v6683_v54 = vld [vmem:[#allocation6 + $0x1e0] sm:$0xff] }
 0xc46   : > { %9895 = vrcp.f32 %v7049_v49  ;;  %8902 = vmatprep.subr.msk.bf16.mxu1 %vm15819_vm7, %v8900_v16  ;;  %v7088_v33 = vmul.f32 %v9886_v23, %v6631_v10  ;;  %v6684_v10 = vld [vmem:[#allocation6 + $0x1e8] sm:$0xff] }
 0xc47   : > { %9897 = vrcp.f32 %v7044_v61 }
 0xc48   : > { %v9888_v59 = vpop.eup %9887  ;;  %v8855_v58 = vpack.c.bf16 %v7090_v0, %v7088_v33  ;;  %v6814_v18 = vpop.permute.xlu0 %6813 }
 0xc49   : > { %v9890_v32 = vpop.eup %9889  ;;  %v6809_v15 = vpop.permute.xlu1 %6808  ;;  %v7154_v20 = vmul.f32 %v9888_v59, %v6664_v40  ;;  %v6635_v59 = vld [vmem:[#allocation6 + $0x60] sm:$0xff] }
 0xc4a   : > { %9899 = vrcp.f32 %v6809_v15  ;;  %8857 = vmatpush3.bf16.xpose.msk.msra.mxu0 %vm15819_vm7, %v8855_v58  ;;  %v7152_v31 = vmul.f32 %v9890_v32, %v6663_v13  ;;  %v6636_v13 = vld [vmem:[#allocation6 + $0x68] sm:$0xff] }
 0xc4b   : > { %9901 = vrcp.f32 %v6804_v52 }
 0xc4c   : > { %v9892_v1 = vpop.eup %9891  ;;  %v8903_v8 = vpack.c.bf16 %v7154_v20, %v7152_v31  ;;  %v6974_v22 = vpop.permute.xlu0 %6973 }
 0xc4d   : > { %v9894_v17 = vpop.eup %9893  ;;  %v6969_v51 = vpop.permute.xlu1 %6968  ;;  %v7126_v36 = vmul.f32 %v9892_v1, %v6650_v24  ;;  %v6667_v1 = vld [vmem:[#allocation6 + $0x160] sm:$0xff] }
 0xc4e   : > { %9903 = vrcp.f32 %v6969_v51  ;;  %8905 = vmatpush3.bf16.xpose.msk.msra.mxu1 %vm15819_vm7, %v8903_v8  ;;  %v7124_v46 = vmul.f32 %v9894_v17, %v6649_v42  ;;  %v6668_v42 = vld [vmem:[#allocation6 + $0x168] sm:$0xff] }
 0xc4f   : > { %9905 = vrcp.f32 %v6964_v6 }
 0xc50   : > { %v9896_v11 = vpop.eup %9895  ;;  %v8858_v35 = vpack.c.bf16 %v7126_v36, %v7124_v46  ;;  %v6904_v0 = vpop.permute.xlu0 %6903 }
 0xc51   : > { %v9898_v4 = vpop.eup %9897  ;;  %v6899_v56 = vpop.permute.xlu1 %6898  ;;  %v7190_v21 = vmul.f32 %v9896_v11, %v6682_v47  ;;  %v6653_v11 = vld [vmem:[#allocation6 + $0xf0] sm:$0xff] }
 0xc52   : > { %9907 = vrcp.f32 %v6899_v56  ;;  %8860 = vmatprep.subr.msk.bf16.mxu0 %vm15819_vm7, %v8858_v35  ;;  %v7188_v28 = vmul.f32 %v9898_v4, %v6681_v26  ;;  %v6654_v26 = vld [vmem:[#allocation6 + $0xf8] sm:$0xff] }
 0xc53   : > { %9909 = vrcp.f32 %v6894_v29 }
 0xc54   : > { %v9900_v60 = vpop.eup %9899  ;;  %v8906_v7 = vpack.c.bf16 %v7190_v21, %v7188_v28  ;;  %v7064_v20 = vpop.permute.xlu0 %7063 }
 0xc55   : > { %v9902_v63 = vpop.eup %9901  ;;  %v7059_v43 = vpop.permute.xlu1 %7058  ;;  %v7094_v41 = vmul.f32 %v9900_v60, %v6634_v38  ;;  %v6685_v60 = vld [vmem:[#allocation6 + $0x1f0] sm:$0xff] }
 0xc56   : > { %9911 = vrcp.f32 %v7059_v43  ;;  %8908 = vmatprep.subr.msk.bf16.mxu1 %vm15819_vm7, %v8906_v7  ;;  %v7092_v55 = vmul.f32 %v9902_v63, %v6633_v37  ;;  %v6686_v37 = vld [vmem:[#allocation6 + $0x1f8] sm:$0xff] }
 0xc57   : > { %9913 = vrcp.f32 %v7054_v44 }
 0xc58   : > { %v9904_v45 = vpop.eup %9903  ;;  %v8861_v5 = vpack.c.bf16 %v7094_v41, %v7092_v55  ;;  %v6824_v36 = vpop.permute.xlu0 %6823  ;;  %v6638_v55 = vld [vmem:[#allocation6 + $0x78] sm:$0xff] }
 0xc59   : > { %v9906_v57 = vpop.eup %9905  ;;  %v6819_v19 = vpop.permute.xlu1 %6818  ;;  %v7158_v62 = vmul.f32 %v9904_v45, %v6666_v50  ;;  %v6637_v50 = vld [vmem:[#allocation6 + $0x70] sm:$0xff] }
 0xc5a   : > { %9915 = vrcp.f32 %v6819_v19  ;;  %8863 = vmatpush3.bf16.xpose.msk.msra.mxu0 %vm15819_vm7, %v8861_v5  ;;  %v7156_v2 = vmul.f32 %v9906_v57, %v6665_v48 }
 0xc5b   : > { %9917 = vrcp.f32 %v6814_v18  ;;  %v6670_v18 = vld [vmem:[#allocation6 + $0x178] sm:$0xff] }
 0xc5c   : > { %v9908_v53 = vpop.eup %9907  ;;  %v8909_v12 = vpack.c.bf16 %v7158_v62, %v7156_v2  ;;  %v6984_v21 = vpop.permute.xlu0 %6983  ;;  %v6669_v62 = vld [vmem:[#allocation6 + $0x170] sm:$0xff] }
 0xc5d   : > { %v9910_v9 = vpop.eup %9909  ;;  %v6979_v27 = vpop.permute.xlu1 %6978  ;;  %v7130_v3 = vmul.f32 %v9908_v53, %v6652_v34 }
 0xc5e   : > { %9919 = vrcp.f32 %v6979_v27  ;;  %8911 = vmatpush3.bf16.xpose.msk.msra.mxu1 %vm15819_vm7, %v8909_v12  ;;  %v7128_v25 = vmul.f32 %v9910_v9, %v6651_v14 }
 0xc5f   : > { %9921 = vrcp.f32 %v6974_v22  ;;  %v7199_v22 = vld [vmem:[#allocation3] sm:$0xff] }
 0xc60   : > { %v9912_v16 = vpop.eup %9911  ;;  %v8864_v23 = vpack.c.bf16 %v7130_v3, %v7128_v25 }
 0xc61   : > { %v9914_v49 = vpop.eup %9913  ;;  %v6909_v61 = vpop.permute.xlu1 %6908  ;;  %v7194_v33 = vmul.f32 %v9912_v16, %v6684_v10  ;;  %v7200_v16 = vld [vmem:[#allocation3 + $0x8] sm:$0xff] }
 0xc62   : > { %9923 = vrcp.f32 %v6909_v61  ;;  %8866 = vmatprep.subr.msk.bf16.mxu0 %vm15819_vm7, %v8864_v23  ;;  %v7192_v40 = vmul.f32 %v9914_v49, %v6683_v54 }
 0xc63   : > { %9925 = vrcp.f32 %v6904_v0 }
 0xc64   : > { %v9916_v58 = vpop.eup %9915  ;;  %v8912_v32 = vpack.c.bf16 %v7194_v33, %v7192_v40 }
 0xc65   : > { %v9918_v15 = vpop.eup %9917  ;;  %v7069_v52 = vpop.permute.xlu1 %7068  ;;  %v7098_v31 = vmul.f32 %v9916_v58, %v6636_v13 }
 0xc66   : > { %9927 = vrcp.f32 %v7069_v52  ;;  %8914 = vmatprep.subr.msk.bf16.mxu1 %vm15819_vm7, %v8912_v32  ;;  %v7096_v24 = vmul.f32 %v9918_v15, %v6635_v59 }
 0xc67   : > { %9929 = vrcp.f32 %v7064_v20 }
 0xc68   : > { %v9920_v8 = vpop.eup %9919  ;;  %v8867_v17 = vpack.c.bf16 %v7098_v31, %v7096_v24 }
 0xc69   : > { %v9922_v51 = vpop.eup %9921  ;;  %v6829_v6 = vpop.permute.xlu1 %6828  ;;  %v7162_v46 = vmul.f32 %v9920_v8, %v6668_v42 }
 0xc6a   : > { %9931 = vrcp.f32 %v6829_v6  ;;  %8869 = vmatpush3.bf16.xpose.msk.msra.mxu0 %vm15819_vm7, %v8867_v17  ;;  %v7160_v47 = vmul.f32 %v9922_v51, %v6667_v1 }
 0xc6b   : > { %9933 = vrcp.f32 %v6824_v36 }
 0xc6c   : > { %v9924_v35 = vpop.eup %9923  ;;  %v8915_v4 = vpack.c.bf16 %v7162_v46, %v7160_v47 }
 0xc6d   : > { %v9926_v56 = vpop.eup %9925  ;;  %v6989_v29 = vpop.permute.xlu1 %6988  ;;  %v7134_v28 = vmul.f32 %v9924_v35, %v6654_v26 }
 0xc6e   : > { %9935 = vrcp.f32 %v6989_v29  ;;  %8917 = vmatpush3.bf16.xpose.msk.msra.mxu1 %vm15819_vm7, %v8915_v4  ;;  %v7132_v38 = vmul.f32 %v9926_v56, %v6653_v11 }
 0xc6f   : > { %9937 = vrcp.f32 %v6984_v21 }
 0xc70   : > { %v9928_v7 = vpop.eup %9927  ;;  %v8870_v63 = vpack.c.bf16 %v7134_v28, %v7132_v38 }
 0xc71   : > { %v9930_v43 = vpop.eup %9929  ;;  %v7198_v44 = vmul.f32 %v9928_v7, %v6686_v37 }
 0xc72   : > { %8872 = vmatprep.subr.msk.bf16.mxu0 %vm15819_vm7, %v8870_v63  ;;  %v7196_v41 = vmul.f32 %v9930_v43, %v6685_v60 }
 0xc74   : > { %v9932_v48 = vpop.eup %9931  ;;  %v8918_v45 = vpack.c.bf16 %v7198_v44, %v7196_v41 }
 0xc75   : > { %v9934_v5 = vpop.eup %9933  ;;  %v7102_v57 = vmul.f32 %v9932_v48, %v6638_v55 }
 0xc76   : > { %8920 = vmatprep.subr.msk.bf16.mxu1 %vm15819_vm7, %v8918_v45  ;;  %v7100_v19 = vmul.f32 %v9934_v5, %v6637_v50 }
 0xc78   : > { %v9936_v2 = vpop.eup %9935  ;;  %v8873_v34 = vpack.c.bf16 %v7102_v57, %v7100_v19 }
 0xc79   : > { %v9938_v14 = vpop.eup %9937  ;;  %v7166_v53 = vmul.f32 %v9936_v2, %v6670_v18 }
 0xc7a   : > { %8875 = vmatpush3.bf16.xpose.msk.msra.mxu0 %vm15819_vm7, %v8873_v34  ;;  %v7164_v12 = vmul.f32 %v9938_v14, %v6669_v62 }
 0xc7c   : > { %v8921_v9 = vpack.c.bf16 %v7166_v53, %v7164_v12 }
 0xc7e   : > { %8923 = vmatpush3.bf16.xpose.msk.msra.mxu1 %vm15819_vm7, %v8921_v9 }
 0xc81   : > { %8423 = vmatmul.mubr.msk.f32.vlgmr.msra.gmra.mrb[0].mxu0 %vm2057_vm4, %v15811_v39 }
 0xc85   : > { %8457 = vmatmul.mubr.msk.f32.vlgmr.msra.gmra.mrb[0].mxu1 %vm2057_vm4, %v15811_v39 }
 0xd54   : > { %v7463_v27 = vpop.f32.mrb[0].mxu0 }
 0xd55   : > { %v7465_v3 = vpop.f32.mrb[1].mxu0 }
 0xd56   : > { %v7543_v25 = vcombine.low %v7463_v27, %v7465_v3 }
 0xd58   : > { %v7547_v10 = vadd.f32 %v7543_v25, %v7199_v22  ;;  %v7534_v54 = vpop.f32.mrb[0].mxu1 }
 0xd59   : > { %v7536_v23 = vpop.f32.mrb[1].mxu1 }
 0xd5a   : > { %7549 = vst [vmem:[#allocation3] sm:$0xff] %v7547_v10  ;;  %v7544_v49 = vcombine.low %v7534_v54, %v7536_v23 }
 0xd5c   : > { %v7548_v61 = vadd.f32 %v7544_v49, %v7200_v16 }
 0xd5e   : > { %7550 = vst [vmem:[#allocation3 + $0x8] sm:$0xff] %v7548_v61 }
 0xd5f PF: > { %s17945_s5 = sld [smem:[#allocation38_spill]] }
 0xd65   : > { %p7551_p9 = scmp.eq.s32.totalorder %s17945_s5, 3 }
 0xd67   : > { %p7552_p4 = pnand %p7551_p9, %p6619_p8 }
 0xd68   : > { %v7556_v39 = vld [vmem:[#allocation2] sm:$0xff] (!%p7552_p4)  ;;  %v7557_v30 = vld [vmem:[#allocation2 + $0x8] sm:$0xff] (!%p7552_p4)  ;;  %v7558_v0 = vld [vmem:[#allocation2 + $0x10] sm:$0xff] (!%p7552_p4) }
 0xd69   : > { %7555 = sbr.rel (%p7552_p4) target bundleno = 3440 (0xd70), region = 100  ;;  %7560 = vst [vmem:[%s10991_s18] sm:$0xff] (!%p7552_p4), %v7556_v39  ;;  %7561 = vst [vmem:[%s10991_s18 + $0x8] sm:$0xff] (!%p7552_p4), %v7557_v30  ;;  %v7559_v33 = vld [vmem:[#allocation2 + $0x18] sm:$0xff] (!%p7552_p4)  ;;  %v7564_v40 = vld [vmem:[#allocation3] sm:$0xff] (!%p7552_p4) }
 0xd6a   : > { %7562 = vst [vmem:[%s10991_s18 + $0x10] sm:$0xff] (!%p7552_p4), %v7558_v0  ;;  %v7565_v13 = vld [vmem:[#allocation3 + $0x8] sm:$0xff] (!%p7552_p4)  ;;  %7563 = vst [vmem:[%s10991_s18 + $0x18] sm:$0xff] (!%p7552_p4), %v7559_v33 }
 0xd6b   : > { %7566 = vst [vmem:[%s10993_s9] sm:$0xff] (!%p7552_p4), %v7564_v40  ;;  %7567 = vst [vmem:[%s10993_s9 + $0x8] sm:$0xff] (!%p7552_p4), %v7565_v13 }
 0xd70 PF: > { %s17947_s7 = sld [smem:[#allocation39_spill]]  ;;  %s17948_s6 = sld [smem:[#allocation41_spill]] }
 0xd71   : > { %s17949_s1 = sld [smem:[#allocation361_spill]]  ;;  %s7588_s13 = sshll.u32 %s10991_s18, 4  ;;  %s7589_s13 = int_to_ptr.vmem [resolvable:$true] %s7588_s13 }
 0xd72   : > { %s7569_s10 = scalar_lea.sflag [#allocation9], %s10949_s3  ;;  %s10179_s14 = scalar_lea.vmem %s7589_s13, 512 }
 0xd73   : > { %p10180_p2 = scmp.ne.s32.totalorder %s7589_s13, %s10179_s14  ;;  %s10411_s27 = smov [#allocation21]  }
 0xd74   : > { %s10183_s28 = sshll.u32 %s10411_s27, 4  ;;  %s10184_s28 = int_to_ptr.vmem [resolvable:$false] %s10183_s28 }
 0xd75   : > { %s10185_s15 = scalar_lea.vmem %s10184_s28, 1024  ;;  %p10186_p11 = scmp.lt.s32.totalorder %s7589_s13, %s10184_s28 }
 0xd76   : > { %s8227_s20 = sshll.u32 %s17947_s7, 9  ;;  %p17950_p10 = scmp.ne.s32.totalorder %s17948_s6, 0 }
 0xd77   : > { %s15904_s26 = scalar_lea.hbm %s17949_s1, %s8227_s20  ;;  %p10187_p13 = scmp.lt.s32.totalorder %s10185_s15, %s10179_s14 }
 0xd78   : > { %p10181_p12 = pnand %p10180_p2, %p17950_p10 }
 0xd79   : > { %p10188_p6 = por %p10187_p13, %p10186_p11 }
 0xd7a   : > { %p10182_p1 = pneg %p10181_p12 }
 0xd7c   : > { %p10189_p0 = pnand %p10188_p6, %p10182_p1 }
 0xd7e   : > { %10192 = shalt.err (!%p10189_p0)
}
 0xd7f   : > { %s10193_s18 = scalar_lea.hbm %s15904_s26, 512  ;;  %s10197_s0 = scalar_lea.hbm %s17949_s1, 1024 }
 0xd80   : > { %p10194_p3 = scmp.ne.s32.totalorder %s15904_s26, %s10193_s18  ;;  %p10198_p5 = scmp.lt.u32.totalorder %s15904_s26, %s17949_s1 }
 0xd81   : > { %p10199_p9 = scmp.lt.u32.totalorder %s10197_s0, %s10193_s18  ;;  %p10201_p2 = scmp.lt.u32.totalorder %s10193_s18, %s15904_s26 }
 0xd82   : > { %p10195_p7 = pnand %p10194_p3, %p17950_p10 }
 0xd83   : > { %p10200_p4 = por %p10199_p9, %p10198_p5 }
 0xd84   : > { %p10196_p8 = pneg %p10195_p7 }
 0xd85   : > { %p10202_p12 = por %p10201_p2, %p10200_p4 }
 0xd87   : > { %p10203_p1 = pnand %p10202_p12, %p10196_p8 }
 0xd89   : > { %10206 = shalt.err (!%p10203_p1)
}
 0xd8a   : > { %8964 = dma.vmem_to_hbm [thread:$0]  (%p17950_p10), %s7589_s13, 512, %s15904_s26, %s7569_s10  }
 0xd8b   : > { %s8228_s19 = sshll.u32 %s17947_s7, 8  ;;  %s7602_s14 = sshll.u32 %s10993_s9, 4  ;;  %s7603_s14 = int_to_ptr.vmem [resolvable:$true] %s7602_s14 }
 0xd8c   : > { %s17951_s15 = sld [smem:[#allocation362_spill]]  ;;  %s7574_s18 = scalar_lea.sflag [#allocation23], %s10949_s3 }
 0xd8d   : > { %s10207_s0 = scalar_lea.vmem %s7603_s14, 256  ;;  %s10412_s20 = smov [#allocation22]  }
 0xd8e   : > { %p10208_p11 = scmp.ne.s32.totalorder %s7603_s14, %s10207_s0  ;;  %s10211_s16 = sshll.u32 %s10412_s20, 4  ;;  %s10212_s16 = int_to_ptr.vmem [resolvable:$false] %s10211_s16 }
 0xd8f   : > { %s10213_s1 = scalar_lea.vmem %s10212_s16, 512  ;;  %p10214_p0 = scmp.lt.s32.totalorder %s7603_s14, %s10212_s16 }
 0xd90   : > { %p10209_p13 = pnand %p10208_p11, %p17950_p10  ;;  %p10215_p3 = scmp.lt.s32.totalorder %s10213_s1, %s10207_s0 }
 0xd92   : > { %s17952_s4 = smov %s17951_s15  ;;  %s15930_s5 = scalar_lea.hbm %s17951_s15, %s8228_s19 }
 0xd93   : > { %p10210_p6 = pneg %p10209_p13  ;;  %p10216_p7 = por %p10215_p3, %p10214_p0 }
 0xd95   : > { %p10217_p8 = pnand %p10216_p7, %p10210_p6 }
 0xd97   : > { %10220 = shalt.err (!%p10217_p8)
}
 0xd98   : > { %s10221_s3 = scalar_lea.hbm %s15930_s5, 256  ;;  %s10225_s26 = scalar_lea.hbm %s17952_s4, 512 }
 0xd99   : > { %p10222_p5 = scmp.ne.s32.totalorder %s15930_s5, %s10221_s3  ;;  %p10226_p2 = scmp.lt.u32.totalorder %s15930_s5, %s17952_s4 }
 0xd9a   : > { %p10227_p12 = scmp.lt.u32.totalorder %s10225_s26, %s10221_s3  ;;  %p10229_p11 = scmp.lt.u32.totalorder %s10221_s3, %s15930_s5 }
 0xd9b   : > { %p10223_p9 = pnand %p10222_p5, %p17950_p10 }
 0xd9c   : > { %p10228_p1 = por %p10227_p12, %p10226_p2 }
 0xd9d   : > { %p10224_p4 = pneg %p10223_p9 }
 0xd9e   : > { %p10230_p13 = por %p10229_p11, %p10228_p1 }
 0xda0   : > { %p10231_p6 = pnand %p10230_p13, %p10224_p4 }
 0xda2   : > { %10234 = shalt.err (!%p10231_p6)
}
 0xda3   : > { %8965 = dma.vmem_to_hbm [thread:$0]  (%p17950_p10), %s7603_s14, 256, %s15930_s5, %s7574_s18  }
 0xda4 PF: > { %s17953_s1 = sld [smem:[#allocation33_spill]]  ;;  %s17954_s19 = sld [smem:[#allocation42_spill]] }
 0xda5   : > { %p9001_p0 = scmp.ge.s32.totalorder %s10393_s24, 2 }
 0xdaa   : > { %s7614_s27 = sand.u32 1, %s17953_s1   ;;  %p17955_p3 = scmp.ne.s32.totalorder %s17954_s19, 0 }
 0xdab   : > { %s7615_s28 = scalar_lea.sflag [#allocation9], %s7614_s27 }
 0xdac   : > { %p8994_p7 = pnand %p9001_p0, %p17955_p3 }
 0xdae   : > { %10324 = dma.done.wait (!%p8994_p7), %s7615_s28, 512  }
 0xdaf   : > { %10326 = vsyncadd (!%p8994_p7), %s7615_s28, 4294966784  ;;  %s7624_s15 = scalar_lea.sflag [#allocation23], %s7614_s27 }
 0xdb0   : > { %10328 = dma.done.wait (!%p8994_p7), %s7624_s15, 256  }
 0xdb1   : > { %10330 = vsyncadd (!%p8994_p7), %s7624_s15, 4294967040  ;;  %s41_s24 = sadd.s32 1, %s10393_s24   ;;  %s17957_s14 = sld [smem:[#allocation32_spill]] }
 0xdb2   : > { %p15955_p8 = scmp.ge.s32.totalorder %s41_s24, 18   ;;  %s17958_s5 = sld [smem:[#allocation34_spill]] }
 0xdb3   : > { %s17959_s13 = sld [smem:[#allocation35_spill]]  ;;  %s17960_s15 = sld [smem:[#allocation36_spill]] }
 0xdb4   : > { %s17961_s18 = smov %s10782_s30  ;;  %s17962_s0 = sld [smem:[#allocation46_spill]] }
 0xdb5   : > { %s17963_s3 = sld [smem:[#allocation47_spill]]  ;;  %s17964_s9 = sld [smem:[#allocation51_spill]] }
 0xdb6   : > { %s17966_s10 = smov %s10341_s11  ;;  %s17967_s11 = smov %s10772_s12 }
 0xdb7   : > { %s17965_s30 = smov %s17957_s14  ;;  %s17969_s14 = smov %s17989_s8 }
 0xdb8   : > { %s17968_s12 = smov %s17958_s5  ;;  %s17970_s16 = smov %s10365_s17 }
 0xdb9   : > { %s17971_s17 = smov %s17961_s18  ;;  %s17972_s18 = smov %s10381_s21 }
 0xdba   : > { %s17973_s19 = smov %s10385_s22  ;;  %s17974_s20 = smov %s10389_s23 }
 0xdbb   : > { %s17975_s21 = smov %s17962_s0  ;;  %s17976_s22 = smov %s17963_s3 }
 0xdbc   : > { %s17977_s23 = smov %s17964_s9  ;;  %40 = sbr.rel (!%p15955_p8) target bundleno = 32 (0x20), region = 216 }
 0xdc3   :  { %7629 = vsyncpa [#allocation8], 1 }
 0xdc4   :  { %7631 = vsyncpa [#allocation8 + $0x1], 1 }
 0xdc5   :  { %7632 = vsyncpa [#allocation11], 1 }
 0xdc6   :  { %7634 = vsyncpa [#allocation11 + $0x1], 1 }
 0xdc7   :  { %7635 = vsyncpa [#allocation14], 1 }
 0xdc8   :  { %7637 = vsyncpa [#allocation14 + $0x1], 1 }
 0xdc9   :  { %7638 = vsyncpa [#allocation17], 1 }
 0xdca   :  { %7640 = vsyncpa [#allocation17 + $0x1], 1 }
 0xdcb   :  { %7641 = vsyncpa [#allocation20], 1 }
 0xdcc   :  { %7643 = vsyncpa [#allocation20 + $0x1], 1 }
 0xdcd   :  { %7644 = vsyncpa [#allocation9], 1 }
 0xdce   :  { %7646 = vsyncpa [#allocation9 + $0x1], 1 }
 0xdcf   :  { %7647 = vsyncpa [#allocation23], 1 }
 0xdd0   :  { %7649 = vsyncpa [#allocation23 + $0x1], 1 }

</bundles_post_ra>
